<compile_context>
chip_gen: v7x
topology: tpu7x:2x2x1
jax: 0.10.0
libtpu: 0.0.40
codegen_flags: <defaults>
</compile_context>

<pallas_src>
import jax
import jax.numpy as jnp
from jax.experimental import pallas as pl
from jax.experimental.pallas import tpu as pltpu

# ---- fixed geometry implied by the module (fc1 expects 64*7*7 -> 28x28 input)
K = 5                          # conv kernel size
C1, C2 = 32, 64                # conv1 / conv2 output channels
H0 = 28                        # input & conv1 output spatial
WP1 = 32                       # conv1 padded row stride (28 + 2*2)
XP1_LEN = 33 * WP1             # 1056: flattened padded conv1 input (+1 slack row)
S1_LEN = H0 * WP1              # 896:  conv1 output in strided-flat space
V1_LEN = S1_LEN - WP1 - 1      # 863:  after the two pooling shifts
H1P = 14                       # pool1 output / conv2 spatial
WP2 = 18                       # conv2 padded row stride (14 + 2*2)
XP2_LEN = 19 * WP2             # 342:  flattened padded conv2 input (+1 slack row)
S2_LEN = H1P * WP2             # 252:  conv2 output in strided-flat space
V2_LEN = S2_LEN - WP2 - 1      # 233
H2P = 7                        # pool2 output spatial
FEAT = C2 * H2P * H2P          # 3136
NPAD = 128                     # fc2 output padded to a lane-dense width


# ----------------------------------------------------------------------------
# Fused conv stage: conv1 + ReLU + pool + conv2 + ReLU + pool, one image/program.
# All activations are channel-major (Cout on sublanes, flat spatial on lanes).
# ----------------------------------------------------------------------------
def conv_stage_kernel(x_ref, w1_ref, b1_ref, s1_ref, w2_ref, b2_ref, s2_ref,
                      o_ref):
    # x_ref: (1, Cin, 1056) padded, row-major flattened input (row stride 32)
    xflat = x_ref[0]                                        # (Cin, 1056)

    # ---- conv1: im2col via 25 lane-offset slices + one MXU matmul (depth 25*Cin)
    taps = []
    for kh in range(K):
        for kw in range(K):
            off = kh * WP1 + kw
            taps.append(xflat[:, off:off + S1_LEN])         # (Cin, 896)
    p1 = jnp.concatenate(taps, axis=0)                      # (K*K*Cin, 896)
    y1 = jnp.dot(w1_ref[...], p1, preferred_element_type=jnp.float32)  # (32,896)
    y1 = jnp.maximum(y1 + b1_ref[...], 0.0)

    # ---- 2x2/2 max-pool in strided-flat space (row stride 32): two shifted maxes
    h1 = jnp.maximum(y1[:, :-1], y1[:, 1:])                 # (32, 895)
    v1 = jnp.maximum(h1[:, :-WP1], h1[:, WP1:])             # (32, 863)
    # gather pooled cells + zero-pad for conv2 via an exact 0/1 selection matmul
    xp2 = jnp.dot(v1, s1_ref[...], preferred_element_type=jnp.float32)  # (32,342)

    # ---- conv2: 25 shifted-tap matmuls (lane-offset slices, channel-major acc)
    acc = jnp.zeros((C2, S2_LEN), jnp.float32)              # (64, 252) ~16 vregs
    for kh in range(K):
        for kw in range(K):
            t = kh * K + kw
            off = kh * WP2 + kw
            acc = acc + jnp.dot(w2_ref[t], xp2[:, off:off + S2_LEN],
                                preferred_element_type=jnp.float32)
    y2 = jnp.maximum(acc + b2_ref[...], 0.0)                # (64, 252)

    # ---- 2x2/2 max-pool (row stride 18) + gather to (64, 49) via selection matmul
    h2 = jnp.maximum(y2[:, :-1], y2[:, 1:])                 # (64, 251)
    v2 = jnp.maximum(h2[:, :-WP2], h2[:, WP2:])             # (64, 233)
    o_ref[0] = jnp.dot(v2, s2_ref[...],
                       preferred_element_type=jnp.float32)  # (64, 49)


def conv_stage(x_nchw, pp):
    B, cin, h, w = x_nchw.shape
    assert h == H0 and w == H0, "module geometry requires 28x28 inputs"
    # Tiny host-side pad+flatten of the raw input (3 KB/image): H padded (2,3)
    # (one slack row for the strided-flat taps), W padded (2,2), row-major flat.
    xflat = jnp.pad(x_nchw, ((0, 0), (0, 0), (2, 3), (2, 2))).reshape(
        B, cin, XP1_LEN)
    return pl.pallas_call(
        conv_stage_kernel,
        out_shape=jax.ShapeDtypeStruct((B, C2, H2P * H2P), jnp.float32),
        grid=(B,),
        in_specs=[
            pl.BlockSpec((1, cin, XP1_LEN), lambda b: (b, 0, 0)),
            pl.BlockSpec(pp["w1m"].shape, lambda b: (0, 0)),
            pl.BlockSpec((C1, 1), lambda b: (0, 0)),
            pl.BlockSpec((V1_LEN, XP2_LEN), lambda b: (0, 0)),
            pl.BlockSpec((K * K, C2, C1), lambda b: (0, 0, 0)),
            pl.BlockSpec((C2, 1), lambda b: (0, 0)),
            pl.BlockSpec((V2_LEN, H2P * H2P), lambda b: (0, 0)),
        ],
        out_specs=pl.BlockSpec((1, C2, H2P * H2P), lambda b: (b, 0, 0)),
        compiler_params=pltpu.CompilerParams(
            dimension_semantics=("parallel",)),      # v7x: shard batch over TCs
    )(xflat, pp["w1m"], pp["b1m"], pp["s1"], pp["w2m"], pp["b2m"], pp["s2"])


# ----------------------------------------------------------------------------
# Fused FC stage: (x @ Wfc1 + b1).relu() @ Wfc2 + b2, tiled over FC1's output
# axis (= FC2's contraction axis). Wfc1 is bf16; the FC2 partial products are
# accumulated in f32 directly in the resident output block (its block index is
# constant over the reduction grid axis, so it stays in VMEM until the end).
# ----------------------------------------------------------------------------
def fc_fused_kernel(x_ref, w1_ref, b1_ref, w2_ref, b2_ref, o_ref):
    @pl.when(pl.program_id(0) == 0)
    def _():
        # Initialize the resident output block with the fc2 bias (broadcast).
        o_ref[...] = jnp.zeros_like(o_ref) + b2_ref[...]

    h = jnp.dot(x_ref[...].astype(jnp.bfloat16), w1_ref[...],
                preferred_element_type=jnp.float32)          # (B, k_tile)
    h = jnp.maximum(h + b1_ref[...], 0.0)
    o_ref[...] += jnp.dot(h, w2_ref[...],
                          preferred_element_type=jnp.float32)


def fc_stage(feat, pp, *, k_tile=512):
    B = feat.shape[0]
    hidden = pp["wfc1bf16"].shape[1]
    assert hidden % k_tile == 0
    return pl.pallas_call(
        fc_fused_kernel,
        out_shape=jax.ShapeDtypeStruct((B, NPAD), jnp.float32),
        grid=(hidden // k_tile,),
        in_specs=[
            pl.BlockSpec((B, FEAT), lambda j: (0, 0)),
            pl.BlockSpec((FEAT, k_tile), lambda j: (0, j)),
            pl.BlockSpec((1, k_tile), lambda j: (0, j)),
            pl.BlockSpec((k_tile, NPAD), lambda j: (j, 0)),
            pl.BlockSpec((1, NPAD), lambda j: (0, 0)),
        ],
        out_specs=pl.BlockSpec((B, NPAD), lambda j: (0, 0)),
        compiler_params=pltpu.CompilerParams(
            dimension_semantics=("arbitrary",)),     # carried FC2 accumulator
    )(feat, pp["wfc1bf16"], pp["bfc1m"], pp["wfc2p"], pp["bfc2p"])


# ----------------------------------------------------------------------------
# Forward pass + parameter preparation (done once, outside the hot path).
# ----------------------------------------------------------------------------
def cnn_forward(x_nchw, pp, num_classes=62):
    B = x_nchw.shape[0]
    feat = conv_stage(x_nchw, pp)            # (B, 64, 49) channel-major
    feat = feat.reshape(B, FEAT)             # == torch NCHW flatten order
    logits = fc_stage(feat, pp)              # (B, 128), lane-dense
    return logits[:, :num_classes]


def prepare_params(params, num_classes=62):
    w1, w2 = params["w1"], params["w2"]              # HWIO
    cin = w1.shape[2]
    # selection matmul: pool1 cells (strided-flat, stride 32) -> padded conv2
    # input (strided-flat, stride 18), zero rows provide the 'same' padding.
    ii, jj = jnp.meshgrid(jnp.arange(H1P), jnp.arange(H1P), indexing="ij")
    s1 = jnp.zeros((V1_LEN, XP2_LEN), jnp.float32).at[
        (2 * ii * WP1 + 2 * jj).ravel(),
        ((ii + 2) * WP2 + (jj + 2)).ravel()].set(1.0)
    # selection matmul: pool2 cells -> dense 7*7 features (torch h*7+w order)
    ii, jj = jnp.meshgrid(jnp.arange(H2P), jnp.arange(H2P), indexing="ij")
    s2 = jnp.zeros((V2_LEN, H2P * H2P), jnp.float32).at[
        (2 * ii * WP2 + 2 * jj).ravel(),
        (ii * H2P + jj).ravel()].set(1.0)
    # fc2 zero-padded to 128 output lanes (unmasked full-lane stores)
    wfc2p = jnp.zeros((params["wfc2"].shape[0], NPAD), jnp.float32
                      ).at[:, :num_classes].set(params["wfc2"])
    bfc2p = jnp.zeros((1, NPAD), jnp.float32).at[0, :num_classes].set(
        params["bfc2"])
    return {
        "w1m": w1.reshape(K * K * cin, C1).T,                    # (32, 25*cin)
        "b1m": params["b1"].reshape(C1, 1),
        "w2m": jnp.transpose(w2, (0, 1, 3, 2)).reshape(K * K, C2, C1),
        "b2m": params["b2"].reshape(C2, 1),
        "s1": s1, "s2": s2,
        "wfc1bf16": params["wfc1"].astype(jnp.bfloat16),         # HBM-bound layer
        "bfc1m": params["bfc1"].reshape(1, -1),
        "wfc2p": wfc2p, "bfc2p": bfc2p,
    }


# Pure-JAX reference (NCHW, same math; fc1 weights rounded through bf16 so the
# check isolates kernel correctness from the intended weight quantization).
def cnn_reference(x_nchw, params):
    hp = jax.lax.Precision.HIGHEST

    def conv_block(x, w_hwio, b):
        w_oihw = jnp.transpose(w_hwio, (3, 2, 0, 1))
        y = jax.lax.conv_general_dilated(
            x, w_oihw, window_strides=(1, 1), padding=((2, 2), (2, 2)),
            dimension_numbers=("NCHW", "OIHW", "NCHW"), precision=hp)
        y = jnp.maximum(y + b.reshape(1, -1, 1, 1), 0.0)
        return jax.lax.reduce_window(y, -jnp.inf, jax.lax.max,
                                     (1, 1, 2, 2), (1, 1, 2, 2), "VALID")

    out = conv_block(x_nchw, params["w1"], params["b1"])
    out = conv_block(out, params["w2"], params["b2"])
    out = out.reshape(out.shape[0], -1)
    wfc1 = params["wfc1"].astype(jnp.bfloat16).astype(jnp.float32)
    out = jnp.maximum(jnp.dot(out, wfc1, precision=hp) + params["bfc1"], 0.0)
    return jnp.dot(out, params["wfc2"], precision=hp) + params["bfc2"]


def init_params(key, in_channels=1, num_classes=62):
    ks = jax.random.split(key, 8)

    def u(k, shape, fan_in):
        bound = 1.0 / jnp.sqrt(jnp.float32(fan_in))
        return jax.random.uniform(k, shape, jnp.float32, -bound, bound)

    return {
        "w1": u(ks[0], (K, K, in_channels, C1), K * K * in_channels),
        "b1": u(ks[1], (C1,), K * K * in_channels),
        "w2": u(ks[2], (K, K, C1, C2), K * K * C1),
        "b2": u(ks[3], (C2,), K * K * C1),
        "wfc1": u(ks[4], (FEAT, 2048), FEAT),
        "bfc1": u(ks[5], (2048,), FEAT),
        "wfc2": u(ks[6], (2048, num_classes), 2048),
        "bfc2": u(ks[7], (num_classes,), 2048),
    }


if __name__ == "__main__":
    key = jax.random.PRNGKey(0)
    kx, kp = jax.random.split(key)
    # fc1 expects 64*7*7 features => 28x28 input with 1 channel (FEMNIST-style).
    x = jax.random.normal(kx, (2, 1, 28, 28), dtype=jnp.float32)
    params = init_params(kp, in_channels=1, num_classes=62)
    pp = prepare_params(params, num_classes=62)

    logits = jax.jit(cnn_forward)(x, pp)
    logits = jax.block_until_ready(logits)
    assert logits.shape == (2, 62) and logits.dtype == jnp.float32

    ref = jax.block_until_ready(cnn_reference(x, params))
    assert jnp.allclose(logits, ref, rtol=2e-2, atol=2e-2), "mismatch vs reference"

    print("KERNEL_OK")
</pallas_src>

<mosaic_0001>
module attributes {stable_mosaic.version = 11 : i64} {
  func.func @conv_stage_kernel(%arg0: i32, %arg1: memref<1x1x1056xf32, #tpu.memory_space<vmem>>, %arg2: memref<32x25xf32, #tpu.memory_space<vmem>>, %arg3: memref<32x1xf32, #tpu.memory_space<vmem>>, %arg4: memref<863x342xf32, #tpu.memory_space<vmem>>, %arg5: memref<25x64x32xf32, #tpu.memory_space<vmem>>, %arg6: memref<64x1xf32, #tpu.memory_space<vmem>>, %arg7: memref<233x49xf32, #tpu.memory_space<vmem>>, %arg8: memref<1x64x49xf32, #tpu.memory_space<vmem>>) attributes {dimension_semantics = [#tpu.dimension_semantics<parallel>], iteration_bounds = array<i64: 2>, scalar_prefetch = 0 : i64, scratch_operands = 0 : i64, tpu.core_type = #tpu.core_type<tc>, window_params = [{transform_indices = @transform_0, window_bounds = array<i64: 1, 1, 1056>}, {pipeline_mode = #tpu.pipeline_mode<synchronous>, transform_indices = @transform_1, window_bounds = array<i64: 32, 25>}, {pipeline_mode = #tpu.pipeline_mode<synchronous>, transform_indices = @transform_2, window_bounds = array<i64: 32, 1>}, {pipeline_mode = #tpu.pipeline_mode<synchronous>, transform_indices = @transform_3, window_bounds = array<i64: 863, 342>}, {pipeline_mode = #tpu.pipeline_mode<synchronous>, transform_indices = @transform_4, window_bounds = array<i64: 25, 64, 32>}, {pipeline_mode = #tpu.pipeline_mode<synchronous>, transform_indices = @transform_5, window_bounds = array<i64: 64, 1>}, {pipeline_mode = #tpu.pipeline_mode<synchronous>, transform_indices = @transform_6, window_bounds = array<i64: 233, 49>}, {transform_indices = @transform_7, window_bounds = array<i64: 1, 64, 49>}]} {
    %c0 = arith.constant 0 : index
    %c0_0 = arith.constant 0 : index
    %c0_1 = arith.constant 0 : index
    %0 = vector.load %arg1[%c0, %c0_0, %c0_1] : memref<1x1x1056xf32, #tpu.memory_space<vmem>>, vector<1x1x1056xf32>
    %1 = vector.shape_cast %0 : vector<1x1x1056xf32> to vector<1x1056xf32>
    %2 = vector.extract_strided_slice %1 {offsets = [0, 0], sizes = [1, 896], strides = [1, 1]} : vector<1x1056xf32> to vector<1x896xf32>
    %3 = vector.extract_strided_slice %1 {offsets = [0, 1], sizes = [1, 896], strides = [1, 1]} : vector<1x1056xf32> to vector<1x896xf32>
    %4 = vector.extract_strided_slice %1 {offsets = [0, 2], sizes = [1, 896], strides = [1, 1]} : vector<1x1056xf32> to vector<1x896xf32>
    %5 = vector.extract_strided_slice %1 {offsets = [0, 3], sizes = [1, 896], strides = [1, 1]} : vector<1x1056xf32> to vector<1x896xf32>
    %6 = vector.extract_strided_slice %1 {offsets = [0, 4], sizes = [1, 896], strides = [1, 1]} : vector<1x1056xf32> to vector<1x896xf32>
    %7 = vector.extract_strided_slice %1 {offsets = [0, 32], sizes = [1, 896], strides = [1, 1]} : vector<1x1056xf32> to vector<1x896xf32>
    %8 = vector.extract_strided_slice %1 {offsets = [0, 33], sizes = [1, 896], strides = [1, 1]} : vector<1x1056xf32> to vector<1x896xf32>
    %9 = vector.extract_strided_slice %1 {offsets = [0, 34], sizes = [1, 896], strides = [1, 1]} : vector<1x1056xf32> to vector<1x896xf32>
    %10 = vector.extract_strided_slice %1 {offsets = [0, 35], sizes = [1, 896], strides = [1, 1]} : vector<1x1056xf32> to vector<1x896xf32>
    %11 = vector.extract_strided_slice %1 {offsets = [0, 36], sizes = [1, 896], strides = [1, 1]} : vector<1x1056xf32> to vector<1x896xf32>
    %12 = vector.extract_strided_slice %1 {offsets = [0, 64], sizes = [1, 896], strides = [1, 1]} : vector<1x1056xf32> to vector<1x896xf32>
    %13 = vector.extract_strided_slice %1 {offsets = [0, 65], sizes = [1, 896], strides = [1, 1]} : vector<1x1056xf32> to vector<1x896xf32>
    %14 = vector.extract_strided_slice %1 {offsets = [0, 66], sizes = [1, 896], strides = [1, 1]} : vector<1x1056xf32> to vector<1x896xf32>
    %15 = vector.extract_strided_slice %1 {offsets = [0, 67], sizes = [1, 896], strides = [1, 1]} : vector<1x1056xf32> to vector<1x896xf32>
    %16 = vector.extract_strided_slice %1 {offsets = [0, 68], sizes = [1, 896], strides = [1, 1]} : vector<1x1056xf32> to vector<1x896xf32>
    %17 = vector.extract_strided_slice %1 {offsets = [0, 96], sizes = [1, 896], strides = [1, 1]} : vector<1x1056xf32> to vector<1x896xf32>
    %18 = vector.extract_strided_slice %1 {offsets = [0, 97], sizes = [1, 896], strides = [1, 1]} : vector<1x1056xf32> to vector<1x896xf32>
    %19 = vector.extract_strided_slice %1 {offsets = [0, 98], sizes = [1, 896], strides = [1, 1]} : vector<1x1056xf32> to vector<1x896xf32>
    %20 = vector.extract_strided_slice %1 {offsets = [0, 99], sizes = [1, 896], strides = [1, 1]} : vector<1x1056xf32> to vector<1x896xf32>
    %21 = vector.extract_strided_slice %1 {offsets = [0, 100], sizes = [1, 896], strides = [1, 1]} : vector<1x1056xf32> to vector<1x896xf32>
    %22 = vector.extract_strided_slice %1 {offsets = [0, 128], sizes = [1, 896], strides = [1, 1]} : vector<1x1056xf32> to vector<1x896xf32>
    %23 = vector.extract_strided_slice %1 {offsets = [0, 129], sizes = [1, 896], strides = [1, 1]} : vector<1x1056xf32> to vector<1x896xf32>
    %24 = vector.extract_strided_slice %1 {offsets = [0, 130], sizes = [1, 896], strides = [1, 1]} : vector<1x1056xf32> to vector<1x896xf32>
    %25 = vector.extract_strided_slice %1 {offsets = [0, 131], sizes = [1, 896], strides = [1, 1]} : vector<1x1056xf32> to vector<1x896xf32>
    %26 = vector.extract_strided_slice %1 {offsets = [0, 132], sizes = [1, 896], strides = [1, 1]} : vector<1x1056xf32> to vector<1x896xf32>
    %27 = tpu.concatenate %2, %3, %4, %5, %6, %7, %8, %9, %10, %11, %12, %13, %14, %15, %16, %17 in 0 : vector<1x896xf32>, vector<1x896xf32>, vector<1x896xf32>, vector<1x896xf32>, vector<1x896xf32>, vector<1x896xf32>, vector<1x896xf32>, vector<1x896xf32>, vector<1x896xf32>, vector<1x896xf32>, vector<1x896xf32>, vector<1x896xf32>, vector<1x896xf32>, vector<1x896xf32>, vector<1x896xf32>, vector<1x896xf32> -> vector<16x896xf32>
    %28 = tpu.concatenate %18, %19, %20, %21, %22, %23, %24, %25, %26 in 0 : vector<1x896xf32>, vector<1x896xf32>, vector<1x896xf32>, vector<1x896xf32>, vector<1x896xf32>, vector<1x896xf32>, vector<1x896xf32>, vector<1x896xf32>, vector<1x896xf32> -> vector<9x896xf32>
    %29 = tpu.concatenate %27, %28 in 0 : vector<16x896xf32>, vector<9x896xf32> -> vector<25x896xf32>
    %c0_2 = arith.constant 0 : index
    %c0_3 = arith.constant 0 : index
    %30 = vector.load %arg2[%c0_2, %c0_3] : memref<32x25xf32, #tpu.memory_space<vmem>>, vector<32x25xf32>
    %cst = arith.constant dense<0.000000e+00> : vector<32x896xf32>
    %31 = tpu.matmul %30, %29, %cst {dimension_numbers = #tpu.dot_dimension_numbers<[1], [0], [0], [1], [0, 0, 1, 1], [], []>} : vector<32x25xf32>, vector<25x896xf32>, vector<32x896xf32> -> vector<32x896xf32>
    %c0_4 = arith.constant 0 : index
    %c0_5 = arith.constant 0 : index
    %32 = vector.load %arg3[%c0_4, %c0_5] : memref<32x1xf32, #tpu.memory_space<vmem>>, vector<32x1xf32>
    %33 = vector.broadcast %32 : vector<32x1xf32> to vector<32x896xf32>
    %34 = arith.addf %31, %33 : vector<32x896xf32>
    %cst_6 = arith.constant 0.000000e+00 : f32
    %35 = vector.broadcast %cst_6 : f32 to vector<32x896xf32>
    %36 = arith.maximumf %34, %35 : vector<32x896xf32>
    %37 = vector.extract_strided_slice %36 {offsets = [0, 0], sizes = [32, 895], strides = [1, 1]} : vector<32x896xf32> to vector<32x895xf32>
    %38 = vector.extract_strided_slice %36 {offsets = [0, 1], sizes = [32, 895], strides = [1, 1]} : vector<32x896xf32> to vector<32x895xf32>
    %39 = arith.maximumf %37, %38 : vector<32x895xf32>
    %40 = vector.extract_strided_slice %39 {offsets = [0, 0], sizes = [32, 863], strides = [1, 1]} : vector<32x895xf32> to vector<32x863xf32>
    %41 = vector.extract_strided_slice %39 {offsets = [0, 32], sizes = [32, 863], strides = [1, 1]} : vector<32x895xf32> to vector<32x863xf32>
    %42 = arith.maximumf %40, %41 : vector<32x863xf32>
    %c0_7 = arith.constant 0 : index
    %c0_8 = arith.constant 0 : index
    %43 = vector.load %arg4[%c0_7, %c0_8] : memref<863x342xf32, #tpu.memory_space<vmem>>, vector<863x342xf32>
    %cst_9 = arith.constant dense<0.000000e+00> : vector<32x342xf32>
    %44 = tpu.matmul %42, %43, %cst_9 {dimension_numbers = #tpu.dot_dimension_numbers<[1], [0], [0], [1], [0, 0, 1, 1], [], []>} : vector<32x863xf32>, vector<863x342xf32>, vector<32x342xf32> -> vector<32x342xf32>
    %cst_10 = arith.constant 0.000000e+00 : f32
    %45 = vector.broadcast %cst_10 : f32 to vector<64x252xf32>
    %c0_11 = arith.constant 0 : index
    %c0_12 = arith.constant 0 : index
    %c0_13 = arith.constant 0 : index
    %46 = vector.load %arg5[%c0_11, %c0_12, %c0_13] : memref<25x64x32xf32, #tpu.memory_space<vmem>>, vector<1x64x32xf32>
    %47 = vector.shape_cast %46 : vector<1x64x32xf32> to vector<64x32xf32>
    %48 = vector.extract_strided_slice %44 {offsets = [0, 0], sizes = [32, 252], strides = [1, 1]} : vector<32x342xf32> to vector<32x252xf32>
    %cst_14 = arith.constant dense<0.000000e+00> : vector<64x252xf32>
    %49 = tpu.matmul %47, %48, %cst_14 {dimension_numbers = #tpu.dot_dimension_numbers<[1], [0], [0], [1], [0, 0, 1, 1], [], []>} : vector<64x32xf32>, vector<32x252xf32>, vector<64x252xf32> -> vector<64x252xf32>
    %50 = arith.addf %45, %49 : vector<64x252xf32>
    %c1 = arith.constant 1 : index
    %c0_15 = arith.constant 0 : index
    %c0_16 = arith.constant 0 : index
    %51 = vector.load %arg5[%c1, %c0_15, %c0_16] : memref<25x64x32xf32, #tpu.memory_space<vmem>>, vector<1x64x32xf32>
    %52 = vector.shape_cast %51 : vector<1x64x32xf32> to vector<64x32xf32>
    %53 = vector.extract_strided_slice %44 {offsets = [0, 1], sizes = [32, 252], strides = [1, 1]} : vector<32x342xf32> to vector<32x252xf32>
    %cst_17 = arith.constant dense<0.000000e+00> : vector<64x252xf32>
    %54 = tpu.matmul %52, %53, %cst_17 {dimension_numbers = #tpu.dot_dimension_numbers<[1], [0], [0], [1], [0, 0, 1, 1], [], []>} : vector<64x32xf32>, vector<32x252xf32>, vector<64x252xf32> -> vector<64x252xf32>
    %55 = arith.addf %50, %54 : vector<64x252xf32>
    %c2 = arith.constant 2 : index
    %c0_18 = arith.constant 0 : index
    %c0_19 = arith.constant 0 : index
    %56 = vector.load %arg5[%c2, %c0_18, %c0_19] : memref<25x64x32xf32, #tpu.memory_space<vmem>>, vector<1x64x32xf32>
    %57 = vector.shape_cast %56 : vector<1x64x32xf32> to vector<64x32xf32>
    %58 = vector.extract_strided_slice %44 {offsets = [0, 2], sizes = [32, 252], strides = [1, 1]} : vector<32x342xf32> to vector<32x252xf32>
    %cst_20 = arith.constant dense<0.000000e+00> : vector<64x252xf32>
    %59 = tpu.matmul %57, %58, %cst_20 {dimension_numbers = #tpu.dot_dimension_numbers<[1], [0], [0], [1], [0, 0, 1, 1], [], []>} : vector<64x32xf32>, vector<32x252xf32>, vector<64x252xf32> -> vector<64x252xf32>
    %60 = arith.addf %55, %59 : vector<64x252xf32>
    %c3 = arith.constant 3 : index
    %c0_21 = arith.constant 0 : index
    %c0_22 = arith.constant 0 : index
    %61 = vector.load %arg5[%c3, %c0_21, %c0_22] : memref<25x64x32xf32, #tpu.memory_space<vmem>>, vector<1x64x32xf32>
    %62 = vector.shape_cast %61 : vector<1x64x32xf32> to vector<64x32xf32>
    %63 = vector.extract_strided_slice %44 {offsets = [0, 3], sizes = [32, 252], strides = [1, 1]} : vector<32x342xf32> to vector<32x252xf32>
    %cst_23 = arith.constant dense<0.000000e+00> : vector<64x252xf32>
    %64 = tpu.matmul %62, %63, %cst_23 {dimension_numbers = #tpu.dot_dimension_numbers<[1], [0], [0], [1], [0, 0, 1, 1], [], []>} : vector<64x32xf32>, vector<32x252xf32>, vector<64x252xf32> -> vector<64x252xf32>
    %65 = arith.addf %60, %64 : vector<64x252xf32>
    %c4 = arith.constant 4 : index
    %c0_24 = arith.constant 0 : index
    %c0_25 = arith.constant 0 : index
    %66 = vector.load %arg5[%c4, %c0_24, %c0_25] : memref<25x64x32xf32, #tpu.memory_space<vmem>>, vector<1x64x32xf32>
    %67 = vector.shape_cast %66 : vector<1x64x32xf32> to vector<64x32xf32>
    %68 = vector.extract_strided_slice %44 {offsets = [0, 4], sizes = [32, 252], strides = [1, 1]} : vector<32x342xf32> to vector<32x252xf32>
    %cst_26 = arith.constant dense<0.000000e+00> : vector<64x252xf32>
    %69 = tpu.matmul %67, %68, %cst_26 {dimension_numbers = #tpu.dot_dimension_numbers<[1], [0], [0], [1], [0, 0, 1, 1], [], []>} : vector<64x32xf32>, vector<32x252xf32>, vector<64x252xf32> -> vector<64x252xf32>
    %70 = arith.addf %65, %69 : vector<64x252xf32>
    %c5 = arith.constant 5 : index
    %c0_27 = arith.constant 0 : index
    %c0_28 = arith.constant 0 : index
    %71 = vector.load %arg5[%c5, %c0_27, %c0_28] : memref<25x64x32xf32, #tpu.memory_space<vmem>>, vector<1x64x32xf32>
    %72 = vector.shape_cast %71 : vector<1x64x32xf32> to vector<64x32xf32>
    %73 = vector.extract_strided_slice %44 {offsets = [0, 18], sizes = [32, 252], strides = [1, 1]} : vector<32x342xf32> to vector<32x252xf32>
    %cst_29 = arith.constant dense<0.000000e+00> : vector<64x252xf32>
    %74 = tpu.matmul %72, %73, %cst_29 {dimension_numbers = #tpu.dot_dimension_numbers<[1], [0], [0], [1], [0, 0, 1, 1], [], []>} : vector<64x32xf32>, vector<32x252xf32>, vector<64x252xf32> -> vector<64x252xf32>
    %75 = arith.addf %70, %74 : vector<64x252xf32>
    %c6 = arith.constant 6 : index
    %c0_30 = arith.constant 0 : index
    %c0_31 = arith.constant 0 : index
    %76 = vector.load %arg5[%c6, %c0_30, %c0_31] : memref<25x64x32xf32, #tpu.memory_space<vmem>>, vector<1x64x32xf32>
    %77 = vector.shape_cast %76 : vector<1x64x32xf32> to vector<64x32xf32>
    %78 = vector.extract_strided_slice %44 {offsets = [0, 19], sizes = [32, 252], strides = [1, 1]} : vector<32x342xf32> to vector<32x252xf32>
    %cst_32 = arith.constant dense<0.000000e+00> : vector<64x252xf32>
    %79 = tpu.matmul %77, %78, %cst_32 {dimension_numbers = #tpu.dot_dimension_numbers<[1], [0], [0], [1], [0, 0, 1, 1], [], []>} : vector<64x32xf32>, vector<32x252xf32>, vector<64x252xf32> -> vector<64x252xf32>
    %80 = arith.addf %75, %79 : vector<64x252xf32>
    %c7 = arith.constant 7 : index
    %c0_33 = arith.constant 0 : index
    %c0_34 = arith.constant 0 : index
    %81 = vector.load %arg5[%c7, %c0_33, %c0_34] : memref<25x64x32xf32, #tpu.memory_space<vmem>>, vector<1x64x32xf32>
    %82 = vector.shape_cast %81 : vector<1x64x32xf32> to vector<64x32xf32>
    %83 = vector.extract_strided_slice %44 {offsets = [0, 20], sizes = [32, 252], strides = [1, 1]} : vector<32x342xf32> to vector<32x252xf32>
    %cst_35 = arith.constant dense<0.000000e+00> : vector<64x252xf32>
    %84 = tpu.matmul %82, %83, %cst_35 {dimension_numbers = #tpu.dot_dimension_numbers<[1], [0], [0], [1], [0, 0, 1, 1], [], []>} : vector<64x32xf32>, vector<32x252xf32>, vector<64x252xf32> -> vector<64x252xf32>
    %85 = arith.addf %80, %84 : vector<64x252xf32>
    %c8 = arith.constant 8 : index
    %c0_36 = arith.constant 0 : index
    %c0_37 = arith.constant 0 : index
    %86 = vector.load %arg5[%c8, %c0_36, %c0_37] : memref<25x64x32xf32, #tpu.memory_space<vmem>>, vector<1x64x32xf32>
    %87 = vector.shape_cast %86 : vector<1x64x32xf32> to vector<64x32xf32>
    %88 = vector.extract_strided_slice %44 {offsets = [0, 21], sizes = [32, 252], strides = [1, 1]} : vector<32x342xf32> to vector<32x252xf32>
    %cst_38 = arith.constant dense<0.000000e+00> : vector<64x252xf32>
    %89 = tpu.matmul %87, %88, %cst_38 {dimension_numbers = #tpu.dot_dimension_numbers<[1], [0], [0], [1], [0, 0, 1, 1], [], []>} : vector<64x32xf32>, vector<32x252xf32>, vector<64x252xf32> -> vector<64x252xf32>
    %90 = arith.addf %85, %89 : vector<64x252xf32>
    %c9 = arith.constant 9 : index
    %c0_39 = arith.constant 0 : index
    %c0_40 = arith.constant 0 : index
    %91 = vector.load %arg5[%c9, %c0_39, %c0_40] : memref<25x64x32xf32, #tpu.memory_space<vmem>>, vector<1x64x32xf32>
    %92 = vector.shape_cast %91 : vector<1x64x32xf32> to vector<64x32xf32>
    %93 = vector.extract_strided_slice %44 {offsets = [0, 22], sizes = [32, 252], strides = [1, 1]} : vector<32x342xf32> to vector<32x252xf32>
    %cst_41 = arith.constant dense<0.000000e+00> : vector<64x252xf32>
    %94 = tpu.matmul %92, %93, %cst_41 {dimension_numbers = #tpu.dot_dimension_numbers<[1], [0], [0], [1], [0, 0, 1, 1], [], []>} : vector<64x32xf32>, vector<32x252xf32>, vector<64x252xf32> -> vector<64x252xf32>
    %95 = arith.addf %90, %94 : vector<64x252xf32>
    %c10 = arith.constant 10 : index
    %c0_42 = arith.constant 0 : index
    %c0_43 = arith.constant 0 : index
    %96 = vector.load %arg5[%c10, %c0_42, %c0_43] : memref<25x64x32xf32, #tpu.memory_space<vmem>>, vector<1x64x32xf32>
    %97 = vector.shape_cast %96 : vector<1x64x32xf32> to vector<64x32xf32>
    %98 = vector.extract_strided_slice %44 {offsets = [0, 36], sizes = [32, 252], strides = [1, 1]} : vector<32x342xf32> to vector<32x252xf32>
    %cst_44 = arith.constant dense<0.000000e+00> : vector<64x252xf32>
    %99 = tpu.matmul %97, %98, %cst_44 {dimension_numbers = #tpu.dot_dimension_numbers<[1], [0], [0], [1], [0, 0, 1, 1], [], []>} : vector<64x32xf32>, vector<32x252xf32>, vector<64x252xf32> -> vector<64x252xf32>
    %100 = arith.addf %95, %99 : vector<64x252xf32>
    %c11 = arith.constant 11 : index
    %c0_45 = arith.constant 0 : index
    %c0_46 = arith.constant 0 : index
    %101 = vector.load %arg5[%c11, %c0_45, %c0_46] : memref<25x64x32xf32, #tpu.memory_space<vmem>>, vector<1x64x32xf32>
    %102 = vector.shape_cast %101 : vector<1x64x32xf32> to vector<64x32xf32>
    %103 = vector.extract_strided_slice %44 {offsets = [0, 37], sizes = [32, 252], strides = [1, 1]} : vector<32x342xf32> to vector<32x252xf32>
    %cst_47 = arith.constant dense<0.000000e+00> : vector<64x252xf32>
    %104 = tpu.matmul %102, %103, %cst_47 {dimension_numbers = #tpu.dot_dimension_numbers<[1], [0], [0], [1], [0, 0, 1, 1], [], []>} : vector<64x32xf32>, vector<32x252xf32>, vector<64x252xf32> -> vector<64x252xf32>
    %105 = arith.addf %100, %104 : vector<64x252xf32>
    %c12 = arith.constant 12 : index
    %c0_48 = arith.constant 0 : index
    %c0_49 = arith.constant 0 : index
    %106 = vector.load %arg5[%c12, %c0_48, %c0_49] : memref<25x64x32xf32, #tpu.memory_space<vmem>>, vector<1x64x32xf32>
    %107 = vector.shape_cast %106 : vector<1x64x32xf32> to vector<64x32xf32>
    %108 = vector.extract_strided_slice %44 {offsets = [0, 38], sizes = [32, 252], strides = [1, 1]} : vector<32x342xf32> to vector<32x252xf32>
    %cst_50 = arith.constant dense<0.000000e+00> : vector<64x252xf32>
    %109 = tpu.matmul %107, %108, %cst_50 {dimension_numbers = #tpu.dot_dimension_numbers<[1], [0], [0], [1], [0, 0, 1, 1], [], []>} : vector<64x32xf32>, vector<32x252xf32>, vector<64x252xf32> -> vector<64x252xf32>
    %110 = arith.addf %105, %109 : vector<64x252xf32>
    %c13 = arith.constant 13 : index
    %c0_51 = arith.constant 0 : index
    %c0_52 = arith.constant 0 : index
    %111 = vector.load %arg5[%c13, %c0_51, %c0_52] : memref<25x64x32xf32, #tpu.memory_space<vmem>>, vector<1x64x32xf32>
    %112 = vector.shape_cast %111 : vector<1x64x32xf32> to vector<64x32xf32>
    %113 = vector.extract_strided_slice %44 {offsets = [0, 39], sizes = [32, 252], strides = [1, 1]} : vector<32x342xf32> to vector<32x252xf32>
    %cst_53 = arith.constant dense<0.000000e+00> : vector<64x252xf32>
    %114 = tpu.matmul %112, %113, %cst_53 {dimension_numbers = #tpu.dot_dimension_numbers<[1], [0], [0], [1], [0, 0, 1, 1], [], []>} : vector<64x32xf32>, vector<32x252xf32>, vector<64x252xf32> -> vector<64x252xf32>
    %115 = arith.addf %110, %114 : vector<64x252xf32>
    %c14 = arith.constant 14 : index
    %c0_54 = arith.constant 0 : index
    %c0_55 = arith.constant 0 : index
    %116 = vector.load %arg5[%c14, %c0_54, %c0_55] : memref<25x64x32xf32, #tpu.memory_space<vmem>>, vector<1x64x32xf32>
    %117 = vector.shape_cast %116 : vector<1x64x32xf32> to vector<64x32xf32>
    %118 = vector.extract_strided_slice %44 {offsets = [0, 40], sizes = [32, 252], strides = [1, 1]} : vector<32x342xf32> to vector<32x252xf32>
    %cst_56 = arith.constant dense<0.000000e+00> : vector<64x252xf32>
    %119 = tpu.matmul %117, %118, %cst_56 {dimension_numbers = #tpu.dot_dimension_numbers<[1], [0], [0], [1], [0, 0, 1, 1], [], []>} : vector<64x32xf32>, vector<32x252xf32>, vector<64x252xf32> -> vector<64x252xf32>
    %120 = arith.addf %115, %119 : vector<64x252xf32>
    %c15 = arith.constant 15 : index
    %c0_57 = arith.constant 0 : index
    %c0_58 = arith.constant 0 : index
    %121 = vector.load %arg5[%c15, %c0_57, %c0_58] : memref<25x64x32xf32, #tpu.memory_space<vmem>>, vector<1x64x32xf32>
    %122 = vector.shape_cast %121 : vector<1x64x32xf32> to vector<64x32xf32>
    %123 = vector.extract_strided_slice %44 {offsets = [0, 54], sizes = [32, 252], strides = [1, 1]} : vector<32x342xf32> to vector<32x252xf32>
    %cst_59 = arith.constant dense<0.000000e+00> : vector<64x252xf32>
    %124 = tpu.matmul %122, %123, %cst_59 {dimension_numbers = #tpu.dot_dimension_numbers<[1], [0], [0], [1], [0, 0, 1, 1], [], []>} : vector<64x32xf32>, vector<32x252xf32>, vector<64x252xf32> -> vector<64x252xf32>
    %125 = arith.addf %120, %124 : vector<64x252xf32>
    %c16 = arith.constant 16 : index
    %c0_60 = arith.constant 0 : index
    %c0_61 = arith.constant 0 : index
    %126 = vector.load %arg5[%c16, %c0_60, %c0_61] : memref<25x64x32xf32, #tpu.memory_space<vmem>>, vector<1x64x32xf32>
    %127 = vector.shape_cast %126 : vector<1x64x32xf32> to vector<64x32xf32>
    %128 = vector.extract_strided_slice %44 {offsets = [0, 55], sizes = [32, 252], strides = [1, 1]} : vector<32x342xf32> to vector<32x252xf32>
    %cst_62 = arith.constant dense<0.000000e+00> : vector<64x252xf32>
    %129 = tpu.matmul %127, %128, %cst_62 {dimension_numbers = #tpu.dot_dimension_numbers<[1], [0], [0], [1], [0, 0, 1, 1], [], []>} : vector<64x32xf32>, vector<32x252xf32>, vector<64x252xf32> -> vector<64x252xf32>
    %130 = arith.addf %125, %129 : vector<64x252xf32>
    %c17 = arith.constant 17 : index
    %c0_63 = arith.constant 0 : index
    %c0_64 = arith.constant 0 : index
    %131 = vector.load %arg5[%c17, %c0_63, %c0_64] : memref<25x64x32xf32, #tpu.memory_space<vmem>>, vector<1x64x32xf32>
    %132 = vector.shape_cast %131 : vector<1x64x32xf32> to vector<64x32xf32>
    %133 = vector.extract_strided_slice %44 {offsets = [0, 56], sizes = [32, 252], strides = [1, 1]} : vector<32x342xf32> to vector<32x252xf32>
    %cst_65 = arith.constant dense<0.000000e+00> : vector<64x252xf32>
    %134 = tpu.matmul %132, %133, %cst_65 {dimension_numbers = #tpu.dot_dimension_numbers<[1], [0], [0], [1], [0, 0, 1, 1], [], []>} : vector<64x32xf32>, vector<32x252xf32>, vector<64x252xf32> -> vector<64x252xf32>
    %135 = arith.addf %130, %134 : vector<64x252xf32>
    %c18 = arith.constant 18 : index
    %c0_66 = arith.constant 0 : index
    %c0_67 = arith.constant 0 : index
    %136 = vector.load %arg5[%c18, %c0_66, %c0_67] : memref<25x64x32xf32, #tpu.memory_space<vmem>>, vector<1x64x32xf32>
    %137 = vector.shape_cast %136 : vector<1x64x32xf32> to vector<64x32xf32>
    %138 = vector.extract_strided_slice %44 {offsets = [0, 57], sizes = [32, 252], strides = [1, 1]} : vector<32x342xf32> to vector<32x252xf32>
    %cst_68 = arith.constant dense<0.000000e+00> : vector<64x252xf32>
    %139 = tpu.matmul %137, %138, %cst_68 {dimension_numbers = #tpu.dot_dimension_numbers<[1], [0], [0], [1], [0, 0, 1, 1], [], []>} : vector<64x32xf32>, vector<32x252xf32>, vector<64x252xf32> -> vector<64x252xf32>
    %140 = arith.addf %135, %139 : vector<64x252xf32>
    %c19 = arith.constant 19 : index
    %c0_69 = arith.constant 0 : index
    %c0_70 = arith.constant 0 : index
    %141 = vector.load %arg5[%c19, %c0_69, %c0_70] : memref<25x64x32xf32, #tpu.memory_space<vmem>>, vector<1x64x32xf32>
    %142 = vector.shape_cast %141 : vector<1x64x32xf32> to vector<64x32xf32>
    %143 = vector.extract_strided_slice %44 {offsets = [0, 58], sizes = [32, 252], strides = [1, 1]} : vector<32x342xf32> to vector<32x252xf32>
    %cst_71 = arith.constant dense<0.000000e+00> : vector<64x252xf32>
    %144 = tpu.matmul %142, %143, %cst_71 {dimension_numbers = #tpu.dot_dimension_numbers<[1], [0], [0], [1], [0, 0, 1, 1], [], []>} : vector<64x32xf32>, vector<32x252xf32>, vector<64x252xf32> -> vector<64x252xf32>
    %145 = arith.addf %140, %144 : vector<64x252xf32>
    %c20 = arith.constant 20 : index
    %c0_72 = arith.constant 0 : index
    %c0_73 = arith.constant 0 : index
    %146 = vector.load %arg5[%c20, %c0_72, %c0_73] : memref<25x64x32xf32, #tpu.memory_space<vmem>>, vector<1x64x32xf32>
    %147 = vector.shape_cast %146 : vector<1x64x32xf32> to vector<64x32xf32>
    %148 = vector.extract_strided_slice %44 {offsets = [0, 72], sizes = [32, 252], strides = [1, 1]} : vector<32x342xf32> to vector<32x252xf32>
    %cst_74 = arith.constant dense<0.000000e+00> : vector<64x252xf32>
    %149 = tpu.matmul %147, %148, %cst_74 {dimension_numbers = #tpu.dot_dimension_numbers<[1], [0], [0], [1], [0, 0, 1, 1], [], []>} : vector<64x32xf32>, vector<32x252xf32>, vector<64x252xf32> -> vector<64x252xf32>
    %150 = arith.addf %145, %149 : vector<64x252xf32>
    %c21 = arith.constant 21 : index
    %c0_75 = arith.constant 0 : index
    %c0_76 = arith.constant 0 : index
    %151 = vector.load %arg5[%c21, %c0_75, %c0_76] : memref<25x64x32xf32, #tpu.memory_space<vmem>>, vector<1x64x32xf32>
    %152 = vector.shape_cast %151 : vector<1x64x32xf32> to vector<64x32xf32>
    %153 = vector.extract_strided_slice %44 {offsets = [0, 73], sizes = [32, 252], strides = [1, 1]} : vector<32x342xf32> to vector<32x252xf32>
    %cst_77 = arith.constant dense<0.000000e+00> : vector<64x252xf32>
    %154 = tpu.matmul %152, %153, %cst_77 {dimension_numbers = #tpu.dot_dimension_numbers<[1], [0], [0], [1], [0, 0, 1, 1], [], []>} : vector<64x32xf32>, vector<32x252xf32>, vector<64x252xf32> -> vector<64x252xf32>
    %155 = arith.addf %150, %154 : vector<64x252xf32>
    %c22 = arith.constant 22 : index
    %c0_78 = arith.constant 0 : index
    %c0_79 = arith.constant 0 : index
    %156 = vector.load %arg5[%c22, %c0_78, %c0_79] : memref<25x64x32xf32, #tpu.memory_space<vmem>>, vector<1x64x32xf32>
    %157 = vector.shape_cast %156 : vector<1x64x32xf32> to vector<64x32xf32>
    %158 = vector.extract_strided_slice %44 {offsets = [0, 74], sizes = [32, 252], strides = [1, 1]} : vector<32x342xf32> to vector<32x252xf32>
    %cst_80 = arith.constant dense<0.000000e+00> : vector<64x252xf32>
    %159 = tpu.matmul %157, %158, %cst_80 {dimension_numbers = #tpu.dot_dimension_numbers<[1], [0], [0], [1], [0, 0, 1, 1], [], []>} : vector<64x32xf32>, vector<32x252xf32>, vector<64x252xf32> -> vector<64x252xf32>
    %160 = arith.addf %155, %159 : vector<64x252xf32>
    %c23 = arith.constant 23 : index
    %c0_81 = arith.constant 0 : index
    %c0_82 = arith.constant 0 : index
    %161 = vector.load %arg5[%c23, %c0_81, %c0_82] : memref<25x64x32xf32, #tpu.memory_space<vmem>>, vector<1x64x32xf32>
    %162 = vector.shape_cast %161 : vector<1x64x32xf32> to vector<64x32xf32>
    %163 = vector.extract_strided_slice %44 {offsets = [0, 75], sizes = [32, 252], strides = [1, 1]} : vector<32x342xf32> to vector<32x252xf32>
    %cst_83 = arith.constant dense<0.000000e+00> : vector<64x252xf32>
    %164 = tpu.matmul %162, %163, %cst_83 {dimension_numbers = #tpu.dot_dimension_numbers<[1], [0], [0], [1], [0, 0, 1, 1], [], []>} : vector<64x32xf32>, vector<32x252xf32>, vector<64x252xf32> -> vector<64x252xf32>
    %165 = arith.addf %160, %164 : vector<64x252xf32>
    %c24 = arith.constant 24 : index
    %c0_84 = arith.constant 0 : index
    %c0_85 = arith.constant 0 : index
    %166 = vector.load %arg5[%c24, %c0_84, %c0_85] : memref<25x64x32xf32, #tpu.memory_space<vmem>>, vector<1x64x32xf32>
    %167 = vector.shape_cast %166 : vector<1x64x32xf32> to vector<64x32xf32>
    %168 = vector.extract_strided_slice %44 {offsets = [0, 76], sizes = [32, 252], strides = [1, 1]} : vector<32x342xf32> to vector<32x252xf32>
    %cst_86 = arith.constant dense<0.000000e+00> : vector<64x252xf32>
    %169 = tpu.matmul %167, %168, %cst_86 {dimension_numbers = #tpu.dot_dimension_numbers<[1], [0], [0], [1], [0, 0, 1, 1], [], []>} : vector<64x32xf32>, vector<32x252xf32>, vector<64x252xf32> -> vector<64x252xf32>
    %170 = arith.addf %165, %169 : vector<64x252xf32>
    %c0_87 = arith.constant 0 : index
    %c0_88 = arith.constant 0 : index
    %171 = vector.load %arg6[%c0_87, %c0_88] : memref<64x1xf32, #tpu.memory_space<vmem>>, vector<64x1xf32>
    %172 = vector.broadcast %171 : vector<64x1xf32> to vector<64x252xf32>
    %173 = arith.addf %170, %172 : vector<64x252xf32>
    %cst_89 = arith.constant 0.000000e+00 : f32
    %174 = vector.broadcast %cst_89 : f32 to vector<64x252xf32>
    %175 = arith.maximumf %173, %174 : vector<64x252xf32>
    %176 = vector.extract_strided_slice %175 {offsets = [0, 0], sizes = [64, 251], strides = [1, 1]} : vector<64x252xf32> to vector<64x251xf32>
    %177 = vector.extract_strided_slice %175 {offsets = [0, 1], sizes = [64, 251], strides = [1, 1]} : vector<64x252xf32> to vector<64x251xf32>
    %178 = arith.maximumf %176, %177 : vector<64x251xf32>
    %179 = vector.extract_strided_slice %178 {offsets = [0, 0], sizes = [64, 233], strides = [1, 1]} : vector<64x251xf32> to vector<64x233xf32>
    %180 = vector.extract_strided_slice %178 {offsets = [0, 18], sizes = [64, 233], strides = [1, 1]} : vector<64x251xf32> to vector<64x233xf32>
    %181 = arith.maximumf %179, %180 : vector<64x233xf32>
    %c0_90 = arith.constant 0 : index
    %c0_91 = arith.constant 0 : index
    %182 = vector.load %arg7[%c0_90, %c0_91] : memref<233x49xf32, #tpu.memory_space<vmem>>, vector<233x49xf32>
    %cst_92 = arith.constant dense<0.000000e+00> : vector<64x49xf32>
    %183 = tpu.matmul %181, %182, %cst_92 {dimension_numbers = #tpu.dot_dimension_numbers<[1], [0], [0], [1], [0, 0, 1, 1], [], []>} : vector<64x233xf32>, vector<233x49xf32>, vector<64x49xf32> -> vector<64x49xf32>
    %c0_93 = arith.constant 0 : index
    %c0_94 = arith.constant 0 : index
    %c0_95 = arith.constant 0 : index
    %184 = vector.load %arg8[%c0_93, %c0_94, %c0_95] : memref<1x64x49xf32, #tpu.memory_space<vmem>>, vector<1x64x49xf32>
    %185 = vector.shape_cast %184 : vector<1x64x49xf32> to vector<64x49xf32>
    %186 = vector.shape_cast %183 : vector<64x49xf32> to vector<1x64x49xf32>
    tpu.vector_store %arg8[%c0_93, %c0_94, %c0_95], %186 {strides = array<i32>} : memref<1x64x49xf32, #tpu.memory_space<vmem>>, vector<1x64x49xf32>,
    return
  }
  func.func @transform_0(%arg0: i32) -> (i32, i32, i32) {
    %c0_i32 = arith.constant 0 : i32
    %c0_i32_0 = arith.constant 0 : i32
    %c0_i32_1 = arith.constant 0 : i32
    return %arg0, %c0_i32, %c0_i32_0 : i32, i32, i32
  }
  func.func @transform_1(%arg0: i32) -> (i32, i32) {
    %c0_i32 = arith.constant 0 : i32
    %c0_i32_0 = arith.constant 0 : i32
    %c0_i32_1 = arith.constant 0 : i32
    return %c0_i32, %c0_i32_0 : i32, i32
  }
  func.func @transform_2(%arg0: i32) -> (i32, i32) {
    %c0_i32 = arith.constant 0 : i32
    %c0_i32_0 = arith.constant 0 : i32
    %c0_i32_1 = arith.constant 0 : i32
    return %c0_i32, %c0_i32_0 : i32, i32
  }
  func.func @transform_3(%arg0: i32) -> (i32, i32) {
    %c0_i32 = arith.constant 0 : i32
    %c0_i32_0 = arith.constant 0 : i32
    %c0_i32_1 = arith.constant 0 : i32
    return %c0_i32, %c0_i32_0 : i32, i32
  }
  func.func @transform_4(%arg0: i32) -> (i32, i32, i32) {
    %c0_i32 = arith.constant 0 : i32
    %c0_i32_0 = arith.constant 0 : i32
    %c0_i32_1 = arith.constant 0 : i32
    %c0_i32_2 = arith.constant 0 : i32
    return %c0_i32, %c0_i32_0, %c0_i32_1 : i32, i32, i32
  }
  func.func @transform_5(%arg0: i32) -> (i32, i32) {
    %c0_i32 = arith.constant 0 : i32
    %c0_i32_0 = arith.constant 0 : i32
    %c0_i32_1 = arith.constant 0 : i32
    return %c0_i32, %c0_i32_0 : i32, i32
  }
  func.func @transform_6(%arg0: i32) -> (i32, i32) {
    %c0_i32 = arith.constant 0 : i32
    %c0_i32_0 = arith.constant 0 : i32
    %c0_i32_1 = arith.constant 0 : i32
    return %c0_i32, %c0_i32_0 : i32, i32
  }
  func.func @transform_7(%arg0: i32) -> (i32, i32, i32) {
    %c0_i32 = arith.constant 0 : i32
    %c0_i32_0 = arith.constant 0 : i32
    %c0_i32_1 = arith.constant 0 : i32
    return %arg0, %c0_i32, %c0_i32_0 : i32, i32, i32
  }
}

module attributes {stable_mosaic.version = 11 : i64} {
  func.func @fc_fused_kernel(%arg0: i32, %arg1: memref<2x3136xf32, #tpu.memory_space<vmem>>, %arg2: memref<3136x512xbf16, #tpu.memory_space<vmem>>, %arg3: memref<1x512xf32, #tpu.memory_space<vmem>>, %arg4: memref<512x128xf32, #tpu.memory_space<vmem>>, %arg5: memref<1x128xf32, #tpu.memory_space<vmem>>, %arg6: memref<2x128xf32, #tpu.memory_space<vmem>>) attributes {dimension_semantics = [#tpu.dimension_semantics<arbitrary>], iteration_bounds = array<i64: 4>, scalar_prefetch = 0 : i64, scratch_operands = 0 : i64, tpu.core_type = #tpu.core_type<tc>, window_params = [{pipeline_mode = #tpu.pipeline_mode<synchronous>, transform_indices = @transform_0, window_bounds = array<i64: 2, 3136>}, {transform_indices = @transform_1, window_bounds = array<i64: 3136, 512>}, {transform_indices = @transform_2, window_bounds = array<i64: 1, 512>}, {transform_indices = @transform_3, window_bounds = array<i64: 512, 128>}, {pipeline_mode = #tpu.pipeline_mode<synchronous>, transform_indices = @transform_4, window_bounds = array<i64: 1, 128>}, {pipeline_mode = #tpu.pipeline_mode<synchronous>, transform_indices = @transform_5, window_bounds = array<i64: 2, 128>}]} {
    %c0_i32 = arith.constant 0 : i32
    %0 = arith.cmpi eq, %arg0, %c0_i32 : i32
    %1 = arith.extui %0 : i1 to i32
    %c0_i32_0 = arith.constant 0 : i32
    %2 = arith.cmpi ne, %1, %c0_i32_0 : i32
    scf.if %2 {
      %cst_14 = arith.constant 0.000000e+00 : f32
      %17 = vector.broadcast %cst_14 : f32 to vector<2x128xf32>
      %c0_15 = arith.constant 0 : index
      %c0_16 = arith.constant 0 : index
      %18 = vector.load %arg5[%c0_15, %c0_16] : memref<1x128xf32, #tpu.memory_space<vmem>>, vector<1x128xf32>
      %19 = vector.broadcast %18 : vector<1x128xf32> to vector<2x128xf32>
      %20 = arith.addf %17, %19 : vector<2x128xf32>
      %c0_17 = arith.constant 0 : index
      %c0_18 = arith.constant 0 : index
      %21 = vector.load %arg6[%c0_17, %c0_18] : memref<2x128xf32, #tpu.memory_space<vmem>>, vector<2x128xf32>
      tpu.vector_store %arg6[%c0_17, %c0_18], %20 {strides = array<i32>} : memref<2x128xf32, #tpu.memory_space<vmem>>, vector<2x128xf32>,
    } else {
    }
    %c0 = arith.constant 0 : index
    %c0_1 = arith.constant 0 : index
    %3 = vector.load %arg1[%c0, %c0_1] : memref<2x3136xf32, #tpu.memory_space<vmem>>, vector<2x3136xf32>
    %4 = arith.truncf %3 : vector<2x3136xf32> to vector<2x3136xbf16>
    %c0_2 = arith.constant 0 : index
    %c0_3 = arith.constant 0 : index
    %5 = vector.load %arg2[%c0_2, %c0_3] : memref<3136x512xbf16, #tpu.memory_space<vmem>>, vector<3136x512xbf16>
    %cst = arith.constant dense<0.000000e+00> : vector<2x512xf32>
    %6 = tpu.matmul %4, %5, %cst {dimension_numbers = #tpu.dot_dimension_numbers<[1], [0], [0], [1], [0, 0, 1, 1], [], []>} : vector<2x3136xbf16>, vector<3136x512xbf16>, vector<2x512xf32> -> vector<2x512xf32>
    %c0_4 = arith.constant 0 : index
    %c0_5 = arith.constant 0 : index
    %7 = vector.load %arg3[%c0_4, %c0_5] : memref<1x512xf32, #tpu.memory_space<vmem>>, vector<1x512xf32>
    %8 = vector.broadcast %7 : vector<1x512xf32> to vector<2x512xf32>
    %9 = arith.addf %6, %8 : vector<2x512xf32>
    %cst_6 = arith.constant 0.000000e+00 : f32
    %10 = vector.broadcast %cst_6 : f32 to vector<2x512xf32>
    %11 = arith.maximumf %9, %10 : vector<2x512xf32>
    %c0_7 = arith.constant 0 : index
    %c0_8 = arith.constant 0 : index
    %12 = vector.load %arg6[%c0_7, %c0_8] : memref<2x128xf32, #tpu.memory_space<vmem>>, vector<2x128xf32>
    %c0_9 = arith.constant 0 : index
    %c0_10 = arith.constant 0 : index
    %13 = vector.load %arg4[%c0_9, %c0_10] : memref<512x128xf32, #tpu.memory_space<vmem>>, vector<512x128xf32>
    %cst_11 = arith.constant dense<0.000000e+00> : vector<2x128xf32>
    %14 = tpu.matmul %11, %13, %cst_11 {dimension_numbers = #tpu.dot_dimension_numbers<[1], [0], [0], [1], [0, 0, 1, 1], [], []>} : vector<2x512xf32>, vector<512x128xf32>, vector<2x128xf32> -> vector<2x128xf32>
    %15 = arith.addf %12, %14 : vector<2x128xf32>
    %c0_12 = arith.constant 0 : index
    %c0_13 = arith.constant 0 : index
    %16 = vector.load %arg6[%c0_12, %c0_13] : memref<2x128xf32, #tpu.memory_space<vmem>>, vector<2x128xf32>
    tpu.vector_store %arg6[%c0_12, %c0_13], %15 {strides = array<i32>} : memref<2x128xf32, #tpu.memory_space<vmem>>, vector<2x128xf32>,
    return
  }
  func.func @transform_0(%arg0: i32) -> (i32, i32) {
    %c0_i32 = arith.constant 0 : i32
    %c0_i32_0 = arith.constant 0 : i32
    %c0_i32_1 = arith.constant 0 : i32
    return %c0_i32, %c0_i32_0 : i32, i32
  }
  func.func @transform_1(%arg0: i32) -> (i32, i32) {
    %c0_i32 = arith.constant 0 : i32
    %c0_i32_0 = arith.constant 0 : i32
    return %c0_i32, %arg0 : i32, i32
  }
  func.func @transform_2(%arg0: i32) -> (i32, i32) {
    %c0_i32 = arith.constant 0 : i32
    %c0_i32_0 = arith.constant 0 : i32
    return %c0_i32, %arg0 : i32, i32
  }
  func.func @transform_3(%arg0: i32) -> (i32, i32) {
    %c0_i32 = arith.constant 0 : i32
    %c0_i32_0 = arith.constant 0 : i32
    return %arg0, %c0_i32 : i32, i32
  }
  func.func @transform_4(%arg0: i32) -> (i32, i32) {
    %c0_i32 = arith.constant 0 : i32
    %c0_i32_0 = arith.constant 0 : i32
    %c0_i32_1 = arith.constant 0 : i32
    return %c0_i32, %c0_i32_0 : i32, i32
  }
  func.func @transform_5(%arg0: i32) -> (i32, i32) {
    %c0_i32 = arith.constant 0 : i32
    %c0_i32_0 = arith.constant 0 : i32
    %c0_i32_1 = arith.constant 0 : i32
    return %c0_i32, %c0_i32_0 : i32, i32
  }
}

</mosaic_0001>

<bundles_post_ra>
// kernel: cnn_forward.2
= control target key start
LH: loop header
LB: loop body
LE: loop exit
PB: predicated region body
PF: predicated region fallthrough
CT: control target
= control target key end

     0   :  { %s11202_s24 = smov 0   ;;  %s16306_s0 = inlined_call_operand.vmem [shape: f32[2,1,1056], index: 0, kind: input, shape index: {}]   ;;  %s16307_s1 = inlined_call_operand.vmem [shape: f32[32,25], index: 1, kind: input, shape index: {}]   ;;  %s16308_s2 = inlined_call_operand.vmem [shape: f32[32,1], index: 2, kind: input, shape index: {}]   ;;  %s16309_s3 = inlined_call_operand.vmem [shape: f32[863,342], index: 3, kind: input, shape index: {}]   ;;  %s16310_s4 = inlined_call_operand.vmem [shape: f32[25,64,32], index: 4, kind: input, shape index: {}]   ;;  %s16311_s5 = inlined_call_operand.vmem [shape: f32[64,1], index: 5, kind: input, shape index: {}]   ;;  %s16312_s6 = inlined_call_operand.vmem [shape: f32[233,49], index: 6, kind: input, shape index: {}]   ;;  %s16313_s7 = inlined_call_operand.vmem [shape: f32[2,64,49], index: 7, kind: output, shape index: {}]  }
   0x1 LB: > { %s8288_s25 = sadd.s32 4294967295, %s11120_s24   ;;  %p8292_p0 = scmp.ge.s32.totalorder %s11120_s24, 1  ;;  %s11120_s24 = sphi %s11202_s24, %s17_s24  }
   0x2   : > { %p236_p1 = scmp.lt.s32.totalorder %s11120_s24, 3 }
   0x4   : > { %p237_p2 = pnand %p8292_p0, %p236_p1 }
   0x6   : > { %240 = sbr.rel (%p237_p2) target bundleno = 2743 (0xab7), region = 48 }
   0xd   : > { %p267_p3 = scmp.lt.s32.totalorder %s8288_s25, 1  ;;  %v279_v0 = vlaneseq  ;;  %s11122_s30 = smov 127   ;;  %vm16337_vm0 = vcmask 1039360   ;;  %vm783_vm1 = vcmask 1040384   ;;  %vm16316_vm2 = vcmask 1031168  }
   0xe   : > { %s11123_s8 = smov 126   ;;  %s11124_s9 = smov 125   ;;  %vm791_vm3 = vcmask 1041408   ;;  %vm16315_vm4 = vcmask 1022976   ;;  %vm799_vm5 = vcmask 1042432   ;;  %vm807_vm6 = vcmask 1043456  }
   0xf   : > { %s16834_s25 = smov (!%p267_p3, %s8288_s25), 1  ;;  %v280_v1 = vshrl.u32 %v279_v0, 7  ;;  %s11125_s10 = smov 97   ;;  %vm16314_vm7 = vcmask 793600   ;;  %vm16338_vm8 = vcmask 785408   ;;  %vm16328_vm9 = vcmask 777216  }
  0x10   : > { %s9968_s26 = smul.u32 9, %s16834_s25  ;;  %s11126_s11 = smov 96   ;;  %vm815_vm10 = vcmask 1044480   ;;  %vm823_vm11 = vcmask 1045504   ;;  %vm16340_vm12 = vcmask 769024   ;;  %vm16332_vm13 = vcmask 760832  }
  0x11   : > { %v285_v2 = vsub.s32 1, %v280_v1  ;;  %v289_v3 = vsub.s32 2, %v280_v1  ;;  %v281_v4 = vsub.s32 0, %v280_v1  ;;  %v301_v5 = vsub.s32 5, %v280_v1  ;;  %s11127_s12 = smov 95   ;;  %s11128_s13 = smov 94  }
  0x12   : > { %v293_v6 = vsub.s32 3, %v280_v1  ;;  %v297_v7 = vsub.s32 4, %v280_v1  ;;  %v305_v8 = vsub.s32 6, %v280_v1  ;;  %v316_v9 = vsub.s32 7, %v280_v1  ;;  %s11216_s29 = scalar_lea.vmem %s16306_s0, %s9968_s26  ;;  %s11129_s14 = smov 93  }
  0x13   : > { %v276_v10 = vld [vmem:[%s11216_s29] sm:$0xff]  ;;  %s11130_s15 = smov 92   ;;  %s11131_s16 = smov 64   ;;  %vm16342_vm14 = vcmask 1046528   ;;  %vm16333_vm15 = vcmask 752640  }
  0x14   : > { %v11219_v11 = vrot.slane %v276_v10, %v285_v2  ;;  %v11221_v12 = vrot.slane %v276_v10, %v289_v3  ;;  %v11223_v13 = vrot.slane %v276_v10, %v281_v4  ;;  %v11225_v14 = vrot.slane %v276_v10, %v301_v5  ;;  %s11132_s17 = smov 63   ;;  %s11133_s18 = smov 124  }
  0x15   : > { %v11227_v15 = vrot.slane %v276_v10, %v293_v6  ;;  %v11229_v16 = vrot.slane %v276_v10, %v297_v7  ;;  %v11231_v17 = vrot.slane %v276_v10, %v305_v8  ;;  %v11233_v18 = vrot.slane %v276_v10, %v316_v9  ;;  %s11134_s19 = smov 62   ;;  %s11135_s20 = smov 61  }
  0x16   : > { %v11237_v19 = vpack.i.bf16 %v11221_v12, %v11219_v11  ;;  %v10027_v20 = vpack.i.bf16 %v11223_v13, %v11225_v14  ;;  %s11136_s21 = smov 60   ;;  %s11137_s22 = smov 32  }
  0x17   : > { %v10022_v21 = vpack.i.bf16 %v11229_v16, %v11227_v15  ;;  %v11319_v22 = vpack.i.bf16 %v11233_v18, %v11231_v17  ;;  %s11138_s23 = smov 31   ;;  %s11150_s26 = smov 73  }
  0x18   : > { %10018 = vrot.lane.b32.xlu0 %v11237_v19, %s11122_s30  ;;  %10028 = vrot.lane.b32.xlu1 %v10027_v20, %s11122_s30  ;;  %s11151_s27 = smov 72  }
  0x1c   : > { %10023 = vrot.lane.b32.xlu0 %v10022_v21, %s11122_s30  ;;  %10033 = vrot.lane.b32.xlu1 %v11237_v19, %s11123_s8 }
  0x20   : > { %10038 = vrot.lane.b32.xlu0 %v10022_v21, %s11123_s8  ;;  %10043 = vrot.lane.b32.xlu1 %v10027_v20, %s11123_s8 }
  0x24   : > { %10048 = vrot.lane.b32.xlu0 %v11237_v19, %s11124_s9  ;;  %10053 = vrot.lane.b32.xlu1 %v10022_v21, %s11124_s9 }
  0x28   : > { %10058 = vrot.lane.b32.xlu0 %v10027_v20, %s11124_s9  ;;  %10063 = vrot.lane.b32.xlu1 %v11237_v19, %s11125_s10 }
  0x2c   : > { %10068 = vrot.lane.b32.xlu0 %v10022_v21, %s11125_s10  ;;  %900 = vrot.lane.b32.xlu1 %v11225_v14, %s11125_s10 }
  0x30   : > { %10073 = vrot.lane.b32.xlu0 %v11237_v19, %s11126_s11  ;;  %10078 = vrot.lane.b32.xlu1 %v10022_v21, %s11126_s11 }
  0x34   : > { %10083 = vrot.lane.b32.xlu0 %v10027_v20, %s11126_s11  ;;  %10088 = vrot.lane.b32.xlu1 %v11237_v19, %s11127_s12 }
  0x38   : > { %10093 = vrot.lane.b32.xlu0 %v10022_v21, %s11127_s12  ;;  %10098 = vrot.lane.b32.xlu1 %v10027_v20, %s11127_s12 }
  0x3c   : > { %10103 = vrot.lane.b32.xlu0 %v11237_v19, %s11128_s13  ;;  %10108 = vrot.lane.b32.xlu1 %v10022_v21, %s11128_s13 }
  0x40   : > { %514 = vrot.lane.b32.xlu0 %v11225_v14, %s11128_s13  ;;  %10113 = vrot.lane.b32.xlu1 %v11237_v19, %s11129_s14 }
  0x44   : > { %10118 = vrot.lane.b32.xlu0 %v10022_v21, %s11129_s14  ;;  %10123 = vrot.lane.b32.xlu1 %v10027_v20, %s11129_s14 }
  0x48   : > { %10128 = vrot.lane.b32.xlu0 %v11237_v19, %s11130_s15  ;;  %10133 = vrot.lane.b32.xlu1 %v10022_v21, %s11130_s15 }
  0x4c   : > { %566 = vrot.lane.b32.xlu0 %v11223_v13, %s11130_s15  ;;  %10138 = vrot.lane.b32.xlu1 %v11237_v19, %s11131_s16 }
  0x50   : > { %10143 = vrot.lane.b32.xlu0 %v10022_v21, %s11131_s16  ;;  %597 = vrot.lane.b32.xlu1 %v11223_v13, %s11131_s16 }
  0x54   : > { %10148 = vrot.lane.b32.xlu0 %v11237_v19, %s11132_s17  ;;  %10153 = vrot.lane.b32.xlu1 %v10022_v21, %s11132_s17 }
  0x58   : > { %10158 = vrot.lane.b32.xlu0 %v11237_v19, %s11133_s18  ;;  %10163 = vrot.lane.b32.xlu1 %v10022_v21, %s11133_s18 }
  0x5c   : > { %628 = vrot.lane.b32.xlu0 %v11223_v13, %s11132_s17  ;;  %10168 = vrot.lane.b32.xlu1 %v11237_v19, %s11134_s19 }
  0x60   : > { %10173 = vrot.lane.b32.xlu0 %v10022_v21, %s11134_s19  ;;  %411 = vrot.lane.b32.xlu1 %v11223_v13, %s11133_s18 }
  0x64   : > { %659 = vrot.lane.b32.xlu0 %v11223_v13, %s11134_s19  ;;  %10178 = vrot.lane.b32.xlu1 %v11237_v19, %s11135_s20 }
  0x68   : > { %10183 = vrot.lane.b32.xlu0 %v10022_v21, %s11135_s20  ;;  %690 = vrot.lane.b32.xlu1 %v11223_v13, %s11135_s20 }
  0x6c   : > { %10188 = vrot.lane.b32.xlu0 %v11237_v19, %s11136_s21  ;;  %10193 = vrot.lane.b32.xlu1 %v10022_v21, %s11136_s21 }
  0x70   : > { %721 = vrot.lane.b32.xlu0 %v11223_v13, %s11136_s21  ;;  %10198 = vrot.lane.b32.xlu1 %v11237_v19, %s11137_s22 }
  0x74   : > { %10203 = vrot.lane.b32.xlu0 %v10022_v21, %s11137_s22  ;;  %504 = vrot.lane.b32.xlu1 %v11223_v13, %s11128_s13 }
  0x78   : > { %752 = vrot.lane.b32.xlu0 %v11223_v13, %s11137_s22  ;;  %10208 = vrot.lane.b32.xlu1 %v11319_v22, %s11122_s30 }
  0x7c   : > { %10213 = vrot.lane.b32.xlu0 %v11319_v22, %s11123_s8  ;;  %10218 = vrot.lane.b32.xlu1 %v11319_v22, %s11124_s9 }
  0x80   : > { %10223 = vrot.lane.b32.xlu0 %v11319_v22, %s11125_s10  ;;  %10233 = vrot.lane.b32.xlu1 %v11319_v22, %s11127_s12  ;;  %s11148_s10 = smov 88  }
  0x84   : > { %10228 = vrot.lane.b32.xlu0 %v11319_v22, %s11126_s11 }
  0x8a   : > { %v10019_v23 = vpop.permute.xlu0 %10018  ;;  %v11335_v24 = vpop.permute.xlu1 %10028 }
  0x8b   : > { %v10021_v33 = vunpack.i.h.bf16 %v10019_v23  ;;  %v10020_v34 = vunpack.i.l.bf16 %v10019_v23  ;;  %v10031_v35 = vunpack.i.h.bf16 %v11335_v24  ;;  %v16324_v50 = vunpack.i.l.bf16 %v11335_v24 }
  0x8d   : > { %v336_v40 = vsel %vm16337_vm0, %v10020_v34, %v10021_v33  ;;  %v335_v41 = vsel %vm16337_vm0, %v10031_v35, %v10020_v34 }
  0x8e   : > { %v10024_v25 = vpop.permute.xlu0 %10023  ;;  %v10034_v26 = vpop.permute.xlu1 %10033  ;;  %v785_v53 = vsel %vm783_vm1, %v11219_v11, %v336_v40  ;;  %v784_v56 = vsel %vm783_vm1, %v11223_v13, %v335_v41 }
  0x8f   : > { %v10025_v38 = vunpack.i.l.bf16 %v10024_v25  ;;  %v10026_v39 = vunpack.i.h.bf16 %v10024_v25  ;;  %v10036_v42 = vunpack.i.h.bf16 %v10034_v26  ;;  %v10035_v43 = vunpack.i.l.bf16 %v10034_v26 }
  0x91   : > { %v337_v46 = vsel %vm16337_vm0, %v10021_v33, %v10025_v38  ;;  %v338_v51 = vsel %vm16337_vm0, %v10025_v38, %v10026_v39  ;;  %v339_v57 = vsel %vm16337_vm0, %v10026_v39, %v16324_v50  ;;  %v367_v59 = vsel %vm16316_vm2, %v10035_v43, %v10036_v42 }
  0x92   : > { %v10039_v27 = vpop.permute.xlu0 %10038  ;;  %v11337_v28 = vpop.permute.xlu1 %10043  ;;  %v786_v58 = vsel %vm783_vm1, %v11221_v12, %v337_v46  ;;  %v787_v62 = vsel %vm783_vm1, %v11227_v15, %v338_v51  ;;  %v788_v10 = vsel %vm783_vm1, %v11229_v16, %v339_v57  ;;  %v793_v11 = vsel %vm791_vm3, %v785_v53, %v367_v59 }
  0x93   : > { %v10041_v47 = vunpack.i.h.bf16 %v10039_v27  ;;  %v10040_v48 = vunpack.i.l.bf16 %v10039_v27  ;;  %v10046_v49 = vunpack.i.h.bf16 %v11337_v28  ;;  %v16323_v52 = vunpack.i.l.bf16 %v11337_v28 }
  0x95   : > { %v368_v63 = vsel %vm16316_vm2, %v10036_v42, %v10040_v48  ;;  %v369_v0 = vsel %vm16316_vm2, %v10040_v48, %v10041_v47  ;;  %v366_v1 = vsel %vm16316_vm2, %v10046_v49, %v10035_v43  ;;  %v370_v2 = vsel %vm16316_vm2, %v10041_v47, %v16323_v52 }
  0x96   : > { %v11339_v29 = vpop.permute.xlu0 %10048  ;;  %v11341_v30 = vpop.permute.xlu1 %10053  ;;  %v794_v20 = vsel %vm791_vm3, %v786_v58, %v368_v63  ;;  %v795_v21 = vsel %vm791_vm3, %v787_v62, %v369_v0  ;;  %v792_v23 = vsel %vm791_vm3, %v784_v56, %v366_v1  ;;  %v796_v25 = vsel %vm791_vm3, %v788_v10, %v370_v2 }
  0x97   : > { %v10051_v54 = vunpack.i.h.bf16 %v11339_v29  ;;  %v10050_v55 = vunpack.i.l.bf16 %v11339_v29  ;;  %v10056_v3 = vunpack.i.h.bf16 %v11341_v30  ;;  %v10055_v4 = vunpack.i.l.bf16 %v11341_v30 }
  0x98   : > { %vm427_vm2 = vcmask 1014784  }
  0x99   : > { %v398_v6 = vsel %vm16315_vm4, %v10050_v55, %v10051_v54  ;;  %v399_v26 = vsel %vm16315_vm4, %v10051_v54, %v10055_v4  ;;  %v400_v27 = vsel %vm16315_vm4, %v10055_v4, %v10056_v3 }
  0x9a   : > { %v11343_v31 = vpop.permute.xlu0 %10058  ;;  %v11345_v32 = vpop.permute.xlu1 %10063  ;;  %v11406_v16 = vsel %vm799_vm5, %v793_v11, %v398_v6  ;;  %v11433_v48 = vsel %vm799_vm5, %v794_v20, %v399_v26  ;;  %v11436_v49 = vsel %vm799_vm5, %v795_v21, %v400_v27 }
  0x9b   : > { %v10061_v5 = vunpack.i.h.bf16 %v11343_v31  ;;  %v16322_v7 = vunpack.i.l.bf16 %v11343_v31  ;;  %v10066_v8 = vunpack.i.h.bf16 %v11345_v32  ;;  %v10065_v9 = vunpack.i.l.bf16 %v11345_v32 }
  0x9d   : > { %v397_v29 = vsel %vm16315_vm4, %v10061_v5, %v10050_v55  ;;  %v401_v30 = vsel %vm16315_vm4, %v10056_v3, %v16322_v7  ;;  %v907_v33 = vsel %vm16314_vm7, %v10065_v9, %v10066_v8  ;;  %vm644_vm4 = vcmask 515072  }
  0x9e   : > { %v11348_v36 = vpop.permute.xlu0 %10068  ;;  %v11350_v37 = vpop.permute.xlu1 %900  ;;  %v11439_v51 = vsel %vm799_vm5, %v792_v23, %v397_v29  ;;  %v948_v53 = vsel %vm807_vm6, %v11406_v16, %v907_v33  ;;  %v11446_v54 = vsel %vm799_vm5, %v796_v25, %v401_v30 }
  0x9f   : > { %v10071_v12 = vunpack.i.h.bf16 %v11348_v36  ;;  %v10070_v13 = vunpack.i.l.bf16 %v11348_v36  ;;  %16388 = vst [vmem:[#allocation2_spill] sm:$0xff] %v11446_v54 }
  0xa1   : > { %v908_v36 = vsel %vm16314_vm7, %v10066_v8, %v10070_v13  ;;  %v909_v38 = vsel %vm16314_vm7, %v10070_v13, %v10071_v12  ;;  %v910_v39 = vsel %vm16314_vm7, %v10071_v12, %v11350_v37  ;;  %vm16334_vm7 = vcmask 523264  }
  0xa2   : > { %v11354_v44 = vpop.permute.xlu0 %10073  ;;  %v11356_v45 = vpop.permute.xlu1 %10078  ;;  %v950_v57 = vsel %vm807_vm6, %v11436_v49, %v909_v38  ;;  %v951_v58 = vsel %vm807_vm6, %v11446_v54, %v910_v39 }
  0xa3   : > { %v10076_v34 = vunpack.i.h.bf16 %v11354_v44  ;;  %v11419_v35 = vunpack.i.l.bf16 %v11354_v44  ;;  %v10080_v40 = vunpack.i.l.bf16 %v11356_v45  ;;  %v10081_v43 = vunpack.i.h.bf16 %v11356_v45 }
  0xa4   : > { %v949_v45 = vsel %vm807_vm6, %v11433_v48, %v908_v36 }
  0xa5   : > { %v11450_v55 = vsel %vm16338_vm8, %v11419_v35, %v10076_v34  ;;  %v11457_v59 = vsel %vm16338_vm8, %v10076_v34, %v10080_v40  ;;  %v11462_v0 = vsel %vm16338_vm8, %v10080_v40, %v10081_v43 }
  0xa6   : > { %v11375_v60 = vpop.permute.xlu0 %10083  ;;  %v11377_v61 = vpop.permute.xlu1 %10088  ;;  %v956_v8 = vsel %vm815_vm10, %v948_v53, %v11450_v55  ;;  %v957_v13 = vsel %vm815_vm10, %v949_v45, %v11457_v59 }
  0xa7   : > { %v16321_v46 = vunpack.i.l.bf16 %v11375_v60  ;;  %v10091_v44 = vunpack.i.h.bf16 %v11377_v61  ;;  %v11430_v47 = vunpack.i.l.bf16 %v11377_v61 }
  0xa9   : > { %v11467_v1 = vsel %vm16338_vm8, %v10081_v43, %v16321_v46  ;;  %v11471_v2 = vsel %vm16328_vm9, %v11430_v47, %v10091_v44 }
  0xaa   : > { %v10094_v15 = vpop.permute.xlu0 %10093  ;;  %v11399_v19 = vpop.permute.xlu1 %10098  ;;  %16389 = vst [vmem:[#allocation3_spill] sm:$0xff] %v11467_v1  ;;  %v964_v25 = vsel %vm823_vm11, %v956_v8, %v11471_v2  ;;  %v959_v26 = vsel %vm815_vm10, %v951_v58, %v11467_v1  ;;  %v958_v8 = vsel %vm815_vm10, %v950_v57, %v11462_v0  ;;  %v947_v57 = vsel %vm807_vm6, %v11439_v51, %v10065_v9 }
  0xab   : > { %v10095_v56 = vunpack.i.l.bf16 %v10094_v15  ;;  %v10096_v61 = vunpack.i.h.bf16 %v10094_v15  ;;  %v16320_v3 = vunpack.i.l.bf16 %v11399_v19 }
  0xad   : > { %v11479_v10 = vsel %vm16328_vm9, %v10091_v44, %v10095_v56  ;;  %v11486_v15 = vsel %vm16328_vm9, %v10095_v56, %v10096_v61  ;;  %v11497_v27 = vsel %vm16328_vm9, %v10096_v61, %v16320_v3 }
  0xae   : > { %v10104_v41 = vpop.permute.xlu0 %10103  ;;  %v10109_v42 = vpop.permute.xlu1 %10108  ;;  %16390 = vst [vmem:[#allocation4_spill] sm:$0xff] %v11497_v27  ;;  %v965_v39 = vsel %vm823_vm11, %v957_v13, %v11479_v10  ;;  %v967_v61 = vsel %vm823_vm11, %v959_v26, %v11497_v27 }
  0xaf   : > { %v10106_v4 = vunpack.i.h.bf16 %v10104_v41  ;;  %v11474_v5 = vunpack.i.l.bf16 %v10104_v41  ;;  %v10110_v6 = vunpack.i.l.bf16 %v10109_v42  ;;  %v10111_v20 = vunpack.i.h.bf16 %v10109_v42 }
  0xb1   : > { %v11506_v36 = vsel %vm16340_vm12, %v11474_v5, %v10106_v4  ;;  %v11509_v38 = vsel %vm16340_vm12, %v10106_v4, %v10110_v6  ;;  %v11537_v58 = vsel %vm16340_vm12, %v10110_v6, %v10111_v20  ;;  %v966_v6 = vsel %vm823_vm11, %v958_v8, %v11486_v15 }
  0xb2   : > { %v11459_v62 = vpop.permute.xlu0 %514  ;;  %v10114_v63 = vpop.permute.xlu1 %10113  ;;  %v973_v4 = vsel %vm16342_vm14, %v965_v39, %v11509_v38  ;;  %v974_v13 = vsel %vm16342_vm14, %v966_v6, %v11537_v58  ;;  %v10086_v6 = vunpack.i.h.bf16 %v11375_v60 }
  0xb3   : > { %v10116_v11 = vunpack.i.h.bf16 %v10114_v63  ;;  %v11481_v12 = vunpack.i.l.bf16 %v10114_v63  ;;  %v11502_v34 = vsel %vm16340_vm12, %v10111_v20, %v11459_v62  ;;  %v972_v63 = vsel %vm16342_vm14, %v964_v25, %v11506_v36 }
  0xb4   : > { %16391 = vst [vmem:[#allocation5_spill] sm:$0xff] %v11502_v34  ;;  %v16318_v20 = vmov 0.0   ;;  %v10247_v26 = vpack.i.bf16 %v973_v4, %v972_v63 }
  0xb5   : > { %v11523_v42 = vsel %vm16332_vm13, %v11481_v12, %v10116_v11  ;;  %1249 = vmatprep.mubr.f32.mxu1 %v16318_v20  ;;  %1160 = vmatprep.mubr.f32.mxu0 %v16318_v20 }
  0xb6   : > { %v10119_v21 = vpop.permute.xlu0 %10118  ;;  %v11488_v23 = vpop.permute.xlu1 %10123 }
  0xb7   : > { %v10121_v29 = vunpack.i.h.bf16 %v10119_v21  ;;  %v10120_v30 = vunpack.i.l.bf16 %v10119_v21  ;;  %v16317_v33 = vunpack.i.l.bf16 %v11488_v23  ;;  %v10126_v20 = vunpack.i.h.bf16 %v11488_v23 }
  0xb9   : > { %v11514_v40 = vsel %vm16332_vm13, %v10120_v30, %v10121_v29  ;;  %v11519_v41 = vsel %vm16332_vm13, %v10121_v29, %v16317_v33  ;;  %v11526_v43 = vsel %vm16332_vm13, %v10116_v11, %v10120_v30  ;;  %v975_v11 = vsel %vm16342_vm14, %v967_v61, %v11502_v34 }
  0xba   : > { %16392 = vst [vmem:[#allocation6_spill] sm:$0xff] %v11519_v41  ;;  %v11528_v44 = vpop.permute.xlu0 %10128  ;;  %v11530_v53 = vpop.permute.xlu1 %10133  ;;  %v10242_v45 = vpack.i.bf16 %v11519_v41, %v11514_v40  ;;  %v10237_v56 = vpack.i.bf16 %v11526_v43, %v11523_v42  ;;  %v10257_v29 = vpack.i.bf16 %v975_v11, %v974_v13  ;;  %v955_v30 = vsel %vm815_vm10, %v947_v57, %v11419_v35 }
  0xbb   : > { %v963_v39 = vsel %vm823_vm11, %v955_v30, %v11430_v47  ;;  %v11579_v61 = vpack.i.bf16 %v11231_v17, %v11225_v14  ;;  %v10101_v13 = vunpack.i.h.bf16 %v11399_v19  ;;  %v16326_v57 = vunpack.i.h.bf16 %v11530_v53 }
  0xbc   : > { %10243 = vrot.lane.b32.xlu1 %v10242_v45, %s11138_s23  ;;  %10238 = vrot.lane.b32.xlu0 %v10237_v56, %s11138_s23  ;;  %v971_v32 = vsel %vm16342_vm14, %v963_v39, %v11474_v5  ;;  %v11611_v33 = vsel %vm16338_vm8, %v10086_v6, %v11419_v35 }
  0xbd   : > { %v10262_v56 = vpack.i.bf16 %v11481_v12, %v971_v32  ;;  %v11625_v35 = vsel %vm16328_vm9, %v10101_v13, %v11430_v47  ;;  %vm675_vm9 = vcmask 506880  }
  0xbe   : > { %v567_v21 = vpop.permute.xlu0 %566  ;;  %v11561_v25 = vpop.permute.xlu1 %10138 }
  0xbf   : > { %v10141_v3 = vunpack.i.h.bf16 %v11561_v25  ;;  %v10140_v46 = vunpack.i.l.bf16 %v11561_v25 }
  0xc0   : > { %10248 = vrot.lane.b32.xlu0 %v10247_v26, %s11138_s23  ;;  %10258 = vrot.lane.b32.xlu1 %v10257_v29, %s11138_s23  ;;  %v10135_v26 = vunpack.i.l.bf16 %v11530_v53  ;;  %v10130_v29 = vunpack.i.l.bf16 %v11528_v44 }
  0xc2   : > { %v11571_v45 = vpop.permute.xlu0 %10143  ;;  %v598_v9 = vpop.permute.xlu1 %597 }
  0xc3   : > { %v10145_v25 = vunpack.i.l.bf16 %v11571_v45 }
  0xc4   : > { %10253 = vrot.lane.b32.xlu0 %v11319_v22, %s11128_s13  ;;  %10263 = vrot.lane.b32.xlu1 %v10262_v56, %s11138_s23 }
  0xc6   : > { %v11581_v63 = vpop.permute.xlu0 %10148  ;;  %v11583_v4 = vpop.permute.xlu1 %10153 }
  0xc7   : > { %v10151_v52 = vunpack.i.h.bf16 %v11581_v63  ;;  %v10155_v1 = vunpack.i.l.bf16 %v11583_v4 }
  0xc8   : > { %10273 = vrot.lane.b32.xlu0 %v11579_v61, %s11130_s15  ;;  %10268 = vrot.lane.b32.xlu1 %v11319_v22, %s11129_s14  ;;  %v10131_v22 = vunpack.i.h.bf16 %v11528_v44  ;;  %v586_v44 = vsel %vm16333_vm15, %v10135_v26, %v16326_v57  ;;  %v583_v57 = vsel %vm16333_vm15, %v567_v21, %v10130_v29 }
  0xca   : > { %v11589_v8 = vpop.permute.xlu0 %10158  ;;  %v11591_v11 = vpop.permute.xlu1 %10163  ;;  %v584_v6 = vsel %vm16333_vm15, %v10130_v29, %v10131_v22  ;;  %v585_v7 = vsel %vm16333_vm15, %v10131_v22, %v10135_v26  ;;  %v842_v26 = vsel %vm783_vm1, %v11514_v40, %v586_v44  ;;  %v552_v22 = vsel %vm16332_vm13, %v10126_v20, %v11481_v12 }
  0xcb   : > { %v10161_v32 = vunpack.i.h.bf16 %v11589_v8  ;;  %v10165_v50 = vunpack.i.l.bf16 %v11591_v11  ;;  %v16393_v47 = vunpack.i.l.bf16 %v11589_v8  ;;  %v841_v21 = vsel %vm783_vm1, %v11526_v43, %v585_v7 }
  0xcc   : > { %10283 = vrot.lane.b32.xlu0 %v11579_v61, %s11132_s17  ;;  %10278 = vrot.lane.b32.xlu1 %v11579_v61, %s11131_s16  ;;  %v840_v29 = vsel %vm783_vm1, %v11523_v42, %v584_v6  ;;  %v615_v40 = vsel %vm16334_vm7, %v10140_v46, %v10141_v3  ;;  %v614_v12 = vsel %vm16334_vm7, %v598_v9, %v10140_v46  ;;  %vm16336_vm13 = vcmask 498688  }
  0xcd   : > { %v429_v13 = vsel %vm427_vm2, %v16393_v47, %v10161_v32  ;;  %v839_v20 = vsel %vm783_vm1, %v552_v22, %v583_v57  ;;  %v430_v44 = vsel %vm427_vm2, %v10161_v32, %v10165_v50  ;;  %v16394_v47 = vunpack.i.h.bf16 %v11591_v11 }
  0xce   : > { %v11603_v30 = vpop.permute.xlu0 %628  ;;  %v11605_v39 = vpop.permute.xlu1 %10168  ;;  %v809_v7 = vsel %vm807_vm6, %v11406_v16, %v429_v13  ;;  %v616_v42 = vsel %vm16334_vm7, %v10141_v3, %v10145_v25  ;;  %v16395_v46 = vunpack.i.h.bf16 %v11571_v45  ;;  %v10150_v9 = vunpack.i.l.bf16 %v11581_v63 }
  0xcf   : > { %v431_v27 = vsel %vm427_vm2, %v10165_v50, %v16394_v47  ;;  %v10156_v57 = vunpack.i.h.bf16 %v11583_v4  ;;  %v847_v50 = vsel %vm791_vm3, %v840_v29, %v615_v40  ;;  %v846_v32 = vsel %vm791_vm3, %v839_v20, %v614_v12 }
  0xd0   : > { %10293 = vrot.lane.b32.xlu0 %v11579_v61, %s11134_s19  ;;  %10288 = vrot.lane.b32.xlu1 %v11579_v61, %s11133_s18  ;;  %v617_v43 = vsel %vm16334_vm7, %v10145_v25, %v16395_v46  ;;  %v647_v6 = vsel %vm644_vm4, %v10151_v52, %v10155_v1  ;;  %vm16343_vm15 = vcmask 490496   ;;  %v817_v16 = vsel %vm815_vm10, %v809_v7, %v11450_v55 }
  0xd1   : > { %v811_v3 = vsel %vm807_vm6, %v11436_v49, %v431_v27  ;;  %v810_v63 = vsel %vm807_vm6, %v11433_v48, %v430_v44  ;;  %v11140_v25 = vmov 0   ;;  %v848_v13 = vsel %vm791_vm3, %v841_v21, %v616_v42 }
  0xd2   : > { %v11631_v56 = vpop.permute.xlu0 %10173  ;;  %v412_v34 = vpop.permute.xlu1 %411  ;;  %10327 = vset.pattern.permute.xlu1 %v11140_v25  ;;  %10328 = vset.pattern.permute.xlu0 %v11140_v25  ;;  %v849_v22 = vsel %vm791_vm3, %v842_v26, %v617_v43  ;;  %v10171_v29 = vunpack.i.h.bf16 %v11605_v39  ;;  %vm16335_vm7 = vcmask 261120   ;;  %v646_v49 = vsel %vm644_vm4, %v10150_v9, %v10151_v52 }
  0xd3   : > { %v648_v48 = vsel %vm644_vm4, %v10155_v1, %v10156_v57  ;;  %v855_v27 = vsel %vm799_vm5, %v848_v13, %v647_v6  ;;  %v645_v21 = vsel %vm644_vm4, %v11603_v30, %v10150_v9  ;;  %v10176_v26 = vunpack.i.h.bf16 %v11631_v56 }
  0xd4   : > { %10303 = vrot.lane.b32.xlu0 %v11579_v61, %s11136_s21  ;;  %10298 = vrot.lane.b32.xlu1 %v11579_v61, %s11135_s20  ;;  %v819_v12 = vsel %vm815_vm10, %v811_v3, %v11462_v0  ;;  %v818_v52 = vsel %vm815_vm10, %v810_v63, %v11457_v59  ;;  %v10175_v20 = vunpack.i.l.bf16 %v11631_v56  ;;  %v16396_v1 = vunpack.i.l.bf16 %v11589_v8  ;;  %v16425_v56 = vld [vmem:[#allocation2_spill] sm:$0xff] }
  0xd5   : > { %v853_v7 = vsel %vm799_vm5, %v846_v32, %v645_v21  ;;  %v854_v0 = vsel %vm799_vm5, %v847_v50, %v646_v49  ;;  %v856_v59 = vsel %vm799_vm5, %v849_v22, %v648_v48  ;;  %v826_v8 = vsel %vm823_vm11, %v818_v52, %v11479_v10 }
  0xd6   : > { %v11660_v54 = vpop.permute.xlu0 %659  ;;  %v11662_v41 = vpop.permute.xlu1 %10178  ;;  %v428_v44 = vsel %vm427_vm2, %v412_v34, %v16396_v1  ;;  %v827_v34 = vsel %vm823_vm11, %v819_v12, %v11486_v15  ;;  %v678_v49 = vsel %vm675_vm9, %v10171_v29, %v10175_v20 }
  0xd7   : > { %v10181_v47 = vunpack.i.h.bf16 %v11662_v41  ;;  %v10180_v30 = vunpack.i.l.bf16 %v11662_v41  ;;  %v808_v41 = vsel %vm807_vm6, %v11439_v51, %v428_v44  ;;  %v835_v22 = vsel %vm16342_vm14, %v827_v34, %v11537_v58 }
  0xd8   : > { %10308 = vrot.lane.b32.xlu1 %v11579_v61, %s11137_s22  ;;  %v10170_v61 = vunpack.i.l.bf16 %v11605_v39  ;;  %v825_v39 = vsel %vm823_vm11, %v817_v16, %v11471_v2  ;;  %v679_v16 = vsel %vm675_vm9, %v10175_v20, %v10176_v26  ;;  %v816_v48 = vsel %vm815_vm10, %v808_v41, %v11611_v33 }
  0xd9   : > { %v833_v50 = vsel %vm16342_vm14, %v825_v39, %v11506_v36  ;;  %v708_v10 = vsel %vm16336_vm13, %v10180_v30, %v10181_v47  ;;  %v834_v36 = vsel %vm16342_vm14, %v826_v8, %v11509_v38  ;;  %v863_v58 = vsel %vm807_vm6, %v856_v59, %v679_v16 }
  0xda   : > { %v11687_v40 = vpop.permute.xlu0 %10183  ;;  %v691_v55 = vpop.permute.xlu1 %690  ;;  %v677_v2 = vsel %vm675_vm9, %v10170_v61, %v10171_v29  ;;  %v676_v12 = vsel %vm675_vm9, %v11660_v54, %v10170_v61 }
  0xdb   : > { %v10186_v32 = vunpack.i.h.bf16 %v11687_v40  ;;  %v10185_v6 = vunpack.i.l.bf16 %v11687_v40  ;;  %v861_v13 = vsel %vm807_vm6, %v854_v0, %v677_v2  ;;  %v707_v54 = vsel %vm16336_vm13, %v691_v55, %v10180_v30 }
  0xdc   : > { %v868_v52 = vsel %vm815_vm10, %v861_v13, %v708_v10  ;;  %v862_v0 = vsel %vm807_vm6, %v855_v27, %v678_v49  ;;  %v860_v41 = vsel %vm807_vm6, %v853_v7, %v676_v12 }
  0xdd   : > { %v710_v1 = vsel %vm16336_vm13, %v10185_v6, %v10186_v32  ;;  %v709_v38 = vsel %vm16336_vm13, %v10181_v47, %v10185_v6  ;;  %v867_v7 = vsel %vm815_vm10, %v860_v41, %v707_v54  ;;  %v16399_v41 = vunpack.i.l.bf16 %v11337_v28 }
  0xde   : > { %v10189_v42 = vpop.permute.xlu0 %10188  ;;  %v11711_v46 = vpop.permute.xlu1 %10193  ;;  %v870_v8 = vsel %vm815_vm10, %v863_v58, %v710_v1  ;;  %v869_v6 = vsel %vm815_vm10, %v862_v0, %v709_v38 }
  0xdf   : > { %v10191_v43 = vunpack.i.h.bf16 %v10189_v42  ;;  %v10190_v9 = vunpack.i.l.bf16 %v10189_v42  ;;  %v10196_v3 = vunpack.i.h.bf16 %v11711_v46  ;;  %v10195_v15 = vunpack.i.l.bf16 %v11711_v46 }
  0xe1   : > { %v739_v51 = vsel %vm16343_vm15, %v10190_v9, %v10191_v43  ;;  %v741_v33 = vsel %vm16343_vm15, %v10195_v15, %v10196_v3  ;;  %v740_v42 = vsel %vm16343_vm15, %v10191_v43, %v10195_v15 }
  0xe2   : > { %v722_v63 = vpop.permute.xlu0 %721  ;;  %v10199_v25 = vpop.permute.xlu1 %10198  ;;  %v875_v20 = vsel %vm823_vm11, %v868_v52, %v739_v51  ;;  %v877_v30 = vsel %vm823_vm11, %v870_v8, %v741_v33  ;;  %v876_v16 = vsel %vm823_vm11, %v869_v6, %v740_v42  ;;  %v16397_v42 = vunpack.i.l.bf16 %v11335_v24 }
  0xe3   : > { %v10201_v21 = vunpack.i.h.bf16 %v10199_v25  ;;  %v10200_v39 = vunpack.i.l.bf16 %v10199_v25  ;;  %v738_v55 = vsel %vm16343_vm15, %v722_v63, %v10190_v9 }
  0xe4   : > { %v874_v25 = vsel %vm823_vm11, %v867_v7, %v738_v55 }
  0xe5   : > { %v770_v29 = vsel %vm16335_vm7, %v10200_v39, %v10201_v21 }
  0xe6   : > { %v11754_v61 = vpop.permute.xlu0 %10203  ;;  %v505_v44 = vpop.permute.xlu1 %504  ;;  %v882_v2 = vsel %vm16342_vm14, %v875_v20, %v770_v29 }
  0xe7   : > { %v10206_v47 = vunpack.i.h.bf16 %v11754_v61  ;;  %v10205_v59 = vunpack.i.l.bf16 %v11754_v61  ;;  %v8934_v34 = vpack.c.bf16 %v882_v2, %v833_v50  ;;  %v521_v43 = vsel %vm16340_vm12, %v505_v44, %v11474_v5 }
  0xe8   : > { %v824_v5 = vsel %vm823_vm11, %v816_v48, %v11625_v35 }
  0xe9   : > { %8935 = vmatprep.subr.bf16.mxu0 %v8934_v34  ;;  %v772_v27 = vsel %vm16335_vm7, %v10205_v59, %v10206_v47  ;;  %v771_v50 = vsel %vm16335_vm7, %v10201_v21, %v10205_v59  ;;  %v832_v12 = vsel %vm16342_vm14, %v824_v5, %v521_v43 }
  0xea   : > { %v753_v15 = vpop.permute.xlu0 %752  ;;  %v10209_v9 = vpop.permute.xlu1 %10208  ;;  %v884_v10 = vsel %vm16342_vm14, %v877_v30, %v772_v27  ;;  %v883_v63 = vsel %vm16342_vm14, %v876_v16, %v771_v50  ;;  %v16402_v16 = vunpack.i.l.bf16 %v11343_v31 }
  0xeb   : > { %v769_v51 = vsel %vm16335_vm7, %v753_v15, %v10200_v39  ;;  %v10211_v13 = vunpack.i.h.bf16 %v10209_v9  ;;  %v8944_v49 = vpack.c.bf16 %v884_v10, %v835_v22  ;;  %v8946_v21 = vpack.c.bf16 %v883_v63, %v834_v36 }
  0xec   : > { %v881_v52 = vsel %vm16342_vm14, %v874_v25, %v769_v51  ;;  %v10210_v54 = vunpack.i.l.bf16 %v10209_v9  ;;  %vm16398_vm7 = vcmask 1031168  }
  0xed   : > { %8945 = vmatprep.subr.bf16.mxu1 %v8944_v49  ;;  %v8936_v1 = vpack.c.bf16 %v881_v52, %v832_v12  ;;  %v944_v58 = vsel %vm783_vm1, %v11233_v18, %v10211_v13  ;;  %vm16400_vm13 = vmmov %vm16398_vm7  ;;  %v16406_v52 = vunpack.i.l.bf16 %v11375_v60 }
  0xee   : > { %v10214_v38 = vpop.permute.xlu0 %10213  ;;  %v10219_v29 = vpop.permute.xlu1 %10218  ;;  %8947 = vmatpush1.bf16.msra.mxu1 %v8946_v21  ;;  %v341_v44 = vsel %vm16337_vm0, %v10210_v54, %v10211_v13  ;;  %v340_v0 = vsel %vm16337_vm0, %v16397_v42, %v10210_v54  ;;  %vm16401_vm0 = vcmask 1022976  }
  0xef   : > { %v10216_v35 = vunpack.i.h.bf16 %v10214_v38  ;;  %v10221_v48 = vunpack.i.h.bf16 %v10219_v29  ;;  %8937 = vmatpush1.bf16.msra.mxu0 %v8936_v1  ;;  %v10215_v2 = vunpack.i.l.bf16 %v10214_v38  ;;  %v790_v59 = vsel %vm783_vm1, %v11231_v17, %v341_v44 }
  0xf0   : > { %v10220_v8 = vunpack.i.l.bf16 %v10219_v29  ;;  %v789_v43 = vsel %vm783_vm1, %v11225_v14, %v340_v0 }
  0xf1   : > { %v945_v39 = vsel %vm791_vm3, %v944_v58, %v10216_v35  ;;  %v372_v34 = vsel %vm16398_vm7, %v10215_v2, %v10216_v35  ;;  %v371_v55 = vsel %vm16400_vm13, %v16399_v41, %v10215_v2  ;;  %vm16403_vm7 = vmmov %vm16401_vm0  ;;  %vm16404_vm13 = vcmask 793600  }
  0xf2   : > { %v946_v22 = vsel %vm799_vm5, %v945_v39, %v10221_v48  ;;  %v10224_v36 = vpop.permute.xlu0 %10223  ;;  %v11799_v30 = vpop.permute.xlu1 %10233  ;;  %v798_v24 = vsel %vm791_vm3, %v790_v59, %v372_v34  ;;  %v403_v27 = vsel %vm16401_vm0, %v10220_v8, %v10221_v48  ;;  %v797_v17 = vsel %vm791_vm3, %v789_v43, %v371_v55  ;;  %vm16405_vm0 = vmmov %vm16404_vm13 }
  0xf3   : > { %v10226_v20 = vunpack.i.h.bf16 %v10224_v36  ;;  %v10225_v50 = vunpack.i.l.bf16 %v10224_v36  ;;  %v402_v28 = vsel %vm16403_vm7, %v16402_v16, %v10220_v8  ;;  %v11814_v9 = vsel %vm799_vm5, %v798_v24, %v403_v27 }
  0xf4   : > { %v10236_v10 = vunpack.i.h.bf16 %v11799_v30  ;;  %v11821_v25 = vsel %vm799_vm5, %v797_v17, %v402_v28  ;;  %vm16341_vm7 = vcmask 252928   ;;  %v10235_v51 = vunpack.i.l.bf16 %v11799_v30 }
  0xf5   : > { %v11787_v33 = vsel %vm807_vm6, %v946_v22, %v10226_v20  ;;  %v912_v14 = vsel %vm16404_vm13, %v10225_v50, %v10226_v20  ;;  %v911_v31 = vsel %vm16405_vm0, %v11350_v37, %v10225_v50  ;;  %vm16407_vm13 = vcmask 777216  }
  0xf6   : > { %v11801_v6 = vpop.permute.xlu0 %10228  ;;  %v953_v12 = vsel %vm807_vm6, %v11814_v9, %v912_v14  ;;  %v952_v38 = vsel %vm807_vm6, %v11821_v25, %v911_v31  ;;  %v11845_v29 = vsel %vm16407_vm13, %v10235_v51, %v10236_v10  ;;  %vm16339_vm0 = vmmov 1  }
  0xf7   : > { %v10231_v7 = vunpack.i.h.bf16 %v11801_v6  ;;  %v10230_v15 = vunpack.i.l.bf16 %v11801_v6  ;;  %vm11867_vm13 = vmpackc.low %vm783_vm1, %vm16339_vm0  ;;  %v16408_v8 = vmov 0  ;;  %v16411_v41 = vunpack.i.l.bf16 %v11399_v19 }
  0xf8   : > { %v16409_v8 = vsel %vm11867_vm13, 4294967295, %v16408_v8  ;;  %vm16414_vm0 = vcmask 752640  }
  0xf9   : > { %v11833_v1 = vsel %vm16338_vm8, %v16406_v52, %v10230_v15  ;;  %v11838_v37 = vsel %vm16338_vm8, %v10230_v15, %v10231_v7  ;;  %16410 = vst [vmem:[#allocation7_spill] sm:$0xff] %v16409_v8  ;;  %vm16412_vm8 = vcmask 777216  }
  0xfa   : > { %v960_v44 = vsel %vm815_vm10, %v952_v38, %v11833_v1  ;;  %v961_v2 = vsel %vm815_vm10, %v953_v12, %v11838_v37  ;;  %v11874_v55 = vsel %vm16412_vm8, %v16411_v41, %v10235_v51  ;;  %vm1069_vm8 = vcmask 203776   ;;  %v11937_v41 = vld [vmem:[%s16307_s1 + $0x8] sm:$0xff] }
  0xfb   : > { %v968_v19 = vsel %vm823_vm11, %v960_v44, %v11874_v55  ;;  %v16413_v44 = vunpack.i.h.bf16 %v11530_v53 }
 0x12e   : > { %v11818_v63 = vpop.permute.xlu1 %10243  ;;  %v10239_v5 = vpop.permute.xlu0 %10238 }
 0x12f   : > { %v10246_v13 = vunpack.i.h.bf16 %v11818_v63  ;;  %v10245_v49 = vunpack.i.l.bf16 %v11818_v63  ;;  %v10241_v21 = vunpack.i.h.bf16 %v10239_v5  ;;  %v10240_v58 = vunpack.i.l.bf16 %v10239_v5 }
 0x130   : > { %v969_v5 = vsel %vm823_vm11, %v961_v2, %v11845_v29 }
 0x131   : > { %v1030_v20 = vsel %vm16341_vm7, %v10245_v49, %v10246_v13  ;;  %v1029_v54 = vsel %vm16341_vm7, %v10241_v21, %v10245_v49  ;;  %v1028_v42 = vsel %vm16341_vm7, %v10240_v58, %v10241_v21  ;;  %v11895_v49 = vld [vmem:[%s16307_s1] sm:$0xff] }
 0x132   : > { %v10249_v35 = vpop.permute.xlu0 %10248  ;;  %v11847_v48 = vpop.permute.xlu1 %10258 }
 0x133   : > { %v10251_v60 = vunpack.i.h.bf16 %v10249_v35  ;;  %v10250_v39 = vunpack.i.l.bf16 %v10249_v35  ;;  %v10261_v22 = vunpack.i.h.bf16 %v11847_v48  ;;  %v10260_v36 = vunpack.i.l.bf16 %v11847_v48 }
 0x135   : > { %v1021_v0 = vsel %vm16341_vm7, %v10250_v39, %v10251_v60  ;;  %v1022_v59 = vsel %vm16341_vm7, %v10251_v60, %v10260_v36  ;;  %v1023_v34 = vsel %vm16341_vm7, %v10260_v36, %v10261_v22 }
 0x136   : > { %v11876_v43 = vpop.permute.xlu0 %10253  ;;  %v10264_v24 = vpop.permute.xlu1 %10263  ;;  %v8938_v27 = vpack.c.bf16 %v1028_v42, %v1021_v0  ;;  %v8948_v50 = vpack.c.bf16 %v1030_v20, %v1023_v34  ;;  %v8951_v17 = vpack.c.bf16 %v1029_v54, %v1022_v59  ;;  %v16415_v42 = vmov 0.0  }
 0x137   : > { %v10256_v16 = vunpack.i.h.bf16 %v11876_v43  ;;  %v10255_v28 = vunpack.i.l.bf16 %v11876_v43  ;;  %v10266_v15 = vunpack.i.h.bf16 %v10264_v24  ;;  %v10265_v14 = vunpack.i.l.bf16 %v10264_v24 }
 0x138   : > { %8940 = vmatprep.subr.msk.bf16.mxu0 %vm11867_vm13, %v8938_v27  ;;  %8950 = vmatprep.subr.msk.bf16.mxu1 %vm11867_vm13, %v8948_v50  ;;  %v16416_v0 = vunpack.i.l.bf16 %v11488_v23 }
 0x139   : > { %v1027_v31 = vsel %vm16341_vm7, %v10266_v15, %v10240_v58  ;;  %v1020_v51 = vsel %vm16341_vm7, %v10265_v14, %v10250_v39  ;;  %8953 = vmatpush1.bf16.msk.msra.mxu1 %vm11867_vm13, %v8951_v17  ;;  %v11899_v21 = vsel %vm16340_vm12, %v11459_v62, %v10255_v28  ;;  %v11904_v12 = vsel %vm16340_vm12, %v10255_v28, %v10256_v16  ;;  %v8295_v14 = vld [vmem:[%s11216_s29 + $0x8] ss:$0 sm:$0xff]  ;;  %s11149_s29 = smov 74  }
 0x13a   : > { %v11906_v52 = vpop.permute.xlu0 %10273  ;;  %v11908_v58 = vpop.permute.xlu1 %10268  ;;  %v8941_v38 = vpack.c.bf16 %v1027_v31, %v1020_v51  ;;  %v976_v35 = vsel %vm16342_vm14, %v968_v19, %v11899_v21  ;;  %v977_v60 = vsel %vm16342_vm14, %v969_v5, %v11904_v12  ;;  %vm16417_vm12 = vcmask 760832   ;;  %vm16419_vm14 = vmmov %vm16414_vm0  ;;  %v16420_v19 = vld [vmem:[#allocation6_spill] sm:$0xff] }
 0x13b   : > { %v10276_v39 = vunpack.i.h.bf16 %v11906_v52  ;;  %v10275_v62 = vunpack.i.l.bf16 %v11906_v52  ;;  %v10271_v36 = vunpack.i.h.bf16 %v11908_v58  ;;  %v10270_v20 = vunpack.i.l.bf16 %v11908_v58  ;;  %vm16418_vm7 = vmmov %vm16417_vm12  ;;  %v1046_v58 = vld [vmem:[%s16308_s2 + $0x8] sm:$0xff] }
 0x13c   : > { %8943 = vmatpush1.bf16.msk.msra.mxu0 %vm11867_vm13, %v8941_v38  ;;  %8304 = vmatmul.mubr.msk.f32.vlgmr.msra.gmra.mrb[0].mxu1 %vm1069_vm8, %v11895_v49  ;;  %v10312_v54 = vpack.i.bf16 %v977_v60, %v976_v35  ;;  %v16421_v51 = vunpack.i.h.bf16 %v11571_v45 }
 0x13d   : > { %v587_v2 = vsel %vm16414_vm0, %v16413_v44, %v10275_v62  ;;  %1255 = vmatprep.mubr.f32.mxu1 %v16415_v42  ;;  %v557_v59 = vsel %vm16417_vm12, %v16416_v0, %v10270_v20  ;;  %v11932_v34 = vsel %vm16418_vm7, %v10270_v20, %v10271_v36  ;;  %v588_v53 = vsel %vm16419_vm14, %v10275_v62, %v10276_v39  ;;  %v11974_v62 = vld [vmem:[%s16307_s1 + $0x10] sm:$0xff] }
 0x13e   : > { %10313 = vrot.lane.b32.xlu0 %v10312_v54, %s11138_s23  ;;  %v11943_v24 = vpop.permute.xlu0 %10283  ;;  %v11945_v23 = vpop.permute.xlu1 %10278  ;;  %v10317_v27 = vpack.i.bf16 %v11932_v34, %v557_v59  ;;  %v843_v5 = vsel %vm783_vm1, %v16420_v19, %v587_v2  ;;  %vm16422_vm12 = vcmask 523264   ;;  %v844_v60 = vsel %vm783_vm1, %v557_v59, %v588_v53 }
 0x13f   : > { %v10286_v50 = vunpack.i.h.bf16 %v11943_v24  ;;  %v10285_v17 = vunpack.i.l.bf16 %v11943_v24  ;;  %v10281_v28 = vunpack.i.h.bf16 %v11945_v23  ;;  %v10280_v15 = vunpack.i.l.bf16 %v11945_v23  ;;  %8298 = vmatmul.mubr.msk.f32.vlgmr.msra.gmra.mrb[0].mxu0 %vm1069_vm8, %v11895_v49  ;;  %vm16423_vm14 = vmmov %vm16422_vm12 }
 0x140   : > { %10318 = vrot.lane.b32.xlu1 %v10317_v27, %s11138_s23  ;;  %8305 = vmatmul.mubr.msk.f32.gmra.mrb[2].mxu1 %vm1069_vm8, %v11937_v41  ;;  %vm16427_vm7 = vcmask 498688  }
 0x141   : > { %v649_v31 = vsel %vm644_vm4, %v10156_v57, %v10285_v17  ;;  %v618_v38 = vsel %vm16422_vm12, %v16421_v51, %v10280_v15  ;;  %v619_v35 = vsel %vm16423_vm14, %v10280_v15, %v10281_v28  ;;  %1166 = vmatprep.mubr.f32.mxu0 %v16415_v42  ;;  %v650_v4 = vsel %vm644_vm4, %v10285_v17, %v10286_v50  ;;  %v12003_v17 = vld [vmem:[%s16307_s1 + $0x18] sm:$0xff]  ;;  %vm16428_vm0 = vmmov %vm16427_vm7 }
 0x142   : > { %v850_v45 = vsel %vm791_vm3, %v843_v5, %v618_v38  ;;  %v851_v57 = vsel %vm791_vm3, %v844_v60, %v619_v35  ;;  %926 = vrot.lane.b32.xlu0 %v8295_v14, %s11126_s11  ;;  %v11982_v20 = vpop.permute.xlu0 %10293  ;;  %v11984_v54 = vpop.permute.xlu1 %10288  ;;  %1261 = vmatprep.mubr.f32.mxu1 %v16415_v42  ;;  %v16424_v5 = vunpack.i.h.bf16 %v11591_v11  ;;  %vm16430_vm12 = vcmask 261120  }
 0x143   : > { %v10296_v44 = vunpack.i.h.bf16 %v11982_v20  ;;  %v10295_v2 = vunpack.i.l.bf16 %v11982_v20  ;;  %8299 = vmatmul.mubr.msk.f32.gmra.mrb[2].mxu0 %vm1069_vm8, %v11937_v41  ;;  %v10291_v0 = vunpack.i.h.bf16 %v11984_v54  ;;  %v10290_v59 = vunpack.i.l.bf16 %v11984_v54  ;;  %vm16431_vm14 = vmmov %vm16430_vm12 }
 0x144   : > { %931 = vrot.lane.b32.xlu1 %v8295_v14, %s11127_s12  ;;  %8306 = vmatmul.mubr.msk.f32.gmra.mrb[4].mxu1 %vm1069_vm8, %v11974_v62  ;;  %v858_v53 = vsel %vm799_vm5, %v851_v57, %v650_v4  ;;  %v857_v27 = vsel %vm799_vm5, %v850_v45, %v649_v31  ;;  %v16426_v45 = vld [vmem:[#allocation3_spill] sm:$0xff]  ;;  %s11158_s12 = smov 53  }
 0x145   : > { %1172 = vmatprep.mubr.f32.mxu0 %v16415_v42  ;;  %1267 = vmatprep.mubr.f32.mxu1 %v16415_v42  ;;  %v680_v15 = vsel %vm675_vm9, %v10176_v26, %v10295_v2  ;;  %v681_v19 = vsel %vm675_vm9, %v10295_v2, %v10296_v44  ;;  %v432_v31 = vsel %vm427_vm2, %v16424_v5, %v10290_v59 }
 0x146   : > { %v433_v51 = vsel %vm427_vm2, %v10290_v59, %v10291_v0  ;;  %936 = vrot.lane.b32.xlu0 %v8295_v14, %s11128_s13  ;;  %v12018_v38 = vpop.permute.xlu0 %10303  ;;  %v12020_v35 = vpop.permute.xlu1 %10298  ;;  %v812_v26 = vsel %vm807_vm6, %v16425_v56, %v432_v31  ;;  %v864_v5 = vsel %vm807_vm6, %v857_v27, %v680_v15  ;;  %v865_v31 = vsel %vm807_vm6, %v858_v53, %v681_v19  ;;  %v16429_v53 = vld [vmem:[#allocation4_spill] sm:$0xff]  ;;  %s11152_s13 = smov 71  }
 0x147   : > { %v813_v60 = vsel %vm807_vm6, %v11821_v25, %v433_v51  ;;  %v10306_v11 = vunpack.i.h.bf16 %v12018_v38  ;;  %v10305_v4 = vunpack.i.l.bf16 %v12018_v38  ;;  %8300 = vmatmul.mubr.msk.f32.gmra.mrb[4].mxu0 %vm1069_vm8, %v11974_v62  ;;  %v820_v57 = vsel %vm815_vm10, %v812_v26, %v16426_v45 }
 0x148   : > { %v10301_v2 = vunpack.i.h.bf16 %v12020_v35  ;;  %v10300_v59 = vunpack.i.l.bf16 %v12020_v35  ;;  %941 = vrot.lane.b32.xlu1 %v8295_v14, %s11129_s14  ;;  %8307 = vmatmul.mubr.msk.f32.gmra.mrb[6].mxu1 %vm1069_vm8, %v12003_v17  ;;  %v821_v25 = vsel %vm815_vm10, %v813_v60, %v11833_v1  ;;  %v828_v27 = vsel %vm823_vm11, %v820_v57, %v16429_v53 }
 0x149   : > { %v742_v51 = vsel %vm16343_vm15, %v10196_v3, %v10305_v4  ;;  %v743_v56 = vsel %vm16343_vm15, %v10305_v4, %v10306_v11  ;;  %1178 = vmatprep.mubr.f32.mxu0 %v16415_v42  ;;  %v829_v3 = vsel %vm823_vm11, %v821_v25, %v11874_v55  ;;  %8898 = vmatprep.mubr.msk.f32.mxu1 %vm1069_vm8, %v11895_v49 }
 0x14a   : > { %v711_v14 = vsel %vm16427_vm7, %v10186_v32, %v10300_v59  ;;  %v712_v1 = vsel %vm16428_vm0, %v10300_v59, %v10301_v2  ;;  %580 = vrot.lane.b32.xlu0 %v11233_v18, %s11130_s15  ;;  %v12056_v46 = vpop.permute.xlu1 %10308  ;;  %vm16432_vm7 = vcmask 1046528   ;;  %v16434_v59 = vld [vmem:[#allocation5_spill] sm:$0xff] }
 0x14b   : > { %v871_v15 = vsel %vm815_vm10, %v864_v5, %v711_v14  ;;  %v10311_v40 = vunpack.i.h.bf16 %v12056_v46  ;;  %v10310_v32 = vunpack.i.l.bf16 %v12056_v46  ;;  %8301 = vmatmul.mubr.msk.f32.gmra.mrb[6].mxu0 %vm1069_vm8, %v12003_v17  ;;  %v872_v19 = vsel %vm815_vm10, %v865_v31, %v712_v1  ;;  %vm16433_vm0 = vmmov %vm16432_vm7  ;;  %v1047_v31 = vld [vmem:[%s16308_s2 + $0x10] sm:$0xff] }
 0x14c   : > { %611 = vrot.lane.b32.xlu1 %v11233_v18, %s11131_s16  ;;  %1338 = vmatprep.mubr.f32.mxu0 %v16415_v42  ;;  %v879_v60 = vsel %vm823_vm11, %v872_v19, %v743_v56  ;;  %v878_v4 = vsel %vm823_vm11, %v871_v15, %v742_v51  ;;  %v837_v45 = vsel %vm16432_vm7, %v829_v3, %v11899_v21  ;;  %vm16435_vm15 = vmmov %vm16433_vm0  ;;  %v1045_v21 = vld [vmem:[%s16308_s2] sm:$0xff]  ;;  %v1048_v51 = vld [vmem:[%s16308_s2 + $0x18] sm:$0xff] }
 0x14d   : > { %v773_v55 = vsel %vm16430_vm12, %v10206_v47, %v10310_v32  ;;  %v774_v26 = vsel %vm16431_vm14, %v10310_v32, %v10311_v40  ;;  %v836_v61 = vsel %vm16435_vm15, %v828_v27, %v16434_v59  ;;  %vm16436_vm12 = vmmov %vm16433_vm0  ;;  %vm16437_vm15 = vcmask 252928  }
 0x14e   : > { %642 = vrot.lane.b32.xlu0 %v11233_v18, %s11132_s17  ;;  %v886_v57 = vsel %vm16433_vm0, %v879_v60, %v774_v26  ;;  %v885_v47 = vsel %vm16436_vm12, %v878_v4, %v773_v55  ;;  %vm16438_vm14 = vmmov %vm16437_vm15  ;;  %vm16441_vm12 = vcmask 785408  }
 0x14f   : > { %v8954_v25 = vpack.c.bf16 %v886_v57, %v837_v45  ;;  %v8956_v5 = vpack.c.bf16 %v885_v47, %v836_v61  ;;  %vm16439_vm7 = vmmov %vm16438_vm14 }
 0x150   : > { %425 = vrot.lane.b32.xlu1 %v11233_v18, %s11133_s18  ;;  %vm16440_vm0 = vmmov %vm16439_vm7 }
 0x151   : > { %8955 = vmatprep.subr.bf16.mxu0 %v8954_v25 }
 0x152   : > { %673 = vrot.lane.b32.xlu0 %v11233_v18, %s11134_s19  ;;  %8957 = vmatpush1.bf16.msra.mxu0 %v8956_v5  ;;  %s11142_s19 = smov 108  }
 0x154   : > { %704 = vrot.lane.b32.xlu1 %v11233_v18, %s11135_s20  ;;  %s11143_s20 = smov 107  }
 0x156   : > { %735 = vrot.lane.b32.xlu0 %v11233_v18, %s11136_s21  ;;  %s11144_s21 = smov 106  }
 0x158   : > { %766 = vrot.lane.b32.xlu1 %v11233_v18, %s11137_s22  ;;  %s11145_s22 = smov 91  }
 0x15c   : > { %1051 = vperm.xlu1 %10327, %v1045_v21  }
 0x160   : > { %1061 = vperm.xlu1 %10327, %v1047_v31  }
 0x164   : > { %1066 = vperm.xlu1 %10327, %v1048_v51  }
 0x1b0   : > { %v12108_v56 = vpop.permute.xlu0 %10313 }
 0x1b1   : > { %v10316_v14 = vunpack.i.h.bf16 %v12108_v56  ;;  %v10315_v18 = vunpack.i.l.bf16 %v12108_v56 }
 0x1b2   : > { %v12112_v1 = vpop.permute.xlu1 %10318 }
 0x1b3   : > { %v10321_v3 = vunpack.i.h.bf16 %v12112_v1  ;;  %v10320_v53 = vunpack.i.l.bf16 %v12112_v1  ;;  %v1024_v27 = vsel %vm16437_vm15, %v10261_v22, %v10315_v18  ;;  %v1025_v32 = vsel %vm16438_vm14, %v10315_v18, %v10316_v14 }
 0x1b4   : > { %v927_v15 = vpop.permute.xlu0 %926  ;;  %vm16442_vm15 = vcmask 777216   ;;  %vm16443_vm14 = vcmask 769024  }
 0x1b5   : > { %v1031_v19 = vsel %vm16439_vm7, %v10246_v13, %v10320_v53  ;;  %v1032_v55 = vsel %vm16440_vm0, %v10320_v53, %v10321_v3  ;;  %v928_v26 = vsel %vm16441_vm12, %v10231_v7, %v927_v15  ;;  %vm16444_vm7 = vcmask 1046528  }
 0x1b6   : > { %v8961_v48 = vpack.c.bf16 %v1031_v19, %v1024_v27  ;;  %v932_v60 = vpop.permute.xlu1 %931  ;;  %v8958_v22 = vpack.c.bf16 %v1032_v55, %v1025_v32  ;;  %v962_v4 = vsel %vm815_vm10, %v11787_v33, %v928_v26  ;;  %vm16445_vm0 = vcmask 760832  }
 0x1b7   : > { %v933_v63 = vsel %vm16442_vm15, %v10236_v10, %v932_v60  ;;  %vm16446_vm12 = vcmask 752640   ;;  %vm16447_vm15 = vcmask 523264  }
 0x1b8   : > { %v970_v13 = vsel %vm823_vm11, %v962_v4, %v933_v63  ;;  %v937_v45 = vpop.permute.xlu0 %936  ;;  %8960 = vmatprep.subr.msk.bf16.mxu0 %vm11867_vm13, %v8958_v22 }
 0x1b9   : > { %v938_v6 = vsel %vm16443_vm14, %v10256_v16, %v937_v45  ;;  %8963 = vmatpush1.bf16.msk.msra.mxu0 %vm11867_vm13, %v8961_v48 }
 0x1ba   : > { %v942_v7 = vpop.permute.xlu1 %941  ;;  %v978_v33 = vsel %vm16444_vm7, %v970_v13, %v938_v6 }
 0x1bb   : > { %v943_v30 = vsel %vm16445_vm0, %v10271_v36, %v942_v7 }
 0x1bc   : > { %v10322_v10 = vpack.i.bf16 %v943_v30, %v978_v33  ;;  %v581_v57 = vpop.permute.xlu0 %580  ;;  %8310 = vmatmul.mubr.msk.f32.vlgmr.msra.gmra.mrb[8].mxu0 %vm1069_vm8, %v11895_v49 }
 0x1bd   : > { %1344 = vmatprep.mubr.f32.mxu0 %v16415_v42  ;;  %v589_v16 = vsel %vm16446_vm12, %v10276_v39, %v581_v57 }
 0x1be   : > { %10323 = vrot.lane.b32.xlu0 %v10322_v10, %s11138_s23  ;;  %v612_v43 = vpop.permute.xlu1 %611  ;;  %v845_v49 = vsel %vm783_vm1, %v11932_v34, %v589_v16  ;;  %vm16448_vm1 = vcmask 498688   ;;  %s11146_s23 = smov 90  }
 0x1bf   : > { %v620_v36 = vsel %vm16447_vm15, %v10281_v28, %v612_v43 }
 0x1c0   : > { %v643_v59 = vpop.permute.xlu0 %642  ;;  %8311 = vmatmul.mubr.msk.f32.gmra.mrb[10].mxu0 %vm1069_vm8, %v11937_v41  ;;  %v852_v39 = vsel %vm791_vm3, %v845_v49, %v620_v36  ;;  %vm16449_vm3 = vcmask 490496  }
 0x1c1   : > { %1350 = vmatprep.mubr.f32.mxu0 %v16415_v42  ;;  %v651_v61 = vsel %vm644_vm4, %v10286_v50, %v643_v59  ;;  %vm16450_vm4 = vcmask 261120  }
 0x1c2   : > { %1056 = vperm.xlu0 %10328, %v1046_v58   ;;  %v426_v52 = vpop.permute.xlu1 %425  ;;  %v859_v24 = vsel %vm799_vm5, %v852_v39, %v651_v61  ;;  %vm16451_vm5 = vmmov %vm16444_vm7 }
 0x1c3   : > { %v434_v23 = vsel %vm427_vm2, %v10291_v0, %v426_v52 }
 0x1c4   : > { %v814_v28 = vsel %vm807_vm6, %v11814_v9, %v434_v23  ;;  %v674_v47 = vpop.permute.xlu0 %673  ;;  %8312 = vmatmul.mubr.msk.f32.gmra.mrb[12].mxu0 %vm1069_vm8, %v11974_v62 }
 0x1c5   : > { %v682_v34 = vsel %vm675_vm9, %v10296_v44, %v674_v47  ;;  %1356 = vmatprep.mubr.f32.mxu0 %v16415_v42  ;;  %v822_v50 = vsel %vm815_vm10, %v814_v28, %v11838_v37  ;;  %vm16453_vm9 = vcmask 252928  }
 0x1c6   : > { %v705_v54 = vpop.permute.xlu1 %704  ;;  %v866_v0 = vsel %vm807_vm6, %v859_v24, %v682_v34  ;;  %v830_v37 = vsel %vm823_vm11, %v822_v50, %v11845_v29  ;;  %vm16452_vm6 = vmmov %vm16451_vm5 }
 0x1c7   : > { %v713_v9 = vsel %vm16448_vm1, %v10301_v2, %v705_v54  ;;  %v838_v31 = vsel %vm16452_vm6, %v830_v37, %v11904_v12  ;;  %vm16466_vm6 = vcmask 785408  }
 0x1c8   : > { %v873_v25 = vsel %vm815_vm10, %v866_v0, %v713_v9  ;;  %v736_v5 = vpop.permute.xlu0 %735  ;;  %8313 = vmatmul.mubr.msk.f32.gmra.mrb[14].mxu0 %vm1069_vm8, %v12003_v17  ;;  %vm16454_vm10 = vmmov %vm16453_vm9 }
 0x1c9   : > { %v744_v20 = vsel %vm16449_vm3, %v10306_v11, %v736_v5 }
 0x1ca   : > { %v767_v44 = vpop.permute.xlu1 %766  ;;  %v880_v21 = vsel %vm823_vm11, %v873_v25, %v744_v20  ;;  %vm16455_vm11 = vcmask 1039360  }
 0x1cb   : > { %v775_v35 = vsel %vm16450_vm4, %v10311_v40, %v767_v44 }
 0x1cc   : > { %v887_v2 = vsel %vm16451_vm5, %v880_v21, %v775_v35 }
 0x1cd   : > { %v8964_v51 = vpack.c.bf16 %v887_v2, %v838_v31 }
 0x1cf   : > { %8965 = vmatprep.subr.bf16.mxu1 %v8964_v51 }
 0x1d0   : > { %8967 = vmatpush3.bf16.msra.mxu1 %v8964_v51 }
 0x1db   : > { %v12203_v38 = vpop.permute.xlu1 %1051 }
 0x1df   : > { %v12247_v56 = vpop.permute.xlu1 %1061 }
 0x1e3   : > { %v12279_v24 = vpop.permute.xlu1 %1066 }
 0x20f   : > { %v1251_v11 = vpop.f32.mrb[0].mxu1 }
 0x210   : > { %v12206_v29 = vadd.f32 %v1251_v11, %v12203_v38  ;;  %v1253_v18 = vpop.f32.mrb[1].mxu1  ;;  %v1805_v11 = vld [vmem:[%s16309_s3 + $0x8] sm:$0xff] }
 0x211   : > { %v12209_v53 = vadd.f32 %v1253_v18, %v12203_v38  ;;  %v1808_v18 = vld [vmem:[%s16309_s3 + $0x20] sm:$0xff] }
 0x212   : > { %v1162_v46 = vpop.f32.mrb[0].mxu0  ;;  %v1450_v32 = vmax.f32 %v12206_v29, 0.0 }
 0x213   : > { %v12212_v40 = vadd.f32 %v1162_v46, %v12203_v38  ;;  %v1164_v27 = vpop.f32.mrb[1].mxu0  ;;  %v1451_v12 = vmax.f32 %v12209_v53, 0.0  ;;  %v1257_v15 = vpop.f32.mrb[2].mxu1  ;;  %v1804_v46 = vld [vmem:[%s16309_s3] sm:$0xff]  ;;  %v1915_v53 = vld [vmem:[%s16309_s3 + $0x378] sm:$0xff] }
 0x214   : > { %v12217_v19 = vadd.f32 %v1164_v27, %v12203_v38  ;;  %v1259_v55 = vpop.f32.mrb[3].mxu1  ;;  %v8974_v27 = vpack.c.bf16 %v1808_v18, %v1805_v11  ;;  %v1832_v11 = vld [vmem:[%s16309_s3 + $0xe0] sm:$0xff] }
 0x215   : > { %v1448_v26 = vmax.f32 %v12212_v40, 0.0 }
 0x216   : > { %v1449_v48 = vmax.f32 %v12217_v19, 0.0  ;;  %v1168_v60 = vpop.f32.mrb[2].mxu0  ;;  %8975 = vmatprep.subr.bf16.mxu0 %v8974_v27  ;;  %v1828_v27 = vld [vmem:[%s16309_s3 + $0xc0] sm:$0xff] }
 0x217   : > { %v10334_v22 = vpack.i.bf16 %v1448_v26, %v1451_v12  ;;  %v1263_v4 = vpop.f32.mrb[4].mxu1  ;;  %v1170_v63 = vpop.f32.mrb[3].mxu0 }
 0x218   : > { %v10329_v13 = vpack.i.bf16 %v1450_v32, %v1449_v48  ;;  %v1265_v45 = vpop.f32.mrb[5].mxu1  ;;  %v12270_v39 = vadd.f32 %v1263_v4, %v12247_v56 }
 0x219   : > { %10335 = vrot.lane.b32.xlu1 %v10334_v22, %s11122_s30  ;;  %v12273_v61 = vadd.f32 %v1265_v45, %v12247_v56  ;;  %v1814_v45 = vld [vmem:[%s16309_s3 + $0x50] sm:$0xff] }
 0x21a   : > { %v1174_v6 = vpop.f32.mrb[4].mxu0  ;;  %10330 = vrot.lane.b32.xlu0 %v10329_v13, %s11122_s30  ;;  %v1464_v20 = vmax.f32 %v12270_v39, 0.0  ;;  %v1811_v13 = vld [vmem:[%s16309_s3 + $0x38] sm:$0xff] }
 0x21b   : > { %v1176_v7 = vpop.f32.mrb[5].mxu0  ;;  %v1269_v33 = vpop.f32.mrb[6].mxu1  ;;  %v16347_v37 = vmax.f32 %v12273_v61, 0.0 }
 0x21c   : > { %v1271_v30 = vpop.f32.mrb[7].mxu1  ;;  %v12253_v1 = vadd.f32 %v1176_v7, %v12247_v56  ;;  %v12300_v44 = vadd.f32 %v1269_v33, %v12279_v24  ;;  %v8978_v7 = vpack.c.bf16 %v1814_v45, %v1811_v13  ;;  %v1813_v33 = vld [vmem:[%s16309_s3 + $0x48] sm:$0xff]  ;;  %v1834_v45 = vld [vmem:[%s16309_s3 + $0xf0] sm:$0xff] }
 0x21d   : > { %v12303_v21 = vadd.f32 %v1271_v30, %v12279_v24 }
 0x21e   : > { %v1180_v10 = vpop.f32.mrb[6].mxu0  ;;  %v1463_v54 = vmax.f32 %v12253_v1, 0.0 }
 0x21f   : > { %v1182_v57 = vpop.f32.mrb[7].mxu0  ;;  %v12284_v0 = vadd.f32 %v1180_v10, %v12279_v24  ;;  %v1817_v10 = vld [vmem:[%s16309_s3 + $0x68] sm:$0xff] }
 0x220   : > { %v12287_v9 = vadd.f32 %v1182_v57, %v12279_v24  ;;  %v10349_v2 = vpack.i.bf16 %v1464_v20, %v1463_v54  ;;  %v1820_v57 = vld [vmem:[%s16309_s3 + $0x80] sm:$0xff] }
 0x221   : > { %v1469_v31 = vmax.f32 %v12284_v0, 0.0 }
 0x222   : > { %v1470_v51 = vmax.f32 %v12287_v9, 0.0  ;;  %v1904_v9 = vld [vmem:[%s16309_s3 + $0x320] sm:$0xff] }
 0x230   : > { %v10324_v43 = vpop.permute.xlu0 %10323 }
 0x231   : > { %v10326_v16 = vunpack.i.h.bf16 %v10324_v43  ;;  %v10325_v58 = vunpack.i.l.bf16 %v10324_v43  ;;  %v1816_v43 = vld [vmem:[%s16309_s3 + $0x60] sm:$0xff] }
 0x233   : > { %v1026_v36 = vsel %vm16453_vm9, %v10316_v14, %v10325_v58  ;;  %v1033_v59 = vsel %vm16454_vm10, %v10321_v3, %v10326_v16  ;;  %v12250_v14 = vadd.f32 %v1174_v6, %v12247_v56  ;;  %v1810_v6 = vld [vmem:[%s16309_s3 + $0x30] sm:$0xff]  ;;  %v8982_v16 = vpack.c.bf16 %v1820_v57, %v1817_v10  ;;  %v1819_v58 = vld [vmem:[%s16309_s3 + $0x78] sm:$0xff]  ;;  %v1840_v57 = vld [vmem:[%s16309_s3 + $0x120] sm:$0xff] }
 0x234   : > { %v8968_v49 = vpack.c.bf16 %v1033_v59, %v1026_v36  ;;  %v8980_v30 = vpack.c.bf16 %v1813_v33, %v1810_v6  ;;  %v1823_v36 = vld [vmem:[%s16309_s3 + $0x98] sm:$0xff]  ;;  %v1826_v59 = vld [vmem:[%s16309_s3 + $0xb0] sm:$0xff]  ;;  %v1837_v6 = vld [vmem:[%s16309_s3 + $0x108] sm:$0xff] }
 0x235   : > { %v1462_v50 = vmax.f32 %v12250_v14, 0.0  ;;  %v1844_v33 = vld [vmem:[%s16309_s3 + $0x140] sm:$0xff]  ;;  %vm16467_vm9 = vmmov %vm16466_vm6 }
 0x236   : > { %8970 = vmatprep.subr.msk.bf16.mxu1 %vm11867_vm13, %v8968_v49 }
 0x237   : > { %8973 = vmatpush3.bf16.msk.msra.mxu1 %vm11867_vm13, %v8968_v49  ;;  %v10354_v35 = vpack.i.bf16 %v1462_v50, %v16347_v37  ;;  %v8984_v49 = vpack.c.bf16 %v1819_v58, %v1816_v43  ;;  %v1843_v43 = vld [vmem:[%s16309_s3 + $0x138] sm:$0xff]  ;;  %v1850_v58 = vld [vmem:[%s16309_s3 + $0x170] sm:$0xff] }
 0x23a   : > { %8899 = vmatmul.mubr.msk.f32.vlgmr.msra.gmra.mrb[8].mxu1 %vm1069_vm8, %v11937_v41 }
 0x23b   : > { %8901 = vmatprep.mubr.msk.f32.mxu1 %vm1069_vm8, %v11974_v62 }
 0x23e   : > { %8902 = vmatmul.mubr.msk.f32.gmra.mrb[10].mxu1 %vm1069_vm8, %v12003_v17  ;;  %vm16456_vm8 = vmmov %vm16455_vm11 }
 0x23f   : > { %vm16457_vm14 = vmmov %vm16456_vm8 }
 0x240   : > { %vm16458_vm7 = vmmov %vm16456_vm8 }
 0x241   : > { %v12255_v3 = vpop.permute.xlu0 %1056  ;;  %vm16459_vm0 = vmmov %vm16458_vm7 }
 0x242   : > { %v12258_v52 = vadd.f32 %v1168_v60, %v12255_v3  ;;  %v12261_v41 = vadd.f32 %v1259_v55, %v12255_v3  ;;  %v12264_v62 = vadd.f32 %v1170_v63, %v12255_v3  ;;  %v12267_v17 = vadd.f32 %v1257_v15, %v12255_v3  ;;  %v1807_v15 = vld [vmem:[%s16309_s3 + $0x18] sm:$0xff]  ;;  %vm16460_vm12 = vmmov %vm16459_vm0 }
 0x243   : > { %v1471_v55 = vmax.f32 %v12300_v44, 0.0  ;;  %v16346_v60 = vmax.f32 %v12303_v21, 0.0  ;;  %v8976_v22 = vpack.c.bf16 %v1807_v15, %v1804_v46  ;;  %v1831_v15 = vld [vmem:[%s16309_s3 + $0xd8] sm:$0xff]  ;;  %vm16461_vm15 = vmmov %vm16459_vm0  ;;  %v1901_v44 = vld [vmem:[%s16309_s3 + $0x308] sm:$0xff] }
 0x244   : > { %v1455_v23 = vmax.f32 %v12258_v52, 0.0  ;;  %v1458_v28 = vmax.f32 %v12261_v41, 0.0  ;;  %v1456_v47 = vmax.f32 %v12264_v62, 0.0  ;;  %v1457_v34 = vmax.f32 %v12267_v17, 0.0  ;;  %vm16462_vm1 = vmmov %vm16459_vm0  ;;  %v1924_v41 = vld [vmem:[%s16309_s3 + $0x3c0] sm:$0xff] }
 0x245   : > { %v10364_v4 = vpack.i.bf16 %v1469_v31, %v16346_v60  ;;  %v10359_v63 = vpack.i.bf16 %v1471_v55, %v1470_v51  ;;  %8977 = vmatpush1.bf16.msra.mxu0 %v8976_v22  ;;  %v1835_v22 = vld [vmem:[%s16309_s3 + $0xf8] sm:$0xff]  ;;  %vm16463_vm3 = vmmov %vm16459_vm0 }
 0x246   : > { %v10344_v25 = vpack.i.bf16 %v1455_v23, %v1458_v28  ;;  %v10339_v5 = vpack.i.bf16 %v1457_v34, %v1456_v47  ;;  %8979 = vmatprep.subr.bf16.mxu0 %v8978_v7  ;;  %v1841_v7 = vld [vmem:[%s16309_s3 + $0x128] sm:$0xff]  ;;  %vm16464_vm4 = vmmov %vm16459_vm0 }
 0x247   : > { %v8998_v10 = vpack.c.bf16 %v1844_v33, %v1841_v7  ;;  %vm16465_vm5 = vmmov %vm16459_vm0 }
 0x248   : > { %10345 = vrot.lane.b32.xlu1 %v10344_v25, %s11122_s30  ;;  %10340 = vrot.lane.b32.xlu0 %v10339_v5, %s11122_s30  ;;  %v8986_v25 = vpack.c.bf16 %v1826_v59, %v1823_v36  ;;  %v1822_v5 = vld [vmem:[%s16309_s3 + $0x90] sm:$0xff]  ;;  %v9000_v36 = vpack.c.bf16 %v1843_v43, %v1840_v57  ;;  %v1871_v57 = vld [vmem:[%s16309_s3 + $0x218] sm:$0xff]  ;;  %vm16468_vm10 = vmmov %vm16459_vm0 }
 0x249   : > { %8981 = vmatpush1.bf16.msra.mxu0 %v8980_v30  ;;  %v8996_v30 = vpack.c.bf16 %v1837_v6, %v1834_v45  ;;  %v1865_v45 = vld [vmem:[%s16309_s3 + $0x1e8] sm:$0xff]  ;;  %v1868_v6 = vld [vmem:[%s16309_s3 + $0x200] sm:$0xff]  ;;  %v1874_v43 = vld [vmem:[%s16309_s3 + $0x230] sm:$0xff] }
 0x24a   : > { %8983 = vmatprep.subr.bf16.mxu0 %v8982_v16  ;;  %v1847_v16 = vld [vmem:[%s16309_s3 + $0x158] sm:$0xff]  ;;  %v9014_v33 = vpack.c.bf16 %v1868_v6, %v1865_v45  ;;  %v1892_v45 = vld [vmem:[%s16309_s3 + $0x2c0] sm:$0xff] }
 0x24b   : > { %v9002_v59 = vpack.c.bf16 %v1850_v58, %v1847_v16  ;;  %v9018_v58 = vpack.c.bf16 %v1874_v43, %v1871_v57  ;;  %v1888_v6 = vld [vmem:[%s16309_s3 + $0x2a0] sm:$0xff]  ;;  %v1898_v57 = vld [vmem:[%s16309_s3 + $0x2f0] sm:$0xff] }
 0x24c   : > { %10355 = vrot.lane.b32.xlu1 %v10354_v35, %s11122_s30  ;;  %10350 = vrot.lane.b32.xlu0 %v10349_v2, %s11122_s30  ;;  %v1825_v35 = vld [vmem:[%s16309_s3 + $0xa8] sm:$0xff] }
 0x24d   : > { %v1829_v2 = vld [vmem:[%s16309_s3 + $0xc8] sm:$0xff]  ;;  %8985 = vmatpush1.bf16.msra.mxu0 %v8984_v49  ;;  %v8988_v18 = vpack.c.bf16 %v1825_v35, %v1822_v5  ;;  %v1846_v49 = vld [vmem:[%s16309_s3 + $0x150] sm:$0xff]  ;;  %v1856_v35 = vld [vmem:[%s16309_s3 + $0x1a0] sm:$0xff] }
 0x24e   : > { %8987 = vmatprep.subr.bf16.mxu0 %v8986_v25  ;;  %v8990_v46 = vpack.c.bf16 %v1832_v11, %v1829_v2  ;;  %v1849_v25 = vld [vmem:[%s16309_s3 + $0x168] sm:$0xff] }
 0x24f   : > { %v1853_v5 = vld [vmem:[%s16309_s3 + $0x188] sm:$0xff]  ;;  %v9004_v2 = vpack.c.bf16 %v1849_v25, %v1846_v49  ;;  %v1880_v25 = vld [vmem:[%s16309_s3 + $0x260] sm:$0xff] }
 0x250   : > { %10365 = vrot.lane.b32.xlu1 %v10364_v4, %s11122_s30  ;;  %10360 = vrot.lane.b32.xlu0 %v10359_v63, %s11122_s30  ;;  %v1838_v4 = vld [vmem:[%s16309_s3 + $0x110] sm:$0xff]  ;;  %v8992_v63 = vpack.c.bf16 %v1831_v15, %v1828_v27  ;;  %v9006_v11 = vpack.c.bf16 %v1856_v35, %v1853_v5  ;;  %v1859_v27 = vld [vmem:[%s16309_s3 + $0x1b8] sm:$0xff] }
 0x251   : > { %8989 = vmatpush1.bf16.msra.mxu0 %v8988_v18  ;;  %v8994_v13 = vpack.c.bf16 %v1838_v4, %v1835_v22  ;;  %v1852_v18 = vld [vmem:[%s16309_s3 + $0x180] sm:$0xff]  ;;  %v1862_v15 = vld [vmem:[%s16309_s3 + $0x1d0] sm:$0xff]  ;;  %v1877_v49 = vld [vmem:[%s16309_s3 + $0x248] sm:$0xff] }
 0x252   : > { %8991 = vmatprep.subr.bf16.mxu0 %v8990_v46  ;;  %v1855_v46 = vld [vmem:[%s16309_s3 + $0x198] sm:$0xff]  ;;  %v9010_v4 = vpack.c.bf16 %v1862_v15, %v1859_v27  ;;  %v9022_v35 = vpack.c.bf16 %v1880_v25, %v1877_v49 }
 0x253   : > { %v9008_v22 = vpack.c.bf16 %v1855_v46, %v1852_v18  ;;  %v1883_v18 = vld [vmem:[%s16309_s3 + $0x278] sm:$0xff]  ;;  %v1886_v46 = vld [vmem:[%s16309_s3 + $0x290] sm:$0xff] }
 0x254   : > { %v9026_v15 = vpack.c.bf16 %v1886_v46, %v1883_v18 }
 0x255   : > { %8993 = vmatpush1.bf16.msra.mxu0 %v8992_v63  ;;  %v1858_v63 = vld [vmem:[%s16309_s3 + $0x1b0] sm:$0xff] }
 0x256   : > { %8995 = vmatprep.subr.bf16.mxu0 %v8994_v13  ;;  %v1861_v13 = vld [vmem:[%s16309_s3 + $0x1c8] sm:$0xff] }
 0x257   : > { %v9012_v7 = vpack.c.bf16 %v1861_v13, %v1858_v63  ;;  %v1889_v13 = vld [vmem:[%s16309_s3 + $0x2a8] sm:$0xff] }
 0x259   : > { %8997 = vmatpush1.bf16.msra.mxu0 %v8996_v30  ;;  %v1864_v30 = vld [vmem:[%s16309_s3 + $0x1e0] sm:$0xff] }
 0x25a   : > { %8999 = vmatprep.subr.bf16.mxu0 %v8998_v10  ;;  %v1867_v10 = vld [vmem:[%s16309_s3 + $0x1f8] sm:$0xff] }
 0x25b   : > { %v9016_v16 = vpack.c.bf16 %v1867_v10, %v1864_v30  ;;  %v1895_v10 = vld [vmem:[%s16309_s3 + $0x2d8] sm:$0xff] }
 0x25c   : > { %v9034_v43 = vpack.c.bf16 %v1898_v57, %v1895_v10 }
 0x25d   : > { %9001 = vmatpush1.bf16.msra.mxu0 %v9000_v36  ;;  %v1870_v36 = vld [vmem:[%s16309_s3 + $0x210] sm:$0xff] }
 0x25e   : > { %9003 = vmatprep.subr.bf16.mxu0 %v9002_v59  ;;  %v1873_v59 = vld [vmem:[%s16309_s3 + $0x228] sm:$0xff] }
 0x25f   : > { %v9020_v5 = vpack.c.bf16 %v1873_v59, %v1870_v36 }
 0x261   : > { %9005 = vmatpush1.bf16.msra.mxu0 %v9004_v2  ;;  %v1876_v2 = vld [vmem:[%s16309_s3 + $0x240] sm:$0xff] }
 0x262   : > { %9007 = vmatprep.subr.bf16.mxu0 %v9006_v11  ;;  %v1879_v11 = vld [vmem:[%s16309_s3 + $0x258] sm:$0xff] }
 0x263   : > { %v9024_v27 = vpack.c.bf16 %v1879_v11, %v1876_v2 }
 0x265   : > { %9009 = vmatpush1.bf16.msra.mxu0 %v9008_v22  ;;  %v1882_v22 = vld [vmem:[%s16309_s3 + $0x270] sm:$0xff] }
 0x266   : > { %9011 = vmatprep.subr.bf16.mxu0 %v9010_v4  ;;  %v1885_v4 = vld [vmem:[%s16309_s3 + $0x288] sm:$0xff] }
 0x267   : > { %v9028_v63 = vpack.c.bf16 %v1885_v4, %v1882_v22 }
 0x269   : > { %9013 = vmatpush1.bf16.msra.mxu0 %v9012_v7  ;;  %v9030_v7 = vpack.c.bf16 %v1892_v45, %v1889_v13 }
 0x26a   : > { %9015 = vmatprep.subr.bf16.mxu0 %v9014_v33  ;;  %v1891_v33 = vld [vmem:[%s16309_s3 + $0x2b8] sm:$0xff] }
 0x26b   : > { %v9032_v30 = vpack.c.bf16 %v1891_v33, %v1888_v6 }
 0x26d   : > { %9017 = vmatpush1.bf16.msra.mxu0 %v9016_v16  ;;  %v1894_v16 = vld [vmem:[%s16309_s3 + $0x2d0] sm:$0xff] }
 0x26e   : > { %9019 = vmatprep.subr.bf16.mxu0 %v9018_v58  ;;  %v1897_v58 = vld [vmem:[%s16309_s3 + $0x2e8] sm:$0xff] }
 0x26f   : > { %v9036_v36 = vpack.c.bf16 %v1897_v58, %v1894_v16 }
 0x271   : > { %9021 = vmatpush1.bf16.msra.mxu0 %v9020_v5 }
 0x272   : > { %9023 = vmatprep.subr.bf16.mxu0 %v9022_v35 }
 0x275   : > { %9025 = vmatpush1.bf16.msra.mxu0 %v9024_v27 }
 0x276   : > { %9027 = vmatprep.subr.bf16.mxu0 %v9026_v15 }
 0x279   : > { %9029 = vmatpush1.bf16.msra.mxu0 %v9028_v63 }
 0x27a   : > { %9031 = vmatprep.subr.bf16.mxu0 %v9030_v7 }
 0x27d   : > { %9033 = vmatpush1.bf16.msra.mxu0 %v9032_v30 }
 0x27e   : > { %9035 = vmatprep.subr.bf16.mxu0 %v9034_v43 }
 0x281   : > { %9037 = vmatpush1.bf16.msra.mxu0 %v9036_v36 }
 0x28b   : > { %v12523_v59 = vpop.permute.xlu1 %10335 }
 0x28c   : > { %v10338_v49 = vunpack.i.h.bf16 %v12523_v59  ;;  %v10337_v25 = vunpack.i.l.bf16 %v12523_v59  ;;  %v10331_v5 = vpop.permute.xlu0 %10330 }
 0x28d   : > { %v10333_v35 = vunpack.i.h.bf16 %v10331_v5  ;;  %v10332_v2 = vunpack.i.l.bf16 %v10331_v5 }
 0x28f   : > { %v1560_v11 = vsel %vm16455_vm11, %v10338_v49, %v10332_v2  ;;  %v1340_v18 = vpop.f32.mrb[8].mxu0  ;;  %v1561_v46 = vsel %vm16456_vm8, %v10332_v2, %v10333_v35  ;;  %v1562_v27 = vsel %vm16457_vm14, %v10333_v35, %v10337_v25  ;;  %vm16469_vm11 = vmmov %vm16459_vm0 }
 0x290   : > { %v12533_v15 = vadd.f32 %v1340_v18, %v12203_v38  ;;  %v1342_v22 = vpop.f32.mrb[9].mxu0  ;;  %v12537_v4 = vmax.f32 %v1448_v26, %v1560_v11  ;;  %v12541_v63 = vmax.f32 %v1449_v48, %v1561_v46  ;;  %v12545_v13 = vmax.f32 %v1450_v32, %v1562_v27  ;;  %vm16470_vm8 = vmmov %vm16459_vm0 }
 0x291   : > { %v12548_v45 = vadd.f32 %v1342_v22, %v12203_v38  ;;  %vm16471_vm14 = vmmov %vm16459_vm0 }
 0x292   : > { %v1452_v6 = vmax.f32 %v12533_v15, 0.0  ;;  %1668 = vrot.lane.b32.xlu1 %v12537_v4, %s11126_s11  ;;  %v10369_v40 = vpack.i.bf16 %v12545_v13, %v12541_v63 }
 0x293   : > { %v16345_v26 = vmax.f32 %v12548_v45, 0.0  ;;  %v1346_v19 = vpop.f32.mrb[10].mxu0 }
 0x294   : > { %v12557_v48 = vadd.f32 %v1346_v19, %v12255_v3  ;;  %v1348_v29 = vpop.f32.mrb[11].mxu0  ;;  %10370 = vrot.lane.b32.xlu0 %v10369_v40, %s11126_s11 }
 0x295   : > { %v10374_v32 = vpack.i.bf16 %v16345_v26, %v1452_v6  ;;  %v12565_v7 = vadd.f32 %v1348_v29, %v12255_v3 }
 0x296   : > { %v1459_v33 = vmax.f32 %v12557_v48, 0.0 }
 0x297   : > { %v16344_v30 = vmax.f32 %v12565_v7, 0.0  ;;  %v1352_v10 = vpop.f32.mrb[12].mxu0 }
 0x298   : > { %v1354_v57 = vpop.f32.mrb[13].mxu0  ;;  %10375 = vrot.lane.b32.xlu0 %v10374_v32, %s11122_s30  ;;  %v12580_v18 = vadd.f32 %v1352_v10, %v12247_v56 }
 0x299   : > { %v10379_v43 = vpack.i.bf16 %v16344_v30, %v1459_v33  ;;  %v12583_v46 = vadd.f32 %v1354_v57, %v12247_v56 }
 0x29b   : > { %v1358_v16 = vpop.f32.mrb[14].mxu0  ;;  %10380 = vrot.lane.b32.xlu1 %v10379_v43, %s11122_s30  ;;  %v16349_v17 = vmax.f32 %v12583_v46, 0.0 }
 0x29c   : > { %v1360_v58 = vpop.f32.mrb[15].mxu0  ;;  %v12644_v39 = vadd.f32 %v1358_v16, %v12279_v24 }
 0x29d   : > { %v12647_v14 = vadd.f32 %v1360_v58, %v12279_v24 }
 0x29f   : > { %v16348_v16 = vmax.f32 %v12647_v14, 0.0 }
 0x2ba   : > { %v12575_v36 = vpop.permute.xlu1 %10345  ;;  %v10341_v49 = vpop.permute.xlu0 %10340 }
 0x2bb   : > { %v10348_v5 = vunpack.i.h.bf16 %v12575_v36  ;;  %v10347_v35 = vunpack.i.l.bf16 %v12575_v36  ;;  %v10343_v2 = vunpack.i.h.bf16 %v10341_v49  ;;  %v10342_v11 = vunpack.i.l.bf16 %v10341_v49 }
 0x2bd   : > { %v1568_v27 = vsel %vm16458_vm7, %v10343_v2, %v10347_v35  ;;  %v1567_v22 = vsel %vm16459_vm0, %v10342_v11, %v10343_v2  ;;  %v1566_v19 = vsel %vm16460_vm12, %v10348_v5, %v10342_v11  ;;  %v1466_v2 = vmax.f32 %v12580_v18, 0.0  ;;  %vm16472_vm7 = vmmov %vm16459_vm0  ;;  %v1981_v18 = vld [vmem:[%s16309_s3 + $0x588] sm:$0xff] }
 0x2be   : > { %v12591_v40 = vmax.f32 %v1457_v34, %v1568_v27  ;;  %v12596_v29 = vmax.f32 %v1456_v47, %v1567_v22  ;;  %v12598_v32 = vpop.permute.xlu1 %10355  ;;  %v10351_v10 = vpop.permute.xlu0 %10350  ;;  %v12613_v11 = vmax.f32 %v1455_v23, %v1566_v19  ;;  %vm16473_vm0 = vmmov %vm16466_vm6 }
 0x2bf   : > { %v10358_v57 = vunpack.i.h.bf16 %v12598_v32  ;;  %v10357_v43 = vunpack.i.l.bf16 %v12598_v32  ;;  %v10353_v49 = vunpack.i.h.bf16 %v10351_v10  ;;  %v10352_v30 = vunpack.i.l.bf16 %v10351_v10  ;;  %vm16474_vm12 = vmmov %vm16462_vm1 }
 0x2c0   : > { %v10384_v34 = vpack.i.bf16 %v12591_v40, %v12596_v29  ;;  %v10389_v52 = vpack.i.bf16 %v16349_v17, %v1466_v2 }
 0x2c1   : > { %v1574_v62 = vsel %vm16461_vm15, %v10353_v49, %v10357_v43  ;;  %v1572_v47 = vsel %vm16462_vm1, %v10358_v57, %v10352_v30  ;;  %v1573_v5 = vsel %vm16463_vm3, %v10352_v30, %v10353_v49  ;;  %v1473_v57 = vmax.f32 %v12644_v39, 0.0  ;;  %vm16475_vm15 = vmmov %vm16462_vm1 }
 0x2c2   : > { %v12617_v27 = vmax.f32 %v1463_v54, %v1573_v5  ;;  %v12619_v22 = vpop.permute.xlu1 %10365  ;;  %v10361_v10 = vpop.permute.xlu0 %10360  ;;  %10385 = vrot.lane.b32.xlu1 %v10384_v34, %s11126_s11  ;;  %v12629_v23 = vmax.f32 %v1464_v20, %v1574_v62  ;;  %v12633_v1 = vmax.f32 %v1462_v50, %v1572_v47  ;;  %v1900_v5 = vld [vmem:[%s16309_s3 + $0x300] sm:$0xff]  ;;  %vm16476_vm1 = vmmov %vm16473_vm0 }
 0x2c3   : > { %v10367_v26 = vunpack.i.l.bf16 %v12619_v22  ;;  %v10363_v60 = vunpack.i.h.bf16 %v10361_v10  ;;  %v10362_v37 = vunpack.i.l.bf16 %v10361_v10  ;;  %v10368_v49 = vunpack.i.h.bf16 %v12619_v22  ;;  %v1903_v10 = vld [vmem:[%s16309_s3 + $0x318] sm:$0xff]  ;;  %vm16478_vm3 = vmmov %vm16473_vm0 }
 0x2c4   : > { %v10394_v54 = vpack.i.bf16 %v12617_v27, %v12613_v11 }
 0x2c5   : > { %v1580_v30 = vsel %vm16464_vm4, %v10363_v60, %v10367_v26  ;;  %v1579_v19 = vsel %vm16465_vm5, %v10362_v37, %v10363_v60  ;;  %v10399_v60 = vpack.i.bf16 %v12633_v1, %v12629_v23  ;;  %vm16479_vm4 = vmmov %vm16473_vm0 }
 0x2c6   : > { %10395 = vrot.lane.b32.xlu0 %v10394_v54, %s11126_s11  ;;  %10390 = vrot.lane.b32.xlu1 %v10389_v52, %s11122_s30  ;;  %v12651_v50 = vmax.f32 %v1471_v55, %v1580_v30  ;;  %v12655_v20 = vmax.f32 %v1470_v51, %v1579_v19  ;;  %v9038_v51 = vpack.c.bf16 %v1904_v9, %v1901_v44  ;;  %v1907_v54 = vld [vmem:[%s16309_s3 + $0x338] sm:$0xff]  ;;  %v1910_v30 = vld [vmem:[%s16309_s3 + $0x350] sm:$0xff]  ;;  %vm16480_vm5 = vmmov %vm16473_vm0 }
 0x2c7   : > { %v10409_v55 = vpack.i.bf16 %v16348_v16, %v1473_v57  ;;  %v9042_v17 = vpack.c.bf16 %v1910_v30, %v1907_v54 }
 0x2c8   : > { %v10404_v58 = vpack.i.bf16 %v12651_v50, %v12655_v20  ;;  %9039 = vmatprep.subr.bf16.mxu0 %v9038_v51 }
 0x2ca   : > { %10400 = vrot.lane.b32.xlu0 %v10399_v60, %s11126_s11 }
 0x2ce   : > { %10405 = vrot.lane.b32.xlu0 %v10404_v58, %s11126_s11  ;;  %v1578_v58 = vsel %vm16468_vm10, %v10368_v49, %v10362_v37  ;;  %v1909_v37 = vld [vmem:[%s16309_s3 + $0x348] sm:$0xff]  ;;  %vm16484_vm10 = vmmov 1  }
 0x2cf   : > { %v12722_v49 = vmax.f32 %v1469_v31, %v1578_v58  ;;  %v1912_v58 = vld [vmem:[%s16309_s3 + $0x360] sm:$0xff] }
 0x2d2   : > { %10410 = vrot.lane.b32.xlu0 %v10409_v55, %s11122_s30  ;;  %v9040_v55 = vpack.c.bf16 %v1903_v10, %v1900_v5 }
 0x304   : > { %v1669_v52 = vpop.permute.xlu1 %1668 }
 0x306   : > { %v12677_v34 = vpop.permute.xlu0 %10370 }
 0x307   : > { %v16350_v62 = vunpack.i.h.bf16 %v12677_v34  ;;  %v10372_v47 = vunpack.i.l.bf16 %v12677_v34 }
 0x309   : > { %v1724_v19 = vsel %vm16466_vm6, %v1669_v52, %v10372_v47  ;;  %v1725_v60 = vsel %vm16467_vm9, %v10372_v47, %v16350_v62  ;;  %v1906_v52 = vld [vmem:[%s16309_s3 + $0x330] sm:$0xff]  ;;  %vm16481_vm6 = vmmov %vm16472_vm7 }
 0x30a   : > { %v12699_v44 = vmax.f32 %v12537_v4, %v1724_v19  ;;  %v12701_v9 = vpop.permute.xlu0 %10375  ;;  %v12704_v51 = vmax.f32 %v12541_v63, %v1725_v60  ;;  %v1913_v4 = vld [vmem:[%s16309_s3 + $0x368] sm:$0xff]  ;;  %v1916_v63 = vld [vmem:[%s16309_s3 + $0x380] sm:$0xff]  ;;  %v9044_v60 = vpack.c.bf16 %v1909_v37, %v1906_v52  ;;  %vm16482_vm9 = vmmov %vm16481_vm6 }
 0x30b   : > { %v10377_v16 = vunpack.i.l.bf16 %v12701_v9  ;;  %v10378_v47 = vunpack.i.h.bf16 %v12701_v9 }
 0x30c   : > { %2213 = vmatprep.mubr.f32.mxu0 %v12704_v51 }
 0x30d   : > { %v1563_v5 = vsel %vm16469_vm11, %v10337_v25, %v10377_v16  ;;  %v8900_v10 = vpop.f32.mrb[8].mxu1  ;;  %2214 = vmatmul.mubr.f32.vlgmr.msra.gmra.mrb[16].mxu0 %v12699_v44  ;;  %v12729_v54 = vpop.permute.xlu1 %10380  ;;  %v9046_v25 = vpack.c.bf16 %v1916_v63, %v1913_v4  ;;  %vm16485_vm11 = vcmask 1046528  }
 0x30e   : > { %v12733_v30 = vmax.f32 %v1451_v12, %v1563_v5  ;;  %v10383_v19 = vunpack.i.h.bf16 %v12729_v54  ;;  %v10382_v0 = vunpack.i.l.bf16 %v12729_v54  ;;  %v1429_v31 = vpop.f32.mrb[9].mxu1  ;;  %9041 = vmatpush1.bf16.msra.mxu0 %v9040_v55  ;;  %v1919_v55 = vld [vmem:[%s16309_s3 + $0x398] sm:$0xff]  ;;  %v2002_v54 = vld [vmem:[%s16309_s3 + $0x630] sm:$0xff] }
 0x30f   : > { %v12738_v59 = vadd.f32 %v1429_v31, %v12203_v38  ;;  %9043 = vmatprep.subr.bf16.mxu0 %v9042_v17  ;;  %v1922_v38 = vld [vmem:[%s16309_s3 + $0x3b0] sm:$0xff]  ;;  %v1564_v17 = vsel %vm16470_vm8, %v10377_v16, %v10378_v47  ;;  %v9048_v31 = vpack.c.bf16 %v1915_v53, %v1912_v58  ;;  %v1921_v16 = vld [vmem:[%s16309_s3 + $0x3a8] sm:$0xff]  ;;  %v1931_v53 = vld [vmem:[%s16309_s3 + $0x3f8] sm:$0xff] }
 0x310   : > { %v10414_v12 = vpack.i.bf16 %v12733_v30, %v12722_v49  ;;  %v1569_v4 = vsel %vm16471_vm14, %v10347_v35, %v10382_v0  ;;  %v1570_v63 = vsel %vm16472_vm7, %v10382_v0, %v10383_v19  ;;  %v9050_v36 = vpack.c.bf16 %v1922_v38, %v1919_v55  ;;  %v1918_v35 = vld [vmem:[%s16309_s3 + $0x390] sm:$0xff]  ;;  %vm13087_vm8 = vmpackc.low %vm16485_vm11, %vm16484_vm10 }
 0x311   : > { %v1454_v52 = vmax.f32 %v12738_v59, 0.0  ;;  %v8903_v37 = vpop.f32.mrb[10].mxu1  ;;  %v12778_v0 = vadd.f32 %v8900_v10, %v12255_v3  ;;  %v12792_v58 = vmax.f32 %v1458_v28, %v1569_v4  ;;  %v12796_v3 = vmax.f32 %v1459_v33, %v1570_v63  ;;  %v1927_v28 = vld [vmem:[%s16309_s3 + $0x3d8] sm:$0xff]  ;;  %v1937_v63 = vld [vmem:[%s16309_s3 + $0x428] sm:$0xff]  ;;  %vm16488_vm14 = vmmov %vm16481_vm6 }
 0x312   : > { %v1439_v5 = vpop.f32.mrb[11].mxu1  ;;  %10415 = vrot.lane.b32.xlu1 %v10414_v12, %s11126_s11  ;;  %9045 = vmatpush1.bf16.msra.mxu0 %v9044_v60  ;;  %v1925_v60 = vld [vmem:[%s16309_s3 + $0x3c8] sm:$0xff]  ;;  %v12812_v33 = vadd.f32 %v8903_v37, %v12279_v24  ;;  %v1934_v12 = vld [vmem:[%s16309_s3 + $0x410] sm:$0xff]  ;;  %v9056_v38 = vpack.c.bf16 %v1927_v28, %v1924_v41  ;;  %vm16490_vm7 = vmmov %vm16473_vm0  ;;  %v16491_v59 = vunpack.i.h.bf16 %v12677_v34 }
 0x313   : > { %v12766_v62 = vadd.f32 %v1439_v5, %v12247_v56  ;;  %1516 = vrot.lane.b32.xlu0 %v1454_v52, %s11122_s30  ;;  %9047 = vmatprep.subr.bf16.mxu0 %v9046_v25  ;;  %v12782_v56 = vmax.f32 %v1452_v6, %v1564_v17  ;;  %v1928_v25 = vld [vmem:[%s16309_s3 + $0x3e0] sm:$0xff]  ;;  %v9052_v6 = vpack.c.bf16 %v1921_v16, %v1918_v35  ;;  %v1461_v48 = vmax.f32 %v12778_v0, 0.0  ;;  %v1930_v17 = vld [vmem:[%s16309_s3 + $0x3f0] sm:$0xff]  ;;  %v1933_v37 = vld [vmem:[%s16309_s3 + $0x408] sm:$0xff] }
 0x314   : > { %v9054_v10 = vpack.c.bf16 %v1928_v25, %v1925_v60  ;;  %v10419_v55 = vpack.i.bf16 %v12796_v3, %v12792_v58  ;;  %v9058_v24 = vpack.c.bf16 %v1934_v12, %v1931_v53  ;;  %v16351_v4 = vmax.f32 %v12812_v33, 0.0  ;;  %v1940_v5 = vld [vmem:[%s16309_s3 + $0x440] sm:$0xff]  ;;  %v1939_v16 = vld [vmem:[%s16309_s3 + $0x438] sm:$0xff]  ;;  %v1946_v25 = vld [vmem:[%s16309_s3 + $0x470] sm:$0xff] }
 0x315   : > { %v16352_v15 = vmax.f32 %v12766_v62, 0.0  ;;  %v1936_v35 = vld [vmem:[%s16309_s3 + $0x420] sm:$0xff]  ;;  %v1943_v60 = vld [vmem:[%s16309_s3 + $0x458] sm:$0xff]  ;;  %v1942_v41 = vld [vmem:[%s16309_s3 + $0x450] sm:$0xff] }
 0x316   : > { %1676 = vrot.lane.b32.xlu1 %v12782_v56, %s11126_s11  ;;  %9049 = vmatpush1.bf16.msra.mxu0 %v9048_v31  ;;  %v9060_v31 = vpack.c.bf16 %v1933_v37, %v1930_v17  ;;  %v1945_v28 = vld [vmem:[%s16309_s3 + $0x468] sm:$0xff]  ;;  %v1952_v12 = vld [vmem:[%s16309_s3 + $0x4a0] sm:$0xff]  ;;  %v1951_v17 = vld [vmem:[%s16309_s3 + $0x498] sm:$0xff] }
 0x317   : > { %1544 = vrot.lane.b32.xlu0 %v16352_v15, %s11122_s30  ;;  %9051 = vmatprep.subr.bf16.mxu0 %v9050_v36  ;;  %v9062_v36 = vpack.c.bf16 %v1940_v5, %v1937_v63  ;;  %v1949_v53 = vld [vmem:[%s16309_s3 + $0x488] sm:$0xff]  ;;  %v1955_v37 = vld [vmem:[%s16309_s3 + $0x4b8] sm:$0xff]  ;;  %v1958_v63 = vld [vmem:[%s16309_s3 + $0x4d0] sm:$0xff] }
 0x318   : > { %v2009_v0 = vld [vmem:[%s16309_s3 + $0x668] sm:$0xff]  ;;  %vm16506_vm10 = vmmov %vm16473_vm0 }
 0x319   : > { %vm16507_vm11 = vmmov %vm16473_vm0 }
 0x31a   : > { %1530 = vrot.lane.b32.xlu1 %v1461_v48, %s11122_s30  ;;  %9053 = vmatpush1.bf16.msra.mxu0 %v9052_v6  ;;  %v9064_v6 = vpack.c.bf16 %v1939_v16, %v1936_v35  ;;  %v1957_v35 = vld [vmem:[%s16309_s3 + $0x4c8] sm:$0xff] }
 0x31b   : > { %10420 = vrot.lane.b32.xlu0 %v10419_v55, %s11126_s11  ;;  %9055 = vmatprep.subr.bf16.mxu0 %v9054_v10  ;;  %v9066_v10 = vpack.c.bf16 %v1946_v25, %v1943_v60  ;;  %v9068_v55 = vpack.c.bf16 %v1945_v28, %v1942_v41  ;;  %v1961_v16 = vld [vmem:[%s16309_s3 + $0x4e8] sm:$0xff]  ;;  %v1964_v60 = vld [vmem:[%s16309_s3 + $0x500] sm:$0xff]  ;;  %v1963_v41 = vld [vmem:[%s16309_s3 + $0x4f8] sm:$0xff] }
 0x31c   : > { %v1967_v28 = vld [vmem:[%s16309_s3 + $0x518] sm:$0xff] }
 0x31e   : > { %1558 = vrot.lane.b32.xlu1 %v16351_v4, %s11122_s30  ;;  %9057 = vmatpush1.bf16.msra.mxu0 %v9056_v38  ;;  %v9070_v38 = vpack.c.bf16 %v1952_v12, %v1949_v53  ;;  %v1970_v53 = vld [vmem:[%s16309_s3 + $0x530] sm:$0xff] }
 0x31f   : > { %9059 = vmatprep.subr.bf16.mxu0 %v9058_v24  ;;  %v1948_v24 = vld [vmem:[%s16309_s3 + $0x480] sm:$0xff] }
 0x320   : > { %v9072_v5 = vpack.c.bf16 %v1951_v17, %v1948_v24  ;;  %v1969_v24 = vld [vmem:[%s16309_s3 + $0x528] sm:$0xff] }
 0x322   : > { %9061 = vmatpush1.bf16.msra.mxu0 %v9060_v31  ;;  %v9074_v31 = vpack.c.bf16 %v1958_v63, %v1955_v37  ;;  %v1973_v37 = vld [vmem:[%s16309_s3 + $0x548] sm:$0xff]  ;;  %v1976_v63 = vld [vmem:[%s16309_s3 + $0x560] sm:$0xff] }
 0x323   : > { %9063 = vmatprep.subr.bf16.mxu0 %v9062_v36  ;;  %v1954_v36 = vld [vmem:[%s16309_s3 + $0x4b0] sm:$0xff] }
 0x324   : > { %v9076_v25 = vpack.c.bf16 %v1957_v35, %v1954_v36 }
 0x326   : > { %9065 = vmatpush1.bf16.msra.mxu0 %v9064_v6  ;;  %v9078_v6 = vpack.c.bf16 %v1964_v60, %v1961_v16  ;;  %v9086_v16 = vpack.c.bf16 %v1976_v63, %v1973_v37 }
 0x327   : > { %9067 = vmatprep.subr.bf16.mxu0 %v9066_v10  ;;  %v1960_v10 = vld [vmem:[%s16309_s3 + $0x4e0] sm:$0xff] }
 0x328   : > { %v9080_v12 = vpack.c.bf16 %v1963_v41, %v1960_v10  ;;  %v1972_v10 = vld [vmem:[%s16309_s3 + $0x540] sm:$0xff]  ;;  %v1975_v41 = vld [vmem:[%s16309_s3 + $0x558] sm:$0xff] }
 0x329   : > { %v9088_v63 = vpack.c.bf16 %v1975_v41, %v1972_v10 }
 0x32a   : > { %9069 = vmatpush1.bf16.msra.mxu0 %v9068_v55  ;;  %v9082_v55 = vpack.c.bf16 %v1970_v53, %v1967_v28 }
 0x32b   : > { %9071 = vmatprep.subr.bf16.mxu0 %v9070_v38  ;;  %v1966_v38 = vld [vmem:[%s16309_s3 + $0x510] sm:$0xff] }
 0x32c   : > { %v9084_v36 = vpack.c.bf16 %v1969_v24, %v1966_v38 }
 0x32e   : > { %9073 = vmatpush1.bf16.msra.mxu0 %v9072_v5 }
 0x32f   : > { %9075 = vmatprep.subr.bf16.mxu0 %v9074_v31 }
 0x332   : > { %9077 = vmatpush1.bf16.msra.mxu0 %v9076_v25 }
 0x333   : > { %9079 = vmatprep.subr.bf16.mxu0 %v9078_v6 }
 0x334   : > { %v12908_v17 = vpop.permute.xlu1 %10385 }
 0x335   : > { %v16353_v5 = vunpack.i.h.bf16 %v12908_v17  ;;  %v10387_v31 = vunpack.i.l.bf16 %v12908_v17 }
 0x336   : > { %9081 = vmatpush1.bf16.msra.mxu0 %v9080_v12 }
 0x337   : > { %v1731_v35 = vsel %vm16473_vm0, %v10387_v31, %v16353_v5  ;;  %9083 = vmatprep.subr.bf16.mxu0 %v9082_v55  ;;  %v1979_v55 = vld [vmem:[%s16309_s3 + $0x578] sm:$0xff] }
 0x338   : > { %v10396_v60 = vpop.permute.xlu0 %10395  ;;  %v12921_v25 = vpop.permute.xlu1 %10390  ;;  %v12924_v6 = vmax.f32 %v12596_v29, %v1731_v35  ;;  %v1982_v29 = vld [vmem:[%s16309_s3 + $0x590] sm:$0xff]  ;;  %v16477_v35 = vmax.f32 %v12273_v61, 0.0 }
 0x339   : > { %v10397_v28 = vunpack.i.l.bf16 %v10396_v60  ;;  %v10393_v53 = vunpack.i.h.bf16 %v12921_v25  ;;  %v10392_v12 = vunpack.i.l.bf16 %v12921_v25  ;;  %v10398_v5 = vunpack.i.h.bf16 %v10396_v60  ;;  %v1978_v61 = vld [vmem:[%s16309_s3 + $0x570] sm:$0xff] }
 0x33a   : > { %2219 = vmatprep.mubr.f32.mxu0 %v12924_v6  ;;  %9085 = vmatpush1.bf16.msra.mxu0 %v9084_v36 }
 0x33b   : > { %v1575_v38 = vsel %vm16474_vm12, %v10357_v43, %v10392_v12  ;;  %v1576_v24 = vsel %vm16475_vm15, %v10392_v12, %v10393_v53  ;;  %v1730_v37 = vsel %vm16476_vm1, %v10397_v28, %v10387_v31  ;;  %9087 = vmatprep.subr.bf16.mxu0 %v9086_v16  ;;  %v9090_v43 = vpack.c.bf16 %v1982_v29, %v1979_v55  ;;  %v1988_v16 = vld [vmem:[%s16309_s3 + $0x5c0] sm:$0xff]  ;;  %vm16492_vm12 = vmmov %vm16473_vm0 }
 0x33c   : > { %v12950_v4 = vmax.f32 %v16477_v35, %v1575_v38  ;;  %v12954_v15 = vmax.f32 %v1466_v2, %v1576_v24  ;;  %v12956_v36 = vpop.permute.xlu0 %10400  ;;  %v12959_v32 = vmax.f32 %v12613_v11, %v1730_v37  ;;  %v1985_v11 = vld [vmem:[%s16309_s3 + $0x5a8] sm:$0xff]  ;;  %v9092_v29 = vpack.c.bf16 %v1981_v18, %v1978_v61  ;;  %vm16493_vm15 = vmmov %vm16481_vm6 }
 0x33d   : > { %v10403_v12 = vunpack.i.h.bf16 %v12956_v36  ;;  %v10402_v31 = vunpack.i.l.bf16 %v12956_v36  ;;  %v9094_v37 = vpack.c.bf16 %v1988_v16, %v1985_v11  ;;  %v1990_v16 = vld [vmem:[%s16309_s3 + $0x5d0] sm:$0xff]  ;;  %vm16495_vm1 = vmmov %vm16481_vm6  ;;  %v2065_v36 = vld [vmem:[%s16309_s3 + $0x828] sm:$0xff] }
 0x33e   : > { %2220 = vmatmul.mubr.f32.gmra.mrb[18].mxu0 %v12959_v32  ;;  %v10424_v2 = vpack.i.bf16 %v12954_v15, %v12950_v4 }
 0x33f   : > { %v1737_v60 = vsel %vm16478_vm3, %v10398_v5, %v10402_v31  ;;  %v1736_v10 = vsel %vm16479_vm4, %v10403_v12, %v10398_v5  ;;  %9089 = vmatpush1.bf16.msra.mxu0 %v9088_v63  ;;  %v1984_v5 = vld [vmem:[%s16309_s3 + $0x5a0] sm:$0xff]  ;;  %v1987_v63 = vld [vmem:[%s16309_s3 + $0x5b8] sm:$0xff]  ;;  %vm16496_vm3 = vmmov %vm16473_vm0 }
 0x340   : > { %v12982_v41 = vpop.permute.xlu0 %10405  ;;  %10425 = vrot.lane.b32.xlu1 %v10424_v2, %s11126_s11  ;;  %v12986_v28 = vmax.f32 %v12617_v27, %v1737_v60  ;;  %v12989_v55 = vmax.f32 %v12633_v1, %v1736_v10  ;;  %9091 = vmatprep.subr.bf16.mxu0 %v9090_v43  ;;  %v1991_v27 = vld [vmem:[%s16309_s3 + $0x5d8] sm:$0xff]  ;;  %v1994_v1 = vld [vmem:[%s16309_s3 + $0x5f0] sm:$0xff]  ;;  %v9096_v61 = vpack.c.bf16 %v1987_v63, %v1984_v5  ;;  %v1993_v60 = vld [vmem:[%s16309_s3 + $0x5e8] sm:$0xff]  ;;  %v16483_v5 = vmax.f32 %v12303_v21, 0.0 }
 0x341   : > { %v10408_v38 = vunpack.i.h.bf16 %v12982_v41  ;;  %v10407_v24 = vunpack.i.l.bf16 %v12982_v41  ;;  %v9098_v11 = vpack.c.bf16 %v1994_v1, %v1991_v27  ;;  %v2000_v10 = vld [vmem:[%s16309_s3 + $0x620] sm:$0xff]  ;;  %v9100_v1 = vpack.c.bf16 %v1993_v60, %v1990_v16  ;;  %v2094_v21 = vld [vmem:[%s16309_s3 + $0x910] sm:$0xff]  ;;  %v2109_v16 = vld [vmem:[%s16309_s3 + $0x988] sm:$0xff] }
 0x342   : > { %2225 = vmatprep.mubr.f32.mxu0 %v12986_v28  ;;  %vm16498_vm4 = vmmov %vm16473_vm0  ;;  %v2083_v41 = vld [vmem:[%s16309_s3 + $0x8b8] sm:$0xff] }
 0x343   : > { %2226 = vmatmul.mubr.f32.gmra.mrb[20].mxu0 %v12989_v55  ;;  %v1743_v35 = vsel %vm16480_vm5, %v10407_v24, %v10408_v38  ;;  %vm16501_vm5 = vmmov %vm16495_vm1 }
 0x344   : > { %v13012_v43 = vpop.permute.xlu0 %10410  ;;  %v13015_v12 = vmax.f32 %v12655_v20, %v1743_v35  ;;  %9093 = vmatpush1.bf16.msra.mxu0 %v9092_v29  ;;  %v1997_v20 = vld [vmem:[%s16309_s3 + $0x608] sm:$0xff] }
 0x345   : > { %v10413_v18 = vunpack.i.h.bf16 %v13012_v43  ;;  %v10412_v2 = vunpack.i.l.bf16 %v13012_v43  ;;  %9095 = vmatprep.subr.bf16.mxu0 %v9094_v37  ;;  %v9102_v35 = vpack.c.bf16 %v2000_v10, %v1997_v20  ;;  %v2112_v20 = vld [vmem:[%s16309_s3 + $0x9a0] sm:$0xff]  ;;  %v2115_v10 = vld [vmem:[%s16309_s3 + $0x9b8] sm:$0xff]  ;;  %v16502_v43 = vmax.f32 %v12812_v33, 0.0  ;;  %v2021_v33 = vld [vmem:[%s16309_s3 + $0x6c8] sm:$0xff] }
 0x346   : > { %2231 = vmatprep.mubr.f32.mxu0 %v13015_v12 }
 0x347   : > { %v1581_v29 = vsel %vm16481_vm6, %v10367_v26, %v10412_v2  ;;  %v1582_v37 = vsel %vm16482_vm9, %v10412_v2, %v10413_v18  ;;  %v2097_v26 = vld [vmem:[%s16309_s3 + $0x928] sm:$0xff]  ;;  %vm16504_vm6 = vmmov %vm16473_vm0 }
 0x348   : > { %v13040_v63 = vmax.f32 %v16483_v5, %v1581_v29  ;;  %v13044_v27 = vmax.f32 %v1473_v57, %v1582_v37  ;;  %9097 = vmatpush1.bf16.msra.mxu0 %v9096_v61  ;;  %v9288_v39 = vpack.c.bf16 %v2097_v26, %v2094_v21  ;;  %v2100_v57 = vld [vmem:[%s16309_s3 + $0x940] sm:$0xff]  ;;  %v2103_v61 = vld [vmem:[%s16309_s3 + $0x958] sm:$0xff]  ;;  %v9300_v29 = vpack.c.bf16 %v2115_v10, %v2112_v20  ;;  %v2118_v37 = vld [vmem:[%s16309_s3 + $0x9d0] sm:$0xff] }
 0x349   : > { %9099 = vmatprep.subr.bf16.mxu0 %v9098_v11  ;;  %v9292_v2 = vpack.c.bf16 %v2103_v61, %v2100_v57  ;;  %v2106_v11 = vld [vmem:[%s16309_s3 + $0x970] sm:$0xff]  ;;  %v2121_v5 = vld [vmem:[%s16309_s3 + $0x9e8] sm:$0xff]  ;;  %vm16505_vm9 = vmmov %vm16473_vm0 }
 0x34a   : > { %v10429_v22 = vpack.i.bf16 %v13044_v27, %v13040_v63  ;;  %9289 = vmatprep.subr.bf16.mxu1 %v9288_v39  ;;  %v9296_v60 = vpack.c.bf16 %v2109_v16, %v2106_v11  ;;  %v1869_v21 = vld [vmem:[%s16309_s3 + $0x208] sm:$0xff] }
 0x34b   : > { %9291 = vmatpush3.bf16.msra.mxu1 %v9288_v39 }
 0x34c   : > { %10430 = vrot.lane.b32.xlu0 %v10429_v22, %s11126_s11  ;;  %9101 = vmatpush1.bf16.msra.mxu0 %v9100_v1  ;;  %v9304_v1 = vpack.c.bf16 %v2121_v5, %v2118_v37  ;;  %v2127_v22 = vld [vmem:[%s16309_s3 + $0xa18] sm:$0x7f]  ;;  %v2006_v5 = vld [vmem:[%s16309_s3 + $0x650] sm:$0xff] }
 0x34d   : > { %9103 = vmatprep.subr.bf16.mxu0 %v9102_v35  ;;  %9293 = vmatprep.subr.bf16.mxu1 %v9292_v2  ;;  %v2124_v35 = vld [vmem:[%s16309_s3 + $0xa00] sm:$0xff] }
 0x34e   : > { %v9308_v26 = vpack.c.bf16 %v2127_v22, %v2124_v35 }
 0x34f   : > { %9295 = vmatpush3.bf16.msra.mxu1 %v9292_v2 }
 0x350   : > { %9297 = vmatprep.subr.bf16.mxu1 %v9296_v60 }
 0x353   : > { %9299 = vmatpush3.bf16.msra.mxu1 %v9296_v60  ;;  %v16489_v60 = vmax.f32 %v12548_v45, 0.0  ;;  %v1999_v45 = vld [vmem:[%s16309_s3 + $0x618] sm:$0xff] }
 0x354   : > { %9301 = vmatprep.subr.bf16.mxu1 %v9300_v29 }
 0x357   : > { %9303 = vmatpush3.bf16.msra.mxu1 %v9300_v29 }
 0x358   : > { %9305 = vmatprep.subr.bf16.mxu1 %v9304_v1 }
 0x35b   : > { %9307 = vmatpush3.bf16.msra.mxu1 %v9304_v1 }
 0x35c   : > { %9310 = vmatprep.subr.msk.bf16.mxu1 %vm13087_vm8, %v9308_v26 }
 0x35f   : > { %9313 = vmatpush3.bf16.msk.msra.mxu1 %vm13087_vm8, %v9308_v26 }
 0x384   : > { %v10416_v39 = vpop.permute.xlu1 %10415 }
 0x385   : > { %v10418_v57 = vunpack.i.h.bf16 %v10416_v39  ;;  %v10417_v61 = vunpack.i.l.bf16 %v10416_v39  ;;  %v1517_v2 = vpop.permute.xlu0 %1516 }
 0x386   : > { %v1565_v11 = vsel %vm16488_vm14, %v10378_v47, %v1517_v2  ;;  %v13100_v16 = vmax.f32 %v1454_v52, %v1517_v2  ;;  %v1996_v47 = vld [vmem:[%s16309_s3 + $0x600] sm:$0xff]  ;;  %vm16508_vm14 = vmmov %vm16473_vm0 }
 0x387   : > { %v13104_v20 = vmax.f32 %v16489_v60, %v1565_v11  ;;  %v1742_v10 = vsel %vm16490_vm7, %v10417_v61, %v10407_v24  ;;  %v1726_v52 = vsel %vm16473_vm0, %v16491_v59, %v10418_v57  ;;  %v9104_v1 = vpack.c.bf16 %v1999_v45, %v1996_v47  ;;  %vm16509_vm7 = vmmov %vm16473_vm0 }
 0x388   : > { %v13109_v29 = vpop.permute.xlu1 %1676  ;;  %1680 = vrot.lane.b32.xlu0 %v13100_v16, %s11126_s11  ;;  %v13114_v9 = vmax.f32 %v12722_v49, %v1742_v10  ;;  %v2003_v49 = vld [vmem:[%s16309_s3 + $0x638] sm:$0xff]  ;;  %v13140_v35 = vmax.f32 %v12545_v13, %v1726_v52  ;;  %v16499_v47 = vmax.f32 %v12766_v62, 0.0  ;;  %vm16510_vm0 = vcmask 777216  }
 0x389   : > { %v1727_v24 = vsel %vm16492_vm12, %v10418_v57, %v13109_v29  ;;  %v1545_v37 = vpop.permute.xlu0 %1544  ;;  %1678 = vrot.lane.b32.xlu1 %v13104_v20, %s11126_s11  ;;  %v9106_v26 = vpack.c.bf16 %v2006_v5, %v2003_v49  ;;  %v16500_v49 = vmax.f32 %v12583_v46, 0.0  ;;  %v2011_v62 = vld [vmem:[%s16309_s3 + $0x678] sm:$0xff]  ;;  %vm16511_vm12 = vmmov %vm16496_vm3 }
 0x38a   : > { %2232 = vmatmul.mubr.f32.gmra.mrb[22].mxu0 %v13114_v9  ;;  %v13137_v34 = vmax.f32 %v12733_v30, %v1727_v24  ;;  %v16494_v30 = vmax.f32 %v12565_v7, 0.0  ;;  %v1577_v7 = vsel %vm16495_vm1, %v10393_v53, %v1545_v37  ;;  %v16497_v53 = vunpack.i.h.bf16 %v12908_v17  ;;  %v2008_v17 = vld [vmem:[%s16309_s3 + $0x660] sm:$0xff]  ;;  %v2015_v46 = vld [vmem:[%s16309_s3 + $0x698] sm:$0xff]  ;;  %vm16513_vm1 = vmmov %vm16510_vm0 }
 0x38b   : > { %v13186_v45 = vmax.f32 %v16499_v47, %v1545_v37  ;;  %v13196_v5 = vmax.f32 %v16500_v49, %v1577_v7  ;;  %v9112_v37 = vpack.c.bf16 %v2011_v62, %v2008_v17  ;;  %v2020_v7 = vld [vmem:[%s16309_s3 + $0x6c0] sm:$0xff]  ;;  %v2029_v47 = vld [vmem:[%s16309_s3 + $0x708] sm:$0xff] }
 0x38c   : > { %v1531_v22 = vpop.permute.xlu1 %1530  ;;  %2302 = vmatprep.mubr.f32.mxu0 %v13137_v34  ;;  %v2036_v49 = vld [vmem:[%s16309_s3 + $0x740] sm:$0xff] }
 0x38d   : > { %v1571_v39 = vsel %vm16493_vm15, %v10383_v19, %v1531_v22  ;;  %v13148_v57 = vmax.f32 %v1461_v48, %v1531_v22  ;;  %v13150_v61 = vpop.permute.xlu0 %10420  ;;  %v2005_v19 = vld [vmem:[%s16309_s3 + $0x648] sm:$0xff]  ;;  %v2012_v48 = vld [vmem:[%s16309_s3 + $0x680] sm:$0xff]  ;;  %v16503_v22 = vmax.f32 %v12647_v14, 0.0  ;;  %vm16512_vm15 = vmmov %vm16496_vm3 }
 0x38e   : > { %v13154_v2 = vmax.f32 %v16494_v30, %v1571_v39  ;;  %v10423_v13 = vunpack.i.h.bf16 %v13150_v61  ;;  %v10422_v11 = vunpack.i.l.bf16 %v13150_v61  ;;  %2303 = vmatmul.mubr.f32.vlgmr.msra.gmra.mrb[16].mxu0 %v13140_v35  ;;  %v9108_v24 = vpack.c.bf16 %v2005_v19, %v2002_v54  ;;  %v2014_v30 = vld [vmem:[%s16309_s3 + $0x690] sm:$0xff]  ;;  %v2024_v14 = vld [vmem:[%s16309_s3 + $0x6e0] sm:$0xff] }
 0x38f   : > { %1694 = vrot.lane.b32.xlu0 %v13148_v57, %s11126_s11  ;;  %9105 = vmatpush1.bf16.msra.mxu0 %v9104_v1  ;;  %v9110_v1 = vpack.c.bf16 %v2012_v48, %v2009_v0  ;;  %v9118_v19 = vpack.c.bf16 %v2024_v14, %v2021_v33  ;;  %v2023_v0 = vld [vmem:[%s16309_s3 + $0x6d8] sm:$0xff]  ;;  %v2032_v62 = vld [vmem:[%s16309_s3 + $0x720] sm:$0xff] }
 0x390   : > { %v1559_v60 = vpop.permute.xlu1 %1558  ;;  %1692 = vrot.lane.b32.xlu1 %v13154_v2, %s11126_s11  ;;  %v1733_v25 = vsel %vm16496_vm3, %v10422_v11, %v10423_v13  ;;  %v1732_v10 = vsel %vm16498_vm4, %v16497_v53, %v10422_v11  ;;  %9107 = vmatprep.subr.bf16.mxu0 %v9106_v26  ;;  %v2017_v11 = vld [vmem:[%s16309_s3 + $0x6a8] sm:$0xff]  ;;  %v2027_v48 = vld [vmem:[%s16309_s3 + $0x6f8] sm:$0xff]  ;;  %vm16514_vm4 = vmmov %vm16496_vm3 }
 0x391   : > { %v13189_v59 = vmax.f32 %v12792_v58, %v1733_v25  ;;  %v13192_v52 = vmax.f32 %v12591_v40, %v1732_v10  ;;  %v1583_v58 = vsel %vm16501_vm5, %v10413_v18, %v1559_v60  ;;  %v2018_v40 = vld [vmem:[%s16309_s3 + $0x6b0] sm:$0xff]  ;;  %v13221_v18 = vmax.f32 %v16502_v43, %v1559_v60  ;;  %vm16515_vm5 = vmmov %vm16510_vm0 }
 0x392   : > { %v13225_v26 = vmax.f32 %v16503_v22, %v1583_v58  ;;  %v9114_v39 = vpack.c.bf16 %v2018_v40, %v2015_v46  ;;  %v9116_v54 = vpack.c.bf16 %v2017_v11, %v2014_v30  ;;  %v2030_v60 = vld [vmem:[%s16309_s3 + $0x710] sm:$0xff]  ;;  %v9120_v25 = vpack.c.bf16 %v2023_v0, %v2020_v7  ;;  %v2035_v58 = vld [vmem:[%s16309_s3 + $0x738] sm:$0xff]  ;;  %v2045_v30 = vld [vmem:[%s16309_s3 + $0x788] sm:$0xff] }
 0x393   : > { %1708 = vrot.lane.b32.xlu0 %v13186_v45, %s11126_s11  ;;  %2308 = vmatprep.mubr.f32.mxu0 %v13189_v59  ;;  %v9122_v53 = vpack.c.bf16 %v2030_v60, %v2027_v48  ;;  %v2026_v10 = vld [vmem:[%s16309_s3 + $0x6f0] sm:$0xff]  ;;  %v2039_v46 = vld [vmem:[%s16309_s3 + $0x758] sm:$0xff]  ;;  %v9128_v43 = vpack.c.bf16 %v2035_v58, %v2032_v62  ;;  %v2048_v11 = vld [vmem:[%s16309_s3 + $0x7a0] sm:$0xff] }
 0x394   : > { %1706 = vrot.lane.b32.xlu1 %v13196_v5, %s11126_s11  ;;  %2309 = vmatmul.mubr.f32.gmra.mrb[18].mxu0 %v13192_v52  ;;  %v2042_v40 = vld [vmem:[%s16309_s3 + $0x770] sm:$0xff]  ;;  %v9134_v14 = vpack.c.bf16 %v2048_v11, %v2045_v30  ;;  %v2051_v7 = vld [vmem:[%s16309_s3 + $0x7b8] sm:$0xff]  ;;  %v2056_v58 = vld [vmem:[%s16309_s3 + $0x7e0] sm:$0xff] }
 0x395   : > { %9109 = vmatpush1.bf16.msra.mxu0 %v9108_v24  ;;  %v2033_v24 = vld [vmem:[%s16309_s3 + $0x728] sm:$0xff]  ;;  %v2038_v22 = vld [vmem:[%s16309_s3 + $0x750] sm:$0xff] }
 0x396   : > { %9111 = vmatprep.subr.bf16.mxu0 %v9110_v1  ;;  %v9124_v1 = vpack.c.bf16 %v2029_v47, %v2026_v10  ;;  %v9126_v17 = vpack.c.bf16 %v2036_v49, %v2033_v24  ;;  %v2054_v0 = vld [vmem:[%s16309_s3 + $0x7d0] sm:$0xff]  ;;  %v2057_v10 = vld [vmem:[%s16309_s3 + $0x7e8] sm:$0xff]  ;;  %v2060_v47 = vld [vmem:[%s16309_s3 + $0x800] sm:$0xff] }
 0x397   : > { %1722 = vrot.lane.b32.xlu0 %v13221_v18, %s11126_s11  ;;  %v9138_v60 = vpack.c.bf16 %v2054_v0, %v2051_v7  ;;  %v2071_v7 = vld [vmem:[%s16309_s3 + $0x858] sm:$0xff] }
 0x398   : > { %1720 = vrot.lane.b32.xlu1 %v13225_v26, %s11126_s11  ;;  %v2075_v0 = vld [vmem:[%s16309_s3 + $0x878] sm:$0xff]  ;;  %s11154_s11 = smov 56  }
 0x399   : > { %9113 = vmatpush1.bf16.msra.mxu0 %v9112_v37  ;;  %v9130_v37 = vpack.c.bf16 %v2042_v40, %v2039_v46  ;;  %v2059_v46 = vld [vmem:[%s16309_s3 + $0x7f8] sm:$0xff] }
 0x39a   : > { %9115 = vmatprep.subr.bf16.mxu0 %v9114_v39  ;;  %v2041_v39 = vld [vmem:[%s16309_s3 + $0x768] sm:$0xff]  ;;  %v2063_v40 = vld [vmem:[%s16309_s3 + $0x818] sm:$0xff]  ;;  %v9144_v11 = vpack.c.bf16 %v2059_v46, %v2056_v58  ;;  %v2084_v58 = vld [vmem:[%s16309_s3 + $0x8c0] sm:$0xff] }
 0x39b   : > { %v9132_v33 = vpack.c.bf16 %v2041_v39, %v2038_v22 }
 0x39d   : > { %9117 = vmatpush1.bf16.msra.mxu0 %v9116_v54  ;;  %v2044_v54 = vld [vmem:[%s16309_s3 + $0x780] sm:$0xff] }
 0x39e   : > { %9119 = vmatprep.subr.bf16.mxu0 %v9118_v19  ;;  %v2047_v19 = vld [vmem:[%s16309_s3 + $0x798] sm:$0xff] }
 0x39f   : > { %v9136_v48 = vpack.c.bf16 %v2047_v19, %v2044_v54  ;;  %v2068_v19 = vld [vmem:[%s16309_s3 + $0x840] sm:$0xff] }
 0x3a1   : > { %9121 = vmatpush1.bf16.msra.mxu0 %v9120_v25  ;;  %v2050_v25 = vld [vmem:[%s16309_s3 + $0x7b0] sm:$0xff] }
 0x3a2   : > { %9123 = vmatprep.subr.bf16.mxu0 %v9122_v53  ;;  %v2053_v53 = vld [vmem:[%s16309_s3 + $0x7c8] sm:$0xff] }
 0x3a3   : > { %v9140_v24 = vpack.c.bf16 %v2053_v53, %v2050_v25  ;;  %v9152_v25 = vpack.c.bf16 %v2071_v7, %v2068_v19 }
 0x3a5   : > { %9125 = vmatpush1.bf16.msra.mxu0 %v9124_v1  ;;  %v9142_v1 = vpack.c.bf16 %v2060_v47, %v2057_v10 }
 0x3a6   : > { %9127 = vmatprep.subr.bf16.mxu0 %v9126_v17 }
 0x3a9   : > { %9129 = vmatpush1.bf16.msra.mxu0 %v9128_v43  ;;  %v2066_v43 = vld [vmem:[%s16309_s3 + $0x830] sm:$0xff] }
 0x3aa   : > { %9131 = vmatprep.subr.bf16.mxu0 %v9130_v37 }
 0x3ad   : > { %9133 = vmatpush1.bf16.msra.mxu0 %v9132_v33  ;;  %v9146_v33 = vpack.c.bf16 %v2066_v43, %v2063_v40 }
 0x3ae   : > { %9135 = vmatprep.subr.bf16.mxu0 %v9134_v14  ;;  %v2062_v14 = vld [vmem:[%s16309_s3 + $0x810] sm:$0xff] }
 0x3b1   : > { %9137 = vmatpush1.bf16.msra.mxu0 %v9136_v48  ;;  %v2078_v48 = vld [vmem:[%s16309_s3 + $0x890] sm:$0xff] }
 0x3b2   : > { %v13315_v49 = vpop.permute.xlu1 %10425  ;;  %9139 = vmatprep.subr.bf16.mxu0 %v9138_v60  ;;  %v9154_v47 = vpack.c.bf16 %v2078_v48, %v2075_v0  ;;  %v2092_v0 = vld [vmem:[%s16309_s3 + $0x900] sm:$0xff]  ;;  %v2095_v48 = vld [vmem:[%s16309_s3 + $0x918] sm:$0xff] }
 0x3b3   : > { %v10428_v17 = vunpack.i.h.bf16 %v13315_v49  ;;  %v10427_v62 = vunpack.i.l.bf16 %v13315_v49 }
 0x3b5   : > { %v1739_v37 = vsel %vm16504_vm6, %v10427_v62, %v10428_v17  ;;  %v1738_v22 = vsel %vm16505_vm9, %v10402_v31, %v10427_v62  ;;  %9141 = vmatpush1.bf16.msra.mxu0 %v9140_v24  ;;  %v9148_v31 = vpack.c.bf16 %v2065_v36, %v2062_v14  ;;  %v2074_v24 = vld [vmem:[%s16309_s3 + $0x870] sm:$0xff]  ;;  %v2081_v62 = vld [vmem:[%s16309_s3 + $0x8a8] sm:$0xff]  ;;  %vm16516_vm6 = vmmov %vm16496_vm3 }
 0x3b6   : > { %v13338_v39 = vmax.f32 %v12950_v4, %v1739_v37  ;;  %v13341_v30 = vmax.f32 %v12629_v23, %v1738_v22  ;;  %9143 = vmatprep.subr.bf16.mxu0 %v9142_v1  ;;  %v2069_v4 = vld [vmem:[%s16309_s3 + $0x848] sm:$0xff]  ;;  %v2072_v23 = vld [vmem:[%s16309_s3 + $0x860] sm:$0xff]  ;;  %v2086_v36 = vld [vmem:[%s16309_s3 + $0x8d0] sm:$0xff] }
 0x3b7   : > { %v9150_v54 = vpack.c.bf16 %v2072_v23, %v2069_v4  ;;  %v2077_v1 = vld [vmem:[%s16309_s3 + $0x888] sm:$0xff]  ;;  %vm16517_vm9 = vmmov %vm16496_vm3 }
 0x3b8   : > { %2314 = vmatprep.mubr.f32.mxu0 %v13338_v39  ;;  %v9156_v22 = vpack.c.bf16 %v2077_v1, %v2074_v24  ;;  %v2089_v4 = vld [vmem:[%s16309_s3 + $0x8e8] sm:$0xff]  ;;  %v2102_v24 = vld [vmem:[%s16309_s3 + $0x950] sm:$0xff] }
 0x3b9   : > { %2315 = vmatmul.mubr.f32.gmra.mrb[20].mxu0 %v13341_v30  ;;  %v2093_v23 = vld [vmem:[%s16309_s3 + $0x908] sm:$0xff] }
 0x3ba   : > { %9145 = vmatpush1.bf16.msra.mxu0 %v9144_v11  ;;  %v9158_v11 = vpack.c.bf16 %v2084_v58, %v2081_v62 }
 0x3bb   : > { %9147 = vmatprep.subr.bf16.mxu0 %v9146_v33  ;;  %v2080_v33 = vld [vmem:[%s16309_s3 + $0x8a0] sm:$0xff] }
 0x3be   : > { %v13369_v60 = vpop.permute.xlu0 %10430  ;;  %9149 = vmatpush1.bf16.msra.mxu0 %v9148_v31  ;;  %v2096_v31 = vld [vmem:[%s16309_s3 + $0x920] sm:$0xff] }
 0x3bf   : > { %v10433_v53 = vunpack.i.h.bf16 %v13369_v60  ;;  %v10432_v10 = vunpack.i.l.bf16 %v13369_v60  ;;  %9151 = vmatprep.subr.bf16.mxu0 %v9150_v54  ;;  %v9164_v54 = vpack.c.bf16 %v2089_v4, %v2086_v36  ;;  %v9166_v19 = vpack.c.bf16 %v2096_v31, %v2093_v23  ;;  %v2114_v23 = vld [vmem:[%s16309_s3 + $0x9b0] sm:$0xff] }
 0x3c1   : > { %v1745_v46 = vsel %vm16506_vm10, %v10432_v10, %v10433_v53  ;;  %v1744_v40 = vsel %vm16507_vm11, %v10408_v38, %v10432_v10  ;;  %v2087_v38 = vld [vmem:[%s16309_s3 + $0x8d8] sm:$0xff]  ;;  %vm16518_vm10 = vmmov %vm16510_vm0 }
 0x3c2   : > { %v13392_v43 = vmax.f32 %v13040_v63, %v1745_v46  ;;  %v13395_v37 = vmax.f32 %v12651_v50, %v1744_v40  ;;  %9153 = vmatpush1.bf16.msra.mxu0 %v9152_v25  ;;  %v2090_v50 = vld [vmem:[%s16309_s3 + $0x8f0] sm:$0xff]  ;;  %v9160_v63 = vpack.c.bf16 %v2083_v41, %v2080_v33  ;;  %v9168_v46 = vpack.c.bf16 %v2095_v48, %v2092_v0  ;;  %vm16520_vm11 = vmmov %vm16510_vm0 }
 0x3c3   : > { %9155 = vmatprep.subr.bf16.mxu0 %v9154_v47  ;;  %v9162_v14 = vpack.c.bf16 %v2090_v50, %v2087_v38  ;;  %v2099_v47 = vld [vmem:[%s16309_s3 + $0x938] sm:$0xff]  ;;  %v2110_v48 = vld [vmem:[%s16309_s3 + $0x990] sm:$0xff] }
 0x3c4   : > { %2320 = vmatprep.mubr.f32.mxu0 %v13392_v43  ;;  %v9170_v40 = vpack.c.bf16 %v2102_v24, %v2099_v47  ;;  %v2120_v47 = vld [vmem:[%s16309_s3 + $0x9e0] sm:$0xff] }
 0x3c5   : > { %2321 = vmatmul.mubr.f32.gmra.mrb[22].mxu0 %v13395_v37 }
 0x3c6   : > { %9157 = vmatpush1.bf16.msra.mxu0 %v9156_v22  ;;  %v2098_v22 = vld [vmem:[%s16309_s3 + $0x930] sm:$0xff] }
 0x3c7   : > { %9159 = vmatprep.subr.bf16.mxu0 %v9158_v11 }
 0x3ca   : > { %9161 = vmatpush1.bf16.msra.mxu0 %v9160_v63  ;;  %v2104_v63 = vld [vmem:[%s16309_s3 + $0x960] sm:$0xff] }
 0x3cb   : > { %9163 = vmatprep.subr.bf16.mxu0 %v9162_v14  ;;  %v2107_v14 = vld [vmem:[%s16309_s3 + $0x978] sm:$0xff] }
 0x3ce   : > { %9165 = vmatpush1.bf16.msra.mxu0 %v9164_v54  ;;  %v9176_v54 = vpack.c.bf16 %v2107_v14, %v2104_v63  ;;  %v1806_v14 = vld [vmem:[%s16309_s3 + $0x10] sm:$0xff] }
 0x3cf   : > { %9167 = vmatprep.subr.bf16.mxu0 %v9166_v19 }
 0x3fa   : > { %v1681_v7 = vpop.permute.xlu0 %1680 }
 0x3fb   : > { %v13430_v25 = vmax.f32 %v13100_v16, %v1681_v7  ;;  %v1679_v10 = vpop.permute.xlu1 %1678 }
 0x3fc   : > { %v1728_v1 = vsel %vm16508_vm14, %v13109_v29, %v1679_v10  ;;  %v1729_v62 = vsel %vm16509_vm7, %v1679_v10, %v1681_v7  ;;  %v2101_v29 = vld [vmem:[%s16309_s3 + $0x948] sm:$0xff]  ;;  %vm16521_vm14 = vmmov %vm16510_vm0 }
 0x3fd   : > { %v13442_v58 = vmax.f32 %v12782_v56, %v1728_v1  ;;  %8928 = vmatprep.mubr.msk.f32.mxu1 %vm16510_vm0, %v13430_v25  ;;  %v13447_v16 = vmax.f32 %v13104_v20, %v1729_v62  ;;  %v2105_v56 = vld [vmem:[%s16309_s3 + $0x968] sm:$0xff]  ;;  %v2108_v20 = vld [vmem:[%s16309_s3 + $0x980] sm:$0xff]  ;;  %v9172_v33 = vpack.c.bf16 %v2101_v29, %v2098_v22  ;;  %v2123_v29 = vld [vmem:[%s16309_s3 + $0x9f8] sm:$0xff] }
 0x3fe   : > { %v9174_v50 = vpack.c.bf16 %v2108_v20, %v2105_v56  ;;  %v2117_v10 = vld [vmem:[%s16309_s3 + $0x9c8] sm:$0xff]  ;;  %v2116_v22 = vld [vmem:[%s16309_s3 + $0x9c0] sm:$0xff]  ;;  %v2126_v56 = vld [vmem:[%s16309_s3 + $0xa10] sm:$0x7f] }
 0x3ff   : > { %2391 = vmatprep.mubr.f32.mxu0 %v13447_v16  ;;  %vm16522_vm7 = vmmov %vm16510_vm0 }
 0x400   : > { %2392 = vmatmul.mubr.f32.vlgmr.msra.gmra.mrb[16].mxu0 %v13442_v58 }
 0x401   : > { %9169 = vmatpush1.bf16.msra.mxu0 %v9168_v46  ;;  %v1695_v11 = vpop.permute.xlu0 %1694 }
 0x402   : > { %v13464_v41 = vmax.f32 %v13148_v57, %v1695_v11  ;;  %v1693_v38 = vpop.permute.xlu1 %1692  ;;  %9171 = vmatprep.subr.bf16.mxu0 %v9170_v40  ;;  %v2111_v57 = vld [vmem:[%s16309_s3 + $0x998] sm:$0xff]  ;;  %v9182_v40 = vpack.c.bf16 %v2120_v47, %v2117_v10  ;;  %v1872_v10 = vld [vmem:[%s16309_s3 + $0x220] sm:$0xff] }
 0x403   : > { %v1734_v36 = vsel %vm16511_vm12, %v10423_v13, %v1693_v38  ;;  %v1735_v4 = vsel %vm16512_vm15, %v1693_v38, %v1695_v11  ;;  %v9178_v0 = vpack.c.bf16 %v2114_v23, %v2111_v57  ;;  %v9186_v11 = vpack.c.bf16 %v2126_v56, %v2123_v29  ;;  %v1857_v38 = vld [vmem:[%s16309_s3 + $0x1a8] sm:$0xff]  ;;  %v1863_v57 = vld [vmem:[%s16309_s3 + $0x1d8] sm:$0xff]  ;;  %v1884_v29 = vld [vmem:[%s16309_s3 + $0x280] sm:$0xff] }
 0x404   : > { %8929 = vmatmul.mubr.msk.f32.vlgmr.msra.gmra.mrb[12].mxu1 %vm16513_vm1, %v13464_v41  ;;  %v13485_v31 = vmax.f32 %v13154_v2, %v1735_v4  ;;  %v13488_v61 = vmax.f32 %v12796_v3, %v1734_v36  ;;  %v2113_v3 = vld [vmem:[%s16309_s3 + $0x9a8] sm:$0xff]  ;;  %v1860_v4 = vld [vmem:[%s16309_s3 + $0x1c0] sm:$0xff]  ;;  %vm4388_vm12 = vcmask 875520   ;;  %vm16523_vm15 = vcmask 261120  }
 0x405   : > { %9173 = vmatpush1.bf16.msra.mxu0 %v9172_v33  ;;  %v1709_v13 = vpop.permute.xlu0 %1708  ;;  %v9180_v1 = vpack.c.bf16 %v2113_v3, %v2110_v48  ;;  %v2122_v33 = vld [vmem:[%s16309_s3 + $0x9f0] sm:$0xff]  ;;  %v1809_v36 = vld [vmem:[%s16309_s3 + $0x28] sm:$0xff]  ;;  %vm16524_vm1 = vmmov %vm16523_vm15 }
 0x406   : > { %v13491_v19 = vmax.f32 %v13186_v45, %v1709_v13  ;;  %v1707_v7 = vpop.permute.xlu1 %1706  ;;  %2397 = vmatprep.mubr.f32.mxu0 %v13485_v31  ;;  %9175 = vmatprep.subr.bf16.mxu0 %v9174_v50  ;;  %v9194_v23 = vpack.c.bf16 %v1809_v36, %v1806_v14  ;;  %v1899_v14 = vld [vmem:[%s16309_s3 + $0x2f8] sm:$0xff] }
 0x407   : > { %v1740_v2 = vsel %vm16496_vm3, %v10428_v17, %v1707_v7  ;;  %v1741_v45 = vsel %vm16514_vm4, %v1707_v7, %v1709_v13  ;;  %2398 = vmatmul.mubr.f32.gmra.mrb[18].mxu0 %v13488_v61  ;;  %v9196_v13 = vpack.c.bf16 %v1863_v57, %v1860_v4  ;;  %v1815_v7 = vld [vmem:[%s16309_s3 + $0x58] sm:$0xff]  ;;  %v1848_v57 = vld [vmem:[%s16309_s3 + $0x160] sm:$0xff]  ;;  %vm4591_vm3 = vcmask 867328   ;;  %vm16525_vm4 = vmmov %vm16524_vm1 }
 0x408   : > { %8931 = vmatprep.mubr.msk.f32.mxu1 %vm16515_vm5, %v13491_v19  ;;  %v13514_v24 = vmax.f32 %v13196_v5, %v1741_v45  ;;  %v13517_v49 = vmax.f32 %v12954_v15, %v1740_v2  ;;  %v2119_v15 = vld [vmem:[%s16309_s3 + $0x9d8] sm:$0xff]  ;;  %v1818_v2 = vld [vmem:[%s16309_s3 + $0x70] sm:$0xff]  ;;  %v1821_v45 = vld [vmem:[%s16309_s3 + $0x88] sm:$0xff] }
 0x409   : > { %9177 = vmatpush1.bf16.msra.mxu0 %v9176_v54  ;;  %v1723_v17 = vpop.permute.xlu0 %1722  ;;  %v1812_v54 = vld [vmem:[%s16309_s3 + $0x40] sm:$0xff]  ;;  %v9202_v47 = vpack.c.bf16 %v1821_v45, %v1818_v2  ;;  %v1959_v2 = vld [vmem:[%s16309_s3 + $0x4d8] sm:$0xff]  ;;  %vm16526_vm5 = vmmov %vm16524_vm1 }
 0x40a   : > { %v13520_v62 = vmax.f32 %v13221_v18, %v1723_v17  ;;  %v1721_v46 = vpop.permute.xlu1 %1720  ;;  %2403 = vmatprep.mubr.f32.mxu0 %v13514_v24  ;;  %9179 = vmatprep.subr.bf16.mxu0 %v9178_v0  ;;  %v1866_v0 = vld [vmem:[%s16309_s3 + $0x1f0] sm:$0xff]  ;;  %v9198_v48 = vpack.c.bf16 %v1815_v7, %v1812_v54  ;;  %v1953_v54 = vld [vmem:[%s16309_s3 + $0x4a8] sm:$0xff] }
 0x40b   : > { %v1746_v5 = vsel %vm16516_vm6, %v10433_v53, %v1721_v46  ;;  %v1747_v18 = vsel %vm16517_vm9, %v1721_v46, %v1723_v17  ;;  %2404 = vmatmul.mubr.f32.gmra.mrb[20].mxu0 %v13517_v49  ;;  %v9184_v53 = vpack.c.bf16 %v2119_v15, %v2116_v22  ;;  %v9200_v3 = vpack.c.bf16 %v1869_v21, %v1866_v0  ;;  %v1827_v46 = vld [vmem:[%s16309_s3 + $0xb8] sm:$0xff]  ;;  %v1902_v21 = vld [vmem:[%s16309_s3 + $0x310] sm:$0xff]  ;;  %vm16527_vm6 = vmmov %vm16524_vm1 }
 0x40c   : > { %8932 = vmatmul.mubr.msk.f32.gmra.mrb[14].mxu1 %vm16518_vm10, %v13520_v62  ;;  %v13543_v20 = vmax.f32 %v13225_v26, %v1747_v18  ;;  %v13546_v60 = vmax.f32 %v13044_v27, %v1746_v5  ;;  %v2125_v26 = vld [vmem:[%s16309_s3 + $0xa08] sm:$0x7f]  ;;  %v1854_v27 = vld [vmem:[%s16309_s3 + $0x190] sm:$0xff]  ;;  %vm16528_vm9 = vmmov %vm16524_vm1 }
 0x40d   : > { %9181 = vmatpush1.bf16.msra.mxu0 %v9180_v1  ;;  %4290 = vmatprep.mubr.f32.mxu1 %v16415_v42  ;;  %v9189_v50 = vpack.c.bf16 %v2125_v26, %v2122_v33  ;;  %v9192_v63 = vpack.c.bf16 %v1857_v38, %v1854_v27  ;;  %v1824_v1 = vld [vmem:[%s16309_s3 + $0xa0] sm:$0xff]  ;;  %v1830_v5 = vld [vmem:[%s16309_s3 + $0xd0] sm:$0xff]  ;;  %v1833_v18 = vld [vmem:[%s16309_s3 + $0xe8] sm:$0xff] }
 0x40e   : > { %2409 = vmatprep.mubr.f32.mxu0 %v13543_v20  ;;  %9183 = vmatprep.subr.bf16.mxu0 %v9182_v40  ;;  %v1878_v40 = vld [vmem:[%s16309_s3 + $0x250] sm:$0xff]  ;;  %v9206_v22 = vpack.c.bf16 %v1827_v46, %v1824_v1  ;;  %v9210_v56 = vpack.c.bf16 %v1833_v18, %v1830_v5  ;;  %v1839_v33 = vld [vmem:[%s16309_s3 + $0x118] sm:$0xff]  ;;  %v1965_v1 = vld [vmem:[%s16309_s3 + $0x508] sm:$0xff] }
 0x40f   : > { %2410 = vmatmul.mubr.f32.gmra.mrb[22].mxu0 %v13546_v60  ;;  %v1890_v26 = vld [vmem:[%s16309_s3 + $0x2b0] sm:$0xff]  ;;  %v1920_v18 = vld [vmem:[%s16309_s3 + $0x3a0] sm:$0xff]  ;;  %vm16529_vm10 = vmmov %vm16524_vm1 }
 0x410   : > { %2480 = vmatprep.mubr.f32.mxu0 %v16415_v42  ;;  %v1842_v38 = vld [vmem:[%s16309_s3 + $0x130] sm:$0xff] }
 0x411   : > { %9185 = vmatpush1.bf16.msra.mxu0 %v9184_v53 }
 0x412   : > { %9188 = vmatprep.subr.msk.bf16.mxu0 %vm13087_vm8, %v9186_v11  ;;  %v1836_v11 = vld [vmem:[%s16309_s3 + $0x100] sm:$0xff] }
 0x415   : > { %9191 = vmatpush1.bf16.msk.msra.mxu0 %vm13087_vm8, %v9189_v50  ;;  %vm16519_vm8 = vmmov %vm16510_vm0  ;;  %v1845_v50 = vld [vmem:[%s16309_s3 + $0x148] sm:$0xff]  ;;  %vm4185_vm0 = vcmask 883712  }
 0x416   : > { %9193 = vmatprep.subr.bf16.mxu0 %v9192_v63  ;;  %v1896_v63 = vld [vmem:[%s16309_s3 + $0x2e0] sm:$0xff]  ;;  %v9218_v36 = vpack.c.bf16 %v1845_v50, %v1842_v38  ;;  %v1938_v50 = vld [vmem:[%s16309_s3 + $0x430] sm:$0xff] }
 0x417   : > { %v9220_v4 = vpack.c.bf16 %v1899_v14, %v1896_v63  ;;  %v1941_v63 = vld [vmem:[%s16309_s3 + $0x448] sm:$0xff]  ;;  %v1992_v14 = vld [vmem:[%s16309_s3 + $0x5e0] sm:$0xff] }
 0x418   : > { %8321 = vmatmul.mubr.msk.f32.vlgmr.msra.gmra.mrb[16].mxu0 %vm16519_vm8, %v13430_v25  ;;  %v1875_v25 = vld [vmem:[%s16309_s3 + $0x238] sm:$0xff]  ;;  %vm16530_vm8 = vmmov %vm16524_vm1 }
 0x419   : > { %9195 = vmatpush3.bf16.msra.mxu0 %v9194_v23  ;;  %2486 = vmatprep.mubr.f32.mxu0 %v16415_v42  ;;  %v9204_v17 = vpack.c.bf16 %v1875_v25, %v1872_v10  ;;  %v1851_v23 = vld [vmem:[%s16309_s3 + $0x178] sm:$0xff]  ;;  %v1908_v25 = vld [vmem:[%s16309_s3 + $0x340] sm:$0xff] }
 0x41a   : > { %9197 = vmatprep.subr.bf16.mxu0 %v9196_v13  ;;  %v1950_v13 = vld [vmem:[%s16309_s3 + $0x490] sm:$0xff]  ;;  %v9222_v7 = vpack.c.bf16 %v1851_v23, %v1848_v57  ;;  %v1944_v23 = vld [vmem:[%s16309_s3 + $0x460] sm:$0xff] }
 0x41b   : > { %v9224_v0 = vpack.c.bf16 %v1953_v54, %v1950_v13  ;;  %v1947_v13 = vld [vmem:[%s16309_s3 + $0x478] sm:$0xff]  ;;  %v2046_v54 = vld [vmem:[%s16309_s3 + $0x790] sm:$0xff] }
 0x41c   : > { %8322 = vmatmul.mubr.msk.f32.gmra.mrb[18].mxu0 %vm16520_vm11, %v13464_v41  ;;  %v1881_v41 = vld [vmem:[%s16309_s3 + $0x268] sm:$0xff]  ;;  %vm16531_vm11 = vmmov %vm16524_vm1 }
 0x41d   : > { %9199 = vmatpush3.bf16.msra.mxu0 %v9198_v48  ;;  %2492 = vmatprep.mubr.f32.mxu0 %v16415_v42  ;;  %v9208_v15 = vpack.c.bf16 %v1881_v41, %v1878_v40  ;;  %v1905_v48 = vld [vmem:[%s16309_s3 + $0x328] sm:$0xff]  ;;  %v1914_v41 = vld [vmem:[%s16309_s3 + $0x370] sm:$0xff] }
 0x41e   : > { %9201 = vmatprep.subr.bf16.mxu0 %v9200_v3  ;;  %v1956_v3 = vld [vmem:[%s16309_s3 + $0x4c0] sm:$0xff]  ;;  %v9226_v45 = vpack.c.bf16 %v1905_v48, %v1902_v21  ;;  %v1998_v48 = vld [vmem:[%s16309_s3 + $0x610] sm:$0xff] }
 0x41f   : > { %v9228_v10 = vpack.c.bf16 %v1959_v2, %v1956_v3  ;;  %v2001_v3 = vld [vmem:[%s16309_s3 + $0x628] sm:$0xff]  ;;  %v2052_v2 = vld [vmem:[%s16309_s3 + $0x7c0] sm:$0xff] }
 0x420   : > { %8323 = vmatmul.mubr.msk.f32.gmra.mrb[20].mxu0 %vm16521_vm14, %v13491_v19  ;;  %v1887_v19 = vld [vmem:[%s16309_s3 + $0x298] sm:$0xff]  ;;  %vm16532_vm14 = vcmask 752640  }
 0x421   : > { %9203 = vmatpush3.bf16.msra.mxu0 %v9202_v47  ;;  %2498 = vmatprep.mubr.f32.mxu0 %v16415_v42  ;;  %v9212_v53 = vpack.c.bf16 %v1887_v19, %v1884_v29  ;;  %v1911_v47 = vld [vmem:[%s16309_s3 + $0x358] sm:$0xff]  ;;  %v1974_v19 = vld [vmem:[%s16309_s3 + $0x550] sm:$0xff] }
 0x422   : > { %9205 = vmatprep.subr.bf16.mxu0 %v9204_v17  ;;  %v1962_v17 = vld [vmem:[%s16309_s3 + $0x4f0] sm:$0xff]  ;;  %v9230_v46 = vpack.c.bf16 %v1911_v47, %v1908_v25  ;;  %v1923_v29 = vld [vmem:[%s16309_s3 + $0x3b8] sm:$0xff]  ;;  %v2004_v47 = vld [vmem:[%s16309_s3 + $0x640] sm:$0xff] }
 0x423   : > { %v9232_v40 = vpack.c.bf16 %v1965_v1, %v1962_v17  ;;  %v2007_v17 = vld [vmem:[%s16309_s3 + $0x658] sm:$0xff]  ;;  %v2058_v1 = vld [vmem:[%s16309_s3 + $0x7f0] sm:$0xff] }
 0x424   : > { %8324 = vmatmul.mubr.msk.f32.gmra.mrb[22].mxu0 %vm16522_vm7, %v13520_v62  ;;  %v1893_v62 = vld [vmem:[%s16309_s3 + $0x2c8] sm:$0xff]  ;;  %vm16533_vm7 = vmmov %vm16532_vm14 }
 0x425   : > { %9207 = vmatpush3.bf16.msra.mxu0 %v9206_v22  ;;  %2569 = vmatprep.mubr.f32.mxu0 %v12704_v51  ;;  %v9214_v51 = vpack.c.bf16 %v1839_v33, %v1836_v11  ;;  %v9216_v27 = vpack.c.bf16 %v1893_v62, %v1890_v26  ;;  %v1917_v22 = vld [vmem:[%s16309_s3 + $0x388] sm:$0xff]  ;;  %v1980_v33 = vld [vmem:[%s16309_s3 + $0x580] sm:$0xff] }
 0x426   : > { %9209 = vmatprep.subr.bf16.mxu0 %v9208_v15  ;;  %v1968_v15 = vld [vmem:[%s16309_s3 + $0x520] sm:$0xff]  ;;  %v1929_v11 = vld [vmem:[%s16309_s3 + $0x3e8] sm:$0xff] }
 0x427   : > { %v1932_v62 = vld [vmem:[%s16309_s3 + $0x400] sm:$0xff] }
 0x429   : > { %9211 = vmatpush3.bf16.msra.mxu0 %v9210_v56 }
 0x42a   : > { %9213 = vmatprep.subr.bf16.mxu0 %v9212_v53  ;;  %v1926_v53 = vld [vmem:[%s16309_s3 + $0x3d0] sm:$0xff] }
 0x42d   : > { %9215 = vmatpush3.bf16.msra.mxu0 %v9214_v51  ;;  %v1935_v51 = vld [vmem:[%s16309_s3 + $0x418] sm:$0xff] }
 0x42e   : > { %9217 = vmatprep.subr.bf16.mxu0 %v9216_v27  ;;  %v1986_v27 = vld [vmem:[%s16309_s3 + $0x5b0] sm:$0xff] }
 0x431   : > { %9219 = vmatpush3.bf16.msra.mxu0 %v9218_v36  ;;  %v1995_v36 = vld [vmem:[%s16309_s3 + $0x5f8] sm:$0xff] }
 0x432   : > { %9221 = vmatprep.subr.bf16.mxu0 %v9220_v4  ;;  %v9250_v4 = vpack.c.bf16 %v1941_v63, %v1938_v50  ;;  %v9252_v57 = vpack.c.bf16 %v1995_v36, %v1992_v14  ;;  %v2043_v50 = vld [vmem:[%s16309_s3 + $0x778] sm:$0xff] }
 0x435   : > { %9223 = vmatpush3.bf16.msra.mxu0 %v9222_v7  ;;  %v2049_v7 = vld [vmem:[%s16309_s3 + $0x7a8] sm:$0xff] }
 0x436   : > { %9225 = vmatprep.subr.bf16.mxu0 %v9224_v0  ;;  %v9254_v0 = vpack.c.bf16 %v1947_v13, %v1944_v23  ;;  %v9256_v21 = vpack.c.bf16 %v2049_v7, %v2046_v54 }
 0x438   : > { %2570 = vmatmul.mubr.f32.vlgmr.msra.gmra.mrb[24].mxu0 %v12699_v44  ;;  %v1971_v44 = vld [vmem:[%s16309_s3 + $0x538] sm:$0xff] }
 0x439   : > { %2574 = vmatprep.mubr.f32.mxu0 %v12924_v6  ;;  %9227 = vmatpush3.bf16.msra.mxu0 %v9226_v45  ;;  %v9234_v6 = vpack.c.bf16 %v1917_v22, %v1914_v41  ;;  %v9236_v5 = vpack.c.bf16 %v1971_v44, %v1968_v15  ;;  %v2055_v45 = vld [vmem:[%s16309_s3 + $0x7d8] sm:$0xff]  ;;  %v2010_v22 = vld [vmem:[%s16309_s3 + $0x670] sm:$0xff]  ;;  %v2013_v15 = vld [vmem:[%s16309_s3 + $0x688] sm:$0xff] }
 0x43a   : > { %9229 = vmatprep.subr.bf16.mxu0 %v9228_v10  ;;  %v9258_v10 = vpack.c.bf16 %v2001_v3, %v1998_v48  ;;  %v9260_v25 = vpack.c.bf16 %v2055_v45, %v2052_v2  ;;  %v2064_v44 = vld [vmem:[%s16309_s3 + $0x820] sm:$0xff] }
 0x43c   : > { %2575 = vmatmul.mubr.f32.gmra.mrb[26].mxu0 %v12959_v32  ;;  %v1977_v32 = vld [vmem:[%s16309_s3 + $0x568] sm:$0xff] }
 0x43d   : > { %2579 = vmatprep.mubr.f32.mxu0 %v12986_v28  ;;  %9231 = vmatpush3.bf16.msra.mxu0 %v9230_v46  ;;  %v9238_v28 = vpack.c.bf16 %v1923_v29, %v1920_v18  ;;  %v9240_v56 = vpack.c.bf16 %v1977_v32, %v1974_v19  ;;  %v2061_v46 = vld [vmem:[%s16309_s3 + $0x808] sm:$0xff]  ;;  %v2019_v18 = vld [vmem:[%s16309_s3 + $0x6b8] sm:$0xff]  ;;  %v2070_v29 = vld [vmem:[%s16309_s3 + $0x850] sm:$0xff] }
 0x43e   : > { %9233 = vmatprep.subr.bf16.mxu0 %v9232_v40  ;;  %v9262_v40 = vpack.c.bf16 %v2007_v17, %v2004_v47  ;;  %v9264_v41 = vpack.c.bf16 %v2061_v46, %v2058_v1  ;;  %v2022_v32 = vld [vmem:[%s16309_s3 + $0x6d0] sm:$0xff] }
 0x440   : > { %2580 = vmatmul.mubr.f32.gmra.mrb[28].mxu0 %v12989_v55  ;;  %v1983_v55 = vld [vmem:[%s16309_s3 + $0x598] sm:$0xff] }
 0x441   : > { %2584 = vmatprep.mubr.f32.mxu0 %v13015_v12  ;;  %9235 = vmatpush3.bf16.msra.mxu0 %v9234_v6  ;;  %v9242_v12 = vpack.c.bf16 %v1929_v11, %v1926_v53  ;;  %v9244_v26 = vpack.c.bf16 %v1983_v55, %v1980_v33  ;;  %v2028_v11 = vld [vmem:[%s16309_s3 + $0x700] sm:$0xff]  ;;  %v2031_v33 = vld [vmem:[%s16309_s3 + $0x718] sm:$0xff]  ;;  %v2082_v55 = vld [vmem:[%s16309_s3 + $0x8b0] sm:$0xff] }
 0x442   : > { %9237 = vmatprep.subr.bf16.mxu0 %v9236_v5  ;;  %v2016_v5 = vld [vmem:[%s16309_s3 + $0x6a0] sm:$0xff] }
 0x444   : > { %2585 = vmatmul.mubr.f32.gmra.mrb[30].mxu0 %v13114_v9  ;;  %v1989_v9 = vld [vmem:[%s16309_s3 + $0x5c8] sm:$0xff] }
 0x445   : > { %9239 = vmatpush3.bf16.msra.mxu0 %v9238_v28  ;;  %2654 = vmatprep.mubr.f32.mxu0 %v13137_v34  ;;  %v9246_v34 = vpack.c.bf16 %v1935_v51, %v1932_v62  ;;  %v9248_v38 = vpack.c.bf16 %v1989_v9, %v1986_v27  ;;  %v2025_v28 = vld [vmem:[%s16309_s3 + $0x6e8] sm:$0xff]  ;;  %v2088_v51 = vld [vmem:[%s16309_s3 + $0x8e0] sm:$0xff]  ;;  %v2091_v27 = vld [vmem:[%s16309_s3 + $0x8f8] sm:$0xff] }
 0x446   : > { %9241 = vmatprep.subr.bf16.mxu0 %v9240_v56  ;;  %v2076_v56 = vld [vmem:[%s16309_s3 + $0x880] sm:$0xff]  ;;  %v2037_v62 = vld [vmem:[%s16309_s3 + $0x748] sm:$0xff] }
 0x449   : > { %9243 = vmatpush3.bf16.msra.mxu0 %v9242_v12 }
 0x44a   : > { %9245 = vmatprep.subr.bf16.mxu0 %v9244_v26  ;;  %v2034_v26 = vld [vmem:[%s16309_s3 + $0x730] sm:$0xff] }
 0x44b   : > { %v9282_v9 = vpack.c.bf16 %v2037_v62, %v2034_v26 }
 0x44d   : > { %9247 = vmatpush3.bf16.msra.mxu0 %v9246_v34  ;;  %v9284_v34 = vpack.c.bf16 %v2091_v27, %v2088_v51 }
 0x44e   : > { %9249 = vmatprep.subr.bf16.mxu0 %v9248_v38  ;;  %v2040_v38 = vld [vmem:[%s16309_s3 + $0x760] sm:$0xff] }
 0x44f   : > { %v9286_v63 = vpack.c.bf16 %v2043_v50, %v2040_v38 }
 0x451   : > { %9251 = vmatpush3.bf16.msra.mxu0 %v9250_v4 }
 0x452   : > { %9253 = vmatprep.subr.bf16.mxu0 %v9252_v57 }
 0x455   : > { %9255 = vmatpush3.bf16.msra.mxu0 %v9254_v0 }
 0x456   : > { %9257 = vmatprep.subr.bf16.mxu0 %v9256_v21 }
 0x458   : > { %2655 = vmatmul.mubr.f32.vlgmr.msra.gmra.mrb[32].mxu0 %v13140_v35  ;;  %v2067_v35 = vld [vmem:[%s16309_s3 + $0x838] sm:$0xff] }
 0x459   : > { %2659 = vmatprep.mubr.f32.mxu0 %v13189_v59  ;;  %9259 = vmatpush3.bf16.msra.mxu0 %v9258_v10  ;;  %v9266_v59 = vpack.c.bf16 %v2013_v15, %v2010_v22  ;;  %v9268_v6 = vpack.c.bf16 %v2067_v35, %v2064_v44 }
 0x45a   : > { %9261 = vmatprep.subr.bf16.mxu0 %v9260_v25 }
 0x45c   : > { %2660 = vmatmul.mubr.f32.gmra.mrb[34].mxu0 %v13192_v52  ;;  %v2073_v52 = vld [vmem:[%s16309_s3 + $0x868] sm:$0xff] }
 0x45d   : > { %2664 = vmatprep.mubr.f32.mxu0 %v13338_v39  ;;  %9263 = vmatpush3.bf16.msra.mxu0 %v9262_v40  ;;  %v9270_v39 = vpack.c.bf16 %v2019_v18, %v2016_v5  ;;  %v9272_v19 = vpack.c.bf16 %v2073_v52, %v2070_v29 }
 0x45e   : > { %9265 = vmatprep.subr.bf16.mxu0 %v9264_v41 }
 0x460   : > { %2665 = vmatmul.mubr.f32.gmra.mrb[36].mxu0 %v13341_v30  ;;  %v2079_v30 = vld [vmem:[%s16309_s3 + $0x898] sm:$0xff] }
 0x461   : > { %2669 = vmatprep.mubr.f32.mxu0 %v13392_v43  ;;  %9267 = vmatpush3.bf16.msra.mxu0 %v9266_v59  ;;  %v9274_v43 = vpack.c.bf16 %v2025_v28, %v2022_v32  ;;  %v9276_v53 = vpack.c.bf16 %v2079_v30, %v2076_v56 }
 0x462   : > { %9269 = vmatprep.subr.bf16.mxu0 %v9268_v6 }
 0x464   : > { %2670 = vmatmul.mubr.f32.gmra.mrb[38].mxu0 %v13395_v37  ;;  %v2085_v37 = vld [vmem:[%s16309_s3 + $0x8c8] sm:$0xff] }
 0x465   : > { %9271 = vmatpush3.bf16.msra.mxu0 %v9270_v39  ;;  %2739 = vmatprep.mubr.f32.mxu0 %v13447_v16  ;;  %v9278_v16 = vpack.c.bf16 %v2031_v33, %v2028_v11  ;;  %v9280_v12 = vpack.c.bf16 %v2085_v37, %v2082_v55 }
 0x466   : > { %9273 = vmatprep.subr.bf16.mxu0 %v9272_v19 }
 0x469   : > { %9275 = vmatpush3.bf16.msra.mxu0 %v9274_v43 }
 0x46a   : > { %9277 = vmatprep.subr.bf16.mxu0 %v9276_v53 }
 0x46d   : > { %9279 = vmatpush3.bf16.msra.mxu0 %v9278_v16 }
 0x46e   : > { %9281 = vmatprep.subr.bf16.mxu0 %v9280_v12 }
 0x471   : > { %9283 = vmatpush3.bf16.msra.mxu0 %v9282_v9 }
 0x472   : > { %9285 = vmatprep.subr.bf16.mxu0 %v9284_v34 }
 0x475   : > { %9287 = vmatpush3.bf16.msra.mxu0 %v9286_v63 }
 0x478   : > { %2740 = vmatmul.mubr.f32.vlgmr.msra.gmra.mrb[40].mxu0 %v13442_v58 }
 0x479   : > { %2744 = vmatprep.mubr.f32.mxu0 %v13485_v31 }
 0x47c   : > { %2745 = vmatmul.mubr.f32.gmra.mrb[42].mxu0 %v13488_v61 }
 0x47d   : > { %2749 = vmatprep.mubr.f32.mxu0 %v13514_v24 }
 0x480   : > { %2750 = vmatmul.mubr.f32.gmra.mrb[44].mxu0 %v13517_v49 }
 0x481   : > { %2754 = vmatprep.mubr.f32.mxu0 %v13543_v20 }
 0x484   : > { %2755 = vmatmul.mubr.f32.gmra.mrb[46].mxu0 %v13546_v60 }
 0x485   : > { %2986 = vmatprep.mubr.f32.mxu0 %v16415_v42 }
 0x4d7   : > { %v13886_v14 = vpop.f32.mrb[12].mxu1 }
 0x4d8   : > { %v2826_v36 = vpop.f32.mrb[13].mxu1 }
 0x4df   : > { %v13888_v4 = vpop.f32.mrb[14].mxu1 }
 0x4e0   : > { %v13890_v58 = vpop.f32.mrb[15].mxu1 }
 0x4eb   : > { %v13892_v31 = vpop.f32.mrb[16].mxu0 }
 0x4ec   : > { %v13894_v61 = vpop.f32.mrb[17].mxu0 }
 0x4ed   : > { %v13898_v24 = vpack.i.bf16 %v13894_v61, %v13892_v31 }
 0x4ef   : > { %v13900_v49 = vpop.f32.mrb[18].mxu0 }
 0x4f0   : > { %v13902_v20 = vpop.f32.mrb[19].mxu0  ;;  %v13906_v60 = vpack.i.bf16 %v13900_v49, %v13892_v31 }
 0x4f1   : > { %v13912_v57 = vpack.i.bf16 %v13902_v20, %v13900_v49 }
 0x4f2   : > { %10435 = vrot.lane.b32.xlu1 %v13906_v60, %s11142_s19 }
 0x4f3   : > { %v13914_v23 = vpop.f32.mrb[20].mxu0 }
 0x4f4   : > { %v13916_v13 = vpop.f32.mrb[21].mxu0 }
 0x4f5   : > { %v13920_v54 = vpack.i.bf16 %v13916_v13, %v13914_v23 }
 0x4f7   : > { %v13922_v7 = vpop.f32.mrb[22].mxu0 }
 0x4f8   : > { %v13928_v48 = vpop.f32.mrb[23].mxu0  ;;  %v13932_v3 = vpack.i.bf16 %v13922_v7, %v13914_v23 }
 0x4f9   : > { %v13936_v2 = vpack.i.bf16 %v13928_v48, %v13922_v7 }
 0x50b   : > { %v8774_v25 = vpop.f32.mrb[24].mxu0 }
 0x50c   : > { %v8775_v47 = vpop.f32.mrb[25].mxu0 }
 0x50d   : > { %v8776_v17 = vadd.f32 %v8775_v47, %v8774_v25 }
 0x50f   : > { %v8777_v1 = vpop.f32.mrb[26].mxu0 }
 0x510   : > { %v8778_v46 = vpop.f32.mrb[27].mxu0 }
 0x511   : > { %v8779_v40 = vadd.f32 %v8778_v46, %v8777_v1 }
 0x513   : > { %v8780_v41 = vpop.f32.mrb[28].mxu0 }
 0x514   : > { %v8781_v22 = vpop.f32.mrb[29].mxu0 }
 0x515   : > { %v8782_v15 = vadd.f32 %v8781_v22, %v8780_v41 }
 0x517   : > { %v8783_v44 = vpop.f32.mrb[30].mxu0 }
 0x518   : > { %v8784_v35 = vpop.f32.mrb[31].mxu0 }
 0x519   : > { %v8785_v59 = vadd.f32 %v8784_v35, %v8783_v44 }
 0x52b   : > { %v8818_v6 = vpop.f32.mrb[32].mxu0 }
 0x52c   : > { %v8819_v5 = vpop.f32.mrb[33].mxu0 }
 0x52d   : > { %v8820_v18 = vadd.f32 %v8819_v5, %v8818_v6 }
 0x52f   : > { %v2657_v29 = vadd.f32 %v8820_v18, %v8776_v17  ;;  %v8821_v52 = vpop.f32.mrb[34].mxu0 }
 0x530   : > { %v8822_v39 = vpop.f32.mrb[35].mxu0 }
 0x531   : > { %v8823_v19 = vadd.f32 %v8822_v39, %v8821_v52 }
 0x533   : > { %v2662_v32 = vadd.f32 %v8823_v19, %v8779_v40  ;;  %v8824_v28 = vpop.f32.mrb[36].mxu0 }
 0x534   : > { %v8825_v56 = vpop.f32.mrb[37].mxu0 }
 0x535   : > { %v8826_v30 = vadd.f32 %v8825_v56, %v8824_v28 }
 0x537   : > { %v2667_v43 = vadd.f32 %v8826_v30, %v8782_v15  ;;  %v8827_v53 = vpop.f32.mrb[38].mxu0 }
 0x538   : > { %v8828_v11 = vpop.f32.mrb[39].mxu0 }
 0x539   : > { %v8829_v33 = vadd.f32 %v8828_v11, %v8827_v53 }
 0x53b   : > { %v2672_v55 = vadd.f32 %v8829_v33, %v8785_v59 }
 0x54b   : > { %v8862_v37 = vpop.f32.mrb[40].mxu0 }
 0x54c   : > { %v8863_v16 = vpop.f32.mrb[41].mxu0 }
 0x54d   : > { %v8864_v12 = vadd.f32 %v8863_v16, %v8862_v37 }
 0x54f   : > { %v2742_v26 = vadd.f32 %v8864_v12, %v2657_v29  ;;  %v8865_v62 = vpop.f32.mrb[42].mxu0 }
 0x550   : > { %v8866_v51 = vpop.f32.mrb[43].mxu0 }
 0x551   : > { %v2827_v27 = vadd.f32 %v2826_v36, %v2742_v26  ;;  %v8867_v9 = vadd.f32 %v8866_v51, %v8865_v62 }
 0x553   : > { %v2747_v34 = vadd.f32 %v8867_v9, %v2662_v32  ;;  %v8868_v38 = vpop.f32.mrb[44].mxu0  ;;  %v13943_v50 = vpack.i.bf16 %v2827_v27, %v13894_v61 }
 0x554   : > { %v8869_v63 = vpop.f32.mrb[45].mxu0 }
 0x555   : > { %v2832_v25 = vadd.f32 %v13886_v14, %v2747_v34  ;;  %v8870_v47 = vadd.f32 %v8869_v63, %v8868_v38  ;;  %10440 = vrot.lane.b32.xlu1 %v13943_v50, %s11142_s19 }
 0x557   : > { %v2752_v17 = vadd.f32 %v8870_v47, %v2667_v43  ;;  %v8871_v1 = vpop.f32.mrb[46].mxu0  ;;  %v13949_v46 = vpack.i.bf16 %v2832_v25, %v13902_v20 }
 0x558   : > { %v8872_v40 = vpop.f32.mrb[47].mxu0 }
 0x559   : > { %v2837_v36 = vadd.f32 %v13890_v58, %v2752_v17  ;;  %v8873_v41 = vadd.f32 %v8872_v40, %v8871_v1  ;;  %10445 = vrot.lane.b32.xlu0 %v13949_v46, %s11142_s19 }
 0x55b   : > { %v2757_v22 = vadd.f32 %v8873_v41, %v2672_v55  ;;  %v13955_v15 = vpack.i.bf16 %v2837_v36, %v13916_v13 }
 0x55d   : > { %v2842_v14 = vadd.f32 %v13888_v4, %v2757_v22  ;;  %10450 = vrot.lane.b32.xlu0 %v13955_v15, %s11142_s19 }
 0x55f   : > { %v13961_v44 = vpack.i.bf16 %v2842_v14, %v13928_v48 }
 0x561   : > { %10460 = vrot.lane.b32.xlu0 %v13932_v3, %s11142_s19  ;;  %10455 = vrot.lane.b32.xlu1 %v13961_v44, %s11142_s19  ;;  %s11156_s19 = smov 54  }
 0x564   : > { %v10436_v4 = vpop.permute.xlu1 %10435 }
 0x565   : > { %10470 = vrot.lane.b32.xlu0 %v13949_v46, %s11143_s20  ;;  %10465 = vrot.lane.b32.xlu1 %v13943_v50, %s11143_s20  ;;  %v10438_v5 = vunpack.i.h.bf16 %v10436_v4  ;;  %v10437_v18 = vunpack.i.l.bf16 %v10436_v4  ;;  %v8434_v4 = vld [vmem:[%s16310_s4 + $0x1c0] sm:$0xff] }
 0x569   : > { %10480 = vrot.lane.b32.xlu0 %v13955_v15, %s11143_s20  ;;  %10475 = vrot.lane.b32.xlu1 %v13906_v60, %s11143_s20 }
 0x56d   : > { %10490 = vrot.lane.b32.xlu0 %v13932_v3, %s11143_s20  ;;  %10485 = vrot.lane.b32.xlu1 %v13961_v44, %s11143_s20 }
 0x571   : > { %10500 = vrot.lane.b32.xlu0 %v13949_v46, %s11144_s21  ;;  %10495 = vrot.lane.b32.xlu1 %v13943_v50, %s11144_s21 }
 0x575   : > { %10510 = vrot.lane.b32.xlu0 %v13955_v15, %s11144_s21  ;;  %10505 = vrot.lane.b32.xlu1 %v13906_v60, %s11144_s21 }
 0x579   : > { %10520 = vrot.lane.b32.xlu0 %v13932_v3, %s11144_s21  ;;  %10515 = vrot.lane.b32.xlu1 %v13961_v44, %s11144_s21 }
 0x57d   : > { %10530 = vrot.lane.b32.xlu0 %v13949_v46, %s11130_s15  ;;  %10525 = vrot.lane.b32.xlu1 %v13943_v50, %s11130_s15 }
 0x581   : > { %10540 = vrot.lane.b32.xlu0 %v13955_v15, %s11130_s15  ;;  %10535 = vrot.lane.b32.xlu1 %v13906_v60, %s11130_s15 }
 0x585   : > { %10550 = vrot.lane.b32.xlu0 %v13932_v3, %s11130_s15  ;;  %10545 = vrot.lane.b32.xlu1 %v13961_v44, %s11130_s15  ;;  %s11147_s15 = smov 89  }
 0x589   : > { %10560 = vrot.lane.b32.xlu0 %v13949_v46, %s11145_s22  ;;  %10555 = vrot.lane.b32.xlu1 %v13943_v50, %s11145_s22 }
 0x58d   : > { %10570 = vrot.lane.b32.xlu0 %v13955_v15, %s11145_s22  ;;  %10565 = vrot.lane.b32.xlu1 %v13906_v60, %s11145_s22 }
 0x591   : > { %10580 = vrot.lane.b32.xlu0 %v13932_v3, %s11145_s22  ;;  %10575 = vrot.lane.b32.xlu1 %v13961_v44, %s11145_s22 }
 0x595   : > { %10590 = vrot.lane.b32.xlu0 %v13949_v46, %s11146_s23  ;;  %10585 = vrot.lane.b32.xlu1 %v13943_v50, %s11146_s23 }
 0x599   : > { %10600 = vrot.lane.b32.xlu0 %v13955_v15, %s11146_s23  ;;  %10595 = vrot.lane.b32.xlu1 %v13906_v60, %s11146_s23 }
 0x59d   : > { %10610 = vrot.lane.b32.xlu0 %v13932_v3, %s11146_s23  ;;  %10605 = vrot.lane.b32.xlu1 %v13961_v44, %s11146_s23  ;;  %s11159_s23 = smov 109  }
 0x5a1   : > { %10620 = vrot.lane.b32.xlu0 %v13949_v46, %s11147_s15  ;;  %10615 = vrot.lane.b32.xlu1 %v13943_v50, %s11147_s15 }
 0x5a5   : > { %10630 = vrot.lane.b32.xlu0 %v13955_v15, %s11147_s15  ;;  %10625 = vrot.lane.b32.xlu1 %v13906_v60, %s11147_s15 }
 0x5a9   : > { %10640 = vrot.lane.b32.xlu0 %v13932_v3, %s11147_s15  ;;  %10635 = vrot.lane.b32.xlu1 %v13961_v44, %s11147_s15 }
 0x5ad   : > { %10650 = vrot.lane.b32.xlu0 %v13949_v46, %s11148_s10  ;;  %10645 = vrot.lane.b32.xlu1 %v13943_v50, %s11148_s10 }
 0x5b1   : > { %10660 = vrot.lane.b32.xlu0 %v13955_v15, %s11148_s10  ;;  %10655 = vrot.lane.b32.xlu1 %v13906_v60, %s11148_s10 }
 0x5b5   : > { %10670 = vrot.lane.b32.xlu0 %v13932_v3, %s11148_s10  ;;  %10665 = vrot.lane.b32.xlu1 %v13961_v44, %s11148_s10  ;;  %s11153_s10 = smov 70  }
 0x5b9   : > { %10680 = vrot.lane.b32.xlu0 %v13949_v46, %s11149_s29  ;;  %10675 = vrot.lane.b32.xlu1 %v13943_v50, %s11149_s29 }
 0x5bd   : > { %10690 = vrot.lane.b32.xlu0 %v13955_v15, %s11149_s29  ;;  %10685 = vrot.lane.b32.xlu1 %v13906_v60, %s11149_s29 }
 0x5c1   : > { %10700 = vrot.lane.b32.xlu0 %v13932_v3, %s11149_s29  ;;  %10695 = vrot.lane.b32.xlu1 %v13961_v44, %s11149_s29  ;;  %s11155_s29 = smov 55  }
 0x5c5   : > { %10710 = vrot.lane.b32.xlu0 %v13949_v46, %s11150_s26  ;;  %10705 = vrot.lane.b32.xlu1 %v13943_v50, %s11150_s26 }
 0x5c7   : > { %v10441_v58 = vpop.permute.xlu1 %10440 }
 0x5c8   : > { %v10443_v35 = vunpack.i.h.bf16 %v10441_v58  ;;  %v10442_v59 = vunpack.i.l.bf16 %v10441_v58 }
 0x5c9   : > { %10720 = vrot.lane.b32.xlu0 %v13955_v15, %s11150_s26  ;;  %10715 = vrot.lane.b32.xlu1 %v13906_v60, %s11150_s26 }
 0x5ca   : > { %v4186_v39 = vsel %vm4185_vm0, %v10437_v18, %v10442_v59  ;;  %v4187_v32 = vsel %vm4185_vm0, %v10442_v59, %v10443_v35 }
 0x5cb   : > { %v10446_v6 = vpop.permute.xlu0 %10445 }
 0x5cc   : > { %v10448_v29 = vunpack.i.h.bf16 %v10446_v6  ;;  %v10447_v52 = vunpack.i.l.bf16 %v10446_v6 }
 0x5cd   : > { %10730 = vrot.lane.b32.xlu0 %v13932_v3, %s11150_s26  ;;  %10725 = vrot.lane.b32.xlu1 %v13961_v44, %s11150_s26 }
 0x5ce   : > { %v4188_v19 = vsel %vm4185_vm0, %v10438_v5, %v10447_v52  ;;  %v4189_v28 = vsel %vm4185_vm0, %v10447_v52, %v10448_v29 }
 0x5cf   : > { %v10451_v56 = vpop.permute.xlu0 %10450  ;;  %v9370_v30 = vpack.c.bf16 %v4189_v28, %v4187_v32  ;;  %v9372_v43 = vpack.c.bf16 %v4188_v19, %v4186_v39  ;;  %v8435_v19 = vld [vmem:[%s16310_s4 + $0x1c8] sm:$0xff] }
 0x5d0   : > { %v10453_v53 = vunpack.i.h.bf16 %v10451_v56  ;;  %v10452_v11 = vunpack.i.l.bf16 %v10451_v56 }
 0x5d1   : > { %10740 = vrot.lane.b32.xlu0 %v13949_v46, %s11151_s27  ;;  %10735 = vrot.lane.b32.xlu1 %v13943_v50, %s11151_s27 }
 0x5d2   : > { %9371 = vmatprep.subr.bf16.mxu1 %v9370_v30  ;;  %v4191_v27 = vsel %vm4185_vm0, %v10452_v11, %v10453_v53 }
 0x5d3   : > { %9373 = vmatpush1.bf16.msra.mxu1 %v9372_v43  ;;  %v10461_v33 = vpop.permute.xlu0 %10460  ;;  %v10456_v55 = vpop.permute.xlu1 %10455 }
 0x5d4   : > { %v10463_v37 = vunpack.i.h.bf16 %v10461_v33  ;;  %v10462_v16 = vunpack.i.l.bf16 %v10461_v33  ;;  %v10458_v12 = vunpack.i.h.bf16 %v10456_v55  ;;  %v10457_v26 = vunpack.i.l.bf16 %v10456_v55 }
 0x5d5   : > { %10750 = vrot.lane.b32.xlu0 %v13955_v15, %s11151_s27  ;;  %10745 = vrot.lane.b32.xlu1 %v13906_v60, %s11151_s27 }
 0x5d6   : > { %v4190_v62 = vsel %vm4185_vm0, %v10462_v16, %v10452_v11  ;;  %v4192_v51 = vsel %vm4185_vm0, %v10463_v37, %v10457_v26  ;;  %v4193_v9 = vsel %vm4185_vm0, %v10457_v26, %v10458_v12  ;;  %v8436_v12 = vld [vmem:[%s16310_s4 + $0x1d0] sm:$0xff]  ;;  %vm16534_vm0 = vmmov %vm16524_vm1 }
 0x5d7   : > { %v10471_v34 = vpop.permute.xlu0 %10470  ;;  %v10466_v38 = vpop.permute.xlu1 %10465  ;;  %v9374_v63 = vpack.c.bf16 %v4193_v9, %v4191_v27  ;;  %v9376_v25 = vpack.c.bf16 %v4192_v51, %v4190_v62 }
 0x5d8   : > { %v10473_v47 = vunpack.i.h.bf16 %v10471_v34  ;;  %v10472_v17 = vunpack.i.l.bf16 %v10471_v34  ;;  %v10468_v1 = vunpack.i.h.bf16 %v10466_v38  ;;  %v10467_v40 = vunpack.i.l.bf16 %v10466_v38 }
 0x5d9   : > { %10760 = vrot.lane.b32.xlu0 %v13932_v3, %s11151_s27  ;;  %10755 = vrot.lane.b32.xlu1 %v13961_v44, %s11151_s27 }
 0x5da   : > { %9375 = vmatprep.subr.bf16.mxu1 %v9374_v63  ;;  %v4390_v36 = vsel %vm4388_vm12, %v10467_v40, %v10468_v1  ;;  %v4392_v41 = vsel %vm4388_vm12, %v10472_v17, %v10473_v47 }
 0x5db   : > { %9377 = vmatpush1.bf16.msra.mxu1 %v9376_v25  ;;  %v10481_v22 = vpop.permute.xlu0 %10480  ;;  %v10476_v14 = vpop.permute.xlu1 %10475  ;;  %v9378_v58 = vpack.c.bf16 %v4392_v41, %v4390_v36  ;;  %v8438_v41 = vld [vmem:[%s16310_s4 + $0x1e0] sm:$0xff] }
 0x5dc   : > { %v10478_v35 = vunpack.i.h.bf16 %v10476_v14  ;;  %v10477_v59 = vunpack.i.l.bf16 %v10476_v14  ;;  %v10483_v6 = vunpack.i.h.bf16 %v10481_v22  ;;  %v10482_v5 = vunpack.i.l.bf16 %v10481_v22 }
 0x5dd   : > { %10770 = vrot.lane.b32.xlu0 %v13949_v46, %s11152_s13  ;;  %10765 = vrot.lane.b32.xlu1 %v13943_v50, %s11152_s13 }
 0x5de   : > { %v4391_v18 = vsel %vm4388_vm12, %v10478_v35, %v10472_v17  ;;  %v4389_v29 = vsel %vm4388_vm12, %v10477_v59, %v10467_v40  ;;  %8442 = vmatmul.mubr.msk.f32.vlgmr.msra.gmra.mrb[16].mxu1 %vm16523_vm15, %v8434_v4  ;;  %9379 = vmatprep.subr.bf16.mxu1 %v9378_v58  ;;  %v4394_v33 = vsel %vm4388_vm12, %v10482_v5, %v10483_v6  ;;  %v8437_v17 = vld [vmem:[%s16310_s4 + $0x1d8] sm:$0xff]  ;;  %v8439_v4 = vld [vmem:[%s16310_s4 + $0x1e8] sm:$0xff]  ;;  %v8440_v59 = vld [vmem:[%s16310_s4 + $0x1f0] sm:$0xff] }
 0x5df   : > { %v10491_v52 = vpop.permute.xlu0 %10490  ;;  %v10486_v39 = vpop.permute.xlu1 %10485  ;;  %4296 = vmatprep.mubr.f32.mxu1 %v16415_v42  ;;  %v9380_v32 = vpack.c.bf16 %v4391_v18, %v4389_v29  ;;  %vm16536_vm15 = vmmov %vm16534_vm0 }
 0x5e0   : > { %v10493_v28 = vunpack.i.h.bf16 %v10491_v52  ;;  %v10492_v56 = vunpack.i.l.bf16 %v10491_v52  ;;  %v10488_v30 = vunpack.i.h.bf16 %v10486_v39  ;;  %v10487_v43 = vunpack.i.l.bf16 %v10486_v39 }
 0x5e1   : > { %10780 = vrot.lane.b32.xlu0 %v13912_v57, %s11122_s30  ;;  %10775 = vrot.lane.b32.xlu1 %v13898_v24, %s11122_s30 }
 0x5e2   : > { %v4393_v53 = vsel %vm4388_vm12, %v10492_v56, %v10482_v5  ;;  %v4395_v11 = vsel %vm4388_vm12, %v10493_v28, %v10487_v43  ;;  %8443 = vmatmul.mubr.msk.f32.gmra.mrb[18].mxu1 %vm16524_vm1, %v8435_v19  ;;  %v4396_v55 = vsel %vm4388_vm12, %v10487_v43, %v10488_v30  ;;  %v8441_v19 = vld [vmem:[%s16310_s4 + $0x1f8] sm:$0xff]  ;;  %vm16535_vm12 = vmmov %vm16534_vm0 }
 0x5e3   : > { %9381 = vmatpush1.bf16.msra.mxu1 %v9380_v32  ;;  %v10501_v37 = vpop.permute.xlu0 %10500  ;;  %v14066_v16 = vpop.permute.xlu1 %10495  ;;  %4302 = vmatprep.mubr.f32.mxu1 %v16415_v42  ;;  %v9382_v26 = vpack.c.bf16 %v4396_v55, %v4394_v33  ;;  %v9384_v62 = vpack.c.bf16 %v4395_v11, %v4393_v53  ;;  %vm16537_vm1 = vmmov %vm16534_vm0 }
 0x5e4   : > { %v10503_v51 = vunpack.i.h.bf16 %v10501_v37  ;;  %v10502_v27 = vunpack.i.l.bf16 %v10501_v37  ;;  %v10498_v9 = vunpack.i.h.bf16 %v14066_v16  ;;  %v10497_v34 = vunpack.i.l.bf16 %v14066_v16 }
 0x5e5   : > { %10790 = vrot.lane.b32.xlu0 %v13955_v15, %s11152_s13  ;;  %10785 = vrot.lane.b32.xlu1 %v13906_v60, %s11152_s13 }
 0x5e6   : > { %8444 = vmatmul.mubr.msk.f32.gmra.mrb[20].mxu1 %vm16525_vm4, %v8436_v12  ;;  %9383 = vmatprep.subr.bf16.mxu1 %v9382_v26  ;;  %v4593_v38 = vsel %vm4591_vm3, %v10497_v34, %v10498_v9  ;;  %v4595_v63 = vsel %vm4591_vm3, %v10502_v27, %v10503_v51  ;;  %vm16539_vm4 = vmmov %vm16534_vm0 }
 0x5e7   : > { %9385 = vmatpush1.bf16.msra.mxu1 %v9384_v62  ;;  %v14081_v25 = vpop.permute.xlu0 %10510  ;;  %v10506_v47 = vpop.permute.xlu1 %10505  ;;  %4308 = vmatprep.mubr.f32.mxu1 %v16415_v42  ;;  %v9386_v1 = vpack.c.bf16 %v4595_v63, %v4593_v38  ;;  %v8450_v62 = vld [vmem:[%s16310_s4 + $0x200] sm:$0xff] }
 0x5e8   : > { %v10508_v6 = vunpack.i.h.bf16 %v10506_v47  ;;  %v10507_v5 = vunpack.i.l.bf16 %v10506_v47  ;;  %v10513_v32 = vunpack.i.h.bf16 %v14081_v25  ;;  %v10512_v28 = vunpack.i.l.bf16 %v14081_v25  ;;  %v8451_v47 = vld [vmem:[%s16310_s4 + $0x208] sm:$0xff] }
 0x5e9   : > { %10795 = vrot.lane.b32.xlu0 %v13920_v54, %s11122_s30  ;;  %10800 = vrot.lane.b32.xlu1 %v13961_v44, %s11152_s13 }
 0x5ea   : > { %8445 = vmatmul.mubr.msk.f32.gmra.mrb[22].mxu1 %vm16526_vm5, %v8437_v17  ;;  %9387 = vmatprep.subr.bf16.mxu1 %v9386_v1  ;;  %v4594_v56 = vsel %vm4591_vm3, %v10508_v6, %v10502_v27  ;;  %v4592_v30 = vsel %vm4591_vm3, %v10507_v5, %v10497_v34  ;;  %v4597_v27 = vsel %vm4591_vm3, %v10512_v28, %v10513_v32  ;;  %v8454_v32 = vld [vmem:[%s16310_s4 + $0x220] sm:$0xff]  ;;  %vm16540_vm5 = vmmov %vm16533_vm7 }
 0x5eb   : > { %v10521_v40 = vpop.permute.xlu0 %10520  ;;  %v10516_v36 = vpop.permute.xlu1 %10515  ;;  %4314 = vmatprep.mubr.f32.mxu1 %v16415_v42  ;;  %v9388_v51 = vpack.c.bf16 %v4594_v56, %v4592_v30  ;;  %v8455_v30 = vld [vmem:[%s16310_s4 + $0x228] sm:$0xff] }
 0x5ec   : > { %v10518_v18 = vunpack.i.h.bf16 %v10516_v36  ;;  %v10517_v29 = vunpack.i.l.bf16 %v10516_v36  ;;  %v10523_v43 = vunpack.i.h.bf16 %v10521_v40  ;;  %v10522_v53 = vunpack.i.l.bf16 %v10521_v40 }
 0x5ed   : > { %10810 = vrot.lane.b32.xlu0 %v13932_v3, %s11152_s13  ;;  %10805 = vrot.lane.b32.xlu1 %v13936_v2, %s11122_s30 }
 0x5ee   : > { %8446 = vmatmul.mubr.msk.f32.gmra.mrb[24].mxu1 %vm16527_vm6, %v8438_v41  ;;  %v4599_v11 = vsel %vm4591_vm3, %v10517_v29, %v10518_v18  ;;  %v4596_v9 = vsel %vm4591_vm3, %v10522_v53, %v10512_v28  ;;  %v4598_v34 = vsel %vm4591_vm3, %v10523_v43, %v10517_v29  ;;  %v8453_v18 = vld [vmem:[%s16310_s4 + $0x218] sm:$0xff]  ;;  %vm16538_vm3 = vmmov %vm16534_vm0 }
 0x5ef   : > { %v14101_v22 = vpop.permute.xlu0 %10530  ;;  %v14103_v14 = vpop.permute.xlu1 %10525  ;;  %4320 = vmatprep.mubr.f32.mxu1 %v16415_v42  ;;  %v9390_v38 = vpack.c.bf16 %v4599_v11, %v4597_v27  ;;  %v9392_v40 = vpack.c.bf16 %v4598_v34, %v4596_v9  ;;  %v8456_v11 = vld [vmem:[%s16310_s4 + $0x230] sm:$0xff]  ;;  %v8457_v34 = vld [vmem:[%s16310_s4 + $0x238] sm:$0xff]  ;;  %vm16541_vm6 = vmmov %vm16540_vm5 }
 0x5f0   : > { %v10533_v33 = vunpack.i.h.bf16 %v14101_v22  ;;  %v10532_v55 = vunpack.i.l.bf16 %v14101_v22  ;;  %v10528_v37 = vunpack.i.h.bf16 %v14103_v14  ;;  %v10527_v16 = vunpack.i.l.bf16 %v14103_v14 }
 0x5f1   : > { %10820 = vrot.lane.b32.xlu0 %v13949_v46, %s11153_s10  ;;  %10815 = vrot.lane.b32.xlu1 %v13943_v50, %s11153_s10 }
 0x5f2   : > { %8447 = vmatmul.mubr.msk.f32.gmra.mrb[26].mxu1 %vm16528_vm9, %v8439_v4  ;;  %v4795_v17 = vsel %vm16532_vm14, %v10527_v16, %v10528_v37  ;;  %v4797_v1 = vsel %vm16533_vm7, %v10532_v55, %v10533_v33  ;;  %vm16542_vm9 = vmmov %vm16534_vm0 }
 0x5f3   : > { %v14112_v58 = vpop.permute.xlu0 %10540  ;;  %v14114_v35 = vpop.permute.xlu1 %10535  ;;  %4326 = vmatprep.mubr.f32.mxu1 %v16415_v42  ;;  %v9394_v36 = vpack.c.bf16 %v4797_v1, %v4795_v17  ;;  %vm16545_vm14 = vmmov %vm16540_vm5 }
 0x5f4   : > { %v10538_v33 = vunpack.i.h.bf16 %v14114_v35  ;;  %v10537_v37 = vunpack.i.l.bf16 %v14114_v35  ;;  %v10542_v35 = vunpack.i.l.bf16 %v14112_v58  ;;  %vm16546_vm7 = vmmov %vm16540_vm5 }
 0x5f5   : > { %10830 = vrot.lane.b32.xlu0 %v13955_v15, %s11153_s10  ;;  %10825 = vrot.lane.b32.xlu1 %v13906_v60, %s11153_s10 }
 0x5f6   : > { %8448 = vmatmul.mubr.msk.f32.gmra.mrb[28].mxu1 %vm16529_vm10, %v8440_v59  ;;  %v8452_v59 = vld [vmem:[%s16310_s4 + $0x210] sm:$0xff]  ;;  %vm16543_vm10 = vmmov %vm16540_vm5 }
 0x5f7   : > { %v14123_v52 = vpop.permute.xlu0 %10550  ;;  %v14125_v39 = vpop.permute.xlu1 %10545  ;;  %4332 = vmatprep.mubr.f32.mxu1 %v16415_v42 }
 0x5f8   : > { %v10553_v17 = vunpack.i.h.bf16 %v14123_v52  ;;  %v10552_v1 = vunpack.i.l.bf16 %v14123_v52  ;;  %v8466_v52 = vld [vmem:[%s16310_s4 + $0x240] sm:$0xff] }
 0x5f9   : > { %10840 = vrot.lane.b32.xlu0 %v13932_v3, %s11153_s10  ;;  %10835 = vrot.lane.b32.xlu1 %v13961_v44, %s11153_s10 }
 0x5fa   : > { %8449 = vmatmul.mubr.msk.f32.gmra.mrb[30].mxu1 %vm16530_vm8, %v8441_v19  ;;  %vm4996_vm8 = vcmask 744448  }
 0x5fb   : > { %v14143_v12 = vpop.permute.xlu0 %10560  ;;  %v14145_v26 = vpop.permute.xlu1 %10555  ;;  %4493 = vmatprep.mubr.f32.mxu1 %v16415_v42 }
 0x5fd   : > { %10850 = vrot.lane.b32.xlu0 %v13949_v46, %s11154_s11  ;;  %10845 = vrot.lane.b32.xlu1 %v13943_v50, %s11154_s11 }
 0x5fe   : > { %8458 = vmatmul.mubr.msk.f32.vlgmr.msra.gmra.mrb[16].mxu1 %vm16531_vm11, %v8450_v62  ;;  %v10548_v62 = vunpack.i.h.bf16 %v14125_v39  ;;  %vm16544_vm11 = vmmov %vm16540_vm5 }
 0x5ff   : > { %9389 = vmatpush1.bf16.msra.mxu1 %v9388_v51  ;;  %v14159_v63 = vpop.permute.xlu0 %10570  ;;  %v14161_v25 = vpop.permute.xlu1 %10565  ;;  %4499 = vmatprep.mubr.f32.mxu1 %v16415_v42  ;;  %v10547_v51 = vunpack.i.l.bf16 %v14125_v39  ;;  %v4796_v39 = vsel %vm16540_vm5, %v10538_v33, %v10532_v55  ;;  %v10562_v55 = vunpack.i.l.bf16 %v14143_v12  ;;  %vm16552_vm5 = vmmov %vm16534_vm0 }
 0x600   : > { %9391 = vmatprep.subr.bf16.mxu1 %v9390_v38  ;;  %v10543_v38 = vunpack.i.h.bf16 %v14112_v58  ;;  %v10563_v58 = vunpack.i.h.bf16 %v14143_v12 }
 0x601   : > { %10860 = vrot.lane.b32.xlu0 %v13912_v57, %s11123_s8  ;;  %10855 = vrot.lane.b32.xlu1 %v13898_v24, %s11123_s8  ;;  %v4801_v22 = vsel %vm16543_vm10, %v10547_v51, %v10548_v62  ;;  %v8467_v62 = vld [vmem:[%s16310_s4 + $0x248] sm:$0xff]  ;;  %vm16554_vm10 = vmmov %vm16534_vm0 }
 0x602   : > { %8459 = vmatmul.mubr.msk.f32.gmra.mrb[18].mxu1 %vm16534_vm0, %v8451_v47  ;;  %v4794_v47 = vsel %vm16541_vm6, %v10537_v37, %v10527_v16  ;;  %vm16553_vm6 = vmmov %vm16534_vm0 }
 0x603   : > { %9393 = vmatpush1.bf16.msra.mxu1 %v9392_v40  ;;  %v14178_v41 = vpop.permute.xlu0 %10580  ;;  %v14180_v4 = vpop.permute.xlu1 %10575  ;;  %4505 = vmatprep.mubr.f32.mxu1 %v16415_v42  ;;  %v10558_v40 = vunpack.i.h.bf16 %v14145_v26  ;;  %v9396_v16 = vpack.c.bf16 %v4796_v39, %v4794_v47 }
 0x604   : > { %9395 = vmatprep.subr.bf16.mxu1 %v9394_v36  ;;  %v10557_v36 = vunpack.i.l.bf16 %v14145_v26 }
 0x605   : > { %10870 = vrot.lane.b32.xlu0 %v13955_v15, %s11154_s11  ;;  %10865 = vrot.lane.b32.xlu1 %v13906_v60, %s11154_s11 }
 0x606   : > { %8460 = vmatmul.mubr.msk.f32.gmra.mrb[20].mxu1 %vm16535_vm12, %v8452_v59  ;;  %vm16547_vm12 = vmmov %vm16534_vm0 }
 0x607   : > { %v14191_v6 = vpop.permute.xlu0 %10590  ;;  %v14193_v5 = vpop.permute.xlu1 %10585  ;;  %4511 = vmatprep.mubr.f32.mxu1 %v16415_v42 }
 0x609   : > { %10875 = vrot.lane.b32.xlu0 %v13920_v54, %s11123_s8  ;;  %10880 = vrot.lane.b32.xlu1 %v13961_v44, %s11154_s11 }
 0x60a   : > { %8461 = vmatmul.mubr.msk.f32.gmra.mrb[22].mxu1 %vm16536_vm15, %v8453_v18  ;;  %v4799_v18 = vsel %vm16544_vm11, %v10542_v35, %v10543_v38  ;;  %vm16548_vm15 = vmmov %vm16534_vm0 }
 0x60b   : > { %v14204_v29 = vpop.permute.xlu0 %10600  ;;  %v14206_v19 = vpop.permute.xlu1 %10595  ;;  %4517 = vmatprep.mubr.f32.mxu1 %v16415_v42  ;;  %vm16556_vm11 = vmmov %vm16534_vm0 }
 0x60d   : > { %10890 = vrot.lane.b32.xlu0 %v13932_v3, %s11154_s11  ;;  %10885 = vrot.lane.b32.xlu1 %v13936_v2, %s11123_s8 }
 0x60e   : > { %8462 = vmatmul.mubr.msk.f32.gmra.mrb[24].mxu1 %vm16537_vm1, %v8454_v32  ;;  %v4798_v32 = vsel %vm16545_vm14, %v10552_v1, %v10542_v35  ;;  %vm16549_vm1 = vmmov %vm16534_vm0 }
 0x60f   : > { %v14217_v28 = vpop.permute.xlu0 %10610  ;;  %v14219_v56 = vpop.permute.xlu1 %10605  ;;  %4523 = vmatprep.mubr.f32.mxu1 %v16415_v42  ;;  %vm16557_vm14 = vmmov %vm16534_vm0 }
 0x610   : > { %v10608_v8 = vunpack.i.h.bf16 %v14219_v56 }
 0x611   : > { %10900 = vrot.lane.b32.xlu0 %v13949_v46, %s11155_s29  ;;  %10895 = vrot.lane.b32.xlu1 %v13943_v50, %s11155_s29 }
 0x612   : > { %8463 = vmatmul.mubr.msk.f32.gmra.mrb[26].mxu1 %vm16538_vm3, %v8455_v30  ;;  %v4800_v30 = vsel %vm16546_vm7, %v10553_v17, %v10547_v51  ;;  %v5000_v51 = vsel %vm4996_vm8, %v10562_v55, %v10563_v58  ;;  %v8468_v17 = vld [vmem:[%s16310_s4 + $0x250] sm:$0xff]  ;;  %v8469_v58 = vld [vmem:[%s16310_s4 + $0x258] sm:$0xff]  ;;  %vm16550_vm3 = vmmov %vm16534_vm0 }
 0x613   : > { %v14230_v43 = vpop.permute.xlu0 %10620  ;;  %v14232_v53 = vpop.permute.xlu1 %10615  ;;  %4529 = vmatprep.mubr.f32.mxu1 %v16415_v42  ;;  %v9400_v38 = vpack.c.bf16 %v4800_v30, %v4798_v32  ;;  %vm16559_vm7 = vmmov %vm16534_vm0 }
 0x615   : > { %10910 = vrot.lane.b32.xlu0 %v13912_v57, %s11124_s9  ;;  %10905 = vrot.lane.b32.xlu1 %v13898_v24, %s11124_s9 }
 0x616   : > { %8464 = vmatmul.mubr.msk.f32.gmra.mrb[28].mxu1 %vm16539_vm4, %v8456_v11  ;;  %v9398_v11 = vpack.c.bf16 %v4801_v22, %v4799_v18  ;;  %v8471_v18 = vld [vmem:[%s16310_s4 + $0x268] sm:$0xff]  ;;  %vm16551_vm4 = vmmov %vm16534_vm0 }
 0x617   : > { %v14247_v27 = vpop.permute.xlu0 %10630  ;;  %v14249_v9 = vpop.permute.xlu1 %10625  ;;  %4535 = vmatprep.mubr.f32.mxu1 %v16415_v42 }
 0x619   : > { %10920 = vrot.lane.b32.xlu0 %v13955_v15, %s11155_s29  ;;  %10915 = vrot.lane.b32.xlu1 %v13906_v60, %s11155_s29 }
 0x61a   : > { %8465 = vmatmul.mubr.msk.f32.gmra.mrb[30].mxu1 %vm16542_vm9, %v8457_v34  ;;  %v4998_v34 = vsel %vm4996_vm8, %v10557_v36, %v10558_v40  ;;  %vm5199_vm9 = vcmask 736256  }
 0x61b   : > { %v14275_v59 = vpop.permute.xlu0 %10640  ;;  %v14277_v14 = vpop.permute.xlu1 %10635  ;;  %4696 = vmatprep.mubr.f32.mxu1 %v16415_v42  ;;  %v9402_v35 = vpack.c.bf16 %v5000_v51, %v4998_v34  ;;  %v10578_v34 = vunpack.i.h.bf16 %v14180_v4  ;;  %v10577_v51 = vunpack.i.l.bf16 %v14180_v4 }
 0x61d   : > { %10925 = vrot.lane.b32.xlu0 %v13920_v54, %s11124_s9  ;;  %10930 = vrot.lane.b32.xlu1 %v13961_v44, %s11155_s29  ;;  %v5004_v12 = vsel %vm4996_vm8, %v10577_v51, %v10578_v34 }
 0x61e   : > { %8474 = vmatmul.mubr.msk.f32.vlgmr.msra.gmra.mrb[16].mxu1 %vm16534_vm0, %v8466_v52 }
 0x61f   : > { %9397 = vmatpush1.bf16.msra.mxu1 %v9396_v16  ;;  %v14291_v33 = vpop.permute.xlu0 %10650  ;;  %v14293_v37 = vpop.permute.xlu1 %10645  ;;  %4702 = vmatprep.mubr.f32.mxu1 %v16415_v42  ;;  %v8470_v16 = vld [vmem:[%s16310_s4 + $0x260] sm:$0xff] }
 0x620   : > { %9399 = vmatprep.subr.bf16.mxu1 %v9398_v11  ;;  %v8472_v11 = vld [vmem:[%s16310_s4 + $0x270] sm:$0xff] }
 0x621   : > { %10940 = vrot.lane.b32.xlu0 %v13932_v3, %s11155_s29  ;;  %10935 = vrot.lane.b32.xlu1 %v13936_v2, %s11124_s9  ;;  %s11160_s29 = smov 52  }
 0x622   : > { %8475 = vmatmul.mubr.msk.f32.gmra.mrb[18].mxu1 %vm16547_vm12, %v8467_v62  ;;  %v10568_v62 = vunpack.i.h.bf16 %v14161_v25  ;;  %vm16562_vm12 = vcmask 1039360  }
 0x623   : > { %9401 = vmatpush1.bf16.msra.mxu1 %v9400_v38  ;;  %v14310_v39 = vpop.permute.xlu0 %10660  ;;  %v14312_v47 = vpop.permute.xlu1 %10655  ;;  %4708 = vmatprep.mubr.f32.mxu1 %v16415_v42 }
 0x624   : > { %9403 = vmatprep.subr.bf16.mxu1 %v9402_v35  ;;  %v4999_v4 = vsel %vm4996_vm8, %v10568_v62, %v10562_v55  ;;  %v16355_v55 = vunpack.i.l.bf16 %v14191_v6  ;;  %v16354_v62 = vunpack.i.l.bf16 %v14193_v5 }
 0x625   : > { %10950 = vrot.lane.b32.xlu0 %v13949_v46, %s11156_s19  ;;  %10945 = vrot.lane.b32.xlu1 %v13943_v50, %s11156_s19 }
 0x626   : > { %8476 = vmatmul.mubr.msk.f32.gmra.mrb[20].mxu1 %vm16548_vm15, %v8468_v17  ;;  %v8473_v17 = vld [vmem:[%s16310_s4 + $0x278] sm:$0xff]  ;;  %vm16563_vm15 = vmmov %vm16562_vm12 }
 0x627   : > { %v14321_v1 = vpop.permute.xlu0 %10670  ;;  %v14323_v22 = vpop.permute.xlu1 %10665  ;;  %4714 = vmatprep.mubr.f32.mxu1 %v16415_v42 }
 0x629   : > { %10960 = vrot.lane.b32.xlu0 %v13912_v57, %s11133_s18  ;;  %10955 = vrot.lane.b32.xlu1 %v13898_v24, %s11133_s18 }
 0x62a   : > { %8477 = vmatmul.mubr.msk.f32.gmra.mrb[22].mxu1 %vm16549_vm1, %v8469_v58  ;;  %vm16564_vm1 = vmmov %vm16534_vm0 }
 0x62b   : > { %v14334_v40 = vpop.permute.xlu0 %10680  ;;  %v14336_v52 = vpop.permute.xlu1 %10675  ;;  %4720 = vmatprep.mubr.f32.mxu1 %v16415_v42 }
 0x62d   : > { %10970 = vrot.lane.b32.xlu0 %v13955_v15, %s11156_s19  ;;  %10965 = vrot.lane.b32.xlu1 %v13906_v60, %s11156_s19 }
 0x62e   : > { %8478 = vmatmul.mubr.msk.f32.gmra.mrb[24].mxu1 %vm16550_vm3, %v8470_v16  ;;  %v10583_v16 = vunpack.i.h.bf16 %v14178_v41  ;;  %vm16568_vm3 = vmmov %vm16534_vm0 }
 0x62f   : > { %v14345_v57 = vpop.permute.xlu0 %10690  ;;  %v14347_v24 = vpop.permute.xlu1 %10685  ;;  %4726 = vmatprep.mubr.f32.mxu1 %v16415_v42 }
 0x631   : > { %10975 = vrot.lane.b32.xlu0 %v13920_v54, %s11133_s18  ;;  %10980 = vrot.lane.b32.xlu1 %v13961_v44, %s11156_s19  ;;  %v10567_v54 = vunpack.i.l.bf16 %v14161_v25  ;;  %v10572_v25 = vunpack.i.l.bf16 %v14159_v63 }
 0x632   : > { %8479 = vmatmul.mubr.msk.f32.gmra.mrb[26].mxu1 %vm16551_vm4, %v8471_v18  ;;  %v10582_v18 = vunpack.i.l.bf16 %v14178_v41  ;;  %v8482_v41 = vld [vmem:[%s16310_s4 + $0x280] sm:$0xff]  ;;  %vm5402_vm4 = vcmask 728064  }
 0x633   : > { %v14357_v32 = vpop.permute.xlu0 %10700  ;;  %v14359_v30 = vpop.permute.xlu1 %10695  ;;  %4732 = vmatprep.mubr.f32.mxu1 %v16415_v42  ;;  %v4997_v58 = vsel %vm4996_vm8, %v10567_v54, %v10557_v36 }
 0x634   : > { %v9404_v36 = vpack.c.bf16 %v4999_v4, %v4997_v58  ;;  %v5001_v34 = vsel %vm4996_vm8, %v10582_v18, %v10572_v25  ;;  %v8483_v4 = vld [vmem:[%s16310_s4 + $0x288] sm:$0xff] }
 0x635   : > { %10990 = vrot.lane.b32.xlu0 %v13932_v3, %s11156_s19  ;;  %10985 = vrot.lane.b32.xlu1 %v13936_v2, %s11133_s18  ;;  %v10573_v2 = vunpack.i.h.bf16 %v14159_v63  ;;  %s11157_s18 = smov 110   ;;  %v10593_v63 = vunpack.i.h.bf16 %v14191_v6 }
 0x636   : > { %8480 = vmatmul.mubr.msk.f32.gmra.mrb[28].mxu1 %vm16552_vm5, %v8472_v11  ;;  %v10588_v11 = vunpack.i.h.bf16 %v14193_v5  ;;  %vm16569_vm5 = vmmov %vm16534_vm0 }
 0x637   : > { %v14373_v38 = vpop.permute.xlu0 %10710  ;;  %v14375_v35 = vpop.permute.xlu1 %10705  ;;  %4738 = vmatprep.mubr.f32.mxu1 %v16415_v42  ;;  %v5002_v54 = vsel %vm4996_vm8, %v10572_v25, %v10573_v2 }
 0x638   : > { %v9406_v45 = vpack.c.bf16 %v5004_v12, %v5002_v54  ;;  %v5201_v2 = vsel %vm5199_vm9, %v16354_v62, %v10588_v11  ;;  %v8485_v11 = vld [vmem:[%s16310_s4 + $0x298] sm:$0xff]  ;;  %v8486_v54 = vld [vmem:[%s16310_s4 + $0x2a0] sm:$0xff]  ;;  %v10598_v62 = vunpack.i.h.bf16 %v14206_v19 }
 0x639   : > { %11000 = vrot.lane.b32.xlu0 %v13949_v46, %s11157_s18  ;;  %10995 = vrot.lane.b32.xlu1 %v13943_v50, %s11157_s18 }
 0x63a   : > { %8481 = vmatmul.mubr.msk.f32.gmra.mrb[30].mxu1 %vm16553_vm6, %v8473_v17  ;;  %v5003_v17 = vsel %vm4996_vm8, %v10583_v16, %v10577_v51  ;;  %v5203_v51 = vsel %vm5199_vm9, %v16355_v55, %v10593_v63  ;;  %vm16555_vm8 = vmmov %vm16534_vm0  ;;  %v10597_v55 = vunpack.i.l.bf16 %v14206_v19 }
 0x63b   : > { %v14401_v10 = vpop.permute.xlu0 %10720  ;;  %v14403_v26 = vpop.permute.xlu1 %10715  ;;  %4898 = vmatprep.mubr.f32.mxu1 %v16415_v42  ;;  %v9408_v25 = vpack.c.bf16 %v5003_v17, %v5001_v34  ;;  %v9410_v58 = vpack.c.bf16 %v5203_v51, %v5201_v2  ;;  %vm16572_vm6 = vmmov %vm16562_vm12 }
 0x63d   : > { %11010 = vrot.lane.b32.xlu0 %v13949_v46, %s11158_s12  ;;  %11005 = vrot.lane.b32.xlu1 %v13943_v50, %s11158_s12 }
 0x63e   : > { %8490 = vmatmul.mubr.msk.f32.vlgmr.msra.gmra.mrb[16].mxu1 %vm16554_vm10, %v8482_v41  ;;  %vm16574_vm10 = vmmov %vm16534_vm0 }
 0x63f   : > { %9405 = vmatpush1.bf16.msra.mxu1 %v9404_v36  ;;  %v14417_v21 = vpop.permute.xlu0 %10730  ;;  %v14419_v0 = vpop.permute.xlu1 %10725  ;;  %4904 = vmatprep.mubr.f32.mxu1 %v16415_v42 }
 0x640   : > { %9407 = vmatprep.subr.bf16.mxu1 %v9406_v45  ;;  %v8484_v45 = vld [vmem:[%s16310_s4 + $0x290] sm:$0xff] }
 0x641   : > { %11020 = vrot.lane.b32.xlu0 %v13906_v60, %s11158_s12  ;;  %11015 = vrot.lane.b32.xlu1 %v13906_v60, %s11157_s18 }
 0x642   : > { %8491 = vmatmul.mubr.msk.f32.gmra.mrb[18].mxu1 %vm16555_vm8, %v8483_v4  ;;  %v8487_v4 = vld [vmem:[%s16310_s4 + $0x2a8] sm:$0xff]  ;;  %vm16575_vm8 = vmmov %vm16534_vm0 }
 0x643   : > { %9409 = vmatpush1.bf16.msra.mxu1 %v9408_v25  ;;  %v14436_v16 = vpop.permute.xlu0 %10740  ;;  %v14438_v18 = vpop.permute.xlu1 %10735  ;;  %4910 = vmatprep.mubr.f32.mxu1 %v16415_v42  ;;  %v8488_v25 = vld [vmem:[%s16310_s4 + $0x2b0] sm:$0xff] }
 0x644   : > { %9411 = vmatprep.subr.bf16.mxu1 %v9410_v58 }
 0x645   : > { %11040 = vrot.lane.b32.xlu0 %v13961_v44, %s11157_s18  ;;  %11025 = vrot.lane.b32.xlu1 %v13955_v15, %s11157_s18 }
 0x646   : > { %8492 = vmatmul.mubr.msk.f32.gmra.mrb[20].mxu1 %vm16556_vm11, %v8484_v45  ;;  %vm16577_vm11 = vmmov %vm16534_vm0 }
 0x647   : > { %v14449_v12 = vpop.permute.xlu0 %10750  ;;  %v14451_v63 = vpop.permute.xlu1 %10745  ;;  %4916 = vmatprep.mubr.f32.mxu1 %v16415_v42 }
 0x649   : > { %11045 = vrot.lane.b32.xlu0 %v13961_v44, %s11158_s12  ;;  %11030 = vrot.lane.b32.xlu1 %v13955_v15, %s11158_s12 }
 0x64a   : > { %8493 = vmatmul.mubr.msk.f32.gmra.mrb[22].mxu1 %vm16557_vm14, %v8485_v11  ;;  %vm6620_vm14 = vcmask 572416  }
 0x64b   : > { %v14462_v41 = vpop.permute.xlu0 %10760  ;;  %v14464_v36 = vpop.permute.xlu1 %10755  ;;  %4922 = vmatprep.mubr.f32.mxu1 %v16415_v42 }
 0x64c   : > { %16558 = vst [vmem:[#allocation6_spill] sm:$0xff] %v14462_v41 }
 0x64d   : > { %11050 = vrot.lane.b32.xlu0 %v13932_v3, %s11158_s12  ;;  %11035 = vrot.lane.b32.xlu1 %v13932_v3, %s11157_s18 }
 0x64e   : > { %8494 = vmatmul.mubr.msk.f32.gmra.mrb[24].mxu1 %vm16559_vm7, %v8486_v54  ;;  %vm16579_vm7 = vmmov %vm16534_vm0 }
 0x64f   : > { %v14475_v34 = vpop.permute.xlu0 %10770  ;;  %v14477_v17 = vpop.permute.xlu1 %10765  ;;  %4928 = vmatprep.mubr.f32.mxu1 %v16415_v42 }
 0x650   : > { %16560 = vst [vmem:[#allocation2_spill] sm:$0xff] %v14475_v34  ;;  %16561 = vst [vmem:[#allocation3_spill] sm:$0xff] %v14477_v17 }
 0x651   : > { %11060 = vrot.lane.b32.xlu0 %v13949_v46, %s11159_s23  ;;  %11055 = vrot.lane.b32.xlu1 %v13943_v50, %s11159_s23 }
 0x652   : > { %8495 = vmatmul.mubr.msk.f32.gmra.mrb[26].mxu1 %vm16534_vm0, %v8487_v4  ;;  %v10607_v4 = vunpack.i.l.bf16 %v14219_v56  ;;  %v10602_v56 = vunpack.i.l.bf16 %v14204_v29 }
 0x653   : > { %v10781_v2 = vpop.permute.xlu0 %10780  ;;  %v10776_v51 = vpop.permute.xlu1 %10775  ;;  %4934 = vmatprep.mubr.f32.mxu1 %v16415_v42 }
 0x654   : > { %v10783_v58 = vunpack.i.h.bf16 %v10781_v2  ;;  %v10782_v45 = vunpack.i.l.bf16 %v10781_v2  ;;  %v10778_v11 = vunpack.i.h.bf16 %v10776_v51  ;;  %v10777_v54 = vunpack.i.l.bf16 %v10776_v51 }
 0x655   : > { %11070 = vrot.lane.b32.xlu0 %v13949_v46, %s11160_s29  ;;  %11065 = vrot.lane.b32.xlu1 %v13943_v50, %s11160_s29  ;;  %v8489_v50 = vld [vmem:[%s16310_s4 + $0x2b8] sm:$0xff]  ;;  %v10603_v46 = vunpack.i.h.bf16 %v14204_v29  ;;  %v5207_v29 = vsel %vm5199_vm9, %v10607_v4, %v10608_v8 }
 0x656   : > { %v2887_v17 = vsel %vm16562_vm12, %v10782_v45, %v10783_v58  ;;  %v2886_v2 = vsel %vm16563_vm15, %v10777_v54, %v10778_v11  ;;  %8496 = vmatmul.mubr.msk.f32.gmra.mrb[28].mxu1 %vm16564_vm1, %v8488_v25  ;;  %v9314_v51 = vpack.c.bf16 %v10783_v58, %v10778_v11  ;;  %v10612_v45 = vunpack.i.l.bf16 %v14217_v28  ;;  %vm16582_vm12 = vmmov %vm16534_vm0 }
 0x657   : > { %v14503_v34 = vpop.permute.xlu0 %10790  ;;  %v14505_v19 = vpop.permute.xlu1 %10785  ;;  %4940 = vmatprep.mubr.f32.mxu1 %v16415_v42  ;;  %v9316_v41 = vpack.c.bf16 %v2887_v17, %v2886_v2  ;;  %v16566_v25 = vunpack.i.l.bf16 %v14191_v6  ;;  %v16567_v58 = vunpack.i.l.bf16 %v14193_v5  ;;  %v10613_v54 = vunpack.i.h.bf16 %v14217_v28  ;;  %v8498_v5 = vld [vmem:[%s16310_s4 + $0x2c0] sm:$0xff]  ;;  %vm16583_vm1 = vmmov %vm16534_vm0 }
 0x658   : > { %16565 = vst [vmem:[#allocation4_spill] sm:$0xff] %v14503_v34  ;;  %9315 = vmatprep.subr.bf16.mxu0 %v9314_v51  ;;  %v10623_v2 = vunpack.i.h.bf16 %v14230_v43  ;;  %v5204_v8 = vsel %vm5199_vm9, %v10612_v45, %v10602_v56  ;;  %v8499_v34 = vld [vmem:[%s16310_s4 + $0x2c8] sm:$0xff]  ;;  %vm6823_vm15 = vcmask 457728  }
 0x659   : > { %11080 = vrot.lane.b32.xlu0 %v13906_v60, %s11160_s29  ;;  %11075 = vrot.lane.b32.xlu1 %v13906_v60, %s11159_s23  ;;  %v5202_v17 = vsel %vm5199_vm9, %v10598_v62, %v16566_v25  ;;  %v5200_v11 = vsel %vm5199_vm9, %v10597_v55, %v16567_v58  ;;  %v10618_v60 = vunpack.i.h.bf16 %v14232_v53  ;;  %v5205_v55 = vsel %vm5199_vm9, %v10602_v56, %v10603_v46 }
 0x65a   : > { %9317 = vmatpush1.bf16.msra.mxu0 %v9316_v41  ;;  %8497 = vmatmul.mubr.msk.f32.gmra.mrb[30].mxu1 %vm16568_vm3, %v8489_v50  ;;  %v9412_v28 = vpack.c.bf16 %v5202_v17, %v5200_v11  ;;  %v5206_v41 = vsel %vm5199_vm9, %v10613_v54, %v10607_v4  ;;  %v9414_v51 = vpack.c.bf16 %v5207_v29, %v5205_v55  ;;  %v16570_v17 = vunpack.i.l.bf16 %v14232_v53  ;;  %vm16573_vm9 = vmmov %vm16572_vm6 }
 0x65b   : > { %v10796_v62 = vpop.permute.xlu0 %10795  ;;  %v14531_v25 = vpop.permute.xlu1 %10800  ;;  %5101 = vmatprep.mubr.f32.mxu1 %v16415_v42  ;;  %v16571_v4 = vunpack.i.l.bf16 %v14230_v43  ;;  %v9416_v29 = vpack.c.bf16 %v5206_v41, %v5204_v8  ;;  %v7806_v8 = vld [vmem:[%s16311_s5 + $0x8] sm:$0xff]  ;;  %v16576_v55 = vpack.c.bf16 %v13902_v20, %v13894_v61  ;;  %v16578_v61 = vpack.c.bf16 %v13900_v49, %v13892_v31  ;;  %v7807_v31 = vld [vmem:[%s16311_s5 + $0x10] sm:$0xff]  ;;  %vm16584_vm3 = vmmov %vm16534_vm0 }
 0x65c   : > { %v10798_v50 = vunpack.i.h.bf16 %v10796_v62  ;;  %v10797_v58 = vunpack.i.l.bf16 %v10796_v62  ;;  %v5404_v46 = vsel %vm5402_vm4, %v16570_v17, %v10618_v60  ;;  %v8331_v20 = vld [vmem:[%s16310_s4 + $0x48] sm:$0xff] }
 0x65d   : > { %11100 = vrot.lane.b32.xlu0 %v13961_v44, %s11159_s23  ;;  %11085 = vrot.lane.b32.xlu1 %v13955_v15, %s11159_s23  ;;  %v5406_v56 = vsel %vm5402_vm4, %v16571_v4, %v10623_v2  ;;  %v16580_v4 = vpack.c.bf16 %v13928_v48, %v13916_v13 }
 0x65e   : > { %8506 = vmatmul.mubr.msk.f32.vlgmr.msra.gmra.mrb[16].mxu1 %vm16569_vm5, %v8498_v5  ;;  %v2888_v62 = vsel %vm16572_vm6, %v10797_v58, %v10798_v50  ;;  %v9418_v60 = vpack.c.bf16 %v5406_v56, %v5404_v46  ;;  %v8501_v58 = vld [vmem:[%s16310_s4 + $0x2d8] sm:$0xff]  ;;  %vm16585_vm5 = vmmov %vm16534_vm0 }
 0x65f   : > { %9413 = vmatpush1.bf16.msra.mxu1 %v9412_v28  ;;  %v14545_v6 = vpop.permute.xlu0 %10810  ;;  %v10806_v45 = vpop.permute.xlu1 %10805  ;;  %5107 = vmatprep.mubr.f32.mxu1 %v16415_v42  ;;  %v7808_v46 = vld [vmem:[%s16311_s5 + $0x18] sm:$0xff]  ;;  %vm16586_vm6 = vmmov %vm16534_vm0 }
 0x660   : > { %9415 = vmatprep.subr.bf16.mxu1 %v9414_v51  ;;  %v10808_v11 = vunpack.i.h.bf16 %v10806_v45  ;;  %v10807_v54 = vunpack.i.l.bf16 %v10806_v45 }
 0x661   : > { %11105 = vrot.lane.b32.xlu0 %v13961_v44, %s11160_s29  ;;  %11090 = vrot.lane.b32.xlu1 %v13955_v15, %s11160_s29  ;;  %v8500_v15 = vld [vmem:[%s16310_s4 + $0x2d0] sm:$0xff] }
 0x662   : > { %v2889_v5 = vsel %vm16573_vm9, %v10807_v54, %v10808_v11  ;;  %8507 = vmatmul.mubr.msk.f32.gmra.mrb[18].mxu1 %vm16574_vm10, %v8499_v34  ;;  %v9318_v28 = vpack.c.bf16 %v10808_v11, %v10798_v50  ;;  %v8330_v34 = vld [vmem:[%s16310_s4 + $0x40] sm:$0xff]  ;;  %vm16589_vm9 = vmmov %vm16534_vm0 }
 0x663   : > { %9417 = vmatpush1.bf16.msra.mxu1 %v9416_v29  ;;  %v14564_v2 = vpop.permute.xlu0 %10820  ;;  %v14566_v51 = vpop.permute.xlu1 %10815  ;;  %5113 = vmatprep.mubr.f32.mxu1 %v16415_v42  ;;  %v9320_v44 = vpack.c.bf16 %v2889_v5, %v2888_v62  ;;  %v8502_v5 = vld [vmem:[%s16310_s4 + $0x2e0] sm:$0xff]  ;;  %vm16592_vm10 = vmmov %vm16534_vm0 }
 0x664   : > { %9419 = vmatprep.subr.bf16.mxu1 %v9418_v60  ;;  %9319 = vmatprep.subr.bf16.mxu0 %v9318_v28  ;;  %v16581_v28 = vpack.c.bf16 %v13922_v7, %v13914_v23  ;;  %v7809_v23 = vld [vmem:[%s16311_s5 + $0x20] sm:$0xff]  ;;  %v10643_v7 = vunpack.i.h.bf16 %v14275_v59 }
 0x665   : > { %11110 = vrot.lane.b32.xlu0 %v13932_v3, %s11160_s29  ;;  %11095 = vrot.lane.b32.xlu1 %v13932_v3, %s11159_s23  ;;  %v7805_v3 = vld [vmem:[%s16311_s5] sm:$0xff] }
 0x666   : > { %9321 = vmatpush1.bf16.msra.mxu0 %v9320_v44  ;;  %8508 = vmatmul.mubr.msk.f32.gmra.mrb[20].mxu1 %vm16575_vm8, %v8500_v15  ;;  %v8332_v44 = vld [vmem:[%s16310_s4 + $0x50] sm:$0xff]  ;;  %v7810_v15 = vld [vmem:[%s16311_s5 + $0x28] sm:$0xff]  ;;  %vm5605_vm8 = vcmask 719872  }
 0x667   : > { %9323 = vmatprep.subr.bf16.mxu0 %v16576_v55  ;;  %v10831_v41 = vpop.permute.xlu0 %10830  ;;  %v14586_v50 = vpop.permute.xlu1 %10825  ;;  %5119 = vmatprep.mubr.f32.mxu1 %v16415_v42 }
 0x668   : > { %v10833_v45 = vunpack.i.h.bf16 %v10831_v41  ;;  %v10832_v17 = vunpack.i.l.bf16 %v10831_v41 }
 0x669   : > { %8338 = vmatmul.mubr.msk.f32.vlgmr.msra.gmra.mrb[48].mxu0 %vm16577_vm11, %v8330_v34  ;;  %7820 = vperm.xlu0 %10328, %v7806_v8   ;;  %vm16593_vm11 = vmmov %vm16534_vm0 }
 0x66a   : > { %7815 = vperm.xlu1 %10327, %v7805_v3   ;;  %9325 = vmatpush1.bf16.msra.mxu0 %v16578_v61  ;;  %v14619_v13 = vsel %vm6620_vm14, %v10832_v17, %v10833_v45  ;;  %v8503_v61 = vld [vmem:[%s16310_s4 + $0x2e8] sm:$0xff] }
 0x66b   : > { %8509 = vmatmul.mubr.msk.f32.gmra.mrb[22].mxu1 %vm16579_vm7, %v8501_v58  ;;  %9327 = vmatprep.subr.bf16.mxu0 %v16580_v4  ;;  %v10841_v56 = vpop.permute.xlu0 %10840  ;;  %v10836_v11 = vpop.permute.xlu1 %10835  ;;  %vm16594_vm7 = vmmov %vm16534_vm0 }
 0x66c   : > { %v10843_v49 = vunpack.i.h.bf16 %v10841_v56  ;;  %v10842_v54 = vunpack.i.l.bf16 %v10841_v56  ;;  %v10838_v29 = vunpack.i.h.bf16 %v10836_v11  ;;  %v10837_v62 = vunpack.i.l.bf16 %v10836_v11  ;;  %2992 = vmatprep.mubr.f32.mxu0 %v16415_v42  ;;  %5125 = vmatprep.mubr.f32.mxu1 %v16415_v42 }
 0x66d   : > { %8339 = vmatmul.mubr.msk.f32.gmra.mrb[50].mxu0 %vm16534_vm0, %v8331_v20  ;;  %7830 = vperm.xlu0 %10328, %v7808_v46   ;;  %v8333_v20 = vld [vmem:[%s16310_s4 + $0x58] sm:$0xff] }
 0x66e   : > { %v14622_v48 = vsel %vm6620_vm14, %v10842_v54, %v10832_v17  ;;  %v14625_v60 = vsel %vm6620_vm14, %v10843_v49, %v10837_v62  ;;  %7825 = vperm.xlu1 %10327, %v7807_v31   ;;  %9329 = vmatpush1.bf16.msra.mxu0 %v16581_v28  ;;  %v14637_v34 = vsel %vm6620_vm14, %v10837_v62, %v10838_v29  ;;  %v7812_v46 = vld [vmem:[%s16311_s5 + $0x38] sm:$0xff]  ;;  %v7811_v49 = vld [vmem:[%s16311_s5 + $0x30] sm:$0xff]  ;;  %v10628_v28 = vunpack.i.h.bf16 %v14249_v9 }
 0x66f   : > { %8510 = vmatmul.mubr.msk.f32.gmra.mrb[24].mxu1 %vm16582_vm12, %v8502_v5  ;;  %v10851_v55 = vpop.permute.xlu0 %10850  ;;  %v10846_v41 = vpop.permute.xlu1 %10845  ;;  %2998 = vmatprep.mubr.f32.mxu0 %v16415_v42  ;;  %v8504_v5 = vld [vmem:[%s16310_s4 + $0x2f0] sm:$0xff]  ;;  %v16587_v54 = vunpack.i.l.bf16 %v14230_v43  ;;  %v8335_v43 = vld [vmem:[%s16310_s4 + $0x68] sm:$0xff]  ;;  %vm7026_vm12 = vcmask 449536  }
 0x670   : > { %v10853_v3 = vunpack.i.h.bf16 %v10851_v55  ;;  %v10852_v58 = vunpack.i.l.bf16 %v10851_v55  ;;  %v10848_v45 = vunpack.i.h.bf16 %v10846_v41  ;;  %v10847_v17 = vunpack.i.l.bf16 %v10846_v41  ;;  %5131 = vmatprep.mubr.f32.mxu1 %v16415_v42  ;;  %v8334_v55 = vld [vmem:[%s16310_s4 + $0x60] sm:$0xff] }
 0x671   : > { %8340 = vmatmul.mubr.msk.f32.gmra.mrb[52].mxu0 %vm16583_vm1, %v8332_v44  ;;  %7840 = vperm.xlu0 %10328, %v7810_v15   ;;  %v10627_v44 = vunpack.i.l.bf16 %v14249_v9  ;;  %v10638_v41 = vunpack.i.h.bf16 %v14277_v14 }
 0x672   : > { %7835 = vperm.xlu1 %10327, %v7809_v23   ;;  %3004 = vmatprep.mubr.f32.mxu0 %v16415_v42  ;;  %v14661_v4 = vsel %vm6823_vm15, %v10847_v17, %v10848_v45  ;;  %v14664_v56 = vsel %vm6823_vm15, %v10852_v58, %v10853_v3  ;;  %v10637_v23 = vunpack.i.l.bf16 %v14277_v14  ;;  %v10633_v45 = vunpack.i.h.bf16 %v14247_v27 }
 0x673   : > { %8511 = vmatmul.mubr.msk.f32.gmra.mrb[26].mxu1 %vm16584_vm3, %v8503_v61  ;;  %v14667_v11 = vpop.permute.xlu0 %10860  ;;  %v14669_v31 = vpop.permute.xlu1 %10855  ;;  %v10632_v61 = vunpack.i.l.bf16 %v14247_v27  ;;  %v5405_v14 = vsel %vm5402_vm4, %v10628_v28, %v16587_v54  ;;  %v10642_v27 = vunpack.i.l.bf16 %v14275_v59  ;;  %vm16602_vm3 = vmmov %vm16534_vm0 }
 0x674   : > { %v16362_v29 = vunpack.i.h.bf16 %v14667_v11  ;;  %v16361_v62 = vunpack.i.h.bf16 %v14669_v31  ;;  %5137 = vmatprep.mubr.f32.mxu1 %v16415_v42 }
 0x675   : > { %8341 = vmatmul.mubr.msk.f32.gmra.mrb[54].mxu0 %vm16585_vm5, %v8333_v20  ;;  %7850 = vperm.xlu0 %10328, %v7812_v46   ;;  %v5407_v59 = vsel %vm5402_vm4, %v10642_v27, %v10632_v61  ;;  %vm16604_vm5 = vmmov %vm16534_vm0 }
 0x676   : > { %v9330_v15 = vpack.c.bf16 %v16362_v29, %v16361_v62  ;;  %7845 = vperm.xlu1 %10327, %v7811_v49   ;;  %3010 = vmatprep.mubr.f32.mxu0 %v16415_v42  ;;  %v8505_v49 = vld [vmem:[%s16310_s4 + $0x2f8] sm:$0xff] }
 0x677   : > { %8512 = vmatmul.mubr.msk.f32.gmra.mrb[28].mxu1 %vm16586_vm6, %v8504_v5  ;;  %v10871_v9 = vpop.permute.xlu0 %10870  ;;  %v10866_v3 = vpop.permute.xlu1 %10865  ;;  %v16588_v5 = vunpack.i.l.bf16 %v14232_v53  ;;  %v10653_v53 = vunpack.i.h.bf16 %v14291_v33 }
 0x678   : > { %v10868_v20 = vunpack.i.h.bf16 %v10866_v3  ;;  %v10867_v46 = vunpack.i.l.bf16 %v10866_v3  ;;  %9331 = vmatprep.subr.bf16.mxu0 %v9330_v15  ;;  %5143 = vmatprep.mubr.f32.mxu1 %v16415_v42  ;;  %v10873_v15 = vunpack.i.h.bf16 %v10871_v9  ;;  %v10872_v3 = vunpack.i.l.bf16 %v10871_v9 }
 0x679   : > { %v5403_v8 = vsel %vm5402_vm4, %v10627_v44, %v16588_v5  ;;  %8342 = vmatmul.mubr.msk.f32.gmra.mrb[56].mxu0 %vm16589_vm9, %v8334_v55  ;;  %v10648_v44 = vunpack.i.h.bf16 %v14293_v37  ;;  %v5408_v5 = vsel %vm5402_vm4, %v10632_v61, %v10633_v45  ;;  %v5409_v55 = vsel %vm5402_vm4, %v10643_v7, %v10637_v23  ;;  %vm16606_vm9 = vmmov %vm16534_vm0 }
 0x67a   : > { %v14712_v62 = vsel %vm6823_vm15, %v10868_v20, %v10852_v58  ;;  %v14715_v29 = vsel %vm6823_vm15, %v10867_v46, %v10847_v17  ;;  %3016 = vmatprep.mubr.f32.mxu0 %v16415_v42  ;;  %v5410_v17 = vsel %vm5402_vm4, %v10637_v23, %v10638_v41  ;;  %v8514_v46 = vld [vmem:[%s16310_s4 + $0x300] sm:$0xff]  ;;  %v8336_v41 = vld [vmem:[%s16310_s4 + $0x70] sm:$0xff]  ;;  %v16595_v61 = vunpack.i.l.bf16 %v14293_v37  ;;  %vm16597_vm4 = vmmov %vm16534_vm0 }
 0x67b   : > { %16590 = vst [vmem:[#allocation5_spill] sm:$0xff] %v14712_v62  ;;  %16591 = vst [vmem:[#allocation8_spill] sm:$0xff] %v14715_v29  ;;  %8513 = vmatmul.mubr.msk.f32.gmra.mrb[30].mxu1 %vm16592_vm10, %v8505_v49  ;;  %v14726_v58 = vpop.permute.xlu0 %10875  ;;  %v10881_v28 = vpop.permute.xlu1 %10880  ;;  %v9420_v49 = vpack.c.bf16 %v5405_v14, %v5403_v8  ;;  %v9422_v8 = vpack.c.bf16 %v5410_v17, %v5408_v5  ;;  %v16596_v23 = vunpack.i.l.bf16 %v14291_v33  ;;  %v10862_v17 = vunpack.i.l.bf16 %v14667_v11 }
 0x67c   : > { %v10883_v9 = vunpack.i.h.bf16 %v10881_v28  ;;  %v10882_v20 = vunpack.i.l.bf16 %v10881_v28  ;;  %5304 = vmatprep.mubr.f32.mxu1 %v16415_v42  ;;  %v14742_v28 = vsel %vm6823_vm15, %v10872_v3, %v10873_v15  ;;  %v8515_v15 = vld [vmem:[%s16310_s4 + $0x308] sm:$0xff]  ;;  %v5607_v7 = vsel %vm5605_vm8, %v16595_v61, %v10648_v44 }
 0x67d   : > { %8343 = vmatmul.mubr.msk.f32.gmra.mrb[58].mxu0 %vm16593_vm11, %v8335_v43  ;;  %v5609_v27 = vsel %vm5605_vm8, %v16596_v23, %v10653_v53  ;;  %v9424_v5 = vpack.c.bf16 %v5409_v55, %v5407_v59  ;;  %v8337_v53 = vld [vmem:[%s16310_s4 + $0x78] sm:$0xff]  ;;  %v8516_v55 = vld [vmem:[%s16310_s4 + $0x310] sm:$0xff]  ;;  %vm16608_vm11 = vmmov %vm16534_vm0  ;;  %v10668_v43 = vunpack.i.h.bf16 %v14323_v22 }
 0x67e   : > { %3022 = vmatprep.mubr.f32.mxu0 %v16415_v42  ;;  %v14745_v54 = vsel %vm6823_vm15, %v10882_v20, %v10883_v9  ;;  %v10857_v9 = vunpack.i.l.bf16 %v14669_v31 }
 0x67f   : > { %8522 = vmatmul.mubr.msk.f32.vlgmr.msra.gmra.mrb[16].mxu1 %vm16594_vm7, %v8514_v46  ;;  %v10891_v45 = vpop.permute.xlu0 %10890  ;;  %v10886_v14 = vpop.permute.xlu1 %10885  ;;  %vm16609_vm7 = vmmov %vm16534_vm0 }
 0x680   : > { %9421 = vmatpush1.bf16.msra.mxu1 %v9420_v49  ;;  %v10893_v29 = vunpack.i.h.bf16 %v10891_v45  ;;  %v10892_v62 = vunpack.i.l.bf16 %v10891_v45  ;;  %5310 = vmatprep.mubr.f32.mxu1 %v16415_v42  ;;  %v10888_v23 = vunpack.i.h.bf16 %v10886_v14 }
 0x681   : > { %9423 = vmatprep.subr.bf16.mxu1 %v9422_v8  ;;  %8344 = vmatmul.mubr.msk.f32.gmra.mrb[60].mxu0 %vm16597_vm4, %v8336_v41  ;;  %v9426_v8 = vpack.c.bf16 %v5609_v27, %v5607_v7  ;;  %v10887_v27 = vunpack.i.l.bf16 %v10886_v14  ;;  %vm16612_vm4 = vmmov %vm16534_vm0 }
 0x682   : > { %v14766_v46 = vsel %vm6823_vm15, %v10892_v62, %v10872_v3  ;;  %v14769_v49 = vsel %vm6823_vm15, %v10893_v29, %v10882_v20  ;;  %3028 = vmatprep.mubr.f32.mxu0 %v16415_v42  ;;  %v16598_v20 = vunpack.i.h.bf16 %v14667_v11  ;;  %vm16599_vm15 = vcmask 1031168  }
 0x683   : > { %8523 = vmatmul.mubr.msk.f32.gmra.mrb[18].mxu1 %vm16534_vm0, %v8515_v15  ;;  %v10901_v41 = vpop.permute.xlu0 %10900  ;;  %v10896_v45 = vpop.permute.xlu1 %10895  ;;  %v16600_v15 = vunpack.i.h.bf16 %v14669_v31  ;;  %vm16601_vm1 = vmmov %vm16599_vm15  ;;  %v10878_v31 = vunpack.i.h.bf16 %v14726_v58 }
 0x684   : > { %9425 = vmatpush1.bf16.msra.mxu1 %v9424_v5  ;;  %v10903_v62 = vunpack.i.h.bf16 %v10901_v41  ;;  %v10902_v29 = vunpack.i.l.bf16 %v10901_v41  ;;  %v10898_v3 = vunpack.i.h.bf16 %v10896_v45  ;;  %v10897_v59 = vunpack.i.l.bf16 %v10896_v45  ;;  %5316 = vmatprep.mubr.f32.mxu1 %v16415_v42  ;;  %v2845_v5 = vld [vmem:[%s16310_s4] sm:$0xff]  ;;  %vm16605_vm6 = vmmov %vm16601_vm1 }
 0x685   : > { %v3198_v61 = vsel %vm16599_vm15, %v10862_v17, %v16598_v20  ;;  %v3197_v7 = vsel %vm16601_vm1, %v10857_v9, %v16600_v15  ;;  %9427 = vmatprep.subr.bf16.mxu1 %v9426_v8  ;;  %8345 = vmatmul.mubr.msk.f32.gmra.mrb[62].mxu0 %vm16602_vm3, %v8337_v53  ;;  %v10877_v17 = vunpack.i.l.bf16 %v14726_v58  ;;  %v8517_v58 = vld [vmem:[%s16310_s4 + $0x318] sm:$0xff]  ;;  %v2846_v20 = vld [vmem:[%s16310_s4 + $0x8] sm:$0xff]  ;;  %vm16607_vm10 = vmmov %vm16601_vm1  ;;  %vm7229_vm3 = vcmask 441344  }
 0x686   : > { %3123 = vmatprep.mubr.f32.mxu0 %v16415_v42  ;;  %v14794_v41 = vsel %vm7026_vm12, %v10897_v59, %v10898_v3  ;;  %v14797_v11 = vsel %vm7026_vm12, %v10902_v29, %v10903_v62  ;;  %v9332_v8 = vpack.c.bf16 %v3198_v61, %v3197_v7  ;;  %v9334_v62 = vpack.c.bf16 %v10888_v23, %v10878_v31  ;;  %v8518_v53 = vld [vmem:[%s16310_s4 + $0x320] sm:$0xff]  ;;  %vm16615_vm15 = vmmov %vm16534_vm0 }
 0x687   : > { %16603 = vst [vmem:[#allocation9_spill] sm:$0xff] %v14794_v41  ;;  %8524 = vmatmul.mubr.msk.f32.gmra.mrb[20].mxu1 %vm16604_vm5, %v8516_v55  ;;  %v14802_v14 = vpop.permute.xlu0 %10910  ;;  %v14804_v9 = vpop.permute.xlu1 %10905  ;;  %v3200_v55 = vsel %vm16605_vm6, %v10887_v27, %v10888_v23  ;;  %v3199_v61 = vsel %vm16607_vm10, %v10877_v17, %v10878_v31  ;;  %vm16616_vm1 = vmmov %vm16534_vm0  ;;  %v10683_v41 = vunpack.i.h.bf16 %v14334_v40 }
 0x688   : > { %v16366_v45 = vunpack.i.h.bf16 %v14802_v14  ;;  %v16365_v3 = vunpack.i.h.bf16 %v14804_v9  ;;  %5322 = vmatprep.mubr.f32.mxu1 %v16415_v42  ;;  %v9336_v27 = vpack.c.bf16 %v3200_v55, %v3199_v61  ;;  %vm16619_vm5 = vmmov %vm16534_vm0 }
 0x689   : > { %8346 = vmatmul.mubr.msk.f32.vlgmr.msra.gmra.mrb[48].mxu0 %vm16606_vm9, %v2845_v5  ;;  %vm16625_vm6 = vmmov %vm16534_vm0  ;;  %vm5808_vm9 = vcmask 605184  }
 0x68a   : > { %9333 = vmatpush1.bf16.msra.mxu0 %v9332_v8  ;;  %3129 = vmatprep.mubr.f32.mxu0 %v16415_v42  ;;  %v9338_v15 = vpack.c.bf16 %v16366_v45, %v16365_v3  ;;  %vm16626_vm10 = vmmov %vm16534_vm0 }
 0x68b   : > { %9335 = vmatprep.subr.bf16.mxu0 %v9334_v62  ;;  %8525 = vmatmul.mubr.msk.f32.gmra.mrb[22].mxu1 %vm16608_vm11, %v8517_v58  ;;  %v10921_v7 = vpop.permute.xlu0 %10920  ;;  %v10916_v23 = vpop.permute.xlu1 %10915  ;;  %v2847_v62 = vld [vmem:[%s16310_s4 + $0x10] sm:$0xff]  ;;  %vm16627_vm11 = vmmov %vm16534_vm0 }
 0x68c   : > { %v10918_v5 = vunpack.i.h.bf16 %v10916_v23  ;;  %v10917_v8 = vunpack.i.l.bf16 %v10916_v23  ;;  %5328 = vmatprep.mubr.f32.mxu1 %v16415_v42  ;;  %v10923_v31 = vunpack.i.h.bf16 %v10921_v7  ;;  %v10922_v17 = vunpack.i.l.bf16 %v10921_v7 }
 0x68d   : > { %8347 = vmatmul.mubr.msk.f32.gmra.mrb[50].mxu0 %vm16609_vm7, %v2846_v20  ;;  %vm16631_vm7 = vmmov %vm16534_vm0 }
 0x68e   : > { %v14832_v44 = vsel %vm7026_vm12, %v10918_v5, %v10902_v29  ;;  %v14835_v58 = vsel %vm7026_vm12, %v10917_v8, %v10897_v59  ;;  %9337 = vmatpush1.bf16.msra.mxu0 %v9336_v27  ;;  %3135 = vmatprep.mubr.f32.mxu0 %v16415_v42  ;;  %v8519_v59 = vld [vmem:[%s16310_s4 + $0x328] sm:$0xff]  ;;  %v10657_v8 = vunpack.i.l.bf16 %v14312_v47 }
 0x68f   : > { %16610 = vst [vmem:[#allocation10_spill] sm:$0xff] %v14832_v44  ;;  %16611 = vst [vmem:[#allocation11_spill] sm:$0xff] %v14835_v58  ;;  %9339 = vmatprep.subr.bf16.mxu0 %v9338_v15  ;;  %8526 = vmatmul.mubr.msk.f32.gmra.mrb[24].mxu1 %vm16612_vm4, %v8518_v53  ;;  %v14844_v20 = vpop.permute.xlu0 %10925  ;;  %v10931_v29 = vpop.permute.xlu1 %10930  ;;  %v2848_v15 = vld [vmem:[%s16310_s4 + $0x18] sm:$0xff]  ;;  %v14856_v53 = vsel %vm7026_vm12, %v10922_v17, %v10923_v31  ;;  %v8520_v31 = vld [vmem:[%s16310_s4 + $0x330] sm:$0xff]  ;;  %vm16633_vm4 = vcmask 1022976  }
 0x690   : > { %v10933_v61 = vunpack.i.h.bf16 %v10931_v29  ;;  %v10932_v7 = vunpack.i.l.bf16 %v10931_v29  ;;  %5334 = vmatprep.mubr.f32.mxu1 %v16415_v42  ;;  %16613 = vst [vmem:[#allocation12_spill] sm:$0xff] %v14856_v53 }
 0x691   : > { %8348 = vmatmul.mubr.msk.f32.gmra.mrb[52].mxu0 %vm16534_vm0, %v2847_v62 }
 0x692   : > { %3141 = vmatprep.mubr.f32.mxu0 %v16415_v42  ;;  %v14859_v23 = vsel %vm7026_vm12, %v10932_v7, %v10933_v61  ;;  %v10658_v61 = vunpack.i.h.bf16 %v14312_v47  ;;  %v8521_v47 = vld [vmem:[%s16310_s4 + $0x338] sm:$0xff] }
 0x693   : > { %16614 = vst [vmem:[#allocation13_spill] sm:$0xff] %v14859_v23  ;;  %8527 = vmatmul.mubr.msk.f32.gmra.mrb[26].mxu1 %vm16615_vm15, %v8519_v59  ;;  %v10941_v27 = vpop.permute.xlu0 %10940  ;;  %v14862_v5 = vpop.permute.xlu1 %10935  ;;  %v10663_v23 = vunpack.i.h.bf16 %v14310_v39  ;;  %vm16636_vm15 = vmmov %vm16616_vm1 }
 0x694   : > { %v10943_v62 = vunpack.i.h.bf16 %v10941_v27  ;;  %v10942_v29 = vunpack.i.l.bf16 %v10941_v27  ;;  %5340 = vmatprep.mubr.f32.mxu1 %v16415_v42  ;;  %v2849_v27 = vld [vmem:[%s16310_s4 + $0x20] sm:$0xff] }
 0x695   : > { %8349 = vmatmul.mubr.msk.f32.gmra.mrb[54].mxu0 %vm16616_vm1, %v2848_v15  ;;  %v10667_v15 = vunpack.i.l.bf16 %v14323_v22  ;;  %v10662_v22 = vunpack.i.l.bf16 %v14310_v39  ;;  %v16623_v39 = vunpack.i.l.bf16 %v14291_v33 }
 0x696   : > { %v14873_v59 = vsel %vm7026_vm12, %v10942_v29, %v10922_v17  ;;  %v14876_v55 = vsel %vm7026_vm12, %v10943_v62, %v10932_v7  ;;  %3147 = vmatprep.mubr.f32.mxu0 %v16415_v42  ;;  %vm16620_vm12 = vmmov %vm16534_vm0  ;;  %v10672_v17 = vunpack.i.l.bf16 %v14321_v1 }
 0x697   : > { %16617 = vst [vmem:[#allocation14_spill] sm:$0xff] %v14873_v59  ;;  %16618 = vst [vmem:[#allocation15_spill] sm:$0xff] %v14876_v55  ;;  %8528 = vmatmul.mubr.msk.f32.gmra.mrb[28].mxu1 %vm16619_vm5, %v8520_v31  ;;  %v10951_v7 = vpop.permute.xlu0 %10950  ;;  %v10946_v62 = vpop.permute.xlu1 %10945  ;;  %v10673_v31 = vunpack.i.h.bf16 %v14321_v1  ;;  %v16624_v55 = vunpack.i.l.bf16 %v14293_v37 }
 0x698   : > { %v10953_v29 = vunpack.i.h.bf16 %v10951_v7  ;;  %v10952_v3 = vunpack.i.l.bf16 %v10951_v7  ;;  %v10948_v45 = vunpack.i.h.bf16 %v10946_v62  ;;  %v10947_v53 = vunpack.i.l.bf16 %v10946_v62  ;;  %5346 = vmatprep.mubr.f32.mxu1 %v16415_v42  ;;  %v2850_v7 = vld [vmem:[%s16310_s4 + $0x28] sm:$0xff] }
 0x699   : > { %8350 = vmatmul.mubr.msk.f32.gmra.mrb[56].mxu0 %vm16620_vm12, %v2849_v27  ;;  %v5608_v27 = vsel %vm5605_vm8, %v10658_v61, %v16623_v39  ;;  %v5606_v1 = vsel %vm5605_vm8, %v10657_v8, %v16624_v55  ;;  %v10678_v61 = vunpack.i.h.bf16 %v14336_v52  ;;  %v8530_v55 = vld [vmem:[%s16310_s4 + $0x340] sm:$0xff]  ;;  %v5612_v8 = vsel %vm5605_vm8, %v10673_v31, %v10667_v15  ;;  %vm16639_vm12 = vmmov %vm16616_vm1 }
 0x69a   : > { %3153 = vmatprep.mubr.f32.mxu0 %v16415_v42  ;;  %v14902_v62 = vsel %vm7229_vm3, %v10947_v53, %v10948_v45  ;;  %v14905_v59 = vsel %vm7229_vm3, %v10952_v3, %v10953_v29  ;;  %v5613_v45 = vsel %vm5605_vm8, %v10667_v15, %v10668_v43  ;;  %v5610_v43 = vsel %vm5605_vm8, %v10672_v17, %v10662_v22  ;;  %v2851_v29 = vld [vmem:[%s16310_s4 + $0x30] sm:$0xff] }
 0x69b   : > { %16621 = vst [vmem:[#allocation16_spill] sm:$0xff] %v14902_v62  ;;  %16622 = vst [vmem:[#allocation17_spill] sm:$0xff] %v14905_v59  ;;  %8529 = vmatmul.mubr.msk.f32.gmra.mrb[30].mxu1 %vm16625_vm6, %v8521_v47  ;;  %v14914_v58 = vpop.permute.xlu0 %10960  ;;  %v14916_v44 = vpop.permute.xlu1 %10955  ;;  %v9428_v47 = vpack.c.bf16 %v5608_v27, %v5606_v1  ;;  %v5611_v39 = vsel %vm5605_vm8, %v10662_v22, %v10663_v23  ;;  %v8531_v23 = vld [vmem:[%s16310_s4 + $0x348] sm:$0xff]  ;;  %v16628_v15 = vunpack.i.l.bf16 %v14336_v52  ;;  %v16629_v22 = vunpack.i.l.bf16 %v14334_v40 }
 0x69c   : > { %5507 = vmatprep.mubr.f32.mxu1 %v16415_v42  ;;  %v9430_v33 = vpack.c.bf16 %v5613_v45, %v5611_v39  ;;  %v10912_v27 = vunpack.i.l.bf16 %v14802_v14  ;;  %v10907_v1 = vunpack.i.l.bf16 %v14804_v9  ;;  %vm16630_vm8 = vmmov %vm16534_vm0 }
 0x69d   : > { %8351 = vmatmul.mubr.msk.f32.gmra.mrb[58].mxu0 %vm16626_vm10, %v2850_v7  ;;  %v5810_v17 = vsel %vm5808_vm9, %v16628_v15, %v10678_v61  ;;  %v5812_v31 = vsel %vm5808_vm9, %v16629_v22, %v10683_v41  ;;  %v2852_v41 = vld [vmem:[%s16310_s4 + $0x38] sm:$0xff]  ;;  %vm16635_vm0 = vmmov %vm16633_vm4  ;;  %v10938_v15 = vunpack.i.h.bf16 %v14862_v5  ;;  %v8354_v22 = vld [vmem:[%s16310_s4 + $0x80] sm:$0xff] }
 0x69e   : > { %3159 = vmatprep.mubr.f32.mxu0 %v16415_v42  ;;  %vm16638_vm5 = vmmov %vm16635_vm0 }
 0x69f   : > { %8538 = vmatmul.mubr.msk.f32.vlgmr.msra.gmra.mrb[16].mxu1 %vm16627_vm11, %v8530_v55  ;;  %v10971_v37 = vpop.permute.xlu0 %10970  ;;  %v10966_v62 = vpop.permute.xlu1 %10965  ;;  %vm16642_vm6 = vmmov %vm16635_vm0 }
 0x6a0   : > { %9429 = vmatpush1.bf16.msra.mxu1 %v9428_v47  ;;  %v10968_v7 = vunpack.i.h.bf16 %v10966_v62  ;;  %v10967_v59 = vunpack.i.l.bf16 %v10966_v62  ;;  %5513 = vmatprep.mubr.f32.mxu1 %v16415_v42  ;;  %v9432_v62 = vpack.c.bf16 %v5612_v8, %v5610_v43  ;;  %v10973_v45 = vunpack.i.h.bf16 %v10971_v37  ;;  %vm16643_vm10 = vmmov %vm16616_vm1 }
 0x6a1   : > { %9431 = vmatprep.subr.bf16.mxu1 %v9430_v33  ;;  %8352 = vmatmul.mubr.msk.f32.gmra.mrb[60].mxu0 %vm16630_vm8, %v2851_v29  ;;  %v10972_v55 = vunpack.i.l.bf16 %v10971_v37  ;;  %v9434_v29 = vpack.c.bf16 %v5812_v31, %v5810_v17  ;;  %v10937_v17 = vunpack.i.l.bf16 %v14862_v5  ;;  %v10928_v31 = vunpack.i.h.bf16 %v14844_v20  ;;  %vm16645_vm11 = vmmov %vm16616_vm1 }
 0x6a2   : > { %v14952_v47 = vsel %vm7229_vm3, %v10968_v7, %v10952_v3  ;;  %v14955_v39 = vsel %vm7229_vm3, %v10967_v59, %v10947_v53  ;;  %3165 = vmatprep.mubr.f32.mxu0 %v16415_v42  ;;  %v8532_v53 = vld [vmem:[%s16310_s4 + $0x350] sm:$0xff]  ;;  %v16632_v59 = vunpack.i.h.bf16 %v14802_v14  ;;  %v16634_v7 = vunpack.i.h.bf16 %v14804_v9 }
 0x6a3   : > { %8539 = vmatmul.mubr.msk.f32.gmra.mrb[18].mxu1 %vm16631_vm7, %v8531_v23  ;;  %v14964_v61 = vpop.permute.xlu0 %10975  ;;  %v10981_v37 = vpop.permute.xlu1 %10980  ;;  %v14984_v14 = vsel %vm7229_vm3, %v10972_v55, %v10973_v45  ;;  %v8533_v45 = vld [vmem:[%s16310_s4 + $0x358] sm:$0xff]  ;;  %vm7432_vm8 = vcmask 433152   ;;  %vm16646_vm7 = vmmov %vm16616_vm1  ;;  %v10697_v33 = vunpack.i.l.bf16 %v14359_v30 }
 0x6a4   : > { %9433 = vmatpush1.bf16.msra.mxu1 %v9432_v62  ;;  %v10983_v3 = vunpack.i.h.bf16 %v10981_v37  ;;  %v10982_v43 = vunpack.i.l.bf16 %v10981_v37  ;;  %5519 = vmatprep.mubr.f32.mxu1 %v16415_v42  ;;  %v3388_v8 = vsel %vm16633_vm4, %v10912_v27, %v16632_v59  ;;  %v3387_v23 = vsel %vm16635_vm0, %v10907_v1, %v16634_v7  ;;  %16637 = vst [vmem:[#allocation18_spill] sm:$0xff] %v14984_v14  ;;  %vm16649_vm4 = vmmov %vm16616_vm1 }
 0x6a5   : > { %9435 = vmatprep.subr.bf16.mxu1 %v9434_v29  ;;  %8353 = vmatmul.mubr.msk.f32.gmra.mrb[62].mxu0 %vm16636_vm15, %v2852_v41  ;;  %v10927_v27 = vunpack.i.l.bf16 %v14844_v20  ;;  %v9340_v41 = vpack.c.bf16 %v3388_v8, %v3387_v23  ;;  %v3390_v20 = vsel %vm16638_vm5, %v10937_v17, %v10938_v15  ;;  %v16376_v59 = vunpack.i.h.bf16 %v14916_v44  ;;  %v8355_v23 = vld [vmem:[%s16310_s4 + $0x88] sm:$0xff]  ;;  %vm16650_vm0 = vmmov %vm16616_vm1 }
 0x6a6   : > { %3297 = vmatprep.mubr.f32.mxu0 %v16415_v42  ;;  %v14987_v9 = vsel %vm7229_vm3, %v10982_v43, %v10983_v3  ;;  %v9342_v3 = vpack.c.bf16 %v10938_v15, %v10928_v31  ;;  %v10688_v62 = vunpack.i.h.bf16 %v14347_v24  ;;  %vm16653_vm15 = vmmov %vm16650_vm0 }
 0x6a7   : > { %8540 = vmatmul.mubr.msk.f32.gmra.mrb[20].mxu1 %vm16616_vm1, %v8532_v53  ;;  %v10991_v5 = vpop.permute.xlu0 %10990  ;;  %v14992_v1 = vpop.permute.xlu1 %10985  ;;  %v16377_v53 = vunpack.i.h.bf16 %v14914_v58  ;;  %vm16655_vm5 = vmmov %vm16650_vm0 }
 0x6a8   : > { %v10993_v29 = vunpack.i.h.bf16 %v10991_v5  ;;  %v10992_v37 = vunpack.i.l.bf16 %v10991_v5  ;;  %5525 = vmatprep.mubr.f32.mxu1 %v16415_v42  ;;  %v3389_v5 = vsel %vm16642_vm6, %v10927_v27, %v10928_v31  ;;  %v8356_v27 = vld [vmem:[%s16310_s4 + $0x90] sm:$0xff]  ;;  %vm16658_vm6 = vmmov %vm16650_vm0 }
 0x6a9   : > { %8362 = vmatmul.mubr.msk.f32.vlgmr.msra.gmra.mrb[48].mxu0 %vm16639_vm12, %v8354_v22  ;;  %v9344_v22 = vpack.c.bf16 %v3390_v20, %v3389_v5  ;;  %v9346_v31 = vpack.c.bf16 %v16377_v53, %v16376_v59  ;;  %v8357_v5 = vld [vmem:[%s16310_s4 + $0x98] sm:$0xff]  ;;  %v8358_v59 = vld [vmem:[%s16310_s4 + $0xa0] sm:$0xff]  ;;  %vm16657_vm12 = vmmov %vm16650_vm0 }
 0x6aa   : > { %v15005_v7 = vsel %vm7229_vm3, %v10992_v37, %v10972_v55  ;;  %v15008_v8 = vsel %vm7229_vm3, %v10993_v29, %v10982_v43  ;;  %9341 = vmatpush1.bf16.msra.mxu0 %v9340_v41  ;;  %3303 = vmatprep.mubr.f32.mxu0 %v16415_v42  ;;  %v8534_v43 = vld [vmem:[%s16310_s4 + $0x360] sm:$0xff]  ;;  %vm16644_vm3 = vmmov %vm16616_vm1  ;;  %vm6011_vm1 = vcmask 596992  }
 0x6ab   : > { %16640 = vst [vmem:[#allocation19_spill] sm:$0xff] %v15005_v7  ;;  %16641 = vst [vmem:[#allocation20_spill] sm:$0xff] %v15008_v8  ;;  %9343 = vmatprep.subr.bf16.mxu0 %v9342_v3  ;;  %8541 = vmatmul.mubr.msk.f32.gmra.mrb[22].mxu1 %vm16643_vm10, %v8533_v45  ;;  %v15017_v17 = vpop.permute.xlu0 %11000  ;;  %v15019_v55 = vpop.permute.xlu1 %10995 }
 0x6ac   : > { %5531 = vmatprep.mubr.f32.mxu1 %v16415_v42  ;;  %vm16659_vm10 = vmmov %vm16650_vm0 }
 0x6ad   : > { %8363 = vmatmul.mubr.msk.f32.gmra.mrb[50].mxu0 %vm16644_vm3, %v8355_v23  ;;  %v8535_v23 = vld [vmem:[%s16310_s4 + $0x368] sm:$0xff]  ;;  %vm16665_vm3 = vmmov %vm16650_vm0 }
 0x6ae   : > { %9345 = vmatpush1.bf16.msra.mxu0 %v9344_v22  ;;  %3309 = vmatprep.mubr.f32.mxu0 %v16415_v42 }
 0x6af   : > { %9347 = vmatprep.subr.bf16.mxu0 %v9346_v31  ;;  %8542 = vmatmul.mubr.msk.f32.gmra.mrb[24].mxu1 %vm16645_vm11, %v8534_v43  ;;  %v11011_v41 = vpop.permute.xlu0 %11010  ;;  %v11006_v29 = vpop.permute.xlu1 %11005  ;;  %vm16668_vm11 = vmmov %vm16650_vm0 }
 0x6b0   : > { %v11013_v37 = vunpack.i.h.bf16 %v11011_v41  ;;  %v11012_v45 = vunpack.i.l.bf16 %v11011_v41  ;;  %v11008_v3 = vunpack.i.h.bf16 %v11006_v29  ;;  %v11007_v20 = vunpack.i.l.bf16 %v11006_v29  ;;  %5537 = vmatprep.mubr.f32.mxu1 %v16415_v42 }
 0x6b1   : > { %8364 = vmatmul.mubr.msk.f32.gmra.mrb[52].mxu0 %vm16646_vm7, %v8356_v27  ;;  %vm16669_vm7 = vmmov %vm16650_vm0 }
 0x6b2   : > { %3315 = vmatprep.mubr.f32.mxu0 %v16415_v42  ;;  %v15046_v22 = vsel %vm7432_vm8, %v11007_v20, %v11008_v3  ;;  %v15049_v43 = vsel %vm7432_vm8, %v11012_v45, %v11013_v37  ;;  %v8536_v3 = vld [vmem:[%s16310_s4 + $0x370] sm:$0xff]  ;;  %v10687_v37 = vunpack.i.l.bf16 %v14347_v24 }
 0x6b3   : > { %16647 = vst [vmem:[#allocation21_spill] sm:$0xff] %v15046_v22  ;;  %16648 = vst [vmem:[#allocation22_spill] sm:$0xff] %v15049_v43  ;;  %8543 = vmatmul.mubr.msk.f32.gmra.mrb[26].mxu1 %vm16649_vm4, %v8535_v23  ;;  %v11021_v31 = vpop.permute.xlu0 %11020  ;;  %v15052_v41 = vpop.permute.xlu1 %11015  ;;  %v10698_v23 = vunpack.i.h.bf16 %v14359_v30  ;;  %vm7635_vm4 = vcmask 424960  }
 0x6b4   : > { %v11023_v29 = vunpack.i.h.bf16 %v11021_v31  ;;  %v11022_v15 = vunpack.i.l.bf16 %v11021_v31  ;;  %5543 = vmatprep.mubr.f32.mxu1 %v16415_v42 }
 0x6b5   : > { %8365 = vmatmul.mubr.msk.f32.gmra.mrb[54].mxu0 %vm16650_vm0, %v8357_v5 }
 0x6b6   : > { %v15066_v27 = vsel %vm7432_vm8, %v11022_v15, %v11007_v20  ;;  %v15069_v31 = vsel %vm7432_vm8, %v11023_v29, %v11012_v45  ;;  %3321 = vmatprep.mubr.f32.mxu0 %v16415_v42  ;;  %v8537_v15 = vld [vmem:[%s16310_s4 + $0x378] sm:$0xff]  ;;  %v10693_v45 = vunpack.i.h.bf16 %v14345_v57  ;;  %v10692_v20 = vunpack.i.l.bf16 %v14345_v57  ;;  %v8359_v57 = vld [vmem:[%s16310_s4 + $0xa8] sm:$0xff] }
 0x6b7   : > { %16651 = vst [vmem:[#allocation23_spill] sm:$0xff] %v15066_v27  ;;  %16652 = vst [vmem:[#allocation24_spill] sm:$0xff] %v15069_v31  ;;  %8544 = vmatmul.mubr.msk.f32.gmra.mrb[28].mxu1 %vm16653_vm15, %v8536_v3  ;;  %v15078_v5 = vpop.permute.xlu0 %11040  ;;  %v15080_v30 = vpop.permute.xlu1 %11025  ;;  %v16654_v29 = vunpack.i.l.bf16 %v14334_v40  ;;  %v16656_v3 = vunpack.i.l.bf16 %v14336_v52  ;;  %v10703_v27 = vunpack.i.h.bf16 %v14357_v32  ;;  %v10702_v31 = vunpack.i.l.bf16 %v14357_v32 }
 0x6b8   : > { %5549 = vmatprep.mubr.f32.mxu1 %v16415_v42  ;;  %v5816_v40 = vsel %vm5808_vm9, %v10697_v33, %v10698_v23  ;;  %v10708_v52 = vunpack.i.h.bf16 %v14375_v35  ;;  %v8546_v23 = vld [vmem:[%s16310_s4 + $0x380] sm:$0xff]  ;;  %v5814_v8 = vsel %vm5808_vm9, %v10692_v20, %v10693_v45  ;;  %vm16671_vm15 = vmmov %vm16650_vm0 }
 0x6b9   : > { %v5811_v24 = vsel %vm5808_vm9, %v10688_v62, %v16654_v29  ;;  %8366 = vmatmul.mubr.msk.f32.gmra.mrb[56].mxu0 %vm16655_vm5, %v8358_v59  ;;  %v5809_v53 = vsel %vm5808_vm9, %v10687_v37, %v16656_v3  ;;  %v10713_v62 = vunpack.i.h.bf16 %v14373_v38  ;;  %v5813_v37 = vsel %vm5808_vm9, %v10702_v31, %v10692_v20  ;;  %vm16672_vm5 = vmmov %vm16650_vm0 }
 0x6ba   : > { %3327 = vmatprep.mubr.f32.mxu0 %v16415_v42  ;;  %v9436_v59 = vpack.c.bf16 %v5811_v24, %v5809_v53  ;;  %v9438_v53 = vpack.c.bf16 %v5816_v40, %v5814_v8  ;;  %v16661_v31 = vunpack.i.l.bf16 %v14373_v38 }
 0x6bb   : > { %8545 = vmatmul.mubr.msk.f32.gmra.mrb[30].mxu1 %vm16657_vm12, %v8537_v15  ;;  %v11046_v29 = vpop.permute.xlu0 %11045  ;;  %v11031_v32 = vpop.permute.xlu1 %11030  ;;  %v5815_v15 = vsel %vm5808_vm9, %v10703_v27, %v10697_v33  ;;  %v16660_v33 = vunpack.i.l.bf16 %v14375_v35  ;;  %vm16662_vm9 = vmmov %vm16650_vm0 }
 0x6bc   : > { %v11048_v3 = vunpack.i.h.bf16 %v11046_v29  ;;  %v11047_v22 = vunpack.i.l.bf16 %v11046_v29  ;;  %v11033_v43 = vunpack.i.h.bf16 %v11031_v32  ;;  %v11032_v7 = vunpack.i.l.bf16 %v11031_v32  ;;  %5710 = vmatprep.mubr.f32.mxu1 %v16415_v42  ;;  %v8360_v29 = vld [vmem:[%s16310_s4 + $0xb0] sm:$0xff]  ;;  %vm16674_vm12 = vmmov %vm16650_vm0 }
 0x6bd   : > { %8367 = vmatmul.mubr.msk.f32.gmra.mrb[58].mxu0 %vm16658_vm6, %v8359_v57  ;;  %v6013_v27 = vsel %vm6011_vm1, %v16660_v33, %v10708_v52  ;;  %v6015_v20 = vsel %vm6011_vm1, %v16661_v31, %v10713_v62  ;;  %v10962_v57 = vunpack.i.l.bf16 %v14914_v58  ;;  %v8547_v52 = vld [vmem:[%s16310_s4 + $0x388] sm:$0xff]  ;;  %v9440_v33 = vpack.c.bf16 %v5815_v15, %v5813_v37  ;;  %vm16675_vm6 = vmmov %vm16650_vm0 }
 0x6be   : > { %3333 = vmatprep.mubr.f32.mxu0 %v16415_v42  ;;  %v15120_v32 = vsel %vm7432_vm8, %v11032_v7, %v11033_v43  ;;  %v15123_v14 = vsel %vm7432_vm8, %v11047_v22, %v11048_v3  ;;  %v10957_v3 = vunpack.i.l.bf16 %v14916_v44  ;;  %v16667_v15 = vunpack.i.h.bf16 %v14916_v44 }
 0x6bf   : > { %8554 = vmatmul.mubr.msk.f32.vlgmr.msra.gmra.mrb[16].mxu1 %vm16659_vm10, %v8546_v23  ;;  %v11051_v24 = vpop.permute.xlu0 %11050  ;;  %v15126_v45 = vpop.permute.xlu1 %11035  ;;  %v11003_v44 = vunpack.i.h.bf16 %v15017_v17  ;;  %vm16676_vm10 = vmmov %vm16650_vm0 }
 0x6c0   : > { %9437 = vmatpush1.bf16.msra.mxu1 %v9436_v59  ;;  %v11053_v8 = vunpack.i.h.bf16 %v11051_v24  ;;  %v11052_v40 = vunpack.i.l.bf16 %v11051_v24  ;;  %5716 = vmatprep.mubr.f32.mxu1 %v16415_v42  ;;  %v8361_v59 = vld [vmem:[%s16310_s4 + $0xb8] sm:$0xff]  ;;  %v3577_v31 = vsel %vm427_vm2, %v10957_v3, %v16667_v15  ;;  %v8370_v3 = vld [vmem:[%s16310_s4 + $0xc0] sm:$0xff] }
 0x6c1   : > { %9439 = vmatprep.subr.bf16.mxu1 %v9438_v53  ;;  %8368 = vmatmul.mubr.msk.f32.gmra.mrb[60].mxu0 %vm16662_vm9, %v8360_v29  ;;  %v9442_v53 = vpack.c.bf16 %v6015_v20, %v6013_v27  ;;  %v10988_v27 = vunpack.i.h.bf16 %v14992_v1  ;;  %v10987_v20 = vunpack.i.l.bf16 %v14992_v1  ;;  %v10978_v1 = vunpack.i.h.bf16 %v14964_v61  ;;  %vm16677_vm9 = vmmov %vm16650_vm0 }
 0x6c2   : > { %v15144_v62 = vsel %vm7432_vm8, %v11052_v40, %v11032_v7  ;;  %v15147_v23 = vsel %vm7432_vm8, %v11053_v8, %v11047_v22  ;;  %3339 = vmatprep.mubr.f32.mxu0 %v16415_v42  ;;  %v16666_v22 = vunpack.i.h.bf16 %v14914_v58  ;;  %v8548_v8 = vld [vmem:[%s16310_s4 + $0x390] sm:$0xff]  ;;  %v10998_v40 = vunpack.i.h.bf16 %v15019_v55 }
 0x6c3   : > { %16663 = vst [vmem:[#allocation25_spill] sm:$0xff] %v15144_v62  ;;  %16664 = vst [vmem:[#allocation26_spill] sm:$0xff] %v15147_v23  ;;  %8555 = vmatmul.mubr.msk.f32.gmra.mrb[18].mxu1 %vm16665_vm3, %v8547_v52  ;;  %v15156_v29 = vpop.permute.xlu0 %11060  ;;  %v15158_v7 = vpop.permute.xlu1 %11055  ;;  %v16386_v58 = vunpack.i.l.bf16 %v15019_v55  ;;  %vm3779_vm8 = vcmask 900096  }
 0x6c4   : > { %v3578_v37 = vsel %vm427_vm2, %v10962_v57, %v16666_v22  ;;  %9441 = vmatpush1.bf16.msra.mxu1 %v9440_v33  ;;  %5722 = vmatprep.mubr.f32.mxu1 %v16415_v42  ;;  %v10977_v33 = vunpack.i.l.bf16 %v14964_v61  ;;  %v8549_v57 = vld [vmem:[%s16310_s4 + $0x398] sm:$0xff]  ;;  %vm16678_vm3 = vmmov %vm16650_vm0 }
 0x6c5   : > { %9443 = vmatprep.subr.bf16.mxu1 %v9442_v53  ;;  %8369 = vmatmul.mubr.msk.f32.gmra.mrb[62].mxu0 %vm16668_vm11, %v8361_v59  ;;  %v9348_v52 = vpack.c.bf16 %v3578_v37, %v3577_v31  ;;  %v9350_v37 = vpack.c.bf16 %v10988_v27, %v10978_v1  ;;  %v3580_v31 = vsel %vm427_vm2, %v10987_v20, %v10988_v27  ;;  %vm16681_vm11 = vmmov %vm16650_vm0 }
 0x6c6   : > { %3487 = vmatprep.mubr.f32.mxu0 %v16415_v42  ;;  %v3781_v61 = vsel %vm3779_vm8, %v16386_v58, %v10998_v40  ;;  %v3579_v20 = vsel %vm427_vm2, %v10977_v33, %v10978_v1  ;;  %v8372_v33 = vld [vmem:[%s16310_s4 + $0xd0] sm:$0xff]  ;;  %vm16673_vm2 = vmmov %vm16650_vm0 }
 0x6c7   : > { %8556 = vmatmul.mubr.msk.f32.gmra.mrb[20].mxu1 %vm16669_vm7, %v8548_v8  ;;  %v11071_v53 = vpop.permute.xlu0 %11070  ;;  %v11066_v59 = vpop.permute.xlu1 %11065  ;;  %v8371_v8 = vld [vmem:[%s16310_s4 + $0xc8] sm:$0xff]  ;;  %vm6214_vm7 = vcmask 588800  }
 0x6c8   : > { %v11073_v22 = vunpack.i.h.bf16 %v11071_v53  ;;  %v11072_v15 = vunpack.i.l.bf16 %v11071_v53  ;;  %v11068_v24 = vunpack.i.h.bf16 %v11066_v59  ;;  %v11067_v43 = vunpack.i.l.bf16 %v11066_v59  ;;  %5728 = vmatprep.mubr.f32.mxu1 %v16415_v42 }
 0x6c9   : > { %8378 = vmatmul.mubr.msk.f32.vlgmr.msra.gmra.mrb[48].mxu0 %vm16650_vm0, %v8370_v3  ;;  %v16670_v53 = vunpack.i.l.bf16 %v15017_v17 }
 0x6ca   : > { %9349 = vmatpush1.bf16.msra.mxu0 %v9348_v52  ;;  %3493 = vmatprep.mubr.f32.mxu0 %v16415_v42  ;;  %v15201_v62 = vsel %vm7635_vm4, %v11067_v43, %v11068_v24  ;;  %v15204_v27 = vsel %vm7635_vm4, %v11072_v15, %v11073_v22  ;;  %v9352_v52 = vpack.c.bf16 %v3580_v31, %v3579_v20  ;;  %v8550_v24 = vld [vmem:[%s16310_s4 + $0x3a0] sm:$0xff]  ;;  %v10717_v31 = vunpack.i.l.bf16 %v14403_v26 }
 0x6cb   : > { %v3783_v59 = vsel %vm3779_vm8, %v16670_v53, %v11003_v44  ;;  %9351 = vmatprep.subr.bf16.mxu0 %v9350_v37  ;;  %8557 = vmatmul.mubr.msk.f32.gmra.mrb[22].mxu1 %vm16671_vm15, %v8549_v57  ;;  %v11081_v40 = vpop.permute.xlu0 %11080  ;;  %v9506_v3 = vpack.c.bf16 %v15204_v27, %v15201_v62  ;;  %v8374_v37 = vld [vmem:[%s16310_s4 + $0xe0] sm:$0xff]  ;;  %v8553_v53 = vld [vmem:[%s16310_s4 + $0x3b8] sm:$0xff]  ;;  %v10722_v20 = vunpack.i.l.bf16 %v14401_v10  ;;  %vm16682_vm15 = vmmov %vm16650_vm0 }
 0x6cc   : > { %v11083_v58 = vunpack.i.h.bf16 %v11081_v40  ;;  %v11082_v23 = vunpack.i.l.bf16 %v11081_v40  ;;  %5734 = vmatprep.mubr.f32.mxu1 %v16415_v42  ;;  %v9354_v44 = vpack.c.bf16 %v3783_v59, %v3781_v61  ;;  %v10728_v61 = vunpack.i.h.bf16 %v14419_v0  ;;  %v8679_v62 = vld [vmem:[%s16310_s4 + $0x5a8] sm:$0xff] }
 0x6cd   : > { %8379 = vmatmul.mubr.msk.f32.gmra.mrb[50].mxu0 %vm16672_vm5, %v8371_v8  ;;  %v10727_v8 = vunpack.i.l.bf16 %v14419_v0  ;;  %v10723_v59 = vunpack.i.h.bf16 %v14401_v10  ;;  %v8375_v0 = vld [vmem:[%s16310_s4 + $0xe8] sm:$0xff]  ;;  %vm16684_vm5 = vmmov %vm16650_vm0 }
 0x6ce   : > { %v15216_v1 = vsel %vm7635_vm4, %v11082_v23, %v11067_v43  ;;  %v15219_v57 = vsel %vm7635_vm4, %v11083_v58, %v11072_v15  ;;  %9353 = vmatpush1.bf16.msra.mxu0 %v9352_v52  ;;  %3499 = vmatprep.mubr.f32.mxu0 %v16415_v42  ;;  %v8551_v43 = vld [vmem:[%s16310_s4 + $0x3a8] sm:$0xff]  ;;  %v8373_v23 = vld [vmem:[%s16310_s4 + $0xd8] sm:$0xff]  ;;  %v8552_v58 = vld [vmem:[%s16310_s4 + $0x3b0] sm:$0xff]  ;;  %v10718_v15 = vunpack.i.h.bf16 %v14403_v26  ;;  %v16679_v26 = vunpack.i.l.bf16 %v14373_v38 }
 0x6cf   : > { %v9508_v22 = vpack.c.bf16 %v15219_v57, %v15216_v1  ;;  %9355 = vmatprep.subr.bf16.mxu0 %v9354_v44  ;;  %8558 = vmatmul.mubr.msk.f32.gmra.mrb[24].mxu1 %vm16673_vm2, %v8550_v24  ;;  %v16680_v52 = vunpack.i.l.bf16 %v14375_v35  ;;  %v10733_v44 = vunpack.i.h.bf16 %v14417_v21  ;;  %v6019_v10 = vsel %vm6011_vm1, %v10727_v8, %v10728_v61  ;;  %v8562_v35 = vld [vmem:[%s16310_s4 + $0x3c0] sm:$0xff]  ;;  %vm16687_vm2 = vmmov %vm16650_vm0  ;;  %v8693_v1 = vld [vmem:[%s16310_s4 + $0x5d8] sm:$0xff] }
 0x6d0   : > { %5740 = vmatprep.mubr.f32.mxu1 %v16415_v42  ;;  %v6014_v40 = vsel %vm6011_vm1, %v10718_v15, %v16679_v26  ;;  %v10743_v38 = vunpack.i.h.bf16 %v14436_v16  ;;  %v6017_v15 = vsel %vm6011_vm1, %v10722_v20, %v10723_v59  ;;  %v11018_v26 = vunpack.i.h.bf16 %v15052_v41  ;;  %v8563_v59 = vld [vmem:[%s16310_s4 + $0x3c8] sm:$0xff]  ;;  %v8694_v57 = vld [vmem:[%s16310_s4 + $0x5e0] sm:$0xff] }
 0x6d1   : > { %8380 = vmatmul.mubr.msk.f32.gmra.mrb[52].mxu0 %vm16674_vm12, %v8372_v33  ;;  %v6012_v24 = vsel %vm6011_vm1, %v10717_v31, %v16680_v52  ;;  %v10732_v33 = vunpack.i.l.bf16 %v14417_v21  ;;  %v6018_v61 = vsel %vm6011_vm1, %v10733_v44, %v10727_v8  ;;  %v11042_v52 = vunpack.i.l.bf16 %v15078_v5 }
 0x6d2   : > { %3505 = vmatprep.mubr.f32.mxu0 %v16415_v42  ;;  %v9444_v21 = vpack.c.bf16 %v6014_v40, %v6012_v24  ;;  %v11043_v40 = vunpack.i.h.bf16 %v15078_v5  ;;  %v11027_v24 = vunpack.i.l.bf16 %v15080_v30  ;;  %vm3982_vm12 = vcmask 891904  }
 0x6d3   : > { %8559 = vmatmul.mubr.msk.f32.gmra.mrb[26].mxu1 %vm16675_vm6, %v8551_v43  ;;  %v10742_v43 = vunpack.i.l.bf16 %v14436_v16  ;;  %v6016_v31 = vsel %vm6011_vm1, %v10732_v33, %v10722_v20  ;;  %vm16683_vm1 = vmmov %vm16650_vm0  ;;  %v8377_v33 = vld [vmem:[%s16310_s4 + $0xf8] sm:$0xff]  ;;  %v8578_v16 = vld [vmem:[%s16310_s4 + $0x400] sm:$0xff] }
 0x6d4   : > { %5746 = vmatprep.mubr.f32.mxu1 %v16415_v42  ;;  %v9448_v44 = vpack.c.bf16 %v6018_v61, %v6016_v31  ;;  %v11062_v31 = vunpack.i.l.bf16 %v15156_v29  ;;  %v11058_v61 = vunpack.i.h.bf16 %v15158_v7  ;;  %vm16688_vm6 = vmmov %vm16650_vm0 }
 0x6d5   : > { %8381 = vmatmul.mubr.msk.f32.gmra.mrb[54].mxu0 %vm16676_vm10, %v8373_v23  ;;  %v10738_v23 = vunpack.i.h.bf16 %v14438_v18  ;;  %v6218_v8 = vsel %vm6214_vm7, %v10742_v43, %v10743_v38  ;;  %v16685_v38 = vunpack.i.l.bf16 %v15017_v17  ;;  %vm16689_vm10 = vmmov %vm16650_vm0 }
 0x6d6   : > { %3511 = vmatprep.mubr.f32.mxu0 %v16415_v42 }
 0x6d7   : > { %8560 = vmatmul.mubr.msk.f32.gmra.mrb[28].mxu1 %vm16677_vm9, %v8552_v58  ;;  %v10737_v58 = vunpack.i.l.bf16 %v14438_v18  ;;  %v3782_v5 = vsel %vm3779_vm8, %v11018_v26, %v16685_v38  ;;  %vm16690_vm9 = vmmov %vm16650_vm0  ;;  %v15364_v38 = vpop.permute.xlu1 %11075 }
 0x6d8   : > { %5752 = vmatprep.mubr.f32.mxu1 %v16415_v42 }
 0x6d9   : > { %8382 = vmatmul.mubr.msk.f32.gmra.mrb[56].mxu0 %vm16678_vm3, %v8374_v37  ;;  %v8376_v37 = vld [vmem:[%s16310_s4 + $0xf0] sm:$0xff]  ;;  %v6216_v20 = vsel %vm6214_vm7, %v10737_v58, %v10738_v23  ;;  %v16686_v23 = vunpack.i.l.bf16 %v15019_v55  ;;  %v3787_v55 = vsel %vm3779_vm8, %v11042_v52, %v11043_v40  ;;  %v8387_v40 = vld [vmem:[%s16310_s4 + $0x108] sm:$0xff]  ;;  %vm16691_vm3 = vmmov %vm16650_vm0 }
 0x6da   : > { %3517 = vmatprep.mubr.f32.mxu0 %v16415_v42 }
 0x6db   : > { %8561 = vmatmul.mubr.msk.f32.gmra.mrb[30].mxu1 %vm16681_vm11, %v8553_v53  ;;  %v9446_v53 = vpack.c.bf16 %v6019_v10, %v6017_v15  ;;  %v9450_v10 = vpack.c.bf16 %v6218_v8, %v6216_v20  ;;  %v11037_v15 = vunpack.i.l.bf16 %v15126_v45  ;;  %vm16692_vm11 = vmmov %vm16650_vm0 }
 0x6dc   : > { %5913 = vmatprep.mubr.f32.mxu1 %v16415_v42 }
 0x6dd   : > { %8383 = vmatmul.mubr.msk.f32.gmra.mrb[58].mxu0 %vm16650_vm0, %v8375_v0  ;;  %v11017_v0 = vunpack.i.l.bf16 %v15052_v41  ;;  %v11028_v41 = vunpack.i.h.bf16 %v15080_v30  ;;  %v3784_v20 = vsel %vm3779_vm8, %v11037_v15, %v11027_v24  ;;  %v10748_v15 = vunpack.i.h.bf16 %v14451_v63 }
 0x6de   : > { %3523 = vmatprep.mubr.f32.mxu0 %v16415_v42 }
 0x6df   : > { %8570 = vmatmul.mubr.msk.f32.vlgmr.msra.gmra.mrb[16].mxu1 %vm16682_vm15, %v8562_v35  ;;  %v3780_v30 = vsel %vm3779_vm8, %v11017_v0, %v16686_v23  ;;  %v8564_v35 = vld [vmem:[%s16310_s4 + $0x3d0] sm:$0xff]  ;;  %v3785_v17 = vsel %vm3779_vm8, %v11027_v24, %v11028_v41  ;;  %v8565_v0 = vld [vmem:[%s16310_s4 + $0x3d8] sm:$0xff]  ;;  %vm16693_vm15 = vmmov %vm16650_vm0 }
 0x6e0   : > { %9445 = vmatpush1.bf16.msra.mxu1 %v9444_v21  ;;  %5919 = vmatprep.mubr.f32.mxu1 %v16415_v42  ;;  %v11038_v21 = vunpack.i.h.bf16 %v15126_v45  ;;  %v8386_v45 = vld [vmem:[%s16310_s4 + $0x100] sm:$0xff]  ;;  %v9356_v26 = vpack.c.bf16 %v3782_v5, %v3780_v30  ;;  %v9358_v8 = vpack.c.bf16 %v3787_v55, %v3785_v17  ;;  %v8567_v5 = vld [vmem:[%s16310_s4 + $0x3e8] sm:$0xff]  ;;  %v8389_v23 = vld [vmem:[%s16310_s4 + $0x118] sm:$0xff]  ;;  %v10747_v17 = vunpack.i.l.bf16 %v14451_v63 }
 0x6e1   : > { %9447 = vmatprep.subr.bf16.mxu1 %v9446_v53  ;;  %8384 = vmatmul.mubr.msk.f32.gmra.mrb[60].mxu0 %vm16683_vm1, %v8376_v37  ;;  %v11063_v37 = vunpack.i.h.bf16 %v15156_v29  ;;  %v11057_v53 = vunpack.i.l.bf16 %v15158_v7  ;;  %v8568_v30 = vld [vmem:[%s16310_s4 + $0x3f0] sm:$0xff]  ;;  %vm16694_vm1 = vmmov %vm16650_vm0  ;;  %v10758_v55 = vunpack.i.h.bf16 %v14464_v36 }
 0x6e2   : > { %3529 = vmatprep.mubr.f32.mxu0 %v16415_v42 }
 0x6e3   : > { %8571 = vmatmul.mubr.msk.f32.gmra.mrb[18].mxu1 %vm16684_vm5, %v8563_v59  ;;  %v3786_v59 = vsel %vm3779_vm8, %v11038_v21, %v11042_v52  ;;  %v3984_v41 = vsel %vm3982_vm12, %v11057_v53, %v11058_v61  ;;  %v3986_v52 = vsel %vm3982_vm12, %v11062_v31, %v11063_v37  ;;  %v8390_v21 = vld [vmem:[%s16310_s4 + $0x120] sm:$0xff]  ;;  %v10757_v37 = vunpack.i.l.bf16 %v14464_v36  ;;  %vm16695_vm5 = vmmov %vm16650_vm0  ;;  %v8569_v61 = vld [vmem:[%s16310_s4 + $0x3f8] sm:$0xff] }
 0x6e4   : > { %9449 = vmatpush1.bf16.msra.mxu1 %v9448_v44  ;;  %5925 = vmatprep.mubr.f32.mxu1 %v16415_v42  ;;  %v9360_v24 = vpack.c.bf16 %v3786_v59, %v3784_v20  ;;  %v8566_v44 = vld [vmem:[%s16310_s4 + $0x3e0] sm:$0xff]  ;;  %v8391_v36 = vld [vmem:[%s16310_s4 + $0x128] sm:$0xff]  ;;  %v6217_v20 = vsel %vm6214_vm7, %v10748_v15, %v10742_v43 }
 0x6e5   : > { %9451 = vmatprep.subr.bf16.mxu1 %v9450_v10  ;;  %8385 = vmatmul.mubr.msk.f32.gmra.mrb[62].mxu0 %vm16687_vm2, %v8377_v33  ;;  %v9362_v33 = vpack.c.bf16 %v3986_v52, %v3984_v41  ;;  %v8388_v10 = vld [vmem:[%s16310_s4 + $0x110] sm:$0xff]  ;;  %vm16696_vm2 = vmmov %vm16650_vm0  ;;  %v8579_v15 = vld [vmem:[%s16310_s4 + $0x408] sm:$0xff] }
 0x6e6   : > { %3677 = vmatprep.mubr.f32.mxu0 %v16415_v42 }
 0x6e7   : > { %8572 = vmatmul.mubr.msk.f32.gmra.mrb[20].mxu1 %vm16688_vm6, %v8564_v35  ;;  %v15381_v35 = vpop.permute.xlu1 %11085  ;;  %vm16698_vm6 = vmmov %vm16650_vm0 }
 0x6e8   : > { %5931 = vmatprep.mubr.f32.mxu1 %v16415_v42 }
 0x6e9   : > { %8394 = vmatmul.mubr.msk.f32.vlgmr.msra.gmra.mrb[48].mxu0 %vm16689_vm10, %v8386_v45  ;;  %v10753_v45 = vunpack.i.h.bf16 %v14449_v12  ;;  %vm6417_vm10 = vcmask 580608  }
 0x6ea   : > { %9357 = vmatpush1.bf16.msra.mxu0 %v9356_v26  ;;  %3683 = vmatprep.mubr.f32.mxu0 %v16415_v42  ;;  %v10752_v26 = vunpack.i.l.bf16 %v14449_v12  ;;  %v6222_v12 = vsel %vm6214_vm7, %v10757_v37, %v10758_v55 }
 0x6eb   : > { %9359 = vmatprep.subr.bf16.mxu0 %v9358_v8  ;;  %8573 = vmatmul.mubr.msk.f32.gmra.mrb[22].mxu1 %vm16690_vm9, %v8565_v0  ;;  %v16697_v0 = vld [vmem:[#allocation6_spill] sm:$0xff]  ;;  %v6215_v8 = vsel %vm6214_vm7, %v10747_v17, %v10737_v58  ;;  %vm16701_vm9 = vmmov %vm16650_vm0 }
 0x6ec   : > { %5937 = vmatprep.mubr.f32.mxu1 %v16415_v42  ;;  %v10763_v63 = vunpack.i.h.bf16 %v16697_v0  ;;  %v10762_v59 = vunpack.i.l.bf16 %v16697_v0  ;;  %v9452_v58 = vpack.c.bf16 %v6217_v20, %v6215_v8  ;;  %v8393_v20 = vld [vmem:[%s16310_s4 + $0x138] sm:$0xff]  ;;  %v8580_v8 = vld [vmem:[%s16310_s4 + $0x410] sm:$0xff] }
 0x6ed   : > { %8395 = vmatmul.mubr.msk.f32.gmra.mrb[50].mxu0 %vm16691_vm3, %v8387_v40  ;;  %v16699_v40 = vld [vmem:[#allocation2_spill] sm:$0xff]  ;;  %vm16702_vm3 = vmmov %vm16650_vm0 }
 0x6ee   : > { %9361 = vmatpush1.bf16.msra.mxu0 %v9360_v24  ;;  %3689 = vmatprep.mubr.f32.mxu0 %v16415_v42  ;;  %v10773_v41 = vunpack.i.h.bf16 %v16699_v40  ;;  %v10772_v52 = vunpack.i.l.bf16 %v16699_v40  ;;  %v16700_v24 = vld [vmem:[#allocation3_spill] sm:$0xff]  ;;  %v6219_v18 = vsel %vm6214_vm7, %v10762_v59, %v10752_v26  ;;  %v6221_v43 = vsel %vm6214_vm7, %v10763_v63, %v10757_v37 }
 0x6ef   : > { %9363 = vmatprep.subr.bf16.mxu0 %v9362_v33  ;;  %8574 = vmatmul.mubr.msk.f32.gmra.mrb[24].mxu1 %vm16692_vm11, %v8566_v44  ;;  %v10768_v44 = vunpack.i.h.bf16 %v16700_v24  ;;  %v10767_v33 = vunpack.i.l.bf16 %v16700_v24  ;;  %v11078_v37 = vunpack.i.h.bf16 %v15364_v38  ;;  %v11088_v63 = vunpack.i.h.bf16 %v15381_v35  ;;  %vm16704_vm11 = vmmov %vm16650_vm0  ;;  %v8594_v24 = vld [vmem:[%s16310_s4 + $0x440] sm:$0xff] }
 0x6f0   : > { %5943 = vmatprep.mubr.f32.mxu1 %v16415_v42  ;;  %v6421_v55 = vsel %vm6417_vm10, %v10772_v52, %v10773_v41  ;;  %v11087_v59 = vunpack.i.l.bf16 %v15381_v35 }
 0x6f1   : > { %8396 = vmatmul.mubr.msk.f32.gmra.mrb[52].mxu0 %vm16650_vm0, %v8388_v10  ;;  %v15417_v10 = vpop.permute.xlu1 %11090  ;;  %v6419_v17 = vsel %vm6417_vm10, %v10767_v33, %v10768_v44  ;;  %v3985_v35 = vsel %vm3982_vm12, %v11078_v37, %v11062_v31  ;;  %v8581_v31 = vld [vmem:[%s16310_s4 + $0x418] sm:$0xff]  ;;  %v10788_v37 = vunpack.i.h.bf16 %v14505_v19 }
 0x6f2   : > { %3695 = vmatprep.mubr.f32.mxu0 %v16415_v42 }
 0x6f3   : > { %8575 = vmatmul.mubr.msk.f32.gmra.mrb[26].mxu1 %vm16693_vm15, %v8567_v5  ;;  %v6220_v5 = vsel %vm6214_vm7, %v10752_v26, %v10753_v45  ;;  %vm16703_vm7 = vmmov %vm16650_vm0  ;;  %v9456_v45 = vpack.c.bf16 %v6221_v43, %v6219_v18  ;;  %v3988_v18 = vsel %vm3982_vm12, %v11087_v59, %v11088_v63  ;;  %v8585_v63 = vld [vmem:[%s16310_s4 + $0x438] sm:$0xff] }
 0x6f4   : > { %5949 = vmatprep.mubr.f32.mxu1 %v16415_v42  ;;  %vm16705_vm15 = vmmov %vm16650_vm0 }
 0x6f5   : > { %8397 = vmatmul.mubr.msk.f32.gmra.mrb[54].mxu0 %vm16694_vm1, %v8389_v23  ;;  %v8392_v23 = vld [vmem:[%s16310_s4 + $0x130] sm:$0xff]  ;;  %vm16706_vm1 = vmmov %vm16650_vm0 }
 0x6f6   : > { %3701 = vmatprep.mubr.f32.mxu0 %v16415_v42 }
 0x6f7   : > { %8576 = vmatmul.mubr.msk.f32.gmra.mrb[28].mxu1 %vm16695_vm5, %v8568_v30  ;;  %v11101_v30 = vpop.permute.xlu0 %11100  ;;  %vm16707_vm5 = vmmov %vm16650_vm0 }
 0x6f8   : > { %5955 = vmatprep.mubr.f32.mxu1 %v16415_v42  ;;  %v11103_v26 = vunpack.i.h.bf16 %v11101_v30  ;;  %v11102_v0 = vunpack.i.l.bf16 %v11101_v30  ;;  %v8582_v30 = vld [vmem:[%s16310_s4 + $0x420] sm:$0xff] }
 0x6f9   : > { %8398 = vmatmul.mubr.msk.f32.gmra.mrb[56].mxu0 %vm16696_vm2, %v8390_v21  ;;  %v9454_v21 = vpack.c.bf16 %v6222_v12, %v6220_v5  ;;  %v8403_v5 = vld [vmem:[%s16310_s4 + $0x148] sm:$0xff]  ;;  %vm16709_vm2 = vmmov %vm16650_vm0 }
 0x6fa   : > { %3707 = vmatprep.mubr.f32.mxu0 %v16415_v42  ;;  %v3990_v29 = vsel %vm3982_vm12, %v11102_v0, %v11103_v26  ;;  %v10803_v26 = vunpack.i.h.bf16 %v14531_v25 }
 0x6fb   : > { %8577 = vmatmul.mubr.msk.f32.gmra.mrb[30].mxu1 %vm16698_vm6, %v8569_v61  ;;  %v11077_v61 = vunpack.i.l.bf16 %v15364_v38  ;;  %v9458_v38 = vpack.c.bf16 %v6421_v55, %v6419_v17  ;;  %vm16710_vm6 = vmmov %vm16650_vm0  ;;  %v8405_v17 = vld [vmem:[%s16310_s4 + $0x158] sm:$0xff]  ;;  %v8584_v55 = vld [vmem:[%s16310_s4 + $0x430] sm:$0xff]  ;;  %v11106_v27 = vpop.permute.xlu0 %11105 }
 0x6fc   : > { %6116 = vmatprep.mubr.f32.mxu1 %v16415_v42 }
 0x6fd   : > { %8399 = vmatmul.mubr.msk.f32.gmra.mrb[58].mxu0 %vm16701_vm9, %v8391_v36  ;;  %v11096_v36 = vpop.permute.xlu1 %11095  ;;  %v3983_v12 = vsel %vm3982_vm12, %v11077_v61, %v11057_v53  ;;  %vm16711_vm9 = vmmov %vm16650_vm0  ;;  %v8406_v61 = vld [vmem:[%s16310_s4 + $0x160] sm:$0xff] }
 0x6fe   : > { %3713 = vmatprep.mubr.f32.mxu0 %v16415_v42  ;;  %v11098_v41 = vunpack.i.h.bf16 %v11096_v36  ;;  %v11097_v44 = vunpack.i.l.bf16 %v11096_v36  ;;  %v9364_v7 = vpack.c.bf16 %v3985_v35, %v3983_v12  ;;  %v10812_v35 = vunpack.i.l.bf16 %v14545_v6 }
 0x6ff   : > { %8586 = vmatmul.mubr.msk.f32.vlgmr.msra.gmra.mrb[16].mxu1 %vm16702_vm3, %v8578_v16  ;;  %v8402_v16 = vld [vmem:[%s16310_s4 + $0x140] sm:$0xff]  ;;  %vm16712_vm3 = vmmov %vm16650_vm0  ;;  %v10822_v12 = vunpack.i.l.bf16 %v14564_v2 }
 0x700   : > { %9453 = vmatpush1.bf16.msra.mxu1 %v9452_v58  ;;  %6122 = vmatprep.mubr.f32.mxu1 %v16415_v42  ;;  %v3989_v53 = vsel %vm3982_vm12, %v11098_v41, %v11102_v0  ;;  %v3987_v43 = vsel %vm3982_vm12, %v11097_v44, %v11087_v59  ;;  %v9366_v58 = vpack.c.bf16 %v3990_v29, %v3988_v18  ;;  %vm16708_vm12 = vmmov %vm16650_vm0  ;;  %v10802_v0 = vunpack.i.l.bf16 %v14531_v25  ;;  %v16715_v59 = vld [vmem:[#allocation4_spill] sm:$0xff]  ;;  %v8407_v25 = vld [vmem:[%s16310_s4 + $0x168] sm:$0xff] }
 0x701   : > { %9455 = vmatprep.subr.bf16.mxu1 %v9454_v21  ;;  %8400 = vmatmul.mubr.msk.f32.gmra.mrb[60].mxu0 %vm16703_vm7, %v8392_v23  ;;  %v9368_v23 = vpack.c.bf16 %v3989_v53, %v3987_v43  ;;  %v8404_v21 = vld [vmem:[%s16310_s4 + $0x150] sm:$0xff]  ;;  %vm16713_vm7 = vmmov %vm16650_vm0  ;;  %v10793_v36 = vunpack.i.h.bf16 %v16715_v59  ;;  %v10818_v41 = vunpack.i.h.bf16 %v14566_v51  ;;  %v10817_v44 = vunpack.i.l.bf16 %v14566_v51  ;;  %v8611_v51 = vld [vmem:[%s16310_s4 + $0x488] sm:$0xff] }
 0x702   : > { %3719 = vmatprep.mubr.f32.mxu0 %v16415_v42  ;;  %v6425_v40 = vsel %vm6417_vm10, %v10802_v0, %v10803_v26  ;;  %v8600_v26 = vld [vmem:[%s16310_s4 + $0x470] sm:$0xff] }
 0x703   : > { %8587 = vmatmul.mubr.msk.f32.gmra.mrb[18].mxu1 %vm16704_vm11, %v8579_v15  ;;  %v8583_v15 = vld [vmem:[%s16310_s4 + $0x428] sm:$0xff]  ;;  %vm16714_vm11 = vmmov %vm16650_vm0  ;;  %v6622_v53 = vsel %vm6620_vm14, %v10817_v44, %v10818_v41  ;;  %v16745_v41 = vld [vmem:[#allocation5_spill] sm:$0xff] }
 0x704   : > { %9457 = vmatpush1.bf16.msra.mxu1 %v9456_v45  ;;  %6128 = vmatprep.mubr.f32.mxu1 %v16415_v42  ;;  %v10787_v45 = vunpack.i.l.bf16 %v14505_v19  ;;  %v6420_v19 = vsel %vm6417_vm10, %v10788_v37, %v10772_v52  ;;  %v10823_v52 = vunpack.i.h.bf16 %v14564_v2  ;;  %v8420_v37 = vld [vmem:[%s16310_s4 + $0x190] sm:$0xff] }
 0x705   : > { %9459 = vmatprep.subr.bf16.mxu1 %v9458_v38  ;;  %8401 = vmatmul.mubr.msk.f32.gmra.mrb[62].mxu0 %vm16650_vm0, %v8393_v20  ;;  %v10792_v20 = vunpack.i.l.bf16 %v16715_v59  ;;  %v10827_v59 = vunpack.i.l.bf16 %v14586_v50  ;;  %v8424_v2 = vld [vmem:[%s16310_s4 + $0x1b0] sm:$0xff] }
 0x706   : > { %3884 = vmatprep.mubr.f32.mxu0 %v16415_v42  ;;  %v6418_v38 = vsel %vm6417_vm10, %v10787_v45, %v10767_v33  ;;  %v6624_v43 = vsel %vm6620_vm14, %v10822_v12, %v10823_v52  ;;  %v8421_v45 = vld [vmem:[%s16310_s4 + $0x198] sm:$0xff] }
 0x707   : > { %8588 = vmatmul.mubr.msk.f32.gmra.mrb[20].mxu1 %vm16705_vm15, %v8580_v8  ;;  %v10813_v8 = vunpack.i.h.bf16 %v14545_v6  ;;  %vm16716_vm15 = vmmov %vm16650_vm0  ;;  %v9460_v6 = vpack.c.bf16 %v6420_v19, %v6418_v38  ;;  %v6423_v33 = vsel %vm6417_vm10, %v10792_v20, %v10793_v36  ;;  %v6422_v18 = vsel %vm6417_vm10, %v10812_v35, %v10792_v20  ;;  %v8601_v36 = vld [vmem:[%s16310_s4 + $0x478] sm:$0xff]  ;;  %v8423_v20 = vld [vmem:[%s16310_s4 + $0x1a8] sm:$0xff] }
 0x708   : > { %6134 = vmatprep.mubr.f32.mxu1 %v16415_v42  ;;  %v6621_v19 = vsel %vm6620_vm14, %v10827_v59, %v10817_v44  ;;  %v8425_v35 = vld [vmem:[%s16310_s4 + $0x1b8] sm:$0xff]  ;;  %v16746_v44 = vld [vmem:[#allocation8_spill] sm:$0xff]  ;;  %v8647_v59 = vld [vmem:[%s16310_s4 + $0x528] sm:$0xff] }
 0x709   : > { %8410 = vmatmul.mubr.msk.f32.vlgmr.msra.gmra.mrb[48].mxu0 %vm16706_vm1, %v8402_v16  ;;  %v8408_v16 = vld [vmem:[%s16310_s4 + $0x170] sm:$0xff]  ;;  %v6424_v29 = vsel %vm6417_vm10, %v10813_v8, %v10802_v0  ;;  %vm16717_vm1 = vmmov %vm16650_vm0  ;;  %v8422_v0 = vld [vmem:[%s16310_s4 + $0x1a0] sm:$0xff]  ;;  %v16733_v8 = vpack.c.bf16 %v14637_v34, %v14619_v13  ;;  %v16737_v34 = vpack.c.bf16 %v14664_v56, %v14661_v4 }
 0x70a   : > { %9365 = vmatpush1.bf16.msra.mxu0 %v9364_v7  ;;  %3890 = vmatprep.mubr.f32.mxu0 %v16415_v42  ;;  %v9462_v7 = vpack.c.bf16 %v6425_v40, %v6423_v33  ;;  %vm16718_vm10 = vmmov %vm16650_vm0  ;;  %v16736_v40 = vpack.c.bf16 %v14625_v60, %v14622_v48  ;;  %v8612_v13 = vld [vmem:[%s16310_s4 + $0x490] sm:$0xff]  ;;  %v8613_v48 = vld [vmem:[%s16310_s4 + $0x498] sm:$0xff]  ;;  %v16748_v33 = vpack.c.bf16 %v14745_v54, %v14742_v28 }
 0x70b   : > { %9367 = vmatprep.subr.bf16.mxu0 %v9366_v58  ;;  %8589 = vmatmul.mubr.msk.f32.gmra.mrb[22].mxu1 %vm16707_vm5, %v8581_v31  ;;  %v8595_v31 = vld [vmem:[%s16310_s4 + $0x448] sm:$0xff]  ;;  %v9464_v58 = vpack.c.bf16 %v6424_v29, %v6422_v18  ;;  %vm16719_vm5 = vmmov %vm16650_vm0  ;;  %v8614_v60 = vld [vmem:[%s16310_s4 + $0x4a0] sm:$0xff] }
 0x70c   : > { %6140 = vmatprep.mubr.f32.mxu1 %v16415_v42  ;;  %v8615_v4 = vld [vmem:[%s16310_s4 + $0x4a8] sm:$0xff]  ;;  %v8616_v56 = vld [vmem:[%s16310_s4 + $0x4b0] sm:$0xff]  ;;  %v8617_v52 = vld [vmem:[%s16310_s4 + $0x4b8] sm:$0xff] }
 0x70d   : > { %8411 = vmatmul.mubr.msk.f32.gmra.mrb[50].mxu0 %vm16708_vm12, %v8403_v5  ;;  %v8409_v5 = vld [vmem:[%s16310_s4 + $0x178] sm:$0xff]  ;;  %vm16720_vm12 = vmmov %vm16650_vm0  ;;  %v8628_v18 = vld [vmem:[%s16310_s4 + $0x4d0] sm:$0xff] }
 0x70e   : > { %9369 = vmatpush1.bf16.msra.mxu0 %v9368_v23  ;;  %3896 = vmatprep.mubr.f32.mxu0 %v16415_v42  ;;  %v9466_v23 = vpack.c.bf16 %v6624_v43, %v6622_v53  ;;  %v16751_v29 = vld [vmem:[#allocation9_spill] sm:$0xff]  ;;  %v8630_v28 = vld [vmem:[%s16310_s4 + $0x4e0] sm:$0xff]  ;;  %v16761_v43 = vld [vmem:[#allocation11_spill] sm:$0xff] }
 0x70f   : > { %8590 = vmatmul.mubr.msk.f32.gmra.mrb[24].mxu1 %vm16709_vm2, %v8582_v30  ;;  %v8596_v30 = vld [vmem:[%s16310_s4 + $0x450] sm:$0xff]  ;;  %vm16721_vm2 = vmmov %vm16650_vm0  ;;  %v8629_v54 = vld [vmem:[%s16310_s4 + $0x4d8] sm:$0xff] }
 0x710   : > { %6146 = vmatprep.mubr.f32.mxu1 %v16415_v42  ;;  %v16760_v53 = vld [vmem:[#allocation10_spill] sm:$0xff] }
 0x711   : > { %8412 = vmatmul.mubr.msk.f32.gmra.mrb[52].mxu0 %vm16710_vm6, %v8404_v21  ;;  %v8418_v21 = vld [vmem:[%s16310_s4 + $0x180] sm:$0xff]  ;;  %vm16722_vm6 = vmmov %vm16650_vm0 }
 0x712   : > { %3902 = vmatprep.mubr.f32.mxu0 %v16415_v42 }
 0x713   : > { %8591 = vmatmul.mubr.msk.f32.gmra.mrb[26].mxu1 %vm16711_vm9, %v8583_v15  ;;  %v8597_v15 = vld [vmem:[%s16310_s4 + $0x458] sm:$0xff]  ;;  %vm16723_vm9 = vmmov %vm16650_vm0 }
 0x714   : > { %6152 = vmatprep.mubr.f32.mxu1 %v16415_v42 }
 0x715   : > { %8413 = vmatmul.mubr.msk.f32.gmra.mrb[54].mxu0 %vm16712_vm3, %v8405_v17  ;;  %v8419_v17 = vld [vmem:[%s16310_s4 + $0x188] sm:$0xff]  ;;  %vm16724_vm3 = vmmov %vm16650_vm0 }
 0x716   : > { %3908 = vmatprep.mubr.f32.mxu0 %v16415_v42 }
 0x717   : > { %8592 = vmatmul.mubr.msk.f32.gmra.mrb[28].mxu1 %vm16713_vm7, %v8584_v55  ;;  %v8598_v55 = vld [vmem:[%s16310_s4 + $0x460] sm:$0xff]  ;;  %vm16725_vm7 = vmmov %vm16650_vm0 }
 0x718   : > { %6158 = vmatprep.mubr.f32.mxu1 %v16415_v42 }
 0x719   : > { %8414 = vmatmul.mubr.msk.f32.gmra.mrb[56].mxu0 %vm16714_vm11, %v8406_v61  ;;  %v8599_v61 = vld [vmem:[%s16310_s4 + $0x468] sm:$0xff]  ;;  %vm16726_vm11 = vmmov %vm16650_vm0 }
 0x71a   : > { %3914 = vmatprep.mubr.f32.mxu0 %v16415_v42 }
 0x71b   : > { %8593 = vmatmul.mubr.msk.f32.gmra.mrb[30].mxu1 %vm16650_vm0, %v8585_v63  ;;  %v10828_v63 = vunpack.i.h.bf16 %v14586_v50 }
 0x71c   : > { %6319 = vmatprep.mubr.f32.mxu1 %v16415_v42 }
 0x71d   : > { %8415 = vmatmul.mubr.msk.f32.gmra.mrb[58].mxu0 %vm16716_vm15, %v8407_v25  ;;  %vm16727_vm15 = vmmov %vm16650_vm0  ;;  %v6623_v50 = vsel %vm6620_vm14, %v10828_v63, %v10822_v12  ;;  %v8610_v25 = vld [vmem:[%s16310_s4 + $0x480] sm:$0xff] }
 0x71e   : > { %3920 = vmatprep.mubr.f32.mxu0 %v16415_v42  ;;  %v9468_v38 = vpack.c.bf16 %v6623_v50, %v6621_v19  ;;  %vm16734_vm14 = vmmov %vm16650_vm0  ;;  %v8626_v12 = vld [vmem:[%s16310_s4 + $0x4c0] sm:$0xff]  ;;  %v16779_v19 = vpack.c.bf16 %v14952_v47, %v14955_v39  ;;  %v8660_v47 = vld [vmem:[%s16310_s4 + $0x550] sm:$0xff] }
 0x71f   : > { %8602 = vmatmul.mubr.msk.f32.vlgmr.msra.gmra.mrb[16].mxu1 %vm16717_vm1, %v8594_v24  ;;  %vm16728_vm1 = vmmov %vm16650_vm0  ;;  %v16747_v24 = vpack.c.bf16 %v16745_v41, %v16746_v44  ;;  %v8646_v63 = vld [vmem:[%s16310_s4 + $0x520] sm:$0xff]  ;;  %v8675_v44 = vld [vmem:[%s16310_s4 + $0x588] sm:$0xff] }
 0x720   : > { %9461 = vmatpush1.bf16.msra.mxu1 %v9460_v6  ;;  %6325 = vmatprep.mubr.f32.mxu1 %v16415_v42  ;;  %v8627_v6 = vld [vmem:[%s16310_s4 + $0x4c8] sm:$0xff]  ;;  %v8658_v50 = vld [vmem:[%s16310_s4 + $0x540] sm:$0xff] }
 0x721   : > { %9463 = vmatprep.subr.bf16.mxu1 %v9462_v7  ;;  %8416 = vmatmul.mubr.msk.f32.gmra.mrb[60].mxu0 %vm16718_vm10, %v8408_v16  ;;  %vm16729_vm10 = vmmov %vm16650_vm0  ;;  %v16750_v16 = vpack.c.bf16 %v14769_v49, %v14766_v46  ;;  %v16752_v7 = vpack.c.bf16 %v14797_v11, %v16751_v29  ;;  %v8631_v46 = vld [vmem:[%s16310_s4 + $0x4e8] sm:$0xff]  ;;  %v8632_v49 = vld [vmem:[%s16310_s4 + $0x4f0] sm:$0xff]  ;;  %v11108_v29 = vunpack.i.h.bf16 %v11106_v27 }
 0x722   : > { %3926 = vmatprep.mubr.f32.mxu0 %v16415_v42  ;;  %v8633_v11 = vld [vmem:[%s16310_s4 + $0x4f8] sm:$0xff]  ;;  %v16786_v39 = vld [vmem:[#allocation22_spill] sm:$0xff] }
 0x723   : > { %8603 = vmatmul.mubr.msk.f32.gmra.mrb[18].mxu1 %vm16719_vm5, %v8595_v31  ;;  %vm16730_vm5 = vmmov %vm16650_vm0  ;;  %v8642_v31 = vld [vmem:[%s16310_s4 + $0x500] sm:$0xff] }
 0x724   : > { %9465 = vmatpush1.bf16.msra.mxu1 %v9464_v58  ;;  %6331 = vmatprep.mubr.f32.mxu1 %v16415_v42  ;;  %v16762_v58 = vpack.c.bf16 %v16760_v53, %v16761_v43  ;;  %v8690_v53 = vld [vmem:[%s16310_s4 + $0x5c0] sm:$0xff] }
 0x725   : > { %9467 = vmatprep.subr.bf16.mxu1 %v9466_v23  ;;  %8417 = vmatmul.mubr.msk.f32.gmra.mrb[62].mxu0 %vm16720_vm12, %v8409_v5  ;;  %vm16731_vm12 = vmmov %vm16650_vm0  ;;  %v8643_v5 = vld [vmem:[%s16310_s4 + $0x508] sm:$0xff]  ;;  %v16763_v23 = vld [vmem:[#allocation13_spill] sm:$0xff] }
 0x726   : > { %4087 = vmatprep.mubr.f32.mxu0 %v16415_v42 }
 0x727   : > { %8604 = vmatmul.mubr.msk.f32.gmra.mrb[20].mxu1 %vm16721_vm2, %v8596_v30  ;;  %vm16732_vm2 = vmmov %vm16650_vm0  ;;  %v16764_v30 = vld [vmem:[#allocation12_spill] sm:$0xff] }
 0x728   : > { %6337 = vmatprep.mubr.f32.mxu1 %v16415_v42 }
 0x729   : > { %8426 = vmatmul.mubr.msk.f32.vlgmr.msra.gmra.mrb[48].mxu0 %vm16722_vm6, %v8418_v21  ;;  %vm16735_vm6 = vmmov %vm16650_vm0  ;;  %v16765_v21 = vpack.c.bf16 %v16763_v23, %v16764_v30  ;;  %v8691_v30 = vld [vmem:[%s16310_s4 + $0x5c8] sm:$0xff] }
 0x72a   : > { %4093 = vmatprep.mubr.f32.mxu0 %v16415_v42 }
 0x72b   : > { %8605 = vmatmul.mubr.msk.f32.gmra.mrb[22].mxu1 %vm16723_vm9, %v8597_v15  ;;  %vm16738_vm9 = vmmov %vm16650_vm0  ;;  %v16767_v15 = vld [vmem:[#allocation15_spill] sm:$0xff] }
 0x72c   : > { %6343 = vmatprep.mubr.f32.mxu1 %v16415_v42 }
 0x72d   : > { %8427 = vmatmul.mubr.msk.f32.gmra.mrb[50].mxu0 %vm16724_vm3, %v8419_v17  ;;  %vm16739_vm3 = vmmov %vm16650_vm0  ;;  %v16768_v17 = vld [vmem:[#allocation14_spill] sm:$0xff] }
 0x72e   : > { %4099 = vmatprep.mubr.f32.mxu0 %v16415_v42 }
 0x72f   : > { %8606 = vmatmul.mubr.msk.f32.gmra.mrb[24].mxu1 %vm16725_vm7, %v8598_v55  ;;  %vm16740_vm7 = vmmov %vm16650_vm0  ;;  %v16769_v55 = vpack.c.bf16 %v16767_v15, %v16768_v17  ;;  %v8692_v15 = vld [vmem:[%s16310_s4 + $0x5d0] sm:$0xff] }
 0x730   : > { %6349 = vmatprep.mubr.f32.mxu1 %v16415_v42  ;;  %v8696_v17 = vld [vmem:[%s16310_s4 + $0x5f0] sm:$0xff] }
 0x731   : > { %8428 = vmatmul.mubr.msk.f32.gmra.mrb[52].mxu0 %vm16726_vm11, %v8420_v37  ;;  %vm16741_vm11 = vmmov %vm16650_vm0  ;;  %v8644_v37 = vld [vmem:[%s16310_s4 + $0x510] sm:$0xff] }
 0x732   : > { %4105 = vmatprep.mubr.f32.mxu0 %v16415_v42 }
 0x733   : > { %8607 = vmatmul.mubr.msk.f32.gmra.mrb[26].mxu1 %vm16650_vm0, %v8599_v61  ;;  %v16770_v61 = vld [vmem:[#allocation17_spill] sm:$0xff] }
 0x734   : > { %6355 = vmatprep.mubr.f32.mxu1 %v16415_v42 }
 0x735   : > { %8429 = vmatmul.mubr.msk.f32.gmra.mrb[54].mxu0 %vm16727_vm15, %v8421_v45  ;;  %vm16742_vm15 = vmmov %vm16650_vm0  ;;  %v16771_v45 = vld [vmem:[#allocation16_spill] sm:$0xff] }
 0x736   : > { %4111 = vmatprep.mubr.f32.mxu0 %v16415_v42 }
 0x737   : > { %8608 = vmatmul.mubr.msk.f32.gmra.mrb[28].mxu1 %vm16728_vm1, %v8600_v26  ;;  %vm16743_vm1 = vmmov %vm16650_vm0  ;;  %v16772_v26 = vpack.c.bf16 %v16770_v61, %v16771_v45 }
 0x738   : > { %6361 = vmatprep.mubr.f32.mxu1 %v16415_v42 }
 0x739   : > { %8430 = vmatmul.mubr.msk.f32.gmra.mrb[56].mxu0 %vm16729_vm10, %v8422_v0  ;;  %vm16744_vm10 = vmmov %vm16650_vm0  ;;  %v8645_v0 = vld [vmem:[%s16310_s4 + $0x518] sm:$0xff] }
 0x73a   : > { %4117 = vmatprep.mubr.f32.mxu0 %v16415_v42 }
 0x73b   : > { %8609 = vmatmul.mubr.msk.f32.gmra.mrb[30].mxu1 %vm16730_vm5, %v8601_v36  ;;  %vm16749_vm5 = vmmov %vm16650_vm0  ;;  %v8648_v36 = vld [vmem:[%s16310_s4 + $0x530] sm:$0xff] }
 0x73c   : > { %6522 = vmatprep.mubr.f32.mxu1 %v16415_v42 }
 0x73d   : > { %8431 = vmatmul.mubr.msk.f32.gmra.mrb[58].mxu0 %vm16731_vm12, %v8423_v20  ;;  %vm16753_vm12 = vmmov %vm16650_vm0  ;;  %v8649_v20 = vld [vmem:[%s16310_s4 + $0x538] sm:$0xff] }
 0x73e   : > { %4123 = vmatprep.mubr.f32.mxu0 %v16415_v42 }
 0x73f   : > { %8618 = vmatmul.mubr.msk.f32.vlgmr.msra.gmra.mrb[16].mxu1 %vm16732_vm2, %v8610_v25  ;;  %vm16754_vm2 = vmmov %vm16650_vm0  ;;  %v8659_v25 = vld [vmem:[%s16310_s4 + $0x548] sm:$0xff] }
 0x740   : > { %9469 = vmatpush1.bf16.msra.mxu1 %v9468_v38  ;;  %6528 = vmatprep.mubr.f32.mxu1 %v16415_v42  ;;  %v16780_v38 = vld [vmem:[#allocation18_spill] sm:$0xff] }
 0x741   : > { %9471 = vmatprep.subr.bf16.mxu1 %v16733_v8  ;;  %8432 = vmatmul.mubr.msk.f32.gmra.mrb[60].mxu0 %vm16734_vm14, %v8424_v2  ;;  %vm16755_vm14 = vmmov %vm16650_vm0  ;;  %v16781_v2 = vpack.c.bf16 %v14987_v9, %v16780_v38  ;;  %v16784_v8 = vld [vmem:[#allocation19_spill] sm:$0xff]  ;;  %v8661_v9 = vld [vmem:[%s16310_s4 + $0x558] sm:$0xff] }
 0x742   : > { %4129 = vmatprep.mubr.f32.mxu0 %v16415_v42  ;;  %v8710_v38 = vld [vmem:[%s16310_s4 + $0x620] sm:$0xff] }
 0x743   : > { %8619 = vmatmul.mubr.msk.f32.gmra.mrb[18].mxu1 %vm16735_vm6, %v8611_v51  ;;  %vm16756_vm6 = vmmov %vm16650_vm0  ;;  %v16783_v51 = vld [vmem:[#allocation20_spill] sm:$0xff] }
 0x744   : > { %9473 = vmatpush1.bf16.msra.mxu1 %v16736_v40  ;;  %6534 = vmatprep.mubr.f32.mxu1 %v16415_v42  ;;  %v16787_v40 = vld [vmem:[#allocation21_spill] sm:$0xff] }
 0x745   : > { %9475 = vmatprep.subr.bf16.mxu1 %v16737_v34  ;;  %8433 = vmatmul.mubr.msk.f32.gmra.mrb[62].mxu0 %vm16738_vm9, %v8425_v35  ;;  %vm16757_vm9 = vmmov %vm16650_vm0  ;;  %v16785_v35 = vpack.c.bf16 %v16783_v51, %v16784_v8  ;;  %v8662_v34 = vld [vmem:[%s16310_s4 + $0x560] sm:$0xff]  ;;  %v8711_v8 = vld [vmem:[%s16310_s4 + $0x628] sm:$0xff] }
 0x747   : > { %8620 = vmatmul.mubr.msk.f32.gmra.mrb[20].mxu1 %vm16739_vm3, %v8612_v13  ;;  %vm16758_vm3 = vmmov %vm16650_vm0  ;;  %v16788_v13 = vpack.c.bf16 %v16786_v39, %v16787_v40  ;;  %v8712_v39 = vld [vmem:[%s16310_s4 + $0x630] sm:$0xff] }
 0x748   : > { %6540 = vmatprep.mubr.f32.mxu1 %v16415_v42 }
 0x74b   : > { %8621 = vmatmul.mubr.msk.f32.gmra.mrb[22].mxu1 %vm16740_vm7, %v8613_v48  ;;  %vm16759_vm7 = vmmov %vm16650_vm0  ;;  %v8663_v48 = vld [vmem:[%s16310_s4 + $0x568] sm:$0xff] }
 0x74c   : > { %6546 = vmatprep.mubr.f32.mxu1 %v16415_v42 }
 0x74f   : > { %8622 = vmatmul.mubr.msk.f32.gmra.mrb[24].mxu1 %vm16741_vm11, %v8614_v60  ;;  %vm16766_vm11 = vmmov %vm16650_vm0  ;;  %v8664_v60 = vld [vmem:[%s16310_s4 + $0x570] sm:$0xff] }
 0x750   : > { %6552 = vmatprep.mubr.f32.mxu1 %v16415_v42 }
 0x753   : > { %8623 = vmatmul.mubr.msk.f32.gmra.mrb[26].mxu1 %vm16650_vm0, %v8615_v4  ;;  %v8665_v4 = vld [vmem:[%s16310_s4 + $0x578] sm:$0xff] }
 0x754   : > { %6558 = vmatprep.mubr.f32.mxu1 %v16415_v42 }
 0x757   : > { %8624 = vmatmul.mubr.msk.f32.gmra.mrb[28].mxu1 %vm16742_vm15, %v8616_v56  ;;  %vm16773_vm15 = vmmov %vm16650_vm0  ;;  %v8674_v56 = vld [vmem:[%s16310_s4 + $0x580] sm:$0xff] }
 0x758   : > { %6564 = vmatprep.mubr.f32.mxu1 %v16415_v42 }
 0x75b   : > { %8625 = vmatmul.mubr.msk.f32.gmra.mrb[30].mxu1 %vm16743_vm1, %v8617_v52  ;;  %vm16774_vm1 = vmmov %vm16650_vm0  ;;  %v16795_v52 = vld [vmem:[#allocation24_spill] sm:$0xff] }
 0x75c   : > { %6725 = vmatprep.mubr.f32.mxu1 %v16415_v42 }
 0x75f   : > { %8634 = vmatmul.mubr.msk.f32.vlgmr.msra.gmra.mrb[16].mxu1 %vm16744_vm10, %v8626_v12  ;;  %vm16775_vm10 = vmmov %vm16650_vm0  ;;  %v16796_v12 = vld [vmem:[#allocation23_spill] sm:$0xff] }
 0x760   : > { %9477 = vmatpush1.bf16.msra.mxu1 %v16747_v24  ;;  %6731 = vmatprep.mubr.f32.mxu1 %v16415_v42  ;;  %v16797_v41 = vpack.c.bf16 %v16795_v52, %v16796_v12  ;;  %v16798_v24 = vpack.c.bf16 %v15123_v14, %v15120_v32  ;;  %v8677_v14 = vld [vmem:[%s16310_s4 + $0x598] sm:$0xff]  ;;  %v8678_v32 = vld [vmem:[%s16310_s4 + $0x5a0] sm:$0xff]  ;;  %v7816_v52 = vpop.permute.xlu1 %7815 }
 0x761   : > { %9479 = vmatprep.subr.bf16.mxu1 %v16748_v33  ;;  %v16801_v33 = vld [vmem:[#allocation25_spill] sm:$0xff] }
 0x763   : > { %8635 = vmatmul.mubr.msk.f32.gmra.mrb[18].mxu1 %vm16749_vm5, %v8627_v6  ;;  %vm16776_vm5 = vmmov %vm16650_vm0  ;;  %v16800_v6 = vld [vmem:[#allocation26_spill] sm:$0xff] }
 0x764   : > { %9481 = vmatpush1.bf16.msra.mxu1 %v16750_v16  ;;  %6737 = vmatprep.mubr.f32.mxu1 %v16415_v42  ;;  %v16802_v16 = vpack.c.bf16 %v16800_v6, %v16801_v33 }
 0x765   : > { %9483 = vmatprep.subr.bf16.mxu1 %v16752_v7  ;;  %v11107_v7 = vunpack.i.l.bf16 %v11106_v27 }
 0x767   : > { %8636 = vmatmul.mubr.msk.f32.gmra.mrb[20].mxu1 %vm16753_vm12, %v8628_v18  ;;  %vm16777_vm12 = vmmov %vm16650_vm0  ;;  %v8676_v18 = vld [vmem:[%s16310_s4 + $0x590] sm:$0xff] }
 0x768   : > { %6743 = vmatprep.mubr.f32.mxu1 %v16415_v42 }
 0x76b   : > { %8637 = vmatmul.mubr.msk.f32.gmra.mrb[22].mxu1 %vm16754_vm2, %v8629_v54  ;;  %vm16778_vm2 = vmmov %vm16650_vm0  ;;  %v11093_v54 = vunpack.i.h.bf16 %v15417_v10 }
 0x76c   : > { %6749 = vmatprep.mubr.f32.mxu1 %v16415_v42 }
 0x76f   : > { %8638 = vmatmul.mubr.msk.f32.gmra.mrb[24].mxu1 %vm16755_vm14, %v8630_v28  ;;  %vm16782_vm14 = vmmov %vm16650_vm0  ;;  %v11092_v28 = vunpack.i.l.bf16 %v15417_v10  ;;  %v7643_v10 = vsel %vm7635_vm4, %v11107_v7, %v11108_v29 }
 0x770   : > { %6755 = vmatprep.mubr.f32.mxu1 %v16415_v42 }
 0x771   : > { %v7641_v43 = vsel %vm7635_vm4, %v11092_v28, %v11093_v54  ;;  %v7826_v54 = vpop.permute.xlu1 %7825 }
 0x772   : > { %v9510_v23 = vpack.c.bf16 %v7643_v10, %v7641_v43 }
 0x773   : > { %8639 = vmatmul.mubr.msk.f32.gmra.mrb[26].mxu1 %vm16756_vm6, %v8631_v46  ;;  %vm16789_vm6 = vmmov %vm16650_vm0  ;;  %v11111_v46 = vpop.permute.xlu0 %11110 }
 0x774   : > { %6761 = vmatprep.mubr.f32.mxu1 %v16415_v42 }
 0x777   : > { %8640 = vmatmul.mubr.msk.f32.gmra.mrb[28].mxu1 %vm16757_vm9, %v8632_v49  ;;  %vm16790_vm9 = vmmov %vm16650_vm0  ;;  %v8681_v49 = vld [vmem:[%s16310_s4 + $0x5b8] sm:$0xff] }
 0x778   : > { %6767 = vmatprep.mubr.f32.mxu1 %v16415_v42 }
 0x77b   : > { %8641 = vmatmul.mubr.msk.f32.gmra.mrb[30].mxu1 %vm16758_vm3, %v8633_v11  ;;  %vm16791_vm3 = vmmov %vm16650_vm0  ;;  %v11113_v11 = vunpack.i.h.bf16 %v11111_v46 }
 0x77c   : > { %6928 = vmatprep.mubr.f32.mxu1 %v16415_v42 }
 0x77f   : > { %8650 = vmatmul.mubr.msk.f32.vlgmr.msra.gmra.mrb[16].mxu1 %vm16759_vm7, %v8642_v31  ;;  %vm16792_vm7 = vmmov %vm16650_vm0  ;;  %v11112_v31 = vunpack.i.l.bf16 %v11111_v46 }
 0x780   : > { %9485 = vmatpush1.bf16.msra.mxu1 %v16762_v58  ;;  %6934 = vmatprep.mubr.f32.mxu1 %v16415_v42 }
 0x781   : > { %9487 = vmatprep.subr.bf16.mxu1 %v16765_v21  ;;  %v7640_v58 = vsel %vm7635_vm4, %v11112_v31, %v11092_v28 }
 0x783   : > { %8651 = vmatmul.mubr.msk.f32.gmra.mrb[18].mxu1 %vm16766_vm11, %v8643_v5  ;;  %vm16793_vm11 = vmmov %vm16650_vm0  ;;  %v7642_v5 = vsel %vm7635_vm4, %v11113_v11, %v11107_v7 }
 0x784   : > { %9489 = vmatpush1.bf16.msra.mxu1 %v16769_v55  ;;  %6940 = vmatprep.mubr.f32.mxu1 %v16415_v42  ;;  %v9512_v21 = vpack.c.bf16 %v7642_v5, %v7640_v58  ;;  %vm16811_vm4 = vmmov %vm16650_vm0  ;;  %v8697_v55 = vld [vmem:[%s16310_s4 + $0x5f8] sm:$0xff] }
 0x785   : > { %9491 = vmatprep.subr.bf16.mxu1 %v16772_v26  ;;  %v8707_v26 = vld [vmem:[%s16310_s4 + $0x608] sm:$0xff] }
 0x787   : > { %8652 = vmatmul.mubr.msk.f32.gmra.mrb[20].mxu1 %vm16650_vm0, %v8644_v37  ;;  %v8706_v37 = vld [vmem:[%s16310_s4 + $0x600] sm:$0xff] }
 0x788   : > { %6946 = vmatprep.mubr.f32.mxu1 %v16415_v42 }
 0x78b   : > { %8653 = vmatmul.mubr.msk.f32.gmra.mrb[22].mxu1 %vm16773_vm15, %v8645_v0  ;;  %vm16794_vm15 = vmmov %vm16650_vm0 }
 0x78c   : > { %6952 = vmatprep.mubr.f32.mxu1 %v16415_v42 }
 0x78f   : > { %8654 = vmatmul.mubr.msk.f32.gmra.mrb[24].mxu1 %vm16774_vm1, %v8646_v63  ;;  %vm16799_vm1 = vmmov %vm16650_vm0 }
 0x790   : > { %6958 = vmatprep.mubr.f32.mxu1 %v16415_v42 }
 0x793   : > { %8655 = vmatmul.mubr.msk.f32.gmra.mrb[26].mxu1 %vm16775_vm10, %v8647_v59  ;;  %vm16803_vm10 = vmmov %vm16650_vm0  ;;  %v8708_v59 = vld [vmem:[%s16310_s4 + $0x610] sm:$0xff] }
 0x794   : > { %6964 = vmatprep.mubr.f32.mxu1 %v16415_v42 }
 0x797   : > { %8656 = vmatmul.mubr.msk.f32.gmra.mrb[28].mxu1 %vm16776_vm5, %v8648_v36  ;;  %vm16804_vm5 = vmmov %vm16650_vm0 }
 0x798   : > { %6970 = vmatprep.mubr.f32.mxu1 %v16415_v42 }
 0x79b   : > { %8657 = vmatmul.mubr.msk.f32.gmra.mrb[30].mxu1 %vm16777_vm12, %v8649_v20  ;;  %vm16805_vm12 = vmmov %vm16650_vm0 }
 0x79c   : > { %7131 = vmatprep.mubr.f32.mxu1 %v16415_v42 }
 0x79f   : > { %8666 = vmatmul.mubr.msk.f32.vlgmr.msra.gmra.mrb[16].mxu1 %vm16778_vm2, %v8658_v50  ;;  %vm16806_vm2 = vmmov %vm16650_vm0  ;;  %v8709_v50 = vld [vmem:[%s16310_s4 + $0x618] sm:$0xff] }
 0x7a0   : > { %9493 = vmatpush1.bf16.msra.mxu1 %v16779_v19  ;;  %7137 = vmatprep.mubr.f32.mxu1 %v16415_v42 }
 0x7a1   : > { %9495 = vmatprep.subr.bf16.mxu1 %v16781_v2 }
 0x7a3   : > { %8667 = vmatmul.mubr.msk.f32.gmra.mrb[18].mxu1 %vm16782_vm14, %v8659_v25  ;;  %vm16807_vm14 = vmmov %vm16650_vm0 }
 0x7a4   : > { %9497 = vmatpush1.bf16.msra.mxu1 %v16785_v35  ;;  %7143 = vmatprep.mubr.f32.mxu1 %v16415_v42 }
 0x7a5   : > { %9499 = vmatprep.subr.bf16.mxu1 %v16788_v13 }
 0x7a7   : > { %8668 = vmatmul.mubr.msk.f32.gmra.mrb[20].mxu1 %vm16789_vm6, %v8660_v47  ;;  %vm16808_vm6 = vmmov %vm16650_vm0 }
 0x7a8   : > { %7149 = vmatprep.mubr.f32.mxu1 %v16415_v42 }
 0x7ab   : > { %8669 = vmatmul.mubr.msk.f32.gmra.mrb[22].mxu1 %vm16790_vm9, %v8661_v9  ;;  %vm16809_vm9 = vmmov %vm16650_vm0  ;;  %v8713_v9 = vld [vmem:[%s16310_s4 + $0x638] sm:$0xff] }
 0x7ac   : > { %7155 = vmatprep.mubr.f32.mxu1 %v16415_v42 }
 0x7af   : > { %8670 = vmatmul.mubr.msk.f32.gmra.mrb[24].mxu1 %vm16791_vm3, %v8662_v34  ;;  %vm16810_vm3 = vmmov %vm16650_vm0 }
 0x7b0   : > { %7161 = vmatprep.mubr.f32.mxu1 %v16415_v42 }
 0x7b3   : > { %8671 = vmatmul.mubr.msk.f32.gmra.mrb[26].mxu1 %vm16792_vm7, %v8663_v48  ;;  %vm16812_vm7 = vmmov %vm16650_vm0 }
 0x7b4   : > { %7167 = vmatprep.mubr.f32.mxu1 %v16415_v42 }
 0x7b7   : > { %8672 = vmatmul.mubr.msk.f32.gmra.mrb[28].mxu1 %vm16793_vm11, %v8664_v60  ;;  %vm16813_vm11 = vmmov %vm16650_vm0 }
 0x7b8   : > { %7173 = vmatprep.mubr.f32.mxu1 %v16415_v42 }
 0x7bb   : > { %8673 = vmatmul.mubr.msk.f32.gmra.mrb[30].mxu1 %vm16650_vm0, %v8665_v4 }
 0x7bc   : > { %7334 = vmatprep.mubr.f32.mxu1 %v16415_v42 }
 0x7bf   : > { %8682 = vmatmul.mubr.msk.f32.vlgmr.msra.gmra.mrb[16].mxu1 %vm16794_vm15, %v8674_v56  ;;  %vm16814_vm15 = vmmov %vm16650_vm0 }
 0x7c0   : > { %9501 = vmatpush1.bf16.msra.mxu1 %v16797_v41  ;;  %7340 = vmatprep.mubr.f32.mxu1 %v16415_v42 }
 0x7c1   : > { %9503 = vmatprep.subr.bf16.mxu1 %v16798_v24 }
 0x7c3   : > { %8683 = vmatmul.mubr.msk.f32.gmra.mrb[18].mxu1 %vm16799_vm1, %v8675_v44  ;;  %vm16815_vm1 = vmmov %vm16650_vm0 }
 0x7c4   : > { %9505 = vmatpush1.bf16.msra.mxu1 %v16802_v16  ;;  %7346 = vmatprep.mubr.f32.mxu1 %v16415_v42  ;;  %v7821_v16 = vpop.permute.xlu0 %7820 }
 0x7c5   : > { %9507 = vmatprep.subr.bf16.mxu1 %v9506_v3  ;;  %v8680_v3 = vld [vmem:[%s16310_s4 + $0x5b0] sm:$0xff] }
 0x7c7   : > { %8684 = vmatmul.mubr.msk.f32.gmra.mrb[20].mxu1 %vm16803_vm10, %v8676_v18  ;;  %vm16816_vm10 = vmmov %vm16650_vm0 }
 0x7c8   : > { %7352 = vmatprep.mubr.f32.mxu1 %v16415_v42  ;;  %v7831_v58 = vpop.permute.xlu0 %7830 }
 0x7cb   : > { %8685 = vmatmul.mubr.msk.f32.gmra.mrb[22].mxu1 %vm16804_vm5, %v8677_v14  ;;  %vm16817_vm5 = vmmov %vm16650_vm0 }
 0x7cc   : > { %7358 = vmatprep.mubr.f32.mxu1 %v16415_v42 }
 0x7cf   : > { %8686 = vmatmul.mubr.msk.f32.gmra.mrb[24].mxu1 %vm16805_vm12, %v8678_v32  ;;  %vm16818_vm12 = vmmov %vm16650_vm0 }
 0x7d0   : > { %7364 = vmatprep.mubr.f32.mxu1 %v16415_v42 }
 0x7d3   : > { %8687 = vmatmul.mubr.msk.f32.gmra.mrb[26].mxu1 %vm16806_vm2, %v8679_v62  ;;  %vm16819_vm2 = vmmov %vm16650_vm0 }
 0x7d4   : > { %7370 = vmatprep.mubr.f32.mxu1 %v16415_v42 }
 0x7d7   : > { %8688 = vmatmul.mubr.msk.f32.gmra.mrb[28].mxu1 %vm16807_vm14, %v8680_v3  ;;  %vm16820_vm14 = vmmov %vm16650_vm0 }
 0x7d8   : > { %7376 = vmatprep.mubr.f32.mxu1 %v16415_v42 }
 0x7db   : > { %8689 = vmatmul.mubr.msk.f32.gmra.mrb[30].mxu1 %vm16808_vm6, %v8681_v49  ;;  %vm16821_vm6 = vmmov %vm16650_vm0 }
 0x7dc   : > { %7537 = vmatprep.mubr.f32.mxu1 %v16415_v42 }
 0x7df   : > { %8698 = vmatmul.mubr.msk.f32.vlgmr.msra.gmra.mrb[16].mxu1 %vm16809_vm9, %v8690_v53  ;;  %vm16822_vm9 = vmmov %vm16650_vm0 }
 0x7e0   : > { %9509 = vmatpush1.bf16.msra.mxu1 %v9508_v22  ;;  %7543 = vmatprep.mubr.f32.mxu1 %v16415_v42  ;;  %v8695_v22 = vld [vmem:[%s16310_s4 + $0x5e8] sm:$0xff] }
 0x7e1   : > { %9511 = vmatprep.subr.bf16.mxu1 %v9510_v23 }
 0x7e3   : > { %8699 = vmatmul.mubr.msk.f32.gmra.mrb[18].mxu1 %vm16810_vm3, %v8691_v30  ;;  %vm16823_vm3 = vmmov %vm16650_vm0 }
 0x7e4   : > { %9513 = vmatpush1.bf16.msra.mxu1 %v9512_v21  ;;  %7549 = vmatprep.mubr.f32.mxu1 %v16415_v42 }
 0x7e7   : > { %8700 = vmatmul.mubr.msk.f32.gmra.mrb[20].mxu1 %vm16811_vm4, %v8692_v15  ;;  %vm16825_vm4 = vcmask 1039360  }
 0x7e8   : > { %7555 = vmatprep.mubr.f32.mxu1 %v16415_v42 }
 0x7eb   : > { %8701 = vmatmul.mubr.msk.f32.gmra.mrb[22].mxu1 %vm16812_vm7, %v8693_v1  ;;  %vm16826_vm7 = vmmov %vm16825_vm4 }
 0x7ec   : > { %7561 = vmatprep.mubr.f32.mxu1 %v16415_v42 }
 0x7ef   : > { %8702 = vmatmul.mubr.msk.f32.gmra.mrb[24].mxu1 %vm16813_vm11, %v8694_v57  ;;  %vm16828_vm11 = vmmov %vm16825_vm4 }
 0x7f0   : > { %7567 = vmatprep.mubr.f32.mxu1 %v16415_v42 }
 0x7f3   : > { %8703 = vmatmul.mubr.msk.f32.gmra.mrb[26].mxu1 %vm16650_vm0, %v8695_v22  ;;  %vm16829_vm0 = vmmov %vm16825_vm4 }
 0x7f4   : > { %7573 = vmatprep.mubr.f32.mxu1 %v16415_v42 }
 0x7f7   : > { %8704 = vmatmul.mubr.msk.f32.gmra.mrb[28].mxu1 %vm16814_vm15, %v8696_v17  ;;  %v7836_v17 = vpop.permute.xlu1 %7835  ;;  %vm16830_vm15 = vmmov %vm16829_vm0 }
 0x7f8   : > { %7579 = vmatprep.mubr.f32.mxu1 %v16415_v42 }
 0x7fb   : > { %8705 = vmatmul.mubr.msk.f32.gmra.mrb[30].mxu1 %vm16815_vm1, %v8697_v55  ;;  %vm16831_vm1 = vmmov %vm16829_vm0 }
 0x7fc   : > { %7740 = vmatprep.mubr.f32.mxu1 %v16415_v42  ;;  %v4089_v61 = vpop.f32.mrb[48].mxu0 }
 0x7fd   : > { %v4091_v45 = vpop.f32.mrb[49].mxu0 }
 0x7ff   : > { %8714 = vmatmul.mubr.msk.f32.vlgmr.msra.gmra.mrb[16].mxu1 %vm16816_vm10, %v8706_v37  ;;  %vm16832_vm10 = vmmov %vm16829_vm0 }
 0x800   : > { %7746 = vmatprep.mubr.f32.mxu1 %v16415_v42  ;;  %v4095_v0 = vpop.f32.mrb[50].mxu0 }
 0x801   : > { %v4097_v63 = vpop.f32.mrb[51].mxu0 }
 0x803   : > { %8715 = vmatmul.mubr.msk.f32.gmra.mrb[18].mxu1 %vm16817_vm5, %v8707_v26  ;;  %vm8091_vm5 = vcmask 859136  }
 0x804   : > { %7752 = vmatprep.mubr.f32.mxu1 %v16415_v42  ;;  %v4101_v36 = vpop.f32.mrb[52].mxu0 }
 0x805   : > { %v4103_v20 = vpop.f32.mrb[53].mxu0 }
 0x807   : > { %8716 = vmatmul.mubr.msk.f32.gmra.mrb[20].mxu1 %vm16818_vm12, %v8708_v59  ;;  %vm8224_vm12 = vcmask 400384  }
 0x808   : > { %7758 = vmatprep.mubr.f32.mxu1 %v16415_v42  ;;  %v4107_v19 = vpop.f32.mrb[54].mxu0 }
 0x809   : > { %v4109_v25 = vpop.f32.mrb[55].mxu0 }
 0x80b   : > { %8717 = vmatmul.mubr.msk.f32.gmra.mrb[22].mxu1 %vm16819_vm2, %v8709_v50 }
 0x80c   : > { %7764 = vmatprep.mubr.f32.mxu1 %v16415_v42  ;;  %v4113_v2 = vpop.f32.mrb[56].mxu0 }
 0x80d   : > { %v15979_v51 = vpop.f32.mrb[57].mxu0 }
 0x80f   : > { %8718 = vmatmul.mubr.msk.f32.gmra.mrb[24].mxu1 %vm16820_vm14, %v8710_v38 }
 0x810   : > { %7770 = vmatprep.mubr.f32.mxu1 %v16415_v42  ;;  %v15986_v35 = vpop.f32.mrb[58].mxu0 }
 0x811   : > { %v15988_v47 = vpop.f32.mrb[59].mxu0 }
 0x813   : > { %8719 = vmatmul.mubr.msk.f32.gmra.mrb[26].mxu1 %vm16821_vm6, %v8711_v8 }
 0x814   : > { %7776 = vmatprep.mubr.f32.mxu1 %v16415_v42  ;;  %v15995_v40 = vpop.f32.mrb[60].mxu0 }
 0x815   : > { %v15997_v13 = vpop.f32.mrb[61].mxu0 }
 0x817   : > { %8720 = vmatmul.mubr.msk.f32.gmra.mrb[28].mxu1 %vm16822_vm9, %v8712_v39 }
 0x818   : > { %7782 = vmatprep.mubr.f32.mxu1 %v16415_v42  ;;  %v16004_v34 = vpop.f32.mrb[62].mxu0 }
 0x819   : > { %v16006_v48 = vpop.f32.mrb[63].mxu0 }
 0x81b   : > { %8721 = vmatmul.mubr.msk.f32.gmra.mrb[30].mxu1 %vm16823_vm3, %v8713_v9  ;;  %v8061_v9 = vld [vmem:[%s16312_s6] sm:$0xff] }
 0x8d2   : > { %v7742_v60 = vpop.f32.mrb[16].mxu1 }
 0x8d3   : > { %v9560_v4 = vadd.f32 %v7742_v60, %v4089_v61  ;;  %v7744_v56 = vpop.f32.mrb[17].mxu1  ;;  %v8062_v60 = vld [vmem:[%s16312_s6 + $0x8] sm:$0xff] }
 0x8d4   : > { %v9561_v12 = vadd.f32 %v7744_v56, %v4091_v45 }
 0x8d5   : > { %v16009_v41 = vadd.f32 %v9560_v4, %v7816_v52  ;;  %v8063_v4 = vld [vmem:[%s16312_s6 + $0x10] sm:$0xff] }
 0x8d6   : > { %v16011_v44 = vadd.f32 %v9561_v12, %v7816_v52  ;;  %v7748_v42 = vpop.f32.mrb[18].mxu1  ;;  %v8064_v52 = vld [vmem:[%s16312_s6 + $0x18] sm:$0xff] }
 0x8d7   : > { %v7869_v24 = vmax.f32 %v16009_v41, 0.0  ;;  %v9562_v6 = vadd.f32 %v7748_v42, %v4095_v0  ;;  %v7750_v33 = vpop.f32.mrb[19].mxu1 }
 0x8d8   : > { %v7870_v18 = vmax.f32 %v16011_v44, 0.0  ;;  %v9563_v14 = vadd.f32 %v7750_v33, %v4097_v63 }
 0x8d9   : > { %v16015_v32 = vadd.f32 %v9562_v6, %v7821_v16  ;;  %7901 = vrot.lane.b32.xlu1 %v7869_v24, %s11122_s30 }
 0x8da   : > { %v16020_v62 = vadd.f32 %v9563_v14, %v7821_v16  ;;  %7903 = vrot.lane.b32.xlu0 %v7870_v18, %s11122_s30  ;;  %v7754_v27 = vpop.f32.mrb[20].mxu1  ;;  %v9518_v14 = vpack.c.bf16 %v8064_v52, %v8063_v4  ;;  %v8080_v4 = vld [vmem:[%s16312_s6 + $0x98] sm:$0xff]  ;;  %v8081_v52 = vld [vmem:[%s16312_s6 + $0xa0] sm:$0xff] }
 0x8db   : > { %v7871_v3 = vmax.f32 %v16015_v32, 0.0  ;;  %v9564_v29 = vadd.f32 %v7754_v27, %v4101_v36  ;;  %v7756_v7 = vpop.f32.mrb[21].mxu1  ;;  %v7841_v36 = vpop.permute.xlu0 %7840 }
 0x8dc   : > { %v7872_v28 = vmax.f32 %v16020_v62, 0.0  ;;  %v9565_v46 = vadd.f32 %v7756_v7, %v4103_v20 }
 0x8dd   : > { %v16027_v49 = vadd.f32 %v9564_v29, %v7826_v54  ;;  %7905 = vrot.lane.b32.xlu1 %v7871_v3, %s11122_s30 }
 0x8de   : > { %v16032_v11 = vadd.f32 %v9565_v46, %v7826_v54  ;;  %7907 = vrot.lane.b32.xlu0 %v7872_v28, %s11122_s30  ;;  %v7760_v31 = vpop.f32.mrb[22].mxu1  ;;  %v8065_v54 = vld [vmem:[%s16312_s6 + $0x20] sm:$0xff]  ;;  %v8066_v46 = vld [vmem:[%s16312_s6 + $0x28] sm:$0xff] }
 0x8df   : > { %v7873_v53 = vmax.f32 %v16027_v49, 0.0  ;;  %v9566_v43 = vadd.f32 %v7760_v31, %v4107_v19  ;;  %v7762_v10 = vpop.f32.mrb[23].mxu1  ;;  %v7851_v27 = vpop.permute.xlu0 %7850 }
 0x8e0   : > { %v7874_v5 = vmax.f32 %v16032_v11, 0.0  ;;  %v9567_v23 = vadd.f32 %v7762_v10, %v4109_v25 }
 0x8e1   : > { %v16039_v30 = vadd.f32 %v9566_v43, %v7831_v58  ;;  %7909 = vrot.lane.b32.xlu1 %v7873_v53, %s11122_s30  ;;  %v9521_v43 = vpack.c.bf16 %v8066_v46, %v8065_v54  ;;  %v8086_v54 = vld [vmem:[%s16312_s6 + $0xc8] sm:$0xff] }
 0x8e2   : > { %v16044_v21 = vadd.f32 %v9567_v23, %v7831_v58  ;;  %7911 = vrot.lane.b32.xlu0 %v7874_v5, %s11122_s30  ;;  %v7766_v15 = vpop.f32.mrb[24].mxu1  ;;  %v8067_v58 = vld [vmem:[%s16312_s6 + $0x30] sm:$0xff]  ;;  %v8068_v23 = vld [vmem:[%s16312_s6 + $0x38] sm:$0xff] }
 0x8e3   : > { %v7875_v1 = vmax.f32 %v16039_v30, 0.0  ;;  %v9568_v57 = vadd.f32 %v7766_v15, %v4113_v2  ;;  %v7768_v22 = vpop.f32.mrb[25].mxu1  ;;  %v9524_v15 = vpack.c.bf16 %v8068_v23, %v8067_v58  ;;  %v8088_v58 = vld [vmem:[%s16312_s6 + $0xd8] sm:$0xff] }
 0x8e4   : > { %v7876_v55 = vmax.f32 %v16044_v21, 0.0  ;;  %v9569_v37 = vadd.f32 %v7768_v22, %v15979_v51  ;;  %v8070_v22 = vld [vmem:[%s16312_s6 + $0x48] sm:$0xff] }
 0x8e5   : > { %v16052_v61 = vadd.f32 %v9568_v57, %v7836_v17  ;;  %7913 = vrot.lane.b32.xlu1 %v7875_v1, %s11122_s30  ;;  %v8069_v57 = vld [vmem:[%s16312_s6 + $0x40] sm:$0xff] }
 0x8e6   : > { %v16057_v45 = vadd.f32 %v9569_v37, %v7836_v17  ;;  %7915 = vrot.lane.b32.xlu0 %v7876_v55, %s11122_s30  ;;  %v7772_v26 = vpop.f32.mrb[26].mxu1  ;;  %v9527_v17 = vpack.c.bf16 %v8070_v22, %v8069_v57  ;;  %v8071_v37 = vld [vmem:[%s16312_s6 + $0x50] sm:$0xff]  ;;  %v8090_v57 = vld [vmem:[%s16312_s6 + $0xe8] sm:$0x1] }
 0x8e7   : > { %v7877_v0 = vmax.f32 %v16052_v61, 0.0  ;;  %v9570_v63 = vadd.f32 %v7772_v26, %v15986_v35  ;;  %v7774_v59 = vpop.f32.mrb[27].mxu1  ;;  %v7846_v35 = vpop.permute.xlu1 %7845  ;;  %v8072_v26 = vld [vmem:[%s16312_s6 + $0x58] sm:$0xff] }
 0x8e8   : > { %v7878_v20 = vmax.f32 %v16057_v45, 0.0  ;;  %v9571_v50 = vadd.f32 %v7774_v59, %v15988_v47  ;;  %v8073_v59 = vld [vmem:[%s16312_s6 + $0x60] sm:$0xff] }
 0x8e9   : > { %v16066_v19 = vadd.f32 %v9570_v63, %v7841_v36  ;;  %7917 = vrot.lane.b32.xlu1 %v7877_v0, %s11122_s30  ;;  %v9530_v63 = vpack.c.bf16 %v8072_v26, %v8071_v37 }
 0x8ea   : > { %v16071_v25 = vadd.f32 %v9571_v50, %v7841_v36  ;;  %7919 = vrot.lane.b32.xlu0 %v7878_v20, %s11122_s30  ;;  %v7778_v38 = vpop.f32.mrb[28].mxu1  ;;  %v8074_v36 = vld [vmem:[%s16312_s6 + $0x68] sm:$0xff] }
 0x8eb   : > { %v7879_v2 = vmax.f32 %v16066_v19, 0.0  ;;  %v9572_v51 = vadd.f32 %v7778_v38, %v15995_v40  ;;  %v7780_v8 = vpop.f32.mrb[29].mxu1  ;;  %v11161_v40 = vmov 0.0|0.0   ;;  %v9533_v50 = vpack.c.bf16 %v8074_v36, %v8073_v59  ;;  %v8075_v38 = vld [vmem:[%s16312_s6 + $0x70] sm:$0xff] }
 0x8ec   : > { %v7880_v47 = vmax.f32 %v16071_v25, 0.0  ;;  %v9573_v39 = vadd.f32 %v7780_v8, %v15997_v13  ;;  %9514 = vmatprep.subr.bf16.mxu0 %v11161_v40  ;;  %v9515_v13 = vpack.c.bf16 %v8062_v60, %v8061_v9  ;;  %v8079_v60 = vld [vmem:[%s16312_s6 + $0x90] sm:$0xff] }
 0x8ed   : > { %v16089_v56 = vadd.f32 %v9572_v51, %v7846_v35  ;;  %7921 = vrot.lane.b32.xlu1 %v7879_v2, %s11122_s30  ;;  %v8076_v51 = vld [vmem:[%s16312_s6 + $0x78] sm:$0xff] }
 0x8ee   : > { %v16098_v12 = vadd.f32 %v9573_v39, %v7846_v35  ;;  %7923 = vrot.lane.b32.xlu0 %v7880_v47, %s11122_s30  ;;  %v7784_v42 = vpop.f32.mrb[30].mxu1  ;;  %9516 = vmatpush1.bf16.msra.mxu0 %v9515_v13  ;;  %v9536_v8 = vpack.c.bf16 %v8076_v51, %v8075_v38  ;;  %v8077_v35 = vld [vmem:[%s16312_s6 + $0x80] sm:$0xff]  ;;  %v8078_v39 = vld [vmem:[%s16312_s6 + $0x88] sm:$0xff]  ;;  %v9542_v13 = vpack.c.bf16 %v8080_v4, %v8079_v60 }
 0x8ef   : > { %v7881_v6 = vmax.f32 %v16089_v56, 0.0  ;;  %v9574_v33 = vadd.f32 %v7784_v42, %v16004_v34  ;;  %v7786_v16 = vpop.f32.mrb[31].mxu1  ;;  %9517 = vmatprep.subr.bf16.mxu0 %v11161_v40  ;;  %v9539_v9 = vpack.c.bf16 %v8078_v39, %v8077_v35  ;;  %v8082_v42 = vld [vmem:[%s16312_s6 + $0xa8] sm:$0xff] }
 0x8f0   : > { %v7882_v29 = vmax.f32 %v16098_v12, 0.0  ;;  %v9575_v7 = vadd.f32 %v7786_v16, %v16006_v48  ;;  %v8083_v16 = vld [vmem:[%s16312_s6 + $0xb0] sm:$0xff] }
 0x8f1   : > { %v16114_v31 = vadd.f32 %v9574_v33, %v7851_v27  ;;  %7925 = vrot.lane.b32.xlu1 %v7881_v6, %s11122_s30  ;;  %v9545_v33 = vpack.c.bf16 %v8082_v42, %v8081_v52 }
 0x8f2   : > { %v16119_v34 = vadd.f32 %v9575_v7, %v7851_v27  ;;  %7927 = vrot.lane.b32.xlu0 %v7882_v29, %s11122_s30  ;;  %9519 = vmatpush1.bf16.msra.mxu0 %v9518_v14  ;;  %v8084_v14 = vld [vmem:[%s16312_s6 + $0xb8] sm:$0xff]  ;;  %v8085_v7 = vld [vmem:[%s16312_s6 + $0xc0] sm:$0xff] }
 0x8f3   : > { %v7883_v48 = vmax.f32 %v16114_v31, 0.0  ;;  %9520 = vmatprep.subr.bf16.mxu0 %v11161_v40  ;;  %v9548_v27 = vpack.c.bf16 %v8084_v14, %v8083_v16  ;;  %v9551_v46 = vpack.c.bf16 %v8086_v54, %v8085_v7 }
 0x8f4   : > { %v7884_v10 = vmax.f32 %v16119_v34, 0.0 }
 0x8f5   : > { %7929 = vrot.lane.b32.xlu1 %v7883_v48, %s11122_s30 }
 0x8f6   : > { %7931 = vrot.lane.b32.xlu0 %v7884_v10, %s11122_s30  ;;  %9522 = vmatpush1.bf16.msra.mxu0 %v9521_v43  ;;  %v8087_v43 = vld [vmem:[%s16312_s6 + $0xd0] sm:$0xff] }
 0x8f7   : > { %9523 = vmatprep.subr.bf16.mxu0 %v11161_v40  ;;  %v9554_v23 = vpack.c.bf16 %v8088_v58, %v8087_v43 }
 0x8fa   : > { %9525 = vmatpush1.bf16.msra.mxu0 %v9524_v15  ;;  %v8089_v15 = vld [vmem:[%s16312_s6 + $0xe0] sm:$0xff] }
 0x8fb   : > { %9526 = vmatprep.subr.bf16.mxu0 %v11161_v40  ;;  %v9557_v22 = vpack.c.bf16 %v8090_v57, %v8089_v15 }
 0x8fe   : > { %9528 = vmatpush1.bf16.msra.mxu0 %v9527_v17 }
 0x8ff   : > { %9529 = vmatprep.subr.bf16.mxu0 %v11161_v40 }
 0x902   : > { %9531 = vmatpush1.bf16.msra.mxu0 %v9530_v63 }
 0x903   : > { %9532 = vmatprep.subr.bf16.mxu0 %v11161_v40 }
 0x906   : > { %9534 = vmatpush1.bf16.msra.mxu0 %v9533_v50 }
 0x907   : > { %9535 = vmatprep.subr.bf16.mxu0 %v11161_v40 }
 0x90a   : > { %9537 = vmatpush1.bf16.msra.mxu0 %v9536_v8 }
 0x90b   : > { %9538 = vmatprep.subr.bf16.mxu0 %v11161_v40 }
 0x90e   : > { %9540 = vmatpush1.bf16.msra.mxu0 %v9539_v9 }
 0x90f   : > { %9541 = vmatprep.subr.bf16.mxu0 %v11161_v40 }
 0x912   : > { %9543 = vmatpush1.bf16.msra.mxu0 %v9542_v13 }
 0x913   : > { %9544 = vmatprep.subr.bf16.mxu0 %v11161_v40 }
 0x916   : > { %9546 = vmatpush1.bf16.msra.mxu0 %v9545_v33 }
 0x917   : > { %9547 = vmatprep.subr.bf16.mxu0 %v11161_v40 }
 0x91a   : > { %9549 = vmatpush1.bf16.msra.mxu0 %v9548_v27 }
 0x91b   : > { %9550 = vmatprep.subr.bf16.mxu0 %v11161_v40 }
 0x91e   : > { %9552 = vmatpush1.bf16.msra.mxu0 %v9551_v46 }
 0x91f   : > { %9553 = vmatprep.subr.bf16.mxu0 %v11161_v40 }
 0x922   : > { %9555 = vmatpush1.bf16.msra.mxu0 %v9554_v23 }
 0x923   : > { %9556 = vmatprep.subr.bf16.mxu0 %v11161_v40 }
 0x926   : > { %9559 = vmatpush1.bf16.msk.msra.mxu0 %vm11867_vm13, %v9557_v22  ;;  %vm16827_vm13 = vmmov %vm16825_vm4 }
 0x94b   : > { %v7902_v37 = vpop.permute.xlu1 %7901 }
 0x94c   : > { %v7904_v26 = vpop.permute.xlu0 %7903 }
 0x94d   : > { %v7933_v63 = vsel %vm16825_vm4, %v7902_v37, %v7904_v26  ;;  %v7958_v59 = vmax.f32 %v7870_v18, %v7904_v26 }
 0x94e   : > { %v7957_v40 = vmax.f32 %v7869_v24, %v7933_v63 }
 0x94f   : > { %v7906_v36 = vpop.permute.xlu1 %7905  ;;  %7991 = vrot.lane.b32.xlu0 %v7958_v59, %s11157_s18 }
 0x950   : > { %v7908_v50 = vpop.permute.xlu0 %7907  ;;  %7989 = vrot.lane.b32.xlu1 %v7957_v40, %s11157_s18 }
 0x951   : > { %v7934_v38 = vsel %vm16826_vm7, %v7906_v36, %v7908_v50  ;;  %v7960_v51 = vmax.f32 %v7872_v28, %v7908_v50 }
 0x952   : > { %v7959_v8 = vmax.f32 %v7871_v3, %v7934_v38 }
 0x953   : > { %v7910_v35 = vpop.permute.xlu1 %7909  ;;  %7995 = vrot.lane.b32.xlu0 %v7960_v51, %s11157_s18 }
 0x954   : > { %v7912_v44 = vpop.permute.xlu0 %7911  ;;  %7993 = vrot.lane.b32.xlu1 %v7959_v8, %s11157_s18 }
 0x955   : > { %v7935_v41 = vsel %vm16827_vm13, %v7910_v35, %v7912_v44  ;;  %v7962_v24 = vmax.f32 %v7874_v5, %v7912_v44 }
 0x956   : > { %v7961_v18 = vmax.f32 %v7873_v53, %v7935_v41 }
 0x957   : > { %v7914_v39 = vpop.permute.xlu1 %7913  ;;  %7999 = vrot.lane.b32.xlu0 %v7962_v24, %s11157_s18 }
 0x958   : > { %v7916_v62 = vpop.permute.xlu0 %7915  ;;  %7997 = vrot.lane.b32.xlu1 %v7961_v18, %s11157_s18 }
 0x959   : > { %v7936_v32 = vsel %vm16828_vm11, %v7914_v39, %v7916_v62  ;;  %v7964_v3 = vmax.f32 %v7876_v55, %v7916_v62 }
 0x95a   : > { %v7963_v28 = vmax.f32 %v7875_v1, %v7936_v32 }
 0x95b   : > { %v7918_v9 = vpop.permute.xlu1 %7917  ;;  %8003 = vrot.lane.b32.xlu0 %v7964_v3, %s11157_s18 }
 0x95c   : > { %v7920_v11 = vpop.permute.xlu0 %7919  ;;  %8001 = vrot.lane.b32.xlu1 %v7963_v28, %s11157_s18 }
 0x95d   : > { %v7937_v49 = vsel %vm16829_vm0, %v7918_v9, %v7920_v11  ;;  %v7966_v53 = vmax.f32 %v7878_v20, %v7920_v11 }
 0x95e   : > { %v7965_v5 = vmax.f32 %v7877_v0, %v7937_v49 }
 0x95f   : > { %v7922_v60 = vpop.permute.xlu1 %7921  ;;  %8007 = vrot.lane.b32.xlu0 %v7966_v53, %s11157_s18 }
 0x960   : > { %v7924_v21 = vpop.permute.xlu0 %7923  ;;  %8005 = vrot.lane.b32.xlu1 %v7965_v5, %s11157_s18 }
 0x961   : > { %v7938_v30 = vsel %vm16830_vm15, %v7922_v60, %v7924_v21  ;;  %v7968_v1 = vmax.f32 %v7880_v47, %v7924_v21 }
 0x962   : > { %v7967_v55 = vmax.f32 %v7879_v2, %v7938_v30 }
 0x963   : > { %v7926_v4 = vpop.permute.xlu1 %7925  ;;  %8011 = vrot.lane.b32.xlu0 %v7968_v1, %s11157_s18 }
 0x964   : > { %v7928_v45 = vpop.permute.xlu0 %7927  ;;  %8009 = vrot.lane.b32.xlu1 %v7967_v55, %s11157_s18 }
 0x965   : > { %v7939_v61 = vsel %vm16831_vm1, %v7926_v4, %v7928_v45  ;;  %v7970_v0 = vmax.f32 %v7882_v29, %v7928_v45 }
 0x966   : > { %v7969_v20 = vmax.f32 %v7881_v6, %v7939_v61 }
 0x967   : > { %v7930_v13 = vpop.permute.xlu1 %7929  ;;  %8015 = vrot.lane.b32.xlu0 %v7970_v0, %s11157_s18 }
 0x968   : > { %8013 = vrot.lane.b32.xlu1 %v7969_v20, %s11157_s18  ;;  %v7932_v19 = vpop.permute.xlu0 %7931 }
 0x969   : > { %v7940_v25 = vsel %vm16832_vm10, %v7930_v13, %v7932_v19  ;;  %v7972_v2 = vmax.f32 %v7884_v10, %v7932_v19 }
 0x96a   : > { %v7971_v47 = vmax.f32 %v7883_v48, %v7940_v25 }
 0x96b   : > { %8019 = vrot.lane.b32.xlu0 %v7972_v2, %s11157_s18 }
 0x96c   : > { %8017 = vrot.lane.b32.xlu1 %v7971_v47, %s11157_s18  ;;  %s8733_s18 = sshll.u32 %s16834_s25, 6 }
 0x96d   : > { %s275_s30 = scalar_lea.vmem %s16313_s7, %s8733_s18 }
 0x9c1   : > { %v7992_v56 = vpop.permute.xlu0 %7991 }
 0x9c2   : > { %v8046_v12 = vmax.f32 %v7958_v59, %v7992_v56  ;;  %v7990_v6 = vpop.permute.xlu1 %7989 }
 0x9c3   : > { %v8021_v29 = vsel %vm3779_vm8, %v7990_v6, %v7992_v56 }
 0x9c4   : > { %v8045_v52 = vmax.f32 %v7957_v40, %v8021_v29  ;;  %8723 = vmatprep.mubr.msk.f32.mxu0 %vm8091_vm5, %v8046_v12 }
 0x9c5   : > { %v7996_v42 = vpop.permute.xlu0 %7995 }
 0x9c6   : > { %v8048_v33 = vmax.f32 %v7960_v51, %v7996_v42  ;;  %v7994_v34 = vpop.permute.xlu1 %7993  ;;  %8184 = vmatmul.mubr.f32.vlgmr.msra.gmra.mrb[64].mxu0 %v8045_v52 }
 0x9c7   : > { %v8022_v31 = vsel %vm3779_vm8, %v7994_v34, %v7996_v42 }
 0x9c8   : > { %v8047_v48 = vmax.f32 %v7959_v8, %v8022_v31  ;;  %8724 = vmatprep.mubr.msk.f32.mxu0 %vm8091_vm5, %v8048_v33 }
 0x9c9   : > { %v8000_v10 = vpop.permute.xlu0 %7999 }
 0x9ca   : > { %v8050_v16 = vmax.f32 %v7962_v24, %v8000_v10  ;;  %v7998_v14 = vpop.permute.xlu1 %7997  ;;  %8189 = vmatmul.mubr.f32.gmra.mrb[66].mxu0 %v8047_v48 }
 0x9cb   : > { %v8023_v27 = vsel %vm3779_vm8, %v7998_v14, %v8000_v10 }
 0x9cc   : > { %v8049_v7 = vmax.f32 %v7961_v18, %v8023_v27  ;;  %8725 = vmatprep.mubr.msk.f32.mxu0 %vm8091_vm5, %v8050_v16 }
 0x9cd   : > { %v8004_v54 = vpop.permute.xlu0 %8003 }
 0x9ce   : > { %v8052_v46 = vmax.f32 %v7964_v3, %v8004_v54  ;;  %v8002_v43 = vpop.permute.xlu1 %8001  ;;  %8194 = vmatmul.mubr.f32.gmra.mrb[68].mxu0 %v8049_v7 }
 0x9cf   : > { %v8024_v58 = vsel %vm3779_vm8, %v8002_v43, %v8004_v54 }
 0x9d0   : > { %v8051_v23 = vmax.f32 %v7963_v28, %v8024_v58  ;;  %8726 = vmatprep.mubr.msk.f32.mxu0 %vm8091_vm5, %v8052_v46 }
 0x9d1   : > { %v8008_v15 = vpop.permute.xlu0 %8007 }
 0x9d2   : > { %v8054_v57 = vmax.f32 %v7966_v53, %v8008_v15  ;;  %v8006_v22 = vpop.permute.xlu1 %8005  ;;  %8199 = vmatmul.mubr.f32.gmra.mrb[70].mxu0 %v8051_v23 }
 0x9d3   : > { %v8025_v17 = vsel %vm3779_vm8, %v8006_v22, %v8008_v15 }
 0x9d4   : > { %v8053_v37 = vmax.f32 %v7965_v5, %v8025_v17  ;;  %8727 = vmatprep.mubr.msk.f32.mxu0 %vm8091_vm5, %v8054_v57 }
 0x9d5   : > { %v8012_v26 = vpop.permute.xlu0 %8011 }
 0x9d6   : > { %v8056_v63 = vmax.f32 %v7968_v1, %v8012_v26  ;;  %v8010_v59 = vpop.permute.xlu1 %8009  ;;  %8204 = vmatmul.mubr.f32.gmra.mrb[72].mxu0 %v8053_v37 }
 0x9d7   : > { %v8026_v40 = vsel %vm3779_vm8, %v8010_v59, %v8012_v26 }
 0x9d8   : > { %v8055_v36 = vmax.f32 %v7967_v55, %v8026_v40  ;;  %8728 = vmatprep.mubr.msk.f32.mxu0 %vm8091_vm5, %v8056_v63 }
 0x9d9   : > { %v8016_v50 = vpop.permute.xlu0 %8015 }
 0x9da   : > { %v8058_v38 = vmax.f32 %v7970_v0, %v8016_v50  ;;  %v8014_v51 = vpop.permute.xlu1 %8013  ;;  %8209 = vmatmul.mubr.f32.gmra.mrb[74].mxu0 %v8055_v36 }
 0x9db   : > { %v8027_v8 = vsel %vm3779_vm8, %v8014_v51, %v8016_v50 }
 0x9dc   : > { %v8057_v35 = vmax.f32 %v7969_v20, %v8027_v8  ;;  %8729 = vmatprep.mubr.msk.f32.mxu0 %vm8091_vm5, %v8058_v38 }
 0x9dd   : > { %v8020_v44 = vpop.permute.xlu0 %8019 }
 0x9de   : > { %v8060_v41 = vmax.f32 %v7972_v2, %v8020_v44  ;;  %v8018_v24 = vpop.permute.xlu1 %8017  ;;  %8214 = vmatmul.mubr.f32.gmra.mrb[76].mxu0 %v8057_v35 }
 0x9df   : > { %v8028_v18 = vsel %vm3779_vm8, %v8018_v24, %v8020_v44 }
 0x9e0   : > { %v8059_v39 = vmax.f32 %v7971_v47, %v8028_v18  ;;  %8730 = vmatprep.mubr.msk.f32.mxu0 %vm8091_vm5, %v8060_v41 }
 0x9e2   : > { %8219 = vmatmul.mubr.f32.gmra.mrb[78].mxu0 %v8059_v39 }
 0xa99   : > { %v8185_v62 = vpop.f32.mrb[64].mxu0 }
 0xa9a   : > { %8225 = vst.msk [vmem:[%s275_s30] sm:$0xff] %vm8224_vm12, %v8185_v62  ;;  %v8187_v32 = vpop.f32.mrb[65].mxu0 }
 0xa9d   : > { %v8190_v3 = vpop.f32.mrb[66].mxu0 }
 0xa9e   : > { %8226 = vst.msk [vmem:[%s275_s30 + $0x8] sm:$0xff] %vm8224_vm12, %v8190_v3  ;;  %v8192_v28 = vpop.f32.mrb[67].mxu0 }
 0xaa1   : > { %v8195_v9 = vpop.f32.mrb[68].mxu0 }
 0xaa2   : > { %8227 = vst.msk [vmem:[%s275_s30 + $0x10] sm:$0xff] %vm8224_vm12, %v8195_v9  ;;  %v8197_v11 = vpop.f32.mrb[69].mxu0 }
 0xaa5   : > { %v8200_v49 = vpop.f32.mrb[70].mxu0 }
 0xaa6   : > { %8228 = vst.msk [vmem:[%s275_s30 + $0x18] sm:$0xff] %vm8224_vm12, %v8200_v49  ;;  %v8202_v53 = vpop.f32.mrb[71].mxu0 }
 0xaa9   : > { %v8205_v5 = vpop.f32.mrb[72].mxu0 }
 0xaaa   : > { %8229 = vst.msk [vmem:[%s275_s30 + $0x20] sm:$0xff] %vm8224_vm12, %v8205_v5  ;;  %v8207_v60 = vpop.f32.mrb[73].mxu0 }
 0xaad   : > { %v8210_v21 = vpop.f32.mrb[74].mxu0 }
 0xaae   : > { %8230 = vst.msk [vmem:[%s275_s30 + $0x28] sm:$0xff] %vm8224_vm12, %v8210_v21  ;;  %v8212_v30 = vpop.f32.mrb[75].mxu0 }
 0xab1   : > { %v8215_v1 = vpop.f32.mrb[76].mxu0 }
 0xab2   : > { %8231 = vst.msk [vmem:[%s275_s30 + $0x30] sm:$0xff] %vm8224_vm12, %v8215_v1  ;;  %v8217_v55 = vpop.f32.mrb[77].mxu0 }
 0xab5   : > { %v8220_v4 = vpop.f32.mrb[78].mxu0 }
 0xab6   : > { %8232 = vst.msk [vmem:[%s275_s30 + $0x38] sm:$0xff] %vm8224_vm12, %v8220_v4  ;;  %v8222_v45 = vpop.f32.mrb[79].mxu0 }
 0xab7 PF: > { %s17_s24 = sadd.s32 1, %s11120_s24  }
 0xab8   : > { %p14_p4 = scmp.ge.s32.totalorder %s17_s24, 4  }
 0xaba   :  { %16 = sbr.rel (!%p14_p4) target bundleno = 1 (0x1), region = 102 }

// kernel: cnn_forward.3
= control target key start
LH: loop header
LB: loop body
LE: loop exit
PB: predicated region body
PF: predicated region fallthrough
CT: control target
= control target key end

     0   :  { %10 = vsyncpa [#allocation3], 0  ;;  %s10081_s0 = inlined_call_operand.vmem [shape: f32[2,3136], index: 0, kind: input, shape index: {}]   ;;  %s10082_s1 = inlined_call_operand.hbm [shape: bf16[3136,2048], index: 1, kind: input, shape index: {}]   ;;  %s10083_s2 = inlined_call_operand.vmem [shape: f32[1,2048], index: 2, kind: input, shape index: {}]   ;;  %s10084_s3 = inlined_call_operand.vmem [shape: f32[2048,128], index: 3, kind: input, shape index: {}]   ;;  %s10085_s4 = inlined_call_operand.vmem [shape: f32[1,128], index: 4, kind: input, shape index: {}]   ;;  %s10086_s5 = inlined_call_operand.hbm [shape: f32[2,128], index: 5, kind: output, shape index: {}]  }
   0x1   :  { %12 = vsyncpa [#allocation3 + $0x1], 0 }
   0x2   :  { %13 = vsyncpa [#allocation4], 0  ;;  %s8950_s18 = smov 0   ;;  %s8952_s19 = smov 0  }
   0x3   :  { %s8954_s20 = smov 0   ;;  %s8956_s21 = smov 0  }
   0x4 LB: > { %s8969_s22 = sadd.s32 4294967295, %s8911_s21   ;;  %s8972_s23 = sadd.s32 1, %s8911_s21   ;;  %s8911_s21 = sphi %s8956_s21, %s10092_s21   ;;  %s8907_s20 = sphi %s8954_s20, %s10091_s20   ;;  %s8903_s19 = sphi %s8952_s19, %s10090_s19   ;;  %s8899_s18 = sphi %s8950_s18, %s10089_s18  }
   0x5   : > { %s44_s24 = ssub.s32 %s8911_s21, %s8972_s23  ;;  %s47_s25 = sadd.s32 1, %s8907_s20 }
   0x6   : > { %p45_p0 = scmp.eq.s32.totalorder %s44_s24, 0  ;;  %p54_p1 = scmp.ne.s32.totalorder %s8907_s20, %s8903_s19 }
   0x7   : > { %p55_p2 = scmp.eq.s32.totalorder %s8911_s21, 0  ;;  %p60_p3 = scmp.ne.s32.totalorder %s8903_s19, %s8899_s18 }
   0x8   : > { %s8982_s26 = scalar_select %p45_p0, %s8907_s20, %s47_s25  }
   0x9   : > { %p56_p4 = por %p55_p2, %p54_p1  ;;  %p61_p5 = scmp.eq.s32.totalorder %s8969_s22, 0 }
   0xa   : > { %p7594_p6 = scmp.lt.s32.totalorder %s8911_s21, 4  ;;  %s184_s28 = sand.u32 1, %s8907_s20  }
   0xb   : > { %p8986_p7 = por %p61_p5, %p60_p3  ;;  %s7582_s29 = smul.u32 6272, %s184_s28 }
   0xc   : > { %s7347_s30 = sshll.u32 %s8911_s21, 8  ;;  %p8992_p8 = pnand %p7594_p6, %p56_p4 }
   0xd   : > { %s8999_s9 = scalar_lea.hbm %s10082_s1, %s7347_s30  ;;  %s188_s10 = scalar_lea.vmem [#allocation2], %s7582_s29 }
   0xe   : > { %s195_s11 = sshll.u32 %s188_s10, 4  ;;  %s9003_s12 = scalar_lea.sflag [#allocation3], %s184_s28  ;;  %s9001_s11 = int_to_ptr.vmem [resolvable:$true] %s195_s11 }
   0xf   : > { %s8817_s13 = scalar_lea.hbm %s8999_s9, 100352  ;;  %p8819_p10 = pneg %p8992_p8 }
  0x10   : > { %p8818_p9 = scmp.ne.s32.totalorder %s8999_s9, %s8817_s13  ;;  %s8822_s16 = scalar_lea.hbm %s10082_s1, 401408 }
  0x11   : > { %p8823_p13 = scmp.lt.u32.totalorder %s8999_s9, %s10082_s1  ;;  %p8824_p0 = scmp.lt.u32.totalorder %s8822_s16, %s8817_s13 }
  0x12   : > { %p8820_p11 = pnand %p8819_p10, %p8818_p9  ;;  %p8826_p2 = scmp.lt.u32.totalorder %s8817_s13, %s8999_s9 }
  0x13   : > { %p8825_p1 = por %p8824_p0, %p8823_p13 }
  0x14   : > { %p8821_p12 = pneg %p8820_p11 }
  0x15   : > { %p8827_p3 = por %p8826_p2, %p8825_p1 }
  0x17   : > { %p8828_p4 = pnand %p8827_p3, %p8821_p12 }
  0x19   : > { %8831 = shalt.err (!%p8828_p4)
}
  0x1a   : > { %s8832_s24 = scalar_lea.vmem %s9001_s11, 100352  ;;  %s8913_s25 = smov [#allocation2]  }
  0x1b   : > { %p8833_p5 = scmp.ne.s32.totalorder %s9001_s11, %s8832_s24  ;;  %s8837_s28 = sshll.u32 %s8913_s25, 4  ;;  %s8838_s28 = int_to_ptr.vmem [resolvable:$false] %s8837_s28 }
  0x1c   : > { %s8839_s29 = scalar_lea.vmem %s8838_s28, 200704  ;;  %p8840_p11 = scmp.lt.s32.totalorder %s9001_s11, %s8838_s28 }
  0x1d   : > { %p8835_p6 = pnand %p8833_p5, %p8819_p10  ;;  %p8841_p13 = scmp.lt.s32.totalorder %s8839_s29, %s8832_s24 }
  0x1f   : > { %p8836_p9 = pneg %p8835_p6  ;;  %p8842_p0 = por %p8841_p13, %p8840_p11 }
  0x21   : > { %p8843_p1 = pnand %p8842_p0, %p8836_p9 }
  0x23   : > { %8846 = shalt.err (!%p8843_p1)
}
  0x24   : > { %s8914_s30 = smov 1024   ;;  %s8915_s7 = smov 256  }
  0x25   : > { %s8916_s8 = smov 16   ;;  %p6550_p10 = scmp.ge.s32.totalorder %s8911_s21, 1 }
  0x26   : > { %7593 = dma.hbm_to_vmem [thread:$0]  (!%p8992_p8), %s8999_s9, 100352, %s9001_s11, %s9003_s12, %s8914_s30, %s8915_s7, %s8916_s8  }
  0x27   : > { %p220_p12 = scmp.lt.s32.totalorder %s8911_s21, 5 }
  0x29   : > { %p221_p2 = pnand %p6550_p10, %p220_p12 }
  0x2a   : > { %s226_s10 = sand.u32 (!%p221_p2), 1, %s8903_s19  }
  0x2b   : > { %224 = sbr.rel (%p221_p2) target bundleno = 1300 (0x514), region = 40  ;;  %s227_s14 = scalar_lea.sflag (!%p221_p2), [#allocation3], %s226_s10 }
  0x2c   : > { %s7583_s13 = smul.u32 (!%p221_p2), 6272, %s226_s10 }
  0x2e   : > { %s9034_s15 = scalar_lea.vmem (!%p221_p2), [#allocation2], %s7583_s13 }
  0x32   : > { %8890 = dma.done.wait (%p8986_p7), %s227_s14, 100352  }
  0x33   : > { %8892 = vsyncadd (%p8986_p7), %s227_s14, 4294866944  ;;  %s6551_s6 = sshll.u32 %s8969_s22, 2  ;;  %s6552_s9 = sshll.u32 %s8969_s22, 6 }
  0x34   : > { %p263_p8 = scmp.lt.s32.totalorder %s6551_s6, 15  ;;  %p268_p3 = scmp.lt.s32.totalorder %s6552_s9, 255 }
  0x35   : > { %p6554_p7 = scmp.ne.s32.totalorder %s8969_s22, 0 }
  0x36   : > { %s10094_s6 = smov (!%p263_p8, %s6551_s6), 15  ;;  %s10096_s9 = smov (!%p268_p3, %s6552_s9), 255 }
  0x37   : > { %s265_s12 = scalar_lea.vmem %s10083_s2, %s10094_s6  ;;  %s6553_s16 = sshll.u32 %s10096_s9, 3  ;;  %v6555_v0 = vld [vmem:[%s10085_s4] ss:$0 sm:$0xff] (!%p6554_p7) }
  0x38   : > { %s9051_s27 = scalar_lea.vmem %s10084_s3, %s6553_s16  ;;  %277 = sbr.rel (%p6554_p7) target bundleno = 63 (0x3f), region = 48  ;;  %286 = vst [vmem:[#allocation5] sm:$0x3] (!%p6554_p7), %v6555_v0 }
  0x3f PF: > { %v7635_v1 = vld [vmem:[%s9034_s15 + $0x4] ss:$16 sps:$4 sm:$0xff]   ;;  %v7637_v2 = vld [vmem:[%s9034_s15 + $0xc] ss:$16 sps:$4 sm:$0xff]   ;;  %v7639_v3 = vld [vmem:[%s9034_s15] ss:$16 sps:$4 sm:$0xff]   ;;  %v305_v39 = vlaneseq }
  0x40   : > { %5190 = vmatprep.subr.bf16.mxu0 %v7635_v1  ;;  %v7640_v4 = vld [vmem:[%s9034_s15 + $0x8] ss:$16 sps:$4 sm:$0xff]   ;;  %5723 = vmatprep.subr.bf16.mxu1 %v7637_v2  ;;  %v7641_v5 = vld [vmem:[%s9034_s15 + $0x24] ss:$16 sps:$4 sm:$0xff]   ;;  %v7643_v6 = vld [vmem:[%s9034_s15 + $0x2c] ss:$16 sps:$4 sm:$0xff]  }
  0x41   : > { %5191 = vmatpush1.bf16.msra.mxu0 %v7639_v3  ;;  %5724 = vmatpush1.bf16.msra.mxu1 %v7640_v4  ;;  %v7645_v7 = vld [vmem:[%s9034_s15 + $0x20] ss:$16 sps:$4 sm:$0xff]   ;;  %v7646_v8 = vld [vmem:[%s9034_s15 + $0x28] ss:$16 sps:$4 sm:$0xff]   ;;  %v7647_v9 = vld [vmem:[%s9034_s15 + $0x44] ss:$16 sps:$4 sm:$0xff]  }
  0x42   : > { %5192 = vmatprep.subr.bf16.mxu0 %v7641_v5  ;;  %5725 = vmatprep.subr.bf16.mxu1 %v7643_v6  ;;  %v7649_v10 = vld [vmem:[%s9034_s15 + $0x4c] ss:$16 sps:$4 sm:$0xff]   ;;  %v7651_v11 = vld [vmem:[%s9034_s15 + $0x40] ss:$16 sps:$4 sm:$0xff]   ;;  %v7652_v12 = vld [vmem:[%s9034_s15 + $0x48] ss:$16 sps:$4 sm:$0xff]  }
  0x43   : > { %v7653_v13 = vld [vmem:[%s9034_s15 + $0x64] ss:$16 sps:$4 sm:$0xff]   ;;  %v7655_v14 = vld [vmem:[%s9034_s15 + $0x6c] ss:$16 sps:$4 sm:$0xff]   ;;  %v7657_v15 = vld [vmem:[%s9034_s15 + $0x60] ss:$16 sps:$4 sm:$0xff]  }
  0x44   : > { %v7658_v16 = vld [vmem:[%s9034_s15 + $0x68] ss:$16 sps:$4 sm:$0xff]   ;;  %v7659_v17 = vld [vmem:[%s9034_s15 + $0x84] ss:$16 sps:$4 sm:$0xff]   ;;  %v7661_v18 = vld [vmem:[%s9034_s15 + $0x8c] ss:$16 sps:$4 sm:$0xff]  }
  0x45   : > { %5193 = vmatpush1.bf16.msra.mxu0 %v7645_v7  ;;  %5726 = vmatpush1.bf16.msra.mxu1 %v7646_v8  ;;  %v7663_v19 = vld [vmem:[%s9034_s15 + $0x80] ss:$16 sps:$4 sm:$0xff]   ;;  %v7664_v20 = vld [vmem:[%s9034_s15 + $0x88] ss:$16 sps:$4 sm:$0xff]   ;;  %v7665_v21 = vld [vmem:[%s9034_s15 + $0xa4] ss:$16 sps:$4 sm:$0xff]  }
  0x46   : > { %5194 = vmatprep.subr.bf16.mxu0 %v7647_v9  ;;  %5727 = vmatprep.subr.bf16.mxu1 %v7649_v10  ;;  %v7667_v22 = vld [vmem:[%s9034_s15 + $0xac] ss:$16 sps:$4 sm:$0xff]   ;;  %v7669_v23 = vld [vmem:[%s9034_s15 + $0xa0] ss:$16 sps:$4 sm:$0xff]   ;;  %v7670_v24 = vld [vmem:[%s9034_s15 + $0xa8] ss:$16 sps:$4 sm:$0xff]  }
  0x47   : > { %v7671_v25 = vld [vmem:[%s9034_s15 + $0xc4] ss:$16 sps:$4 sm:$0xff]   ;;  %v7673_v26 = vld [vmem:[%s9034_s15 + $0xcc] ss:$16 sps:$4 sm:$0xff]   ;;  %v7675_v27 = vld [vmem:[%s9034_s15 + $0xc0] ss:$16 sps:$4 sm:$0xff]  }
  0x48   : > { %v7676_v28 = vld [vmem:[%s9034_s15 + $0xc8] ss:$16 sps:$4 sm:$0xff]   ;;  %v7677_v29 = vld [vmem:[%s9034_s15 + $0xe4] ss:$16 sps:$4 sm:$0xff]   ;;  %v7679_v30 = vld [vmem:[%s9034_s15 + $0xec] ss:$16 sps:$4 sm:$0xff]  }
  0x49   : > { %5195 = vmatpush1.bf16.msra.mxu0 %v7651_v11  ;;  %5728 = vmatpush1.bf16.msra.mxu1 %v7652_v12  ;;  %v7681_v31 = vld [vmem:[%s9034_s15 + $0xe0] ss:$16 sps:$4 sm:$0xff]   ;;  %v7682_v32 = vld [vmem:[%s9034_s15 + $0xe8] ss:$16 sps:$4 sm:$0xff]   ;;  %v7683_v33 = vld [vmem:[%s9034_s15 + $0x104] ss:$16 sps:$4 sm:$0xff]  }
  0x4a   : > { %5196 = vmatprep.subr.bf16.mxu0 %v7653_v13  ;;  %5729 = vmatprep.subr.bf16.mxu1 %v7655_v14  ;;  %v7685_v34 = vld [vmem:[%s9034_s15 + $0x10c] ss:$16 sps:$4 sm:$0xff]   ;;  %v7687_v35 = vld [vmem:[%s9034_s15 + $0x100] ss:$16 sps:$4 sm:$0xff]   ;;  %v7688_v36 = vld [vmem:[%s9034_s15 + $0x108] ss:$16 sps:$4 sm:$0xff]  }
  0x4b   : > { %v8917_v37 = vmov 1983009808   ;;  %v7689_v40 = vld [vmem:[%s9034_s15 + $0x124] ss:$16 sps:$4 sm:$0xff]   ;;  %v7691_v41 = vld [vmem:[%s9034_s15 + $0x12c] ss:$16 sps:$4 sm:$0xff]  }
  0x4c   : > { %v303_v38 = vunpack.c.l.s4 %v8917_v37  ;;  %v7693_v42 = vld [vmem:[%s9034_s15 + $0x120] ss:$16 sps:$4 sm:$0xff]   ;;  %v9096_v44 = vshrl.u32 %v305_v39, 7  ;;  %v7694_v45 = vld [vmem:[%s9034_s15 + $0x128] ss:$16 sps:$4 sm:$0xff]   ;;  %vm5186_vm0 = vcmask 523264  }
  0x4d   : > { %5197 = vmatpush1.bf16.msra.mxu0 %v7657_v15  ;;  %5730 = vmatpush1.bf16.msra.mxu1 %v7658_v16  ;;  %v7695_v46 = vld [vmem:[%s9034_s15 + $0x144] ss:$16 sps:$4 sm:$0xff]   ;;  %v7697_v47 = vld [vmem:[%s9034_s15 + $0x14c] ss:$16 sps:$4 sm:$0xff]   ;;  %v7699_v48 = vld [vmem:[%s9034_s15 + $0x140] ss:$16 sps:$4 sm:$0xff]  }
  0x4e   : > { %5198 = vmatprep.subr.bf16.mxu0 %v7659_v17  ;;  %5731 = vmatprep.subr.bf16.mxu1 %v7661_v18  ;;  %v304_v43 = vunpack.c.0.s8 %v303_v38  ;;  %v7700_v49 = vld [vmem:[%s9034_s15 + $0x148] ss:$16 sps:$4 sm:$0xff]   ;;  %v7701_v51 = vld [vmem:[%s9034_s15 + $0x164] ss:$16 sps:$4 sm:$0xff]   ;;  %v7703_v52 = vld [vmem:[%s9034_s15 + $0x16c] ss:$16 sps:$4 sm:$0xff]  }
  0x4f   : > { %v287_v53 = vld [vmem:[%s10081_s0] sm:$0xff]  ;;  %v7706_v56 = vld [vmem:[%s9034_s15 + $0x168] ss:$16 sps:$4 sm:$0xff]   ;;  %v7709_v58 = vld [vmem:[%s9034_s15 + $0x18c] ss:$16 sps:$4 sm:$0xff]   ;;  %s8919_s6 = smov [#allocation5]  }
  0x50   : > { %v9104_v50 = vsub.s32 %v304_v43, %v9096_v44  ;;  %v7705_v54 = vld [vmem:[%s9034_s15 + $0x160] ss:$16 sps:$4 sm:$0xff]   ;;  %v7707_v57 = vld [vmem:[%s9034_s15 + $0x184] ss:$16 sps:$4 sm:$0xff]   ;;  %v7712_v62 = vld [vmem:[%s9034_s15 + $0x188] ss:$16 sps:$4 sm:$0xff]   ;;  %v301_v5 = vcombine.high %v287_v53, %v287_v53 }
  0x51   : > { %5199 = vmatpush1.bf16.msra.mxu0 %v7663_v19  ;;  %5732 = vmatpush1.bf16.msra.mxu1 %v7664_v20  ;;  %v7711_v60 = vld [vmem:[%s9034_s15 + $0x180] ss:$16 sps:$4 sm:$0xff]   ;;  %v7713_v63 = vld [vmem:[%s9034_s15 + $0x1a4] ss:$16 sps:$4 sm:$0xff]   ;;  %v7715_v0 = vld [vmem:[%s9034_s15 + $0x1ac] ss:$16 sps:$4 sm:$0xff]  }
  0x52   : > { %5200 = vmatprep.subr.bf16.mxu0 %v7665_v21  ;;  %5733 = vmatprep.subr.bf16.mxu1 %v7667_v22  ;;  %v308_v55 = vrot.slane %v287_v53, %v9104_v50  ;;  %v7717_v1 = vld [vmem:[%s9034_s15 + $0x1a0] ss:$16 sps:$4 sm:$0xff]   ;;  %v7718_v2 = vld [vmem:[%s9034_s15 + $0x1a8] ss:$16 sps:$4 sm:$0xff]   ;;  %v7719_v3 = vld [vmem:[%s9034_s15 + $0x1c4] ss:$16 sps:$4 sm:$0xff]   ;;  %v9129_v10 = vrot.slane %v301_v5, %v9104_v50 }
  0x53   : > { %v7721_v4 = vld [vmem:[%s9034_s15 + $0x1cc] ss:$16 sps:$4 sm:$0xff]   ;;  %v7723_v6 = vld [vmem:[%s9034_s15 + $0x1c0] ss:$16 sps:$4 sm:$0xff]   ;;  %v7724_v7 = vld [vmem:[%s9034_s15 + $0x1c8] ss:$16 sps:$4 sm:$0xff]  }
  0x54   : > { %v316_v59 = vcombine.high %v308_v55, %v308_v55  ;;  %v7725_v8 = vld [vmem:[%s9034_s15 + $0x1e4] ss:$16 sps:$4 sm:$0xff]   ;;  %v7727_v9 = vld [vmem:[%s9034_s15 + $0x1ec] ss:$16 sps:$4 sm:$0xff]   ;;  %v7729_v11 = vld [vmem:[%s9034_s15 + $0x1e0] ss:$16 sps:$4 sm:$0xff]   ;;  %v317_v15 = vcombine.high %v9129_v10, %v9129_v10  ;;  %v435_v17 = vpack.c.bf16 %v308_v55, %v308_v55 }
  0x55   : > { %5201 = vmatpush1.bf16.msra.mxu0 %v7669_v23  ;;  %5734 = vmatpush1.bf16.msra.mxu1 %v7670_v24  ;;  %v7730_v12 = vld [vmem:[%s9034_s15 + $0x1e8] ss:$16 sps:$4 sm:$0xff]   ;;  %v7734_v13 = vld [vmem:[%s9034_s15 + $0x204] ss:$16 sps:$4 sm:$0xff]   ;;  %v7737_v14 = vld [vmem:[%s9034_s15 + $0x20c] ss:$16 sps:$4 sm:$0xff]  }
  0x56   : > { %5202 = vmatprep.subr.bf16.mxu0 %v7671_v25  ;;  %5735 = vmatprep.subr.bf16.mxu1 %v7673_v26  ;;  %v436_v61 = vpack.c.bf16 %v316_v59, %v316_v59  ;;  %v7732_v16 = vld [vmem:[%s9034_s15 + $0x200] ss:$16 sps:$4 sm:$0xff]   ;;  %v7735_v18 = vld [vmem:[%s9034_s15 + $0x208] ss:$16 sps:$4 sm:$0xff]   ;;  %v7740_v19 = vld [vmem:[%s9034_s15 + $0x224] ss:$16 sps:$4 sm:$0xff]   ;;  %v438_v21 = vpack.c.bf16 %v317_v15, %v317_v15 }
  0x57   : > { %v7743_v20 = vld [vmem:[%s9034_s15 + $0x22c] ss:$16 sps:$4 sm:$0xff]   ;;  %v7738_v22 = vld [vmem:[%s9034_s15 + $0x220] ss:$16 sps:$4 sm:$0xff]   ;;  %v7741_v23 = vld [vmem:[%s9034_s15 + $0x228] ss:$16 sps:$4 sm:$0xff]  }
  0x58   : > { %5222 = vmatprep.mubr.bf16.mxu0 %v436_v61  ;;  %5755 = vmatprep.mubr.bf16.mxu1 %v436_v61  ;;  %v7746_v24 = vld [vmem:[%s9034_s15 + $0x244] ss:$16 sps:$4 sm:$0xff]   ;;  %v7749_v25 = vld [vmem:[%s9034_s15 + $0x24c] ss:$16 sps:$4 sm:$0xff]   ;;  %v7744_v26 = vld [vmem:[%s9034_s15 + $0x240] ss:$16 sps:$4 sm:$0xff]  }
  0x59   : > { %5203 = vmatpush1.bf16.msra.mxu0 %v7675_v27  ;;  %5736 = vmatpush1.bf16.msra.mxu1 %v7676_v28  ;;  %v7747_v27 = vld [vmem:[%s9034_s15 + $0x248] ss:$16 sps:$4 sm:$0xff]   ;;  %v7752_v28 = vld [vmem:[%s9034_s15 + $0x264] ss:$16 sps:$4 sm:$0xff]   ;;  %v7767_v37 = vld [vmem:[%s9034_s15 + $0x2ac] ss:$16 sps:$4 sm:$0xff]  }
  0x5a   : > { %5204 = vmatprep.subr.bf16.mxu0 %v7677_v29  ;;  %5737 = vmatprep.subr.bf16.mxu1 %v7679_v30  ;;  %v7755_v29 = vld [vmem:[%s9034_s15 + $0x26c] ss:$16 sps:$4 sm:$0xff]   ;;  %v7750_v30 = vld [vmem:[%s9034_s15 + $0x260] ss:$16 sps:$4 sm:$0xff]   ;;  %v7765_v39 = vld [vmem:[%s9034_s15 + $0x2a8] ss:$16 sps:$4 sm:$0xff]  }
  0x5b   : > { %v7762_v38 = vld [vmem:[%s9034_s15 + $0x2a0] ss:$16 sps:$4 sm:$0xff]   ;;  %v7771_v43 = vld [vmem:[%s9034_s15 + $0x2c8] ss:$16 sps:$4 sm:$0xff]   ;;  %v7791_v55 = vld [vmem:[%s9034_s15 + $0x32c] ss:$16 sps:$4 sm:$0xff]  }
  0x5c   : > { %v7783_v53 = vld [vmem:[%s9034_s15 + $0x308] ss:$16 sps:$4 sm:$0xff]   ;;  %v7797_v59 = vld [vmem:[%s9034_s15 + $0x34c] ss:$16 sps:$4 sm:$0xff]   ;;  %v7824_v15 = vld [vmem:[%s9034_s15 + $0x3e4] ss:$16 sps:$4 sm:$0xff]  }
  0x5d   : > { %5205 = vmatpush1.bf16.msra.mxu0 %v7681_v31  ;;  %5738 = vmatpush1.bf16.msra.mxu1 %v7682_v32  ;;  %v7753_v31 = vld [vmem:[%s9034_s15 + $0x268] ss:$16 sps:$4 sm:$0xff]   ;;  %v7758_v32 = vld [vmem:[%s9034_s15 + $0x284] ss:$16 sps:$4 sm:$0xff]   ;;  %p7595_p4 = scmp.eq.s32.totalorder %s8969_s22, 3 }
  0x5e   : > { %5206 = vmatprep.subr.bf16.mxu0 %v7683_v33  ;;  %5739 = vmatprep.subr.bf16.mxu1 %v7685_v34  ;;  %v7761_v33 = vld [vmem:[%s9034_s15 + $0x28c] ss:$16 sps:$4 sm:$0xff]   ;;  %v7756_v34 = vld [vmem:[%s9034_s15 + $0x280] ss:$16 sps:$4 sm:$0xff]   ;;  %v7795_v61 = vld [vmem:[%s9034_s15 + $0x348] ss:$16 sps:$4 sm:$0xff]  }
  0x5f   : > { %v7807_v5 = vld [vmem:[%s9034_s15 + $0x388] ss:$16 sps:$4 sm:$0xff]  }
  0x61   : > { %5207 = vmatpush1.bf16.msra.mxu0 %v7687_v35  ;;  %5740 = vmatpush1.bf16.msra.mxu1 %v7688_v36  ;;  %v7759_v35 = vld [vmem:[%s9034_s15 + $0x288] ss:$16 sps:$4 sm:$0xff]   ;;  %v7764_v36 = vld [vmem:[%s9034_s15 + $0x2a4] ss:$16 sps:$4 sm:$0xff]  }
  0x62   : > { %5208 = vmatprep.subr.bf16.mxu0 %v7689_v40  ;;  %5741 = vmatprep.subr.bf16.mxu1 %v7691_v41  ;;  %v7770_v40 = vld [vmem:[%s9034_s15 + $0x2c4] ss:$16 sps:$4 sm:$0xff]   ;;  %v7773_v41 = vld [vmem:[%s9034_s15 + $0x2cc] ss:$16 sps:$4 sm:$0xff]  }
  0x65   : > { %5209 = vmatpush1.bf16.msra.mxu0 %v7693_v42  ;;  %5742 = vmatpush1.bf16.msra.mxu1 %v7694_v45  ;;  %v7768_v42 = vld [vmem:[%s9034_s15 + $0x2c0] ss:$16 sps:$4 sm:$0xff]   ;;  %v7776_v45 = vld [vmem:[%s9034_s15 + $0x2e4] ss:$16 sps:$4 sm:$0xff]  }
  0x66   : > { %5210 = vmatprep.subr.bf16.mxu0 %v7695_v46  ;;  %5743 = vmatprep.subr.bf16.mxu1 %v7697_v47  ;;  %v7779_v46 = vld [vmem:[%s9034_s15 + $0x2ec] ss:$16 sps:$4 sm:$0xff]   ;;  %v7774_v47 = vld [vmem:[%s9034_s15 + $0x2e0] ss:$16 sps:$4 sm:$0xff]  }
  0x69   : > { %5211 = vmatpush1.bf16.msra.mxu0 %v7699_v48  ;;  %5744 = vmatpush1.bf16.msra.mxu1 %v7700_v49  ;;  %v7777_v48 = vld [vmem:[%s9034_s15 + $0x2e8] ss:$16 sps:$4 sm:$0xff]   ;;  %v7782_v49 = vld [vmem:[%s9034_s15 + $0x304] ss:$16 sps:$4 sm:$0xff]  }
  0x6a   : > { %5212 = vmatprep.subr.bf16.mxu0 %v7701_v51  ;;  %5745 = vmatprep.subr.bf16.mxu1 %v7703_v52  ;;  %v7785_v51 = vld [vmem:[%s9034_s15 + $0x30c] ss:$16 sps:$4 sm:$0xff]   ;;  %v7780_v52 = vld [vmem:[%s9034_s15 + $0x300] ss:$16 sps:$4 sm:$0xff]  }
  0x6d   : > { %5213 = vmatpush1.bf16.msra.mxu0 %v7705_v54  ;;  %5746 = vmatpush1.bf16.msra.mxu1 %v7706_v56  ;;  %v7788_v54 = vld [vmem:[%s9034_s15 + $0x324] ss:$16 sps:$4 sm:$0xff]   ;;  %v7786_v56 = vld [vmem:[%s9034_s15 + $0x320] ss:$16 sps:$4 sm:$0xff]  }
  0x6e   : > { %5214 = vmatprep.subr.bf16.mxu0 %v7707_v57  ;;  %5747 = vmatprep.subr.bf16.mxu1 %v7709_v58  ;;  %v7789_v57 = vld [vmem:[%s9034_s15 + $0x328] ss:$16 sps:$4 sm:$0xff]   ;;  %v7794_v58 = vld [vmem:[%s9034_s15 + $0x344] ss:$16 sps:$4 sm:$0xff]  }
  0x71   : > { %5215 = vmatpush1.bf16.msra.mxu0 %v7711_v60  ;;  %5748 = vmatpush1.bf16.msra.mxu1 %v7712_v62  ;;  %v7792_v60 = vld [vmem:[%s9034_s15 + $0x340] ss:$16 sps:$4 sm:$0xff]   ;;  %v7800_v62 = vld [vmem:[%s9034_s15 + $0x364] ss:$16 sps:$4 sm:$0xff]  }
  0x72   : > { %5216 = vmatprep.subr.bf16.mxu0 %v7713_v63  ;;  %5749 = vmatprep.subr.bf16.mxu1 %v7715_v0  ;;  %v7803_v63 = vld [vmem:[%s9034_s15 + $0x36c] ss:$16 sps:$4 sm:$0xff]   ;;  %v7798_v0 = vld [vmem:[%s9034_s15 + $0x360] ss:$16 sps:$4 sm:$0xff]  }
  0x75   : > { %5217 = vmatpush1.bf16.msra.mxu0 %v7717_v1  ;;  %5750 = vmatpush1.bf16.msra.mxu1 %v7718_v2  ;;  %v7801_v1 = vld [vmem:[%s9034_s15 + $0x368] ss:$16 sps:$4 sm:$0xff]   ;;  %v7806_v2 = vld [vmem:[%s9034_s15 + $0x384] ss:$16 sps:$4 sm:$0xff]  }
  0x76   : > { %5218 = vmatprep.subr.bf16.mxu0 %v7719_v3  ;;  %5751 = vmatprep.subr.bf16.mxu1 %v7721_v4  ;;  %v7809_v3 = vld [vmem:[%s9034_s15 + $0x38c] ss:$16 sps:$4 sm:$0xff]   ;;  %v7804_v4 = vld [vmem:[%s9034_s15 + $0x380] ss:$16 sps:$4 sm:$0xff]  }
  0x79   : > { %5219 = vmatpush1.bf16.msra.mxu0 %v7723_v6  ;;  %5752 = vmatpush1.bf16.msra.mxu1 %v7724_v7  ;;  %v7812_v6 = vld [vmem:[%s9034_s15 + $0x3a4] ss:$16 sps:$4 sm:$0xff]   ;;  %v7815_v7 = vld [vmem:[%s9034_s15 + $0x3ac] ss:$16 sps:$4 sm:$0xff]  }
  0x7a   : > { %5220 = vmatprep.subr.bf16.mxu0 %v7725_v8  ;;  %5753 = vmatprep.subr.bf16.mxu1 %v7727_v9  ;;  %v7810_v8 = vld [vmem:[%s9034_s15 + $0x3a0] ss:$16 sps:$4 sm:$0xff]   ;;  %v7813_v9 = vld [vmem:[%s9034_s15 + $0x3a8] ss:$16 sps:$4 sm:$0xff]  }
  0x7d   : > { %5221 = vmatpush1.bf16.msra.mxu0 %v7729_v11  ;;  %5754 = vmatpush1.bf16.msra.mxu1 %v7730_v12  ;;  %v7818_v11 = vld [vmem:[%s9034_s15 + $0x3c4] ss:$16 sps:$4 sm:$0xff]   ;;  %v7821_v12 = vld [vmem:[%s9034_s15 + $0x3cc] ss:$16 sps:$4 sm:$0xff]  }
  0x7e   : > { %5231 = vmatprep.subr.bf16.mxu0 %v7734_v13  ;;  %5764 = vmatprep.subr.bf16.mxu1 %v7737_v14  ;;  %v7816_v13 = vld [vmem:[%s9034_s15 + $0x3c0] ss:$16 sps:$4 sm:$0xff]   ;;  %v7819_v14 = vld [vmem:[%s9034_s15 + $0x3c8] ss:$16 sps:$4 sm:$0xff]  }
  0x80   : > { %5223 = vmatmul.mubr.bf16.vlgmr.msra.gmra.mrb[0].mxu0 %v435_v17  ;;  %5756 = vmatmul.mubr.bf16.vlgmr.msra.gmra.mrb[0].mxu1 %v435_v17  ;;  %v7822_v17 = vld [vmem:[%s9034_s15 + $0x3e0] ss:$16 sps:$4 sm:$0xff]  }
  0x81   : > { %5232 = vmatpush1.bf16.msra.mxu0 %v7732_v16  ;;  %5765 = vmatpush1.bf16.msra.mxu1 %v7735_v18  ;;  %v7827_v16 = vld [vmem:[%s9034_s15 + $0x3ec] ss:$16 sps:$4 sm:$0xff]   ;;  %v7825_v18 = vld [vmem:[%s9034_s15 + $0x3e8] ss:$16 sps:$4 sm:$0xff]  }
  0x82   : > { %5233 = vmatprep.subr.bf16.mxu0 %v7740_v19  ;;  %5766 = vmatprep.subr.bf16.mxu1 %v7743_v20  ;;  %v7830_v19 = vld [vmem:[%s9034_s15 + $0x404] ss:$16 sps:$4 sm:$0xff]   ;;  %v7833_v20 = vld [vmem:[%s9034_s15 + $0x40c] ss:$16 sps:$4 sm:$0xff]  }
  0x83   : > { %5263 = vmatprep.mubr.bf16.mxu0 %v438_v21  ;;  %5796 = vmatprep.mubr.bf16.mxu1 %v438_v21  ;;  %v7828_v21 = vld [vmem:[%s9034_s15 + $0x400] ss:$16 sps:$4 sm:$0xff]  }
  0x85   : > { %5234 = vmatpush1.bf16.msra.mxu0 %v7738_v22  ;;  %5767 = vmatpush1.bf16.msra.mxu1 %v7741_v23  ;;  %v437_v22 = vpack.c.bf16 %v9129_v10, %v9129_v10  ;;  %v7831_v23 = vld [vmem:[%s9034_s15 + $0x408] ss:$16 sps:$4 sm:$0xff]  }
  0x86   : > { %5235 = vmatprep.subr.bf16.mxu0 %v7746_v24  ;;  %5768 = vmatprep.subr.bf16.mxu1 %v7749_v25  ;;  %v9208_v24 = vld [vmem:[%s10081_s0 + $0x8] sm:$0xff]  ;;  %v7836_v25 = vld [vmem:[%s9034_s15 + $0x424] ss:$16 sps:$4 sm:$0xff]  }
  0x89   : > { %5236 = vmatpush1.bf16.msra.mxu0 %v7744_v26  ;;  %5769 = vmatpush1.bf16.msra.mxu1 %v7747_v27  ;;  %v7839_v26 = vld [vmem:[%s9034_s15 + $0x42c] ss:$16 sps:$4 sm:$0xff]   ;;  %v9214_v27 = vrot.slane %v9208_v24, %v9104_v50 }
  0x8a   : > { %5237 = vmatprep.subr.bf16.mxu0 %v7752_v28  ;;  %5770 = vmatprep.subr.bf16.mxu1 %v7755_v29  ;;  %v7834_v28 = vld [vmem:[%s9034_s15 + $0x420] ss:$16 sps:$4 sm:$0xff]   ;;  %v7837_v29 = vld [vmem:[%s9034_s15 + $0x428] ss:$16 sps:$4 sm:$0xff]  }
  0x8b   : > { %v333_v10 = vcombine.high %v9214_v27, %v9214_v27 }
  0x8d   : > { %5238 = vmatpush1.bf16.msra.mxu0 %v7750_v30  ;;  %5771 = vmatpush1.bf16.msra.mxu1 %v7753_v31  ;;  %v7842_v30 = vld [vmem:[%s9034_s15 + $0x444] ss:$16 sps:$4 sm:$0xff]   ;;  %v7845_v31 = vld [vmem:[%s9034_s15 + $0x44c] ss:$16 sps:$4 sm:$0xff]  }
  0x8e   : > { %5239 = vmatprep.subr.bf16.mxu0 %v7758_v32  ;;  %5772 = vmatprep.subr.bf16.mxu1 %v7761_v33  ;;  %v440_v32 = vpack.c.bf16 %v333_v10, %v333_v10  ;;  %v7840_v33 = vld [vmem:[%s9034_s15 + $0x440] ss:$16 sps:$4 sm:$0xff]   ;;  %v7921_v10 = vld [vmem:[%s9034_s15 + $0x5e8] ss:$16 sps:$4 sm:$0xff]  }
  0x91   : > { %5240 = vmatpush1.bf16.msra.mxu0 %v7756_v34  ;;  %5773 = vmatpush1.bf16.msra.mxu1 %v7759_v35  ;;  %v7843_v34 = vld [vmem:[%s9034_s15 + $0x448] ss:$16 sps:$4 sm:$0xff]   ;;  %v7848_v35 = vld [vmem:[%s9034_s15 + $0x464] ss:$16 sps:$4 sm:$0xff]  }
  0x92   : > { %5241 = vmatprep.subr.bf16.mxu0 %v7764_v36  ;;  %5774 = vmatprep.subr.bf16.mxu1 %v7767_v37  ;;  %v7851_v36 = vld [vmem:[%s9034_s15 + $0x46c] ss:$16 sps:$4 sm:$0xff]   ;;  %v7846_v37 = vld [vmem:[%s9034_s15 + $0x460] ss:$16 sps:$4 sm:$0xff]  }
  0x95   : > { %5242 = vmatpush1.bf16.msra.mxu0 %v7762_v38  ;;  %5775 = vmatpush1.bf16.msra.mxu1 %v7765_v39  ;;  %v7849_v38 = vld [vmem:[%s9034_s15 + $0x468] ss:$16 sps:$4 sm:$0xff]   ;;  %v7854_v39 = vld [vmem:[%s9034_s15 + $0x484] ss:$16 sps:$4 sm:$0xff]  }
  0x96   : > { %5243 = vmatprep.subr.bf16.mxu0 %v7770_v40  ;;  %5776 = vmatprep.subr.bf16.mxu1 %v7773_v41  ;;  %v7857_v40 = vld [vmem:[%s9034_s15 + $0x48c] ss:$16 sps:$4 sm:$0xff]   ;;  %v7852_v41 = vld [vmem:[%s9034_s15 + $0x480] ss:$16 sps:$4 sm:$0xff]  }
  0x99   : > { %5244 = vmatpush1.bf16.msra.mxu0 %v7768_v42  ;;  %5777 = vmatpush1.bf16.msra.mxu1 %v7771_v43  ;;  %v7855_v42 = vld [vmem:[%s9034_s15 + $0x488] ss:$16 sps:$4 sm:$0xff]   ;;  %v7860_v43 = vld [vmem:[%s9034_s15 + $0x4a4] ss:$16 sps:$4 sm:$0xff]  }
  0x9a   : > { %5245 = vmatprep.subr.bf16.mxu0 %v7776_v45  ;;  %5778 = vmatprep.subr.bf16.mxu1 %v7779_v46  ;;  %v7863_v45 = vld [vmem:[%s9034_s15 + $0x4ac] ss:$16 sps:$4 sm:$0xff]   ;;  %v7858_v46 = vld [vmem:[%s9034_s15 + $0x4a0] ss:$16 sps:$4 sm:$0xff]  }
  0x9d   : > { %5246 = vmatpush1.bf16.msra.mxu0 %v7774_v47  ;;  %5779 = vmatpush1.bf16.msra.mxu1 %v7777_v48  ;;  %v7861_v47 = vld [vmem:[%s9034_s15 + $0x4a8] ss:$16 sps:$4 sm:$0xff]   ;;  %v7866_v48 = vld [vmem:[%s9034_s15 + $0x4c4] ss:$16 sps:$4 sm:$0xff]  }
  0x9e   : > { %5247 = vmatprep.subr.bf16.mxu0 %v7782_v49  ;;  %5780 = vmatprep.subr.bf16.mxu1 %v7785_v51  ;;  %v7869_v49 = vld [vmem:[%s9034_s15 + $0x4cc] ss:$16 sps:$4 sm:$0xff]   ;;  %v7864_v51 = vld [vmem:[%s9034_s15 + $0x4c0] ss:$16 sps:$4 sm:$0xff]  }
  0xa1   : > { %5248 = vmatpush1.bf16.msra.mxu0 %v7780_v52  ;;  %5781 = vmatpush1.bf16.msra.mxu1 %v7783_v53  ;;  %v7867_v52 = vld [vmem:[%s9034_s15 + $0x4c8] ss:$16 sps:$4 sm:$0xff]   ;;  %v7872_v53 = vld [vmem:[%s9034_s15 + $0x4e4] ss:$16 sps:$4 sm:$0xff]  }
  0xa2   : > { %5249 = vmatprep.subr.bf16.mxu0 %v7788_v54  ;;  %5782 = vmatprep.subr.bf16.mxu1 %v7791_v55  ;;  %v7875_v54 = vld [vmem:[%s9034_s15 + $0x4ec] ss:$16 sps:$4 sm:$0xff]   ;;  %v7870_v55 = vld [vmem:[%s9034_s15 + $0x4e0] ss:$16 sps:$4 sm:$0xff]  }
  0xa5   : > { %5250 = vmatpush1.bf16.msra.mxu0 %v7786_v56  ;;  %5783 = vmatpush1.bf16.msra.mxu1 %v7789_v57  ;;  %v7873_v56 = vld [vmem:[%s9034_s15 + $0x4e8] ss:$16 sps:$4 sm:$0xff]   ;;  %v7878_v57 = vld [vmem:[%s9034_s15 + $0x504] ss:$16 sps:$4 sm:$0xff]  }
  0xa6   : > { %5251 = vmatprep.subr.bf16.mxu0 %v7794_v58  ;;  %5784 = vmatprep.subr.bf16.mxu1 %v7797_v59  ;;  %v7881_v58 = vld [vmem:[%s9034_s15 + $0x50c] ss:$16 sps:$4 sm:$0xff]   ;;  %v7876_v59 = vld [vmem:[%s9034_s15 + $0x500] ss:$16 sps:$4 sm:$0xff]  }
  0xa9   : > { %5252 = vmatpush1.bf16.msra.mxu0 %v7792_v60  ;;  %5785 = vmatpush1.bf16.msra.mxu1 %v7795_v61  ;;  %v7879_v60 = vld [vmem:[%s9034_s15 + $0x508] ss:$16 sps:$4 sm:$0xff]   ;;  %v7884_v61 = vld [vmem:[%s9034_s15 + $0x524] ss:$16 sps:$4 sm:$0xff]  }
  0xaa   : > { %5253 = vmatprep.subr.bf16.mxu0 %v7800_v62  ;;  %5786 = vmatprep.subr.bf16.mxu1 %v7803_v63  ;;  %v7887_v62 = vld [vmem:[%s9034_s15 + $0x52c] ss:$16 sps:$4 sm:$0xff]   ;;  %v7882_v63 = vld [vmem:[%s9034_s15 + $0x520] ss:$16 sps:$4 sm:$0xff]  }
  0xad   : > { %5254 = vmatpush1.bf16.msra.mxu0 %v7798_v0  ;;  %5787 = vmatpush1.bf16.msra.mxu1 %v7801_v1  ;;  %v7885_v0 = vld [vmem:[%s9034_s15 + $0x528] ss:$16 sps:$4 sm:$0xff]   ;;  %v7890_v1 = vld [vmem:[%s9034_s15 + $0x544] ss:$16 sps:$4 sm:$0xff]  }
  0xae   : > { %5255 = vmatprep.subr.bf16.mxu0 %v7806_v2  ;;  %5788 = vmatprep.subr.bf16.mxu1 %v7809_v3  ;;  %v7893_v2 = vld [vmem:[%s9034_s15 + $0x54c] ss:$16 sps:$4 sm:$0xff]   ;;  %v7888_v3 = vld [vmem:[%s9034_s15 + $0x540] ss:$16 sps:$4 sm:$0xff]  }
  0xb1   : > { %5256 = vmatpush1.bf16.msra.mxu0 %v7804_v4  ;;  %5789 = vmatpush1.bf16.msra.mxu1 %v7807_v5  ;;  %v7891_v4 = vld [vmem:[%s9034_s15 + $0x548] ss:$16 sps:$4 sm:$0xff]   ;;  %v7896_v5 = vld [vmem:[%s9034_s15 + $0x564] ss:$16 sps:$4 sm:$0xff]  }
  0xb2   : > { %5257 = vmatprep.subr.bf16.mxu0 %v7812_v6  ;;  %5790 = vmatprep.subr.bf16.mxu1 %v7815_v7  ;;  %v7899_v6 = vld [vmem:[%s9034_s15 + $0x56c] ss:$16 sps:$4 sm:$0xff]   ;;  %v7894_v7 = vld [vmem:[%s9034_s15 + $0x560] ss:$16 sps:$4 sm:$0xff]  }
  0xb5   : > { %5258 = vmatpush1.bf16.msra.mxu0 %v7810_v8  ;;  %5791 = vmatpush1.bf16.msra.mxu1 %v7813_v9  ;;  %v7897_v8 = vld [vmem:[%s9034_s15 + $0x568] ss:$16 sps:$4 sm:$0xff]   ;;  %v7902_v9 = vld [vmem:[%s9034_s15 + $0x584] ss:$16 sps:$4 sm:$0xff]  }
  0xb6   : > { %5259 = vmatprep.subr.bf16.mxu0 %v7818_v11  ;;  %5792 = vmatprep.subr.bf16.mxu1 %v7821_v12  ;;  %v7905_v11 = vld [vmem:[%s9034_s15 + $0x58c] ss:$16 sps:$4 sm:$0xff]   ;;  %v7900_v12 = vld [vmem:[%s9034_s15 + $0x580] ss:$16 sps:$4 sm:$0xff]  }
  0xb9   : > { %5260 = vmatpush1.bf16.msra.mxu0 %v7816_v13  ;;  %5793 = vmatpush1.bf16.msra.mxu1 %v7819_v14  ;;  %v7903_v13 = vld [vmem:[%s9034_s15 + $0x588] ss:$16 sps:$4 sm:$0xff]   ;;  %v7908_v14 = vld [vmem:[%s9034_s15 + $0x5a4] ss:$16 sps:$4 sm:$0xff]  }
  0xba   : > { %5261 = vmatprep.subr.bf16.mxu0 %v7824_v15  ;;  %5794 = vmatprep.subr.bf16.mxu1 %v7827_v16  ;;  %v7911_v15 = vld [vmem:[%s9034_s15 + $0x5ac] ss:$16 sps:$4 sm:$0xff]   ;;  %v7906_v16 = vld [vmem:[%s9034_s15 + $0x5a0] ss:$16 sps:$4 sm:$0xff]  }
  0xbd   : > { %5262 = vmatpush1.bf16.msra.mxu0 %v7822_v17  ;;  %5795 = vmatpush1.bf16.msra.mxu1 %v7825_v18  ;;  %v7909_v17 = vld [vmem:[%s9034_s15 + $0x5a8] ss:$16 sps:$4 sm:$0xff]   ;;  %v7914_v18 = vld [vmem:[%s9034_s15 + $0x5c4] ss:$16 sps:$4 sm:$0xff]  }
  0xbe   : > { %5272 = vmatprep.subr.bf16.mxu0 %v7830_v19  ;;  %5805 = vmatprep.subr.bf16.mxu1 %v7833_v20  ;;  %v7917_v19 = vld [vmem:[%s9034_s15 + $0x5cc] ss:$16 sps:$4 sm:$0xff]   ;;  %v318_v20 = vcombine.high %v9208_v24, %v9208_v24  ;;  %v7918_v24 = vld [vmem:[%s9034_s15 + $0x5e0] ss:$16 sps:$4 sm:$0xff]  }
  0xc0   : > { %5264 = vmatmul.mubr.bf16.vlgmr.msra.gmra.mrb[0].mxu0 %v437_v22  ;;  %5797 = vmatmul.mubr.bf16.vlgmr.msra.gmra.mrb[0].mxu1 %v437_v22  ;;  %v7915_v22 = vld [vmem:[%s9034_s15 + $0x5c8] ss:$16 sps:$4 sm:$0xff]  }
  0xc1   : > { %5273 = vmatpush1.bf16.msra.mxu0 %v7828_v21  ;;  %5806 = vmatpush1.bf16.msra.mxu1 %v7831_v23  ;;  %v7912_v21 = vld [vmem:[%s9034_s15 + $0x5c0] ss:$16 sps:$4 sm:$0xff]   ;;  %v7920_v23 = vld [vmem:[%s9034_s15 + $0x5e4] ss:$16 sps:$4 sm:$0xff]  }
  0xc2   : > { %5274 = vmatprep.subr.bf16.mxu0 %v7836_v25  ;;  %5807 = vmatprep.subr.bf16.mxu1 %v7839_v26  ;;  %v7923_v25 = vld [vmem:[%s9034_s15 + $0x5ec] ss:$16 sps:$4 sm:$0xff]   ;;  %v9277_v26 = vrot.slane %v318_v20, %v9104_v50  ;;  %v7999_v20 = vld [vmem:[%s9034_s15 + $0x788] ss:$16 sps:$4 sm:$0xff]  }
  0xc3   : > { %5304 = vmatprep.mubr.bf16.mxu0 %v440_v32  ;;  %5837 = vmatprep.mubr.bf16.mxu1 %v440_v32  ;;  %v7924_v32 = vld [vmem:[%s9034_s15 + $0x600] ss:$16 sps:$4 sm:$0xff]  }
  0xc5   : > { %5275 = vmatpush1.bf16.msra.mxu0 %v7834_v28  ;;  %5808 = vmatpush1.bf16.msra.mxu1 %v7837_v29  ;;  %v7926_v28 = vld [vmem:[%s9034_s15 + $0x604] ss:$16 sps:$4 sm:$0xff]   ;;  %v7929_v29 = vld [vmem:[%s9034_s15 + $0x60c] ss:$16 sps:$4 sm:$0xff]  }
  0xc6   : > { %5276 = vmatprep.subr.bf16.mxu0 %v7842_v30  ;;  %5809 = vmatprep.subr.bf16.mxu1 %v7845_v31  ;;  %v334_v30 = vcombine.high %v9277_v26, %v9277_v26  ;;  %v439_v31 = vpack.c.bf16 %v9214_v27, %v9214_v27  ;;  %v7930_v27 = vld [vmem:[%s9034_s15 + $0x620] ss:$16 sps:$4 sm:$0xff]  }
  0xc9   : > { %5277 = vmatpush1.bf16.msra.mxu0 %v7840_v33  ;;  %5810 = vmatpush1.bf16.msra.mxu1 %v7843_v34  ;;  %v7927_v33 = vld [vmem:[%s9034_s15 + $0x608] ss:$16 sps:$4 sm:$0xff]   ;;  %v7932_v34 = vld [vmem:[%s9034_s15 + $0x624] ss:$16 sps:$4 sm:$0xff]  }
  0xca   : > { %5278 = vmatprep.subr.bf16.mxu0 %v7848_v35  ;;  %5811 = vmatprep.subr.bf16.mxu1 %v7851_v36  ;;  %v7935_v35 = vld [vmem:[%s9034_s15 + $0x62c] ss:$16 sps:$4 sm:$0xff]   ;;  %v442_v36 = vpack.c.bf16 %v334_v30, %v334_v30  ;;  %v8011_v30 = vld [vmem:[%s9034_s15 + $0x7c8] ss:$16 sps:$4 sm:$0xff]  }
  0xcd   : > { %5279 = vmatpush1.bf16.msra.mxu0 %v7846_v37  ;;  %5812 = vmatpush1.bf16.msra.mxu1 %v7849_v38  ;;  %v7933_v37 = vld [vmem:[%s9034_s15 + $0x628] ss:$16 sps:$4 sm:$0xff]   ;;  %v7938_v38 = vld [vmem:[%s9034_s15 + $0x644] ss:$16 sps:$4 sm:$0xff]  }
  0xce   : > { %5280 = vmatprep.subr.bf16.mxu0 %v7854_v39  ;;  %5813 = vmatprep.subr.bf16.mxu1 %v7857_v40  ;;  %v7941_v39 = vld [vmem:[%s9034_s15 + $0x64c] ss:$16 sps:$4 sm:$0xff]   ;;  %v7936_v40 = vld [vmem:[%s9034_s15 + $0x640] ss:$16 sps:$4 sm:$0xff]  }
  0xd1   : > { %5281 = vmatpush1.bf16.msra.mxu0 %v7852_v41  ;;  %5814 = vmatpush1.bf16.msra.mxu1 %v7855_v42  ;;  %v7939_v41 = vld [vmem:[%s9034_s15 + $0x648] ss:$16 sps:$4 sm:$0xff]   ;;  %v7944_v42 = vld [vmem:[%s9034_s15 + $0x664] ss:$16 sps:$4 sm:$0xff]  }
  0xd2   : > { %5282 = vmatprep.subr.bf16.mxu0 %v7860_v43  ;;  %5815 = vmatprep.subr.bf16.mxu1 %v7863_v45  ;;  %v7947_v43 = vld [vmem:[%s9034_s15 + $0x66c] ss:$16 sps:$4 sm:$0xff]   ;;  %v7942_v45 = vld [vmem:[%s9034_s15 + $0x660] ss:$16 sps:$4 sm:$0xff]  }
  0xd5   : > { %5283 = vmatpush1.bf16.msra.mxu0 %v7858_v46  ;;  %5816 = vmatpush1.bf16.msra.mxu1 %v7861_v47  ;;  %v7945_v46 = vld [vmem:[%s9034_s15 + $0x668] ss:$16 sps:$4 sm:$0xff]   ;;  %v7950_v47 = vld [vmem:[%s9034_s15 + $0x684] ss:$16 sps:$4 sm:$0xff]  }
  0xd6   : > { %5284 = vmatprep.subr.bf16.mxu0 %v7866_v48  ;;  %5817 = vmatprep.subr.bf16.mxu1 %v7869_v49  ;;  %v7953_v48 = vld [vmem:[%s9034_s15 + $0x68c] ss:$16 sps:$4 sm:$0xff]   ;;  %v7948_v49 = vld [vmem:[%s9034_s15 + $0x680] ss:$16 sps:$4 sm:$0xff]  }
  0xd9   : > { %5285 = vmatpush1.bf16.msra.mxu0 %v7864_v51  ;;  %5818 = vmatpush1.bf16.msra.mxu1 %v7867_v52  ;;  %v7951_v51 = vld [vmem:[%s9034_s15 + $0x688] ss:$16 sps:$4 sm:$0xff]   ;;  %v7956_v52 = vld [vmem:[%s9034_s15 + $0x6a4] ss:$16 sps:$4 sm:$0xff]  }
  0xda   : > { %5286 = vmatprep.subr.bf16.mxu0 %v7872_v53  ;;  %5819 = vmatprep.subr.bf16.mxu1 %v7875_v54  ;;  %v7959_v53 = vld [vmem:[%s9034_s15 + $0x6ac] ss:$16 sps:$4 sm:$0xff]   ;;  %v7954_v54 = vld [vmem:[%s9034_s15 + $0x6a0] ss:$16 sps:$4 sm:$0xff]  }
  0xdd   : > { %5287 = vmatpush1.bf16.msra.mxu0 %v7870_v55  ;;  %5820 = vmatpush1.bf16.msra.mxu1 %v7873_v56  ;;  %v7957_v55 = vld [vmem:[%s9034_s15 + $0x6a8] ss:$16 sps:$4 sm:$0xff]   ;;  %v7962_v56 = vld [vmem:[%s9034_s15 + $0x6c4] ss:$16 sps:$4 sm:$0xff]  }
  0xde   : > { %5288 = vmatprep.subr.bf16.mxu0 %v7878_v57  ;;  %5821 = vmatprep.subr.bf16.mxu1 %v7881_v58  ;;  %v7965_v57 = vld [vmem:[%s9034_s15 + $0x6cc] ss:$16 sps:$4 sm:$0xff]   ;;  %v7960_v58 = vld [vmem:[%s9034_s15 + $0x6c0] ss:$16 sps:$4 sm:$0xff]  }
  0xe1   : > { %5289 = vmatpush1.bf16.msra.mxu0 %v7876_v59  ;;  %5822 = vmatpush1.bf16.msra.mxu1 %v7879_v60  ;;  %v7963_v59 = vld [vmem:[%s9034_s15 + $0x6c8] ss:$16 sps:$4 sm:$0xff]   ;;  %v7968_v60 = vld [vmem:[%s9034_s15 + $0x6e4] ss:$16 sps:$4 sm:$0xff]  }
  0xe2   : > { %5290 = vmatprep.subr.bf16.mxu0 %v7884_v61  ;;  %5823 = vmatprep.subr.bf16.mxu1 %v7887_v62  ;;  %v7971_v61 = vld [vmem:[%s9034_s15 + $0x6ec] ss:$16 sps:$4 sm:$0xff]   ;;  %v7966_v62 = vld [vmem:[%s9034_s15 + $0x6e0] ss:$16 sps:$4 sm:$0xff]  }
  0xe5   : > { %5291 = vmatpush1.bf16.msra.mxu0 %v7882_v63  ;;  %5824 = vmatpush1.bf16.msra.mxu1 %v7885_v0  ;;  %v7969_v63 = vld [vmem:[%s9034_s15 + $0x6e8] ss:$16 sps:$4 sm:$0xff]   ;;  %v7974_v0 = vld [vmem:[%s9034_s15 + $0x704] ss:$16 sps:$4 sm:$0xff]  }
  0xe6   : > { %5292 = vmatprep.subr.bf16.mxu0 %v7890_v1  ;;  %5825 = vmatprep.subr.bf16.mxu1 %v7893_v2  ;;  %v7977_v1 = vld [vmem:[%s9034_s15 + $0x70c] ss:$16 sps:$4 sm:$0xff]   ;;  %v7972_v2 = vld [vmem:[%s9034_s15 + $0x700] ss:$16 sps:$4 sm:$0xff]  }
  0xe9   : > { %5293 = vmatpush1.bf16.msra.mxu0 %v7888_v3  ;;  %5826 = vmatpush1.bf16.msra.mxu1 %v7891_v4  ;;  %v7975_v3 = vld [vmem:[%s9034_s15 + $0x708] ss:$16 sps:$4 sm:$0xff]   ;;  %v7980_v4 = vld [vmem:[%s9034_s15 + $0x724] ss:$16 sps:$4 sm:$0xff]  }
  0xea   : > { %5294 = vmatprep.subr.bf16.mxu0 %v7896_v5  ;;  %5827 = vmatprep.subr.bf16.mxu1 %v7899_v6  ;;  %v7983_v5 = vld [vmem:[%s9034_s15 + $0x72c] ss:$16 sps:$4 sm:$0xff]   ;;  %v7978_v6 = vld [vmem:[%s9034_s15 + $0x720] ss:$16 sps:$4 sm:$0xff]  }
  0xed   : > { %5295 = vmatpush1.bf16.msra.mxu0 %v7894_v7  ;;  %5828 = vmatpush1.bf16.msra.mxu1 %v7897_v8  ;;  %v7981_v7 = vld [vmem:[%s9034_s15 + $0x728] ss:$16 sps:$4 sm:$0xff]   ;;  %v7986_v8 = vld [vmem:[%s9034_s15 + $0x744] ss:$16 sps:$4 sm:$0xff]  }
  0xee   : > { %5296 = vmatprep.subr.bf16.mxu0 %v7902_v9  ;;  %5829 = vmatprep.subr.bf16.mxu1 %v7905_v11  ;;  %v7989_v9 = vld [vmem:[%s9034_s15 + $0x74c] ss:$16 sps:$4 sm:$0xff]   ;;  %v7984_v11 = vld [vmem:[%s9034_s15 + $0x740] ss:$16 sps:$4 sm:$0xff]  }
  0xf1   : > { %5297 = vmatpush1.bf16.msra.mxu0 %v7900_v12  ;;  %5830 = vmatpush1.bf16.msra.mxu1 %v7903_v13  ;;  %v7987_v12 = vld [vmem:[%s9034_s15 + $0x748] ss:$16 sps:$4 sm:$0xff]   ;;  %v7992_v13 = vld [vmem:[%s9034_s15 + $0x764] ss:$16 sps:$4 sm:$0xff]  }
  0xf2   : > { %5298 = vmatprep.subr.bf16.mxu0 %v7908_v14  ;;  %5831 = vmatprep.subr.bf16.mxu1 %v7911_v15  ;;  %v7995_v14 = vld [vmem:[%s9034_s15 + $0x76c] ss:$16 sps:$4 sm:$0xff]   ;;  %v7990_v15 = vld [vmem:[%s9034_s15 + $0x760] ss:$16 sps:$4 sm:$0xff]  }
  0xf5   : > { %5299 = vmatpush1.bf16.msra.mxu0 %v7906_v16  ;;  %5832 = vmatpush1.bf16.msra.mxu1 %v7909_v17  ;;  %v7993_v16 = vld [vmem:[%s9034_s15 + $0x768] ss:$16 sps:$4 sm:$0xff]   ;;  %v7998_v17 = vld [vmem:[%s9034_s15 + $0x784] ss:$16 sps:$4 sm:$0xff]  }
  0xf6   : > { %5300 = vmatprep.subr.bf16.mxu0 %v7914_v18  ;;  %5833 = vmatprep.subr.bf16.mxu1 %v7917_v19  ;;  %v8001_v18 = vld [vmem:[%s9034_s15 + $0x78c] ss:$16 sps:$4 sm:$0xff]   ;;  %v7996_v19 = vld [vmem:[%s9034_s15 + $0x780] ss:$16 sps:$4 sm:$0xff]  }
  0xf9   : > { %5301 = vmatpush1.bf16.msra.mxu0 %v7912_v21  ;;  %5834 = vmatpush1.bf16.msra.mxu1 %v7915_v22  ;;  %v8004_v21 = vld [vmem:[%s9034_s15 + $0x7a4] ss:$16 sps:$4 sm:$0xff]   ;;  %v8007_v22 = vld [vmem:[%s9034_s15 + $0x7ac] ss:$16 sps:$4 sm:$0xff]  }
  0xfa   : > { %5302 = vmatprep.subr.bf16.mxu0 %v7920_v23  ;;  %5835 = vmatprep.subr.bf16.mxu1 %v7923_v25  ;;  %v8002_v23 = vld [vmem:[%s9034_s15 + $0x7a0] ss:$16 sps:$4 sm:$0xff]   ;;  %v8005_v25 = vld [vmem:[%s9034_s15 + $0x7a8] ss:$16 sps:$4 sm:$0xff]  }
  0xfd   : > { %5303 = vmatpush1.bf16.msra.mxu0 %v7918_v24  ;;  %5836 = vmatpush1.bf16.msra.mxu1 %v7921_v10  ;;  %v8010_v24 = vld [vmem:[%s9034_s15 + $0x7c4] ss:$16 sps:$4 sm:$0xff]   ;;  %v8013_v10 = vld [vmem:[%s9034_s15 + $0x7cc] ss:$16 sps:$4 sm:$0xff]  }
  0xfe   : > { %5313 = vmatprep.subr.bf16.mxu0 %v7926_v28  ;;  %5846 = vmatprep.subr.bf16.mxu1 %v7929_v29  ;;  %v8008_v28 = vld [vmem:[%s9034_s15 + $0x7c0] ss:$16 sps:$4 sm:$0xff]  }
  0xff   : > { %v9347_v29 = vld [vmem:[%s10081_s0 + $0x10] sm:$0xff] }
 0x100   : > { %5305 = vmatmul.mubr.bf16.vlgmr.msra.gmra.mrb[0].mxu0 %v439_v31  ;;  %5838 = vmatmul.mubr.bf16.vlgmr.msra.gmra.mrb[0].mxu1 %v439_v31  ;;  %v8016_v31 = vld [vmem:[%s9034_s15 + $0x7e4] ss:$16 sps:$4 sm:$0xff]  }
 0x101   : > { %5314 = vmatpush1.bf16.msra.mxu0 %v7924_v32  ;;  %5847 = vmatpush1.bf16.msra.mxu1 %v7927_v33  ;;  %v8019_v32 = vld [vmem:[%s9034_s15 + $0x7ec] ss:$16 sps:$4 sm:$0xff]   ;;  %v9354_v33 = vrot.slane %v9347_v29, %v9104_v50 }
 0x102   : > { %5315 = vmatprep.subr.bf16.mxu0 %v7932_v34  ;;  %5848 = vmatprep.subr.bf16.mxu1 %v7935_v35  ;;  %v8014_v34 = vld [vmem:[%s9034_s15 + $0x7e0] ss:$16 sps:$4 sm:$0xff]   ;;  %v8017_v35 = vld [vmem:[%s9034_s15 + $0x7e8] ss:$16 sps:$4 sm:$0xff]  }
 0x103   : > { %5345 = vmatprep.mubr.bf16.mxu0 %v442_v36  ;;  %5878 = vmatprep.mubr.bf16.mxu1 %v442_v36  ;;  %v8023_v36 = vld [vmem:[%s9034_s15 + $0x804] ss:$16 sps:$4 sm:$0xff]  }
 0x105   : > { %5316 = vmatpush1.bf16.msra.mxu0 %v7930_v27  ;;  %5849 = vmatpush1.bf16.msra.mxu1 %v7933_v37  ;;  %v8026_v27 = vld [vmem:[%s9034_s15 + $0x80c] ss:$16 sps:$4 sm:$0xff]   ;;  %v350_v37 = vcombine.high %v9354_v33, %v9354_v33 }
 0x106   : > { %5317 = vmatprep.subr.bf16.mxu0 %v7938_v38  ;;  %5850 = vmatprep.subr.bf16.mxu1 %v7941_v39  ;;  %v8021_v38 = vld [vmem:[%s9034_s15 + $0x800] ss:$16 sps:$4 sm:$0xff]   ;;  %v441_v39 = vpack.c.bf16 %v9277_v26, %v9277_v26  ;;  %v8035_v26 = vld [vmem:[%s9034_s15 + $0x844] ss:$16 sps:$4 sm:$0xff]  }
 0x109   : > { %5318 = vmatpush1.bf16.msra.mxu0 %v7936_v40  ;;  %5851 = vmatpush1.bf16.msra.mxu1 %v7939_v41  ;;  %v8024_v40 = vld [vmem:[%s9034_s15 + $0x808] ss:$16 sps:$4 sm:$0xff]   ;;  %v8029_v41 = vld [vmem:[%s9034_s15 + $0x824] ss:$16 sps:$4 sm:$0xff]  }
 0x10a   : > { %5319 = vmatprep.subr.bf16.mxu0 %v7944_v42  ;;  %5852 = vmatprep.subr.bf16.mxu1 %v7947_v43  ;;  %v8032_v42 = vld [vmem:[%s9034_s15 + $0x82c] ss:$16 sps:$4 sm:$0xff]   ;;  %v444_v43 = vpack.c.bf16 %v350_v37, %v350_v37  ;;  %v8105_v37 = vld [vmem:[%s9034_s15 + $0x9c0] ss:$16 sps:$4 sm:$0xff]  }
 0x10d   : > { %5320 = vmatpush1.bf16.msra.mxu0 %v7942_v45  ;;  %5853 = vmatpush1.bf16.msra.mxu1 %v7945_v46  ;;  %v8027_v45 = vld [vmem:[%s9034_s15 + $0x820] ss:$16 sps:$4 sm:$0xff]   ;;  %v8030_v46 = vld [vmem:[%s9034_s15 + $0x828] ss:$16 sps:$4 sm:$0xff]  }
 0x10e   : > { %5321 = vmatprep.subr.bf16.mxu0 %v7950_v47  ;;  %5854 = vmatprep.subr.bf16.mxu1 %v7953_v48  ;;  %v8038_v47 = vld [vmem:[%s9034_s15 + $0x84c] ss:$16 sps:$4 sm:$0xff]   ;;  %v8033_v48 = vld [vmem:[%s9034_s15 + $0x840] ss:$16 sps:$4 sm:$0xff]  }
 0x111   : > { %5322 = vmatpush1.bf16.msra.mxu0 %v7948_v49  ;;  %5855 = vmatpush1.bf16.msra.mxu1 %v7951_v51  ;;  %v8036_v49 = vld [vmem:[%s9034_s15 + $0x848] ss:$16 sps:$4 sm:$0xff]   ;;  %v8041_v51 = vld [vmem:[%s9034_s15 + $0x864] ss:$16 sps:$4 sm:$0xff]  }
 0x112   : > { %5323 = vmatprep.subr.bf16.mxu0 %v7956_v52  ;;  %5856 = vmatprep.subr.bf16.mxu1 %v7959_v53  ;;  %v8044_v52 = vld [vmem:[%s9034_s15 + $0x86c] ss:$16 sps:$4 sm:$0xff]   ;;  %v8039_v53 = vld [vmem:[%s9034_s15 + $0x860] ss:$16 sps:$4 sm:$0xff]  }
 0x115   : > { %5324 = vmatpush1.bf16.msra.mxu0 %v7954_v54  ;;  %5857 = vmatpush1.bf16.msra.mxu1 %v7957_v55  ;;  %v8042_v54 = vld [vmem:[%s9034_s15 + $0x868] ss:$16 sps:$4 sm:$0xff]   ;;  %v8047_v55 = vld [vmem:[%s9034_s15 + $0x884] ss:$16 sps:$4 sm:$0xff]  }
 0x116   : > { %5325 = vmatprep.subr.bf16.mxu0 %v7962_v56  ;;  %5858 = vmatprep.subr.bf16.mxu1 %v7965_v57  ;;  %v8050_v56 = vld [vmem:[%s9034_s15 + $0x88c] ss:$16 sps:$4 sm:$0xff]   ;;  %v8045_v57 = vld [vmem:[%s9034_s15 + $0x880] ss:$16 sps:$4 sm:$0xff]  }
 0x119   : > { %5326 = vmatpush1.bf16.msra.mxu0 %v7960_v58  ;;  %5859 = vmatpush1.bf16.msra.mxu1 %v7963_v59  ;;  %v8048_v58 = vld [vmem:[%s9034_s15 + $0x888] ss:$16 sps:$4 sm:$0xff]   ;;  %v8053_v59 = vld [vmem:[%s9034_s15 + $0x8a4] ss:$16 sps:$4 sm:$0xff]  }
 0x11a   : > { %5327 = vmatprep.subr.bf16.mxu0 %v7968_v60  ;;  %5860 = vmatprep.subr.bf16.mxu1 %v7971_v61  ;;  %v8056_v60 = vld [vmem:[%s9034_s15 + $0x8ac] ss:$16 sps:$4 sm:$0xff]   ;;  %v8051_v61 = vld [vmem:[%s9034_s15 + $0x8a0] ss:$16 sps:$4 sm:$0xff]  }
 0x11d   : > { %5328 = vmatpush1.bf16.msra.mxu0 %v7966_v62  ;;  %5861 = vmatpush1.bf16.msra.mxu1 %v7969_v63  ;;  %v8054_v62 = vld [vmem:[%s9034_s15 + $0x8a8] ss:$16 sps:$4 sm:$0xff]   ;;  %v8059_v63 = vld [vmem:[%s9034_s15 + $0x8c4] ss:$16 sps:$4 sm:$0xff]  }
 0x11e   : > { %5329 = vmatprep.subr.bf16.mxu0 %v7974_v0  ;;  %5862 = vmatprep.subr.bf16.mxu1 %v7977_v1  ;;  %v8062_v0 = vld [vmem:[%s9034_s15 + $0x8cc] ss:$16 sps:$4 sm:$0xff]   ;;  %v8057_v1 = vld [vmem:[%s9034_s15 + $0x8c0] ss:$16 sps:$4 sm:$0xff]  }
 0x121   : > { %5330 = vmatpush1.bf16.msra.mxu0 %v7972_v2  ;;  %5863 = vmatpush1.bf16.msra.mxu1 %v7975_v3  ;;  %v8060_v2 = vld [vmem:[%s9034_s15 + $0x8c8] ss:$16 sps:$4 sm:$0xff]   ;;  %v8065_v3 = vld [vmem:[%s9034_s15 + $0x8e4] ss:$16 sps:$4 sm:$0xff]  }
 0x122   : > { %5331 = vmatprep.subr.bf16.mxu0 %v7980_v4  ;;  %5864 = vmatprep.subr.bf16.mxu1 %v7983_v5  ;;  %v8068_v4 = vld [vmem:[%s9034_s15 + $0x8ec] ss:$16 sps:$4 sm:$0xff]   ;;  %v8063_v5 = vld [vmem:[%s9034_s15 + $0x8e0] ss:$16 sps:$4 sm:$0xff]  }
 0x125   : > { %5332 = vmatpush1.bf16.msra.mxu0 %v7978_v6  ;;  %5865 = vmatpush1.bf16.msra.mxu1 %v7981_v7  ;;  %v8066_v6 = vld [vmem:[%s9034_s15 + $0x8e8] ss:$16 sps:$4 sm:$0xff]   ;;  %v8071_v7 = vld [vmem:[%s9034_s15 + $0x904] ss:$16 sps:$4 sm:$0xff]  }
 0x126   : > { %5333 = vmatprep.subr.bf16.mxu0 %v7986_v8  ;;  %5866 = vmatprep.subr.bf16.mxu1 %v7989_v9  ;;  %v8074_v8 = vld [vmem:[%s9034_s15 + $0x90c] ss:$16 sps:$4 sm:$0xff]   ;;  %v8069_v9 = vld [vmem:[%s9034_s15 + $0x900] ss:$16 sps:$4 sm:$0xff]  }
 0x129   : > { %5334 = vmatpush1.bf16.msra.mxu0 %v7984_v11  ;;  %5867 = vmatpush1.bf16.msra.mxu1 %v7987_v12  ;;  %v8072_v11 = vld [vmem:[%s9034_s15 + $0x908] ss:$16 sps:$4 sm:$0xff]   ;;  %v8077_v12 = vld [vmem:[%s9034_s15 + $0x924] ss:$16 sps:$4 sm:$0xff]  }
 0x12a   : > { %5335 = vmatprep.subr.bf16.mxu0 %v7992_v13  ;;  %5868 = vmatprep.subr.bf16.mxu1 %v7995_v14  ;;  %v8080_v13 = vld [vmem:[%s9034_s15 + $0x92c] ss:$16 sps:$4 sm:$0xff]   ;;  %v8075_v14 = vld [vmem:[%s9034_s15 + $0x920] ss:$16 sps:$4 sm:$0xff]  }
 0x12d   : > { %5336 = vmatpush1.bf16.msra.mxu0 %v7990_v15  ;;  %5869 = vmatpush1.bf16.msra.mxu1 %v7993_v16  ;;  %v8078_v15 = vld [vmem:[%s9034_s15 + $0x928] ss:$16 sps:$4 sm:$0xff]   ;;  %v8083_v16 = vld [vmem:[%s9034_s15 + $0x944] ss:$16 sps:$4 sm:$0xff]  }
 0x12e   : > { %5337 = vmatprep.subr.bf16.mxu0 %v7998_v17  ;;  %5870 = vmatprep.subr.bf16.mxu1 %v8001_v18  ;;  %v8086_v17 = vld [vmem:[%s9034_s15 + $0x94c] ss:$16 sps:$4 sm:$0xff]   ;;  %v8081_v18 = vld [vmem:[%s9034_s15 + $0x940] ss:$16 sps:$4 sm:$0xff]  }
 0x131   : > { %5338 = vmatpush1.bf16.msra.mxu0 %v7996_v19  ;;  %5871 = vmatpush1.bf16.msra.mxu1 %v7999_v20  ;;  %v8084_v19 = vld [vmem:[%s9034_s15 + $0x948] ss:$16 sps:$4 sm:$0xff]   ;;  %v8089_v20 = vld [vmem:[%s9034_s15 + $0x964] ss:$16 sps:$4 sm:$0xff]  }
 0x132   : > { %5339 = vmatprep.subr.bf16.mxu0 %v8004_v21  ;;  %5872 = vmatprep.subr.bf16.mxu1 %v8007_v22  ;;  %v8092_v21 = vld [vmem:[%s9034_s15 + $0x96c] ss:$16 sps:$4 sm:$0xff]   ;;  %v8087_v22 = vld [vmem:[%s9034_s15 + $0x960] ss:$16 sps:$4 sm:$0xff]  }
 0x135   : > { %5340 = vmatpush1.bf16.msra.mxu0 %v8002_v23  ;;  %5873 = vmatpush1.bf16.msra.mxu1 %v8005_v25  ;;  %v8090_v23 = vld [vmem:[%s9034_s15 + $0x968] ss:$16 sps:$4 sm:$0xff]   ;;  %v8095_v25 = vld [vmem:[%s9034_s15 + $0x984] ss:$16 sps:$4 sm:$0xff]  }
 0x136   : > { %5341 = vmatprep.subr.bf16.mxu0 %v8010_v24  ;;  %5874 = vmatprep.subr.bf16.mxu1 %v8013_v10  ;;  %v8098_v24 = vld [vmem:[%s9034_s15 + $0x98c] ss:$16 sps:$4 sm:$0xff]   ;;  %v8093_v10 = vld [vmem:[%s9034_s15 + $0x980] ss:$16 sps:$4 sm:$0xff]  }
 0x139   : > { %5342 = vmatpush1.bf16.msra.mxu0 %v8008_v28  ;;  %5875 = vmatpush1.bf16.msra.mxu1 %v8011_v30  ;;  %v8096_v28 = vld [vmem:[%s9034_s15 + $0x988] ss:$16 sps:$4 sm:$0xff]   ;;  %v8101_v30 = vld [vmem:[%s9034_s15 + $0x9a4] ss:$16 sps:$4 sm:$0xff]  }
 0x13a   : > { %5343 = vmatprep.subr.bf16.mxu0 %v8016_v31  ;;  %5876 = vmatprep.subr.bf16.mxu1 %v8019_v32  ;;  %v8104_v31 = vld [vmem:[%s9034_s15 + $0x9ac] ss:$16 sps:$4 sm:$0xff]   ;;  %v8099_v32 = vld [vmem:[%s9034_s15 + $0x9a0] ss:$16 sps:$4 sm:$0xff]  }
 0x13d   : > { %5344 = vmatpush1.bf16.msra.mxu0 %v8014_v34  ;;  %5877 = vmatpush1.bf16.msra.mxu1 %v8017_v35  ;;  %v8102_v34 = vld [vmem:[%s9034_s15 + $0x9a8] ss:$16 sps:$4 sm:$0xff]   ;;  %v8107_v35 = vld [vmem:[%s9034_s15 + $0x9c4] ss:$16 sps:$4 sm:$0xff]  }
 0x13e   : > { %5354 = vmatprep.subr.bf16.mxu0 %v8023_v36  ;;  %5887 = vmatprep.subr.bf16.mxu1 %v8026_v27  ;;  %v8110_v36 = vld [vmem:[%s9034_s15 + $0x9cc] ss:$16 sps:$4 sm:$0xff]   ;;  %v335_v27 = vcombine.high %v9347_v29, %v9347_v29  ;;  %v8111_v29 = vld [vmem:[%s9034_s15 + $0x9e0] ss:$16 sps:$4 sm:$0xff]  }
 0x140   : > { %5346 = vmatmul.mubr.bf16.vlgmr.msra.gmra.mrb[0].mxu0 %v441_v39  ;;  %5879 = vmatmul.mubr.bf16.vlgmr.msra.gmra.mrb[0].mxu1 %v441_v39  ;;  %v8113_v39 = vld [vmem:[%s9034_s15 + $0x9e4] ss:$16 sps:$4 sm:$0xff]  }
 0x141   : > { %5355 = vmatpush1.bf16.msra.mxu0 %v8021_v38  ;;  %5888 = vmatpush1.bf16.msra.mxu1 %v8024_v40  ;;  %v8108_v38 = vld [vmem:[%s9034_s15 + $0x9c8] ss:$16 sps:$4 sm:$0xff]   ;;  %v8116_v40 = vld [vmem:[%s9034_s15 + $0x9ec] ss:$16 sps:$4 sm:$0xff]  }
 0x142   : > { %5356 = vmatprep.subr.bf16.mxu0 %v8029_v41  ;;  %5889 = vmatprep.subr.bf16.mxu1 %v8032_v42  ;;  %v9427_v41 = vrot.slane %v335_v27, %v9104_v50  ;;  %v8114_v42 = vld [vmem:[%s9034_s15 + $0x9e8] ss:$16 sps:$4 sm:$0xff]  }
 0x143   : > { %5386 = vmatprep.mubr.bf16.mxu0 %v444_v43  ;;  %5919 = vmatprep.mubr.bf16.mxu1 %v444_v43  ;;  %v8119_v43 = vld [vmem:[%s9034_s15 + $0xa04] ss:$16 sps:$4 sm:$0xff]   ;;  %v8192_v27 = vld [vmem:[%s9034_s15 + $0xb88] ss:$16 sps:$4 sm:$0xff]  }
 0x145   : > { %5357 = vmatpush1.bf16.msra.mxu0 %v8027_v45  ;;  %5890 = vmatpush1.bf16.msra.mxu1 %v8030_v46  ;;  %v8122_v45 = vld [vmem:[%s9034_s15 + $0xa0c] ss:$16 sps:$4 sm:$0xff]   ;;  %v351_v46 = vcombine.high %v9427_v41, %v9427_v41 }
 0x146   : > { %5358 = vmatprep.subr.bf16.mxu0 %v8035_v26  ;;  %5891 = vmatprep.subr.bf16.mxu1 %v8038_v47  ;;  %v443_v26 = vpack.c.bf16 %v9354_v33, %v9354_v33  ;;  %v8117_v47 = vld [vmem:[%s9034_s15 + $0xa00] ss:$16 sps:$4 sm:$0xff]  }
 0x147   : > { %v8123_v33 = vld [vmem:[%s9034_s15 + $0xa20] ss:$16 sps:$4 sm:$0xff]  }
 0x149   : > { %5359 = vmatpush1.bf16.msra.mxu0 %v8033_v48  ;;  %5892 = vmatpush1.bf16.msra.mxu1 %v8036_v49  ;;  %v8120_v48 = vld [vmem:[%s9034_s15 + $0xa08] ss:$16 sps:$4 sm:$0xff]   ;;  %v8125_v49 = vld [vmem:[%s9034_s15 + $0xa24] ss:$16 sps:$4 sm:$0xff]  }
 0x14a   : > { %5360 = vmatprep.subr.bf16.mxu0 %v8041_v51  ;;  %5893 = vmatprep.subr.bf16.mxu1 %v8044_v52  ;;  %v8128_v51 = vld [vmem:[%s9034_s15 + $0xa2c] ss:$16 sps:$4 sm:$0xff]   ;;  %v446_v52 = vpack.c.bf16 %v351_v46, %v351_v46  ;;  %v8204_v46 = vld [vmem:[%s9034_s15 + $0xbc8] ss:$16 sps:$4 sm:$0xff]  }
 0x14d   : > { %5361 = vmatpush1.bf16.msra.mxu0 %v8039_v53  ;;  %5894 = vmatpush1.bf16.msra.mxu1 %v8042_v54  ;;  %v8126_v53 = vld [vmem:[%s9034_s15 + $0xa28] ss:$16 sps:$4 sm:$0xff]   ;;  %v8131_v54 = vld [vmem:[%s9034_s15 + $0xa44] ss:$16 sps:$4 sm:$0xff]  }
 0x14e   : > { %5362 = vmatprep.subr.bf16.mxu0 %v8047_v55  ;;  %5895 = vmatprep.subr.bf16.mxu1 %v8050_v56  ;;  %v8134_v55 = vld [vmem:[%s9034_s15 + $0xa4c] ss:$16 sps:$4 sm:$0xff]   ;;  %v8129_v56 = vld [vmem:[%s9034_s15 + $0xa40] ss:$16 sps:$4 sm:$0xff]  }
 0x151   : > { %5363 = vmatpush1.bf16.msra.mxu0 %v8045_v57  ;;  %5896 = vmatpush1.bf16.msra.mxu1 %v8048_v58  ;;  %v8132_v57 = vld [vmem:[%s9034_s15 + $0xa48] ss:$16 sps:$4 sm:$0xff]   ;;  %v8137_v58 = vld [vmem:[%s9034_s15 + $0xa64] ss:$16 sps:$4 sm:$0xff]  }
 0x152   : > { %5364 = vmatprep.subr.bf16.mxu0 %v8053_v59  ;;  %5897 = vmatprep.subr.bf16.mxu1 %v8056_v60  ;;  %v8140_v59 = vld [vmem:[%s9034_s15 + $0xa6c] ss:$16 sps:$4 sm:$0xff]   ;;  %v8135_v60 = vld [vmem:[%s9034_s15 + $0xa60] ss:$16 sps:$4 sm:$0xff]  }
 0x155   : > { %5365 = vmatpush1.bf16.msra.mxu0 %v8051_v61  ;;  %5898 = vmatpush1.bf16.msra.mxu1 %v8054_v62  ;;  %v8138_v61 = vld [vmem:[%s9034_s15 + $0xa68] ss:$16 sps:$4 sm:$0xff]   ;;  %v8143_v62 = vld [vmem:[%s9034_s15 + $0xa84] ss:$16 sps:$4 sm:$0xff]  }
 0x156   : > { %5366 = vmatprep.subr.bf16.mxu0 %v8059_v63  ;;  %5899 = vmatprep.subr.bf16.mxu1 %v8062_v0  ;;  %v8146_v63 = vld [vmem:[%s9034_s15 + $0xa8c] ss:$16 sps:$4 sm:$0xff]   ;;  %v8141_v0 = vld [vmem:[%s9034_s15 + $0xa80] ss:$16 sps:$4 sm:$0xff]  }
 0x159   : > { %5367 = vmatpush1.bf16.msra.mxu0 %v8057_v1  ;;  %5900 = vmatpush1.bf16.msra.mxu1 %v8060_v2  ;;  %v8144_v1 = vld [vmem:[%s9034_s15 + $0xa88] ss:$16 sps:$4 sm:$0xff]   ;;  %v8149_v2 = vld [vmem:[%s9034_s15 + $0xaa4] ss:$16 sps:$4 sm:$0xff]  }
 0x15a   : > { %5368 = vmatprep.subr.bf16.mxu0 %v8065_v3  ;;  %5901 = vmatprep.subr.bf16.mxu1 %v8068_v4  ;;  %v8152_v3 = vld [vmem:[%s9034_s15 + $0xaac] ss:$16 sps:$4 sm:$0xff]   ;;  %v8147_v4 = vld [vmem:[%s9034_s15 + $0xaa0] ss:$16 sps:$4 sm:$0xff]  }
 0x15d   : > { %5369 = vmatpush1.bf16.msra.mxu0 %v8063_v5  ;;  %5902 = vmatpush1.bf16.msra.mxu1 %v8066_v6  ;;  %v8150_v5 = vld [vmem:[%s9034_s15 + $0xaa8] ss:$16 sps:$4 sm:$0xff]   ;;  %v8155_v6 = vld [vmem:[%s9034_s15 + $0xac4] ss:$16 sps:$4 sm:$0xff]  }
 0x15e   : > { %5370 = vmatprep.subr.bf16.mxu0 %v8071_v7  ;;  %5903 = vmatprep.subr.bf16.mxu1 %v8074_v8  ;;  %v8158_v7 = vld [vmem:[%s9034_s15 + $0xacc] ss:$16 sps:$4 sm:$0xff]   ;;  %v8153_v8 = vld [vmem:[%s9034_s15 + $0xac0] ss:$16 sps:$4 sm:$0xff]  }
 0x161   : > { %5371 = vmatpush1.bf16.msra.mxu0 %v8069_v9  ;;  %5904 = vmatpush1.bf16.msra.mxu1 %v8072_v11  ;;  %v8156_v9 = vld [vmem:[%s9034_s15 + $0xac8] ss:$16 sps:$4 sm:$0xff]   ;;  %v8161_v11 = vld [vmem:[%s9034_s15 + $0xae4] ss:$16 sps:$4 sm:$0xff]  }
 0x162   : > { %5372 = vmatprep.subr.bf16.mxu0 %v8077_v12  ;;  %5905 = vmatprep.subr.bf16.mxu1 %v8080_v13  ;;  %v8164_v12 = vld [vmem:[%s9034_s15 + $0xaec] ss:$16 sps:$4 sm:$0xff]   ;;  %v8159_v13 = vld [vmem:[%s9034_s15 + $0xae0] ss:$16 sps:$4 sm:$0xff]  }
 0x165   : > { %5373 = vmatpush1.bf16.msra.mxu0 %v8075_v14  ;;  %5906 = vmatpush1.bf16.msra.mxu1 %v8078_v15  ;;  %v8162_v14 = vld [vmem:[%s9034_s15 + $0xae8] ss:$16 sps:$4 sm:$0xff]   ;;  %v8167_v15 = vld [vmem:[%s9034_s15 + $0xb04] ss:$16 sps:$4 sm:$0xff]  }
 0x166   : > { %5374 = vmatprep.subr.bf16.mxu0 %v8083_v16  ;;  %5907 = vmatprep.subr.bf16.mxu1 %v8086_v17  ;;  %v8170_v16 = vld [vmem:[%s9034_s15 + $0xb0c] ss:$16 sps:$4 sm:$0xff]   ;;  %v8165_v17 = vld [vmem:[%s9034_s15 + $0xb00] ss:$16 sps:$4 sm:$0xff]  }
 0x169   : > { %5375 = vmatpush1.bf16.msra.mxu0 %v8081_v18  ;;  %5908 = vmatpush1.bf16.msra.mxu1 %v8084_v19  ;;  %v8168_v18 = vld [vmem:[%s9034_s15 + $0xb08] ss:$16 sps:$4 sm:$0xff]   ;;  %v8173_v19 = vld [vmem:[%s9034_s15 + $0xb24] ss:$16 sps:$4 sm:$0xff]  }
 0x16a   : > { %5376 = vmatprep.subr.bf16.mxu0 %v8089_v20  ;;  %5909 = vmatprep.subr.bf16.mxu1 %v8092_v21  ;;  %v8176_v20 = vld [vmem:[%s9034_s15 + $0xb2c] ss:$16 sps:$4 sm:$0xff]   ;;  %v8171_v21 = vld [vmem:[%s9034_s15 + $0xb20] ss:$16 sps:$4 sm:$0xff]  }
 0x16d   : > { %5377 = vmatpush1.bf16.msra.mxu0 %v8087_v22  ;;  %5910 = vmatpush1.bf16.msra.mxu1 %v8090_v23  ;;  %v8174_v22 = vld [vmem:[%s9034_s15 + $0xb28] ss:$16 sps:$4 sm:$0xff]   ;;  %v8179_v23 = vld [vmem:[%s9034_s15 + $0xb44] ss:$16 sps:$4 sm:$0xff]  }
 0x16e   : > { %5378 = vmatprep.subr.bf16.mxu0 %v8095_v25  ;;  %5911 = vmatprep.subr.bf16.mxu1 %v8098_v24  ;;  %v8182_v25 = vld [vmem:[%s9034_s15 + $0xb4c] ss:$16 sps:$4 sm:$0xff]   ;;  %v8177_v24 = vld [vmem:[%s9034_s15 + $0xb40] ss:$16 sps:$4 sm:$0xff]  }
 0x171   : > { %5379 = vmatpush1.bf16.msra.mxu0 %v8093_v10  ;;  %5912 = vmatpush1.bf16.msra.mxu1 %v8096_v28  ;;  %v8180_v10 = vld [vmem:[%s9034_s15 + $0xb48] ss:$16 sps:$4 sm:$0xff]   ;;  %v8185_v28 = vld [vmem:[%s9034_s15 + $0xb64] ss:$16 sps:$4 sm:$0xff]  }
 0x172   : > { %5380 = vmatprep.subr.bf16.mxu0 %v8101_v30  ;;  %5913 = vmatprep.subr.bf16.mxu1 %v8104_v31  ;;  %v8188_v30 = vld [vmem:[%s9034_s15 + $0xb6c] ss:$16 sps:$4 sm:$0xff]   ;;  %v8183_v31 = vld [vmem:[%s9034_s15 + $0xb60] ss:$16 sps:$4 sm:$0xff]  }
 0x175   : > { %5381 = vmatpush1.bf16.msra.mxu0 %v8099_v32  ;;  %5914 = vmatpush1.bf16.msra.mxu1 %v8102_v34  ;;  %v8186_v32 = vld [vmem:[%s9034_s15 + $0xb68] ss:$16 sps:$4 sm:$0xff]   ;;  %v8191_v34 = vld [vmem:[%s9034_s15 + $0xb84] ss:$16 sps:$4 sm:$0xff]  }
 0x176   : > { %5382 = vmatprep.subr.bf16.mxu0 %v8107_v35  ;;  %5915 = vmatprep.subr.bf16.mxu1 %v8110_v36  ;;  %v8194_v35 = vld [vmem:[%s9034_s15 + $0xb8c] ss:$16 sps:$4 sm:$0xff]   ;;  %v8189_v36 = vld [vmem:[%s9034_s15 + $0xb80] ss:$16 sps:$4 sm:$0xff]  }
 0x179   : > { %5383 = vmatpush1.bf16.msra.mxu0 %v8105_v37  ;;  %5916 = vmatpush1.bf16.msra.mxu1 %v8108_v38  ;;  %v8197_v37 = vld [vmem:[%s9034_s15 + $0xba4] ss:$16 sps:$4 sm:$0xff]   ;;  %v8200_v38 = vld [vmem:[%s9034_s15 + $0xbac] ss:$16 sps:$4 sm:$0xff]  }
 0x17a   : > { %5384 = vmatprep.subr.bf16.mxu0 %v8113_v39  ;;  %5917 = vmatprep.subr.bf16.mxu1 %v8116_v40  ;;  %v8195_v39 = vld [vmem:[%s9034_s15 + $0xba0] ss:$16 sps:$4 sm:$0xff]   ;;  %v8198_v40 = vld [vmem:[%s9034_s15 + $0xba8] ss:$16 sps:$4 sm:$0xff]  }
 0x17d   : > { %5385 = vmatpush1.bf16.msra.mxu0 %v8111_v29  ;;  %5918 = vmatpush1.bf16.msra.mxu1 %v8114_v42  ;;  %v8203_v29 = vld [vmem:[%s9034_s15 + $0xbc4] ss:$16 sps:$4 sm:$0xff]   ;;  %v8206_v42 = vld [vmem:[%s9034_s15 + $0xbcc] ss:$16 sps:$4 sm:$0xff]  }
 0x17e   : > { %5395 = vmatprep.subr.bf16.mxu0 %v8119_v43  ;;  %5928 = vmatprep.subr.bf16.mxu1 %v8122_v45  ;;  %v9496_v43 = vld [vmem:[%s10081_s0 + $0x18] sm:$0xff]  ;;  %v8201_v45 = vld [vmem:[%s9034_s15 + $0xbc0] ss:$16 sps:$4 sm:$0xff]  }
 0x180   : > { %5387 = vmatmul.mubr.bf16.vlgmr.msra.gmra.mrb[0].mxu0 %v443_v26  ;;  %5920 = vmatmul.mubr.bf16.vlgmr.msra.gmra.mrb[0].mxu1 %v443_v26  ;;  %v8209_v26 = vld [vmem:[%s9034_s15 + $0xbe4] ss:$16 sps:$4 sm:$0xff]  }
 0x181   : > { %5396 = vmatpush1.bf16.msra.mxu0 %v8117_v47  ;;  %5929 = vmatpush1.bf16.msra.mxu1 %v8120_v48  ;;  %v8212_v47 = vld [vmem:[%s9034_s15 + $0xbec] ss:$16 sps:$4 sm:$0xff]   ;;  %v9504_v48 = vrot.slane %v9496_v43, %v9104_v50 }
 0x182   : > { %5397 = vmatprep.subr.bf16.mxu0 %v8125_v49  ;;  %5930 = vmatprep.subr.bf16.mxu1 %v8128_v51  ;;  %v8207_v49 = vld [vmem:[%s9034_s15 + $0xbe0] ss:$16 sps:$4 sm:$0xff]   ;;  %v8210_v51 = vld [vmem:[%s9034_s15 + $0xbe8] ss:$16 sps:$4 sm:$0xff]  }
 0x183   : > { %5427 = vmatprep.mubr.bf16.mxu0 %v446_v52  ;;  %5960 = vmatprep.mubr.bf16.mxu1 %v446_v52  ;;  %v8216_v52 = vld [vmem:[%s9034_s15 + $0xc04] ss:$16 sps:$4 sm:$0xff]  }
 0x185   : > { %5398 = vmatpush1.bf16.msra.mxu0 %v8123_v33  ;;  %5931 = vmatpush1.bf16.msra.mxu1 %v8126_v53  ;;  %v8219_v33 = vld [vmem:[%s9034_s15 + $0xc0c] ss:$16 sps:$4 sm:$0xff]   ;;  %v367_v53 = vcombine.high %v9504_v48, %v9504_v48 }
 0x186   : > { %5399 = vmatprep.subr.bf16.mxu0 %v8131_v54  ;;  %5932 = vmatprep.subr.bf16.mxu1 %v8134_v55  ;;  %v445_v54 = vpack.c.bf16 %v9427_v41, %v9427_v41  ;;  %v8214_v55 = vld [vmem:[%s9034_s15 + $0xc00] ss:$16 sps:$4 sm:$0xff]  }
 0x187   : > { %v8220_v41 = vld [vmem:[%s9034_s15 + $0xc20] ss:$16 sps:$4 sm:$0xff]  }
 0x189   : > { %5400 = vmatpush1.bf16.msra.mxu0 %v8129_v56  ;;  %5933 = vmatpush1.bf16.msra.mxu1 %v8132_v57  ;;  %v8217_v56 = vld [vmem:[%s9034_s15 + $0xc08] ss:$16 sps:$4 sm:$0xff]   ;;  %v8222_v57 = vld [vmem:[%s9034_s15 + $0xc24] ss:$16 sps:$4 sm:$0xff]  }
 0x18a   : > { %5401 = vmatprep.subr.bf16.mxu0 %v8137_v58  ;;  %5934 = vmatprep.subr.bf16.mxu1 %v8140_v59  ;;  %v8225_v58 = vld [vmem:[%s9034_s15 + $0xc2c] ss:$16 sps:$4 sm:$0xff]   ;;  %v448_v59 = vpack.c.bf16 %v367_v53, %v367_v53  ;;  %v8298_v53 = vld [vmem:[%s9034_s15 + $0xdc0] ss:$16 sps:$4 sm:$0xff]  }
 0x18d   : > { %5402 = vmatpush1.bf16.msra.mxu0 %v8135_v60  ;;  %5935 = vmatpush1.bf16.msra.mxu1 %v8138_v61  ;;  %v8223_v60 = vld [vmem:[%s9034_s15 + $0xc28] ss:$16 sps:$4 sm:$0xff]   ;;  %v8228_v61 = vld [vmem:[%s9034_s15 + $0xc44] ss:$16 sps:$4 sm:$0xff]  }
 0x18e   : > { %5403 = vmatprep.subr.bf16.mxu0 %v8143_v62  ;;  %5936 = vmatprep.subr.bf16.mxu1 %v8146_v63  ;;  %v8231_v62 = vld [vmem:[%s9034_s15 + $0xc4c] ss:$16 sps:$4 sm:$0xff]   ;;  %v8226_v63 = vld [vmem:[%s9034_s15 + $0xc40] ss:$16 sps:$4 sm:$0xff]  }
 0x191   : > { %5404 = vmatpush1.bf16.msra.mxu0 %v8141_v0  ;;  %5937 = vmatpush1.bf16.msra.mxu1 %v8144_v1  ;;  %v8229_v0 = vld [vmem:[%s9034_s15 + $0xc48] ss:$16 sps:$4 sm:$0xff]   ;;  %v8234_v1 = vld [vmem:[%s9034_s15 + $0xc64] ss:$16 sps:$4 sm:$0xff]  }
 0x192   : > { %5405 = vmatprep.subr.bf16.mxu0 %v8149_v2  ;;  %5938 = vmatprep.subr.bf16.mxu1 %v8152_v3  ;;  %v8237_v2 = vld [vmem:[%s9034_s15 + $0xc6c] ss:$16 sps:$4 sm:$0xff]   ;;  %v8232_v3 = vld [vmem:[%s9034_s15 + $0xc60] ss:$16 sps:$4 sm:$0xff]  }
 0x195   : > { %5406 = vmatpush1.bf16.msra.mxu0 %v8147_v4  ;;  %5939 = vmatpush1.bf16.msra.mxu1 %v8150_v5  ;;  %v8235_v4 = vld [vmem:[%s9034_s15 + $0xc68] ss:$16 sps:$4 sm:$0xff]   ;;  %v8240_v5 = vld [vmem:[%s9034_s15 + $0xc84] ss:$16 sps:$4 sm:$0xff]  }
 0x196   : > { %5407 = vmatprep.subr.bf16.mxu0 %v8155_v6  ;;  %5940 = vmatprep.subr.bf16.mxu1 %v8158_v7  ;;  %v8243_v6 = vld [vmem:[%s9034_s15 + $0xc8c] ss:$16 sps:$4 sm:$0xff]   ;;  %v8238_v7 = vld [vmem:[%s9034_s15 + $0xc80] ss:$16 sps:$4 sm:$0xff]  }
 0x199   : > { %5408 = vmatpush1.bf16.msra.mxu0 %v8153_v8  ;;  %5941 = vmatpush1.bf16.msra.mxu1 %v8156_v9  ;;  %v8241_v8 = vld [vmem:[%s9034_s15 + $0xc88] ss:$16 sps:$4 sm:$0xff]   ;;  %v8246_v9 = vld [vmem:[%s9034_s15 + $0xca4] ss:$16 sps:$4 sm:$0xff]  }
 0x19a   : > { %5409 = vmatprep.subr.bf16.mxu0 %v8161_v11  ;;  %5942 = vmatprep.subr.bf16.mxu1 %v8164_v12  ;;  %v8249_v11 = vld [vmem:[%s9034_s15 + $0xcac] ss:$16 sps:$4 sm:$0xff]   ;;  %v8244_v12 = vld [vmem:[%s9034_s15 + $0xca0] ss:$16 sps:$4 sm:$0xff]  }
 0x19d   : > { %5410 = vmatpush1.bf16.msra.mxu0 %v8159_v13  ;;  %5943 = vmatpush1.bf16.msra.mxu1 %v8162_v14  ;;  %v8247_v13 = vld [vmem:[%s9034_s15 + $0xca8] ss:$16 sps:$4 sm:$0xff]   ;;  %v8252_v14 = vld [vmem:[%s9034_s15 + $0xcc4] ss:$16 sps:$4 sm:$0xff]  }
 0x19e   : > { %5411 = vmatprep.subr.bf16.mxu0 %v8167_v15  ;;  %5944 = vmatprep.subr.bf16.mxu1 %v8170_v16  ;;  %v8255_v15 = vld [vmem:[%s9034_s15 + $0xccc] ss:$16 sps:$4 sm:$0xff]   ;;  %v8250_v16 = vld [vmem:[%s9034_s15 + $0xcc0] ss:$16 sps:$4 sm:$0xff]  }
 0x1a1   : > { %5412 = vmatpush1.bf16.msra.mxu0 %v8165_v17  ;;  %5945 = vmatpush1.bf16.msra.mxu1 %v8168_v18  ;;  %v8253_v17 = vld [vmem:[%s9034_s15 + $0xcc8] ss:$16 sps:$4 sm:$0xff]   ;;  %v8258_v18 = vld [vmem:[%s9034_s15 + $0xce4] ss:$16 sps:$4 sm:$0xff]  }
 0x1a2   : > { %5413 = vmatprep.subr.bf16.mxu0 %v8173_v19  ;;  %5946 = vmatprep.subr.bf16.mxu1 %v8176_v20  ;;  %v8261_v19 = vld [vmem:[%s9034_s15 + $0xcec] ss:$16 sps:$4 sm:$0xff]   ;;  %v8256_v20 = vld [vmem:[%s9034_s15 + $0xce0] ss:$16 sps:$4 sm:$0xff]  }
 0x1a5   : > { %5414 = vmatpush1.bf16.msra.mxu0 %v8171_v21  ;;  %5947 = vmatpush1.bf16.msra.mxu1 %v8174_v22  ;;  %v8259_v21 = vld [vmem:[%s9034_s15 + $0xce8] ss:$16 sps:$4 sm:$0xff]   ;;  %v8264_v22 = vld [vmem:[%s9034_s15 + $0xd04] ss:$16 sps:$4 sm:$0xff]  }
 0x1a6   : > { %5415 = vmatprep.subr.bf16.mxu0 %v8179_v23  ;;  %5948 = vmatprep.subr.bf16.mxu1 %v8182_v25  ;;  %v8267_v23 = vld [vmem:[%s9034_s15 + $0xd0c] ss:$16 sps:$4 sm:$0xff]   ;;  %v8262_v25 = vld [vmem:[%s9034_s15 + $0xd00] ss:$16 sps:$4 sm:$0xff]  }
 0x1a9   : > { %5416 = vmatpush1.bf16.msra.mxu0 %v8177_v24  ;;  %5949 = vmatpush1.bf16.msra.mxu1 %v8180_v10  ;;  %v8265_v24 = vld [vmem:[%s9034_s15 + $0xd08] ss:$16 sps:$4 sm:$0xff]   ;;  %v8270_v10 = vld [vmem:[%s9034_s15 + $0xd24] ss:$16 sps:$4 sm:$0xff]  }
 0x1aa   : > { %5417 = vmatprep.subr.bf16.mxu0 %v8185_v28  ;;  %5950 = vmatprep.subr.bf16.mxu1 %v8188_v30  ;;  %v8273_v28 = vld [vmem:[%s9034_s15 + $0xd2c] ss:$16 sps:$4 sm:$0xff]   ;;  %v8268_v30 = vld [vmem:[%s9034_s15 + $0xd20] ss:$16 sps:$4 sm:$0xff]  }
 0x1ad   : > { %5418 = vmatpush1.bf16.msra.mxu0 %v8183_v31  ;;  %5951 = vmatpush1.bf16.msra.mxu1 %v8186_v32  ;;  %v8271_v31 = vld [vmem:[%s9034_s15 + $0xd28] ss:$16 sps:$4 sm:$0xff]   ;;  %v8276_v32 = vld [vmem:[%s9034_s15 + $0xd44] ss:$16 sps:$4 sm:$0xff]  }
 0x1ae   : > { %5419 = vmatprep.subr.bf16.mxu0 %v8191_v34  ;;  %5952 = vmatprep.subr.bf16.mxu1 %v8194_v35  ;;  %v8279_v34 = vld [vmem:[%s9034_s15 + $0xd4c] ss:$16 sps:$4 sm:$0xff]   ;;  %v8274_v35 = vld [vmem:[%s9034_s15 + $0xd40] ss:$16 sps:$4 sm:$0xff]  }
 0x1b1   : > { %5420 = vmatpush1.bf16.msra.mxu0 %v8189_v36  ;;  %5953 = vmatpush1.bf16.msra.mxu1 %v8192_v27  ;;  %v8277_v36 = vld [vmem:[%s9034_s15 + $0xd48] ss:$16 sps:$4 sm:$0xff]   ;;  %v8282_v27 = vld [vmem:[%s9034_s15 + $0xd64] ss:$16 sps:$4 sm:$0xff]  }
 0x1b2   : > { %5421 = vmatprep.subr.bf16.mxu0 %v8197_v37  ;;  %5954 = vmatprep.subr.bf16.mxu1 %v8200_v38  ;;  %v8285_v37 = vld [vmem:[%s9034_s15 + $0xd6c] ss:$16 sps:$4 sm:$0xff]   ;;  %v8280_v38 = vld [vmem:[%s9034_s15 + $0xd60] ss:$16 sps:$4 sm:$0xff]  }
 0x1b5   : > { %5422 = vmatpush1.bf16.msra.mxu0 %v8195_v39  ;;  %5955 = vmatpush1.bf16.msra.mxu1 %v8198_v40  ;;  %v8283_v39 = vld [vmem:[%s9034_s15 + $0xd68] ss:$16 sps:$4 sm:$0xff]   ;;  %v8288_v40 = vld [vmem:[%s9034_s15 + $0xd84] ss:$16 sps:$4 sm:$0xff]  }
 0x1b6   : > { %5423 = vmatprep.subr.bf16.mxu0 %v8203_v29  ;;  %5956 = vmatprep.subr.bf16.mxu1 %v8206_v42  ;;  %v8291_v29 = vld [vmem:[%s9034_s15 + $0xd8c] ss:$16 sps:$4 sm:$0xff]   ;;  %v8286_v42 = vld [vmem:[%s9034_s15 + $0xd80] ss:$16 sps:$4 sm:$0xff]  }
 0x1b9   : > { %5424 = vmatpush1.bf16.msra.mxu0 %v8201_v45  ;;  %5957 = vmatpush1.bf16.msra.mxu1 %v8204_v46  ;;  %v8289_v45 = vld [vmem:[%s9034_s15 + $0xd88] ss:$16 sps:$4 sm:$0xff]   ;;  %v8294_v46 = vld [vmem:[%s9034_s15 + $0xda4] ss:$16 sps:$4 sm:$0xff]  }
 0x1ba   : > { %5425 = vmatprep.subr.bf16.mxu0 %v8209_v26  ;;  %5958 = vmatprep.subr.bf16.mxu1 %v8212_v47  ;;  %v8297_v26 = vld [vmem:[%s9034_s15 + $0xdac] ss:$16 sps:$4 sm:$0xff]   ;;  %v8292_v47 = vld [vmem:[%s9034_s15 + $0xda0] ss:$16 sps:$4 sm:$0xff]  }
 0x1bd   : > { %5426 = vmatpush1.bf16.msra.mxu0 %v8207_v49  ;;  %5959 = vmatpush1.bf16.msra.mxu1 %v8210_v51  ;;  %v8295_v49 = vld [vmem:[%s9034_s15 + $0xda8] ss:$16 sps:$4 sm:$0xff]   ;;  %v8300_v51 = vld [vmem:[%s9034_s15 + $0xdc4] ss:$16 sps:$4 sm:$0xff]  }
 0x1be   : > { %5436 = vmatprep.subr.bf16.mxu0 %v8216_v52  ;;  %5969 = vmatprep.subr.bf16.mxu1 %v8219_v33  ;;  %v8303_v52 = vld [vmem:[%s9034_s15 + $0xdcc] ss:$16 sps:$4 sm:$0xff]   ;;  %v352_v33 = vcombine.high %v9496_v43, %v9496_v43  ;;  %v8304_v43 = vld [vmem:[%s9034_s15 + $0xde0] ss:$16 sps:$4 sm:$0xff]  }
 0x1c0   : > { %5428 = vmatmul.mubr.bf16.vlgmr.msra.gmra.mrb[0].mxu0 %v445_v54  ;;  %5961 = vmatmul.mubr.bf16.vlgmr.msra.gmra.mrb[0].mxu1 %v445_v54  ;;  %v8301_v54 = vld [vmem:[%s9034_s15 + $0xdc8] ss:$16 sps:$4 sm:$0xff]  }
 0x1c1   : > { %5437 = vmatpush1.bf16.msra.mxu0 %v8214_v55  ;;  %5970 = vmatpush1.bf16.msra.mxu1 %v8217_v56  ;;  %v8306_v55 = vld [vmem:[%s9034_s15 + $0xde4] ss:$16 sps:$4 sm:$0xff]   ;;  %v8309_v56 = vld [vmem:[%s9034_s15 + $0xdec] ss:$16 sps:$4 sm:$0xff]  }
 0x1c2   : > { %5438 = vmatprep.subr.bf16.mxu0 %v8222_v57  ;;  %5971 = vmatprep.subr.bf16.mxu1 %v8225_v58  ;;  %v9577_v57 = vrot.slane %v352_v33, %v9104_v50  ;;  %v8307_v58 = vld [vmem:[%s9034_s15 + $0xde8] ss:$16 sps:$4 sm:$0xff]  }
 0x1c3   : > { %5468 = vmatprep.mubr.bf16.mxu0 %v448_v59  ;;  %6001 = vmatprep.mubr.bf16.mxu1 %v448_v59  ;;  %v8312_v59 = vld [vmem:[%s9034_s15 + $0xe04] ss:$16 sps:$4 sm:$0xff]   ;;  %v8385_v33 = vld [vmem:[%s9034_s15 + $0xf88] ss:$16 sps:$4 sm:$0xff]  }
 0x1c5   : > { %5439 = vmatpush1.bf16.msra.mxu0 %v8220_v41  ;;  %5972 = vmatpush1.bf16.msra.mxu1 %v8223_v60  ;;  %v8315_v41 = vld [vmem:[%s9034_s15 + $0xe0c] ss:$16 sps:$4 sm:$0xff]   ;;  %v368_v60 = vcombine.high %v9577_v57, %v9577_v57 }
 0x1c6   : > { %5440 = vmatprep.subr.bf16.mxu0 %v8228_v61  ;;  %5973 = vmatprep.subr.bf16.mxu1 %v8231_v62  ;;  %v447_v61 = vpack.c.bf16 %v9504_v48, %v9504_v48  ;;  %v8310_v62 = vld [vmem:[%s9034_s15 + $0xe00] ss:$16 sps:$4 sm:$0xff]  }
 0x1c7   : > { %v8316_v48 = vld [vmem:[%s9034_s15 + $0xe20] ss:$16 sps:$4 sm:$0xff]  }
 0x1c9   : > { %5441 = vmatpush1.bf16.msra.mxu0 %v8226_v63  ;;  %5974 = vmatpush1.bf16.msra.mxu1 %v8229_v0  ;;  %v8313_v63 = vld [vmem:[%s9034_s15 + $0xe08] ss:$16 sps:$4 sm:$0xff]   ;;  %v8318_v0 = vld [vmem:[%s9034_s15 + $0xe24] ss:$16 sps:$4 sm:$0xff]  }
 0x1ca   : > { %5442 = vmatprep.subr.bf16.mxu0 %v8234_v1  ;;  %5975 = vmatprep.subr.bf16.mxu1 %v8237_v2  ;;  %v8321_v1 = vld [vmem:[%s9034_s15 + $0xe2c] ss:$16 sps:$4 sm:$0xff]   ;;  %v450_v2 = vpack.c.bf16 %v368_v60, %v368_v60  ;;  %v8397_v60 = vld [vmem:[%s9034_s15 + $0xfc8] ss:$16 sps:$4 sm:$0xff]  }
 0x1cd   : > { %5443 = vmatpush1.bf16.msra.mxu0 %v8232_v3  ;;  %5976 = vmatpush1.bf16.msra.mxu1 %v8235_v4  ;;  %v8319_v3 = vld [vmem:[%s9034_s15 + $0xe28] ss:$16 sps:$4 sm:$0xff]   ;;  %v8324_v4 = vld [vmem:[%s9034_s15 + $0xe44] ss:$16 sps:$4 sm:$0xff]  }
 0x1ce   : > { %5444 = vmatprep.subr.bf16.mxu0 %v8240_v5  ;;  %5977 = vmatprep.subr.bf16.mxu1 %v8243_v6  ;;  %v8327_v5 = vld [vmem:[%s9034_s15 + $0xe4c] ss:$16 sps:$4 sm:$0xff]   ;;  %v8322_v6 = vld [vmem:[%s9034_s15 + $0xe40] ss:$16 sps:$4 sm:$0xff]  }
 0x1d1   : > { %5445 = vmatpush1.bf16.msra.mxu0 %v8238_v7  ;;  %5978 = vmatpush1.bf16.msra.mxu1 %v8241_v8  ;;  %v8325_v7 = vld [vmem:[%s9034_s15 + $0xe48] ss:$16 sps:$4 sm:$0xff]   ;;  %v8330_v8 = vld [vmem:[%s9034_s15 + $0xe64] ss:$16 sps:$4 sm:$0xff]  }
 0x1d2   : > { %5446 = vmatprep.subr.bf16.mxu0 %v8246_v9  ;;  %5979 = vmatprep.subr.bf16.mxu1 %v8249_v11  ;;  %v8333_v9 = vld [vmem:[%s9034_s15 + $0xe6c] ss:$16 sps:$4 sm:$0xff]   ;;  %v8328_v11 = vld [vmem:[%s9034_s15 + $0xe60] ss:$16 sps:$4 sm:$0xff]  }
 0x1d5   : > { %5447 = vmatpush1.bf16.msra.mxu0 %v8244_v12  ;;  %5980 = vmatpush1.bf16.msra.mxu1 %v8247_v13  ;;  %v8331_v12 = vld [vmem:[%s9034_s15 + $0xe68] ss:$16 sps:$4 sm:$0xff]   ;;  %v8336_v13 = vld [vmem:[%s9034_s15 + $0xe84] ss:$16 sps:$4 sm:$0xff]  }
 0x1d6   : > { %5448 = vmatprep.subr.bf16.mxu0 %v8252_v14  ;;  %5981 = vmatprep.subr.bf16.mxu1 %v8255_v15  ;;  %v8339_v14 = vld [vmem:[%s9034_s15 + $0xe8c] ss:$16 sps:$4 sm:$0xff]   ;;  %v8334_v15 = vld [vmem:[%s9034_s15 + $0xe80] ss:$16 sps:$4 sm:$0xff]  }
 0x1d9   : > { %5449 = vmatpush1.bf16.msra.mxu0 %v8250_v16  ;;  %5982 = vmatpush1.bf16.msra.mxu1 %v8253_v17  ;;  %v8337_v16 = vld [vmem:[%s9034_s15 + $0xe88] ss:$16 sps:$4 sm:$0xff]   ;;  %v8342_v17 = vld [vmem:[%s9034_s15 + $0xea4] ss:$16 sps:$4 sm:$0xff]  }
 0x1da   : > { %5450 = vmatprep.subr.bf16.mxu0 %v8258_v18  ;;  %5983 = vmatprep.subr.bf16.mxu1 %v8261_v19  ;;  %v8345_v18 = vld [vmem:[%s9034_s15 + $0xeac] ss:$16 sps:$4 sm:$0xff]   ;;  %v8340_v19 = vld [vmem:[%s9034_s15 + $0xea0] ss:$16 sps:$4 sm:$0xff]  }
 0x1dd   : > { %5451 = vmatpush1.bf16.msra.mxu0 %v8256_v20  ;;  %5984 = vmatpush1.bf16.msra.mxu1 %v8259_v21  ;;  %v8343_v20 = vld [vmem:[%s9034_s15 + $0xea8] ss:$16 sps:$4 sm:$0xff]   ;;  %v8348_v21 = vld [vmem:[%s9034_s15 + $0xec4] ss:$16 sps:$4 sm:$0xff]  }
 0x1de   : > { %5452 = vmatprep.subr.bf16.mxu0 %v8264_v22  ;;  %5985 = vmatprep.subr.bf16.mxu1 %v8267_v23  ;;  %v8351_v22 = vld [vmem:[%s9034_s15 + $0xecc] ss:$16 sps:$4 sm:$0xff]   ;;  %v8346_v23 = vld [vmem:[%s9034_s15 + $0xec0] ss:$16 sps:$4 sm:$0xff]  }
 0x1e1   : > { %5453 = vmatpush1.bf16.msra.mxu0 %v8262_v25  ;;  %5986 = vmatpush1.bf16.msra.mxu1 %v8265_v24  ;;  %v8349_v25 = vld [vmem:[%s9034_s15 + $0xec8] ss:$16 sps:$4 sm:$0xff]   ;;  %v8354_v24 = vld [vmem:[%s9034_s15 + $0xee4] ss:$16 sps:$4 sm:$0xff]  }
 0x1e2   : > { %5454 = vmatprep.subr.bf16.mxu0 %v8270_v10  ;;  %5987 = vmatprep.subr.bf16.mxu1 %v8273_v28  ;;  %v8357_v10 = vld [vmem:[%s9034_s15 + $0xeec] ss:$16 sps:$4 sm:$0xff]   ;;  %v8352_v28 = vld [vmem:[%s9034_s15 + $0xee0] ss:$16 sps:$4 sm:$0xff]  }
 0x1e5   : > { %5455 = vmatpush1.bf16.msra.mxu0 %v8268_v30  ;;  %5988 = vmatpush1.bf16.msra.mxu1 %v8271_v31  ;;  %v8355_v30 = vld [vmem:[%s9034_s15 + $0xee8] ss:$16 sps:$4 sm:$0xff]   ;;  %v8360_v31 = vld [vmem:[%s9034_s15 + $0xf04] ss:$16 sps:$4 sm:$0xff]  }
 0x1e6   : > { %5456 = vmatprep.subr.bf16.mxu0 %v8276_v32  ;;  %5989 = vmatprep.subr.bf16.mxu1 %v8279_v34  ;;  %v8363_v32 = vld [vmem:[%s9034_s15 + $0xf0c] ss:$16 sps:$4 sm:$0xff]   ;;  %v8358_v34 = vld [vmem:[%s9034_s15 + $0xf00] ss:$16 sps:$4 sm:$0xff]  }
 0x1e9   : > { %5457 = vmatpush1.bf16.msra.mxu0 %v8274_v35  ;;  %5990 = vmatpush1.bf16.msra.mxu1 %v8277_v36  ;;  %v8361_v35 = vld [vmem:[%s9034_s15 + $0xf08] ss:$16 sps:$4 sm:$0xff]   ;;  %v8366_v36 = vld [vmem:[%s9034_s15 + $0xf24] ss:$16 sps:$4 sm:$0xff]  }
 0x1ea   : > { %5458 = vmatprep.subr.bf16.mxu0 %v8282_v27  ;;  %5991 = vmatprep.subr.bf16.mxu1 %v8285_v37  ;;  %v8369_v27 = vld [vmem:[%s9034_s15 + $0xf2c] ss:$16 sps:$4 sm:$0xff]   ;;  %v8364_v37 = vld [vmem:[%s9034_s15 + $0xf20] ss:$16 sps:$4 sm:$0xff]  }
 0x1ed   : > { %5459 = vmatpush1.bf16.msra.mxu0 %v8280_v38  ;;  %5992 = vmatpush1.bf16.msra.mxu1 %v8283_v39  ;;  %v8367_v38 = vld [vmem:[%s9034_s15 + $0xf28] ss:$16 sps:$4 sm:$0xff]   ;;  %v8372_v39 = vld [vmem:[%s9034_s15 + $0xf44] ss:$16 sps:$4 sm:$0xff]  }
 0x1ee   : > { %5460 = vmatprep.subr.bf16.mxu0 %v8288_v40  ;;  %5993 = vmatprep.subr.bf16.mxu1 %v8291_v29  ;;  %v8375_v40 = vld [vmem:[%s9034_s15 + $0xf4c] ss:$16 sps:$4 sm:$0xff]   ;;  %v8370_v29 = vld [vmem:[%s9034_s15 + $0xf40] ss:$16 sps:$4 sm:$0xff]  }
 0x1f1   : > { %5461 = vmatpush1.bf16.msra.mxu0 %v8286_v42  ;;  %5994 = vmatpush1.bf16.msra.mxu1 %v8289_v45  ;;  %v8373_v42 = vld [vmem:[%s9034_s15 + $0xf48] ss:$16 sps:$4 sm:$0xff]   ;;  %v8378_v45 = vld [vmem:[%s9034_s15 + $0xf64] ss:$16 sps:$4 sm:$0xff]  }
 0x1f2   : > { %5462 = vmatprep.subr.bf16.mxu0 %v8294_v46  ;;  %5995 = vmatprep.subr.bf16.mxu1 %v8297_v26  ;;  %v8381_v46 = vld [vmem:[%s9034_s15 + $0xf6c] ss:$16 sps:$4 sm:$0xff]   ;;  %v8376_v26 = vld [vmem:[%s9034_s15 + $0xf60] ss:$16 sps:$4 sm:$0xff]  }
 0x1f5   : > { %5463 = vmatpush1.bf16.msra.mxu0 %v8292_v47  ;;  %5996 = vmatpush1.bf16.msra.mxu1 %v8295_v49  ;;  %v8379_v47 = vld [vmem:[%s9034_s15 + $0xf68] ss:$16 sps:$4 sm:$0xff]   ;;  %v8384_v49 = vld [vmem:[%s9034_s15 + $0xf84] ss:$16 sps:$4 sm:$0xff]  }
 0x1f6   : > { %5464 = vmatprep.subr.bf16.mxu0 %v8300_v51  ;;  %5997 = vmatprep.subr.bf16.mxu1 %v8303_v52  ;;  %v8387_v51 = vld [vmem:[%s9034_s15 + $0xf8c] ss:$16 sps:$4 sm:$0xff]   ;;  %v8382_v52 = vld [vmem:[%s9034_s15 + $0xf80] ss:$16 sps:$4 sm:$0xff]  }
 0x1f9   : > { %5465 = vmatpush1.bf16.msra.mxu0 %v8298_v53  ;;  %5998 = vmatpush1.bf16.msra.mxu1 %v8301_v54  ;;  %v8390_v53 = vld [vmem:[%s9034_s15 + $0xfa4] ss:$16 sps:$4 sm:$0xff]   ;;  %v8393_v54 = vld [vmem:[%s9034_s15 + $0xfac] ss:$16 sps:$4 sm:$0xff]  }
 0x1fa   : > { %5466 = vmatprep.subr.bf16.mxu0 %v8306_v55  ;;  %5999 = vmatprep.subr.bf16.mxu1 %v8309_v56  ;;  %v8388_v55 = vld [vmem:[%s9034_s15 + $0xfa0] ss:$16 sps:$4 sm:$0xff]   ;;  %v8391_v56 = vld [vmem:[%s9034_s15 + $0xfa8] ss:$16 sps:$4 sm:$0xff]  }
 0x1fd   : > { %5467 = vmatpush1.bf16.msra.mxu0 %v8304_v43  ;;  %6000 = vmatpush1.bf16.msra.mxu1 %v8307_v58  ;;  %v8396_v43 = vld [vmem:[%s9034_s15 + $0xfc4] ss:$16 sps:$4 sm:$0xff]   ;;  %v8399_v58 = vld [vmem:[%s9034_s15 + $0xfcc] ss:$16 sps:$4 sm:$0xff]  }
 0x1fe   : > { %5477 = vmatprep.subr.bf16.mxu0 %v8312_v59  ;;  %6010 = vmatprep.subr.bf16.mxu1 %v8315_v41  ;;  %v9646_v59 = vld [vmem:[%s10081_s0 + $0x20] sm:$0xff] }
 0x1ff   : > { %v8394_v41 = vld [vmem:[%s9034_s15 + $0xfc0] ss:$16 sps:$4 sm:$0xff]  }
 0x200   : > { %5469 = vmatmul.mubr.bf16.vlgmr.msra.gmra.mrb[0].mxu0 %v447_v61  ;;  %6002 = vmatmul.mubr.bf16.vlgmr.msra.gmra.mrb[0].mxu1 %v447_v61  ;;  %v8402_v61 = vld [vmem:[%s9034_s15 + $0xfe4] ss:$16 sps:$4 sm:$0xff]  }
 0x201   : > { %5478 = vmatpush1.bf16.msra.mxu0 %v8310_v62  ;;  %6011 = vmatpush1.bf16.msra.mxu1 %v8313_v63  ;;  %v8405_v62 = vld [vmem:[%s9034_s15 + $0xfec] ss:$16 sps:$4 sm:$0xff]   ;;  %v9654_v63 = vrot.slane %v9646_v59, %v9104_v50 }
 0x202   : > { %5479 = vmatprep.subr.bf16.mxu0 %v8318_v0  ;;  %6012 = vmatprep.subr.bf16.mxu1 %v8321_v1  ;;  %v8400_v0 = vld [vmem:[%s9034_s15 + $0xfe0] ss:$16 sps:$4 sm:$0xff]   ;;  %v8403_v1 = vld [vmem:[%s9034_s15 + $0xfe8] ss:$16 sps:$4 sm:$0xff]  }
 0x203   : > { %5509 = vmatprep.mubr.bf16.mxu0 %v450_v2  ;;  %6042 = vmatprep.mubr.bf16.mxu1 %v450_v2  ;;  %v8409_v2 = vld [vmem:[%s9034_s15 + $0x1004] ss:$16 sps:$4 sm:$0xff]  }
 0x205   : > { %5480 = vmatpush1.bf16.msra.mxu0 %v8316_v48  ;;  %6013 = vmatpush1.bf16.msra.mxu1 %v8319_v3  ;;  %v8412_v48 = vld [vmem:[%s9034_s15 + $0x100c] ss:$16 sps:$4 sm:$0xff]   ;;  %v384_v3 = vcombine.high %v9654_v63, %v9654_v63 }
 0x206   : > { %5481 = vmatprep.subr.bf16.mxu0 %v8324_v4  ;;  %6014 = vmatprep.subr.bf16.mxu1 %v8327_v5  ;;  %v449_v4 = vpack.c.bf16 %v9577_v57, %v9577_v57  ;;  %v8407_v5 = vld [vmem:[%s9034_s15 + $0x1000] ss:$16 sps:$4 sm:$0xff]  }
 0x207   : > { %v8413_v57 = vld [vmem:[%s9034_s15 + $0x1020] ss:$16 sps:$4 sm:$0xff]  }
 0x209   : > { %5482 = vmatpush1.bf16.msra.mxu0 %v8322_v6  ;;  %6015 = vmatpush1.bf16.msra.mxu1 %v8325_v7  ;;  %v8410_v6 = vld [vmem:[%s9034_s15 + $0x1008] ss:$16 sps:$4 sm:$0xff]   ;;  %v8415_v7 = vld [vmem:[%s9034_s15 + $0x1024] ss:$16 sps:$4 sm:$0xff]  }
 0x20a   : > { %5483 = vmatprep.subr.bf16.mxu0 %v8330_v8  ;;  %6016 = vmatprep.subr.bf16.mxu1 %v8333_v9  ;;  %v8418_v8 = vld [vmem:[%s9034_s15 + $0x102c] ss:$16 sps:$4 sm:$0xff]   ;;  %v452_v9 = vpack.c.bf16 %v384_v3, %v384_v3  ;;  %v8491_v3 = vld [vmem:[%s9034_s15 + $0x11c0] ss:$16 sps:$4 sm:$0xff]  }
 0x20d   : > { %5484 = vmatpush1.bf16.msra.mxu0 %v8328_v11  ;;  %6017 = vmatpush1.bf16.msra.mxu1 %v8331_v12  ;;  %v8416_v11 = vld [vmem:[%s9034_s15 + $0x1028] ss:$16 sps:$4 sm:$0xff]   ;;  %v8421_v12 = vld [vmem:[%s9034_s15 + $0x1044] ss:$16 sps:$4 sm:$0xff]  }
 0x20e   : > { %5485 = vmatprep.subr.bf16.mxu0 %v8336_v13  ;;  %6018 = vmatprep.subr.bf16.mxu1 %v8339_v14  ;;  %v8424_v13 = vld [vmem:[%s9034_s15 + $0x104c] ss:$16 sps:$4 sm:$0xff]   ;;  %v8419_v14 = vld [vmem:[%s9034_s15 + $0x1040] ss:$16 sps:$4 sm:$0xff]  }
 0x211   : > { %5486 = vmatpush1.bf16.msra.mxu0 %v8334_v15  ;;  %6019 = vmatpush1.bf16.msra.mxu1 %v8337_v16  ;;  %v8422_v15 = vld [vmem:[%s9034_s15 + $0x1048] ss:$16 sps:$4 sm:$0xff]   ;;  %v8427_v16 = vld [vmem:[%s9034_s15 + $0x1064] ss:$16 sps:$4 sm:$0xff]  }
 0x212   : > { %5487 = vmatprep.subr.bf16.mxu0 %v8342_v17  ;;  %6020 = vmatprep.subr.bf16.mxu1 %v8345_v18  ;;  %v8430_v17 = vld [vmem:[%s9034_s15 + $0x106c] ss:$16 sps:$4 sm:$0xff]   ;;  %v8425_v18 = vld [vmem:[%s9034_s15 + $0x1060] ss:$16 sps:$4 sm:$0xff]  }
 0x215   : > { %5488 = vmatpush1.bf16.msra.mxu0 %v8340_v19  ;;  %6021 = vmatpush1.bf16.msra.mxu1 %v8343_v20  ;;  %v8428_v19 = vld [vmem:[%s9034_s15 + $0x1068] ss:$16 sps:$4 sm:$0xff]   ;;  %v8433_v20 = vld [vmem:[%s9034_s15 + $0x1084] ss:$16 sps:$4 sm:$0xff]  }
 0x216   : > { %5489 = vmatprep.subr.bf16.mxu0 %v8348_v21  ;;  %6022 = vmatprep.subr.bf16.mxu1 %v8351_v22  ;;  %v8436_v21 = vld [vmem:[%s9034_s15 + $0x108c] ss:$16 sps:$4 sm:$0xff]   ;;  %v8431_v22 = vld [vmem:[%s9034_s15 + $0x1080] ss:$16 sps:$4 sm:$0xff]  }
 0x219   : > { %5490 = vmatpush1.bf16.msra.mxu0 %v8346_v23  ;;  %6023 = vmatpush1.bf16.msra.mxu1 %v8349_v25  ;;  %v8434_v23 = vld [vmem:[%s9034_s15 + $0x1088] ss:$16 sps:$4 sm:$0xff]   ;;  %v8439_v25 = vld [vmem:[%s9034_s15 + $0x10a4] ss:$16 sps:$4 sm:$0xff]  }
 0x21a   : > { %5491 = vmatprep.subr.bf16.mxu0 %v8354_v24  ;;  %6024 = vmatprep.subr.bf16.mxu1 %v8357_v10  ;;  %v8442_v24 = vld [vmem:[%s9034_s15 + $0x10ac] ss:$16 sps:$4 sm:$0xff]   ;;  %v8437_v10 = vld [vmem:[%s9034_s15 + $0x10a0] ss:$16 sps:$4 sm:$0xff]  }
 0x21d   : > { %5492 = vmatpush1.bf16.msra.mxu0 %v8352_v28  ;;  %6025 = vmatpush1.bf16.msra.mxu1 %v8355_v30  ;;  %v8440_v28 = vld [vmem:[%s9034_s15 + $0x10a8] ss:$16 sps:$4 sm:$0xff]   ;;  %v8445_v30 = vld [vmem:[%s9034_s15 + $0x10c4] ss:$16 sps:$4 sm:$0xff]  }
 0x21e   : > { %5493 = vmatprep.subr.bf16.mxu0 %v8360_v31  ;;  %6026 = vmatprep.subr.bf16.mxu1 %v8363_v32  ;;  %v8448_v31 = vld [vmem:[%s9034_s15 + $0x10cc] ss:$16 sps:$4 sm:$0xff]   ;;  %v8443_v32 = vld [vmem:[%s9034_s15 + $0x10c0] ss:$16 sps:$4 sm:$0xff]  }
 0x221   : > { %5494 = vmatpush1.bf16.msra.mxu0 %v8358_v34  ;;  %6027 = vmatpush1.bf16.msra.mxu1 %v8361_v35  ;;  %v8446_v34 = vld [vmem:[%s9034_s15 + $0x10c8] ss:$16 sps:$4 sm:$0xff]   ;;  %v8451_v35 = vld [vmem:[%s9034_s15 + $0x10e4] ss:$16 sps:$4 sm:$0xff]  }
 0x222   : > { %5495 = vmatprep.subr.bf16.mxu0 %v8366_v36  ;;  %6028 = vmatprep.subr.bf16.mxu1 %v8369_v27  ;;  %v8454_v36 = vld [vmem:[%s9034_s15 + $0x10ec] ss:$16 sps:$4 sm:$0xff]   ;;  %v8449_v27 = vld [vmem:[%s9034_s15 + $0x10e0] ss:$16 sps:$4 sm:$0xff]  }
 0x225   : > { %5496 = vmatpush1.bf16.msra.mxu0 %v8364_v37  ;;  %6029 = vmatpush1.bf16.msra.mxu1 %v8367_v38  ;;  %v8452_v37 = vld [vmem:[%s9034_s15 + $0x10e8] ss:$16 sps:$4 sm:$0xff]   ;;  %v8457_v38 = vld [vmem:[%s9034_s15 + $0x1104] ss:$16 sps:$4 sm:$0xff]  }
 0x226   : > { %5497 = vmatprep.subr.bf16.mxu0 %v8372_v39  ;;  %6030 = vmatprep.subr.bf16.mxu1 %v8375_v40  ;;  %v8460_v39 = vld [vmem:[%s9034_s15 + $0x110c] ss:$16 sps:$4 sm:$0xff]   ;;  %v8455_v40 = vld [vmem:[%s9034_s15 + $0x1100] ss:$16 sps:$4 sm:$0xff]  }
 0x229   : > { %5498 = vmatpush1.bf16.msra.mxu0 %v8370_v29  ;;  %6031 = vmatpush1.bf16.msra.mxu1 %v8373_v42  ;;  %v8458_v29 = vld [vmem:[%s9034_s15 + $0x1108] ss:$16 sps:$4 sm:$0xff]   ;;  %v8463_v42 = vld [vmem:[%s9034_s15 + $0x1124] ss:$16 sps:$4 sm:$0xff]  }
 0x22a   : > { %5499 = vmatprep.subr.bf16.mxu0 %v8378_v45  ;;  %6032 = vmatprep.subr.bf16.mxu1 %v8381_v46  ;;  %v8466_v45 = vld [vmem:[%s9034_s15 + $0x112c] ss:$16 sps:$4 sm:$0xff]   ;;  %v8461_v46 = vld [vmem:[%s9034_s15 + $0x1120] ss:$16 sps:$4 sm:$0xff]  }
 0x22d   : > { %5500 = vmatpush1.bf16.msra.mxu0 %v8376_v26  ;;  %6033 = vmatpush1.bf16.msra.mxu1 %v8379_v47  ;;  %v8464_v26 = vld [vmem:[%s9034_s15 + $0x1128] ss:$16 sps:$4 sm:$0xff]   ;;  %v8469_v47 = vld [vmem:[%s9034_s15 + $0x1144] ss:$16 sps:$4 sm:$0xff]  }
 0x22e   : > { %5501 = vmatprep.subr.bf16.mxu0 %v8384_v49  ;;  %6034 = vmatprep.subr.bf16.mxu1 %v8387_v51  ;;  %v8472_v49 = vld [vmem:[%s9034_s15 + $0x114c] ss:$16 sps:$4 sm:$0xff]   ;;  %v8467_v51 = vld [vmem:[%s9034_s15 + $0x1140] ss:$16 sps:$4 sm:$0xff]  }
 0x231   : > { %5502 = vmatpush1.bf16.msra.mxu0 %v8382_v52  ;;  %6035 = vmatpush1.bf16.msra.mxu1 %v8385_v33  ;;  %v8470_v52 = vld [vmem:[%s9034_s15 + $0x1148] ss:$16 sps:$4 sm:$0xff]   ;;  %v8475_v33 = vld [vmem:[%s9034_s15 + $0x1164] ss:$16 sps:$4 sm:$0xff]  }
 0x232   : > { %5503 = vmatprep.subr.bf16.mxu0 %v8390_v53  ;;  %6036 = vmatprep.subr.bf16.mxu1 %v8393_v54  ;;  %v8478_v53 = vld [vmem:[%s9034_s15 + $0x116c] ss:$16 sps:$4 sm:$0xff]   ;;  %v8473_v54 = vld [vmem:[%s9034_s15 + $0x1160] ss:$16 sps:$4 sm:$0xff]  }
 0x235   : > { %5504 = vmatpush1.bf16.msra.mxu0 %v8388_v55  ;;  %6037 = vmatpush1.bf16.msra.mxu1 %v8391_v56  ;;  %v8476_v55 = vld [vmem:[%s9034_s15 + $0x1168] ss:$16 sps:$4 sm:$0xff]   ;;  %v8481_v56 = vld [vmem:[%s9034_s15 + $0x1184] ss:$16 sps:$4 sm:$0xff]  }
 0x236   : > { %5505 = vmatprep.subr.bf16.mxu0 %v8396_v43  ;;  %6038 = vmatprep.subr.bf16.mxu1 %v8399_v58  ;;  %v8484_v43 = vld [vmem:[%s9034_s15 + $0x118c] ss:$16 sps:$4 sm:$0xff]   ;;  %v8479_v58 = vld [vmem:[%s9034_s15 + $0x1180] ss:$16 sps:$4 sm:$0xff]  }
 0x239   : > { %5506 = vmatpush1.bf16.msra.mxu0 %v8394_v41  ;;  %6039 = vmatpush1.bf16.msra.mxu1 %v8397_v60  ;;  %v8482_v41 = vld [vmem:[%s9034_s15 + $0x1188] ss:$16 sps:$4 sm:$0xff]   ;;  %v8487_v60 = vld [vmem:[%s9034_s15 + $0x11a4] ss:$16 sps:$4 sm:$0xff]  }
 0x23a   : > { %5507 = vmatprep.subr.bf16.mxu0 %v8402_v61  ;;  %6040 = vmatprep.subr.bf16.mxu1 %v8405_v62  ;;  %v8490_v61 = vld [vmem:[%s9034_s15 + $0x11ac] ss:$16 sps:$4 sm:$0xff]   ;;  %v8485_v62 = vld [vmem:[%s9034_s15 + $0x11a0] ss:$16 sps:$4 sm:$0xff]  }
 0x23d   : > { %5508 = vmatpush1.bf16.msra.mxu0 %v8400_v0  ;;  %6041 = vmatpush1.bf16.msra.mxu1 %v8403_v1  ;;  %v8488_v0 = vld [vmem:[%s9034_s15 + $0x11a8] ss:$16 sps:$4 sm:$0xff]   ;;  %v8493_v1 = vld [vmem:[%s9034_s15 + $0x11c4] ss:$16 sps:$4 sm:$0xff]  }
 0x23e   : > { %5518 = vmatprep.subr.bf16.mxu0 %v8409_v2  ;;  %6051 = vmatprep.subr.bf16.mxu1 %v8412_v48  ;;  %v8496_v2 = vld [vmem:[%s9034_s15 + $0x11cc] ss:$16 sps:$4 sm:$0xff]   ;;  %v369_v48 = vcombine.high %v9646_v59, %v9646_v59  ;;  %v8497_v59 = vld [vmem:[%s9034_s15 + $0x11e0] ss:$16 sps:$4 sm:$0xff]  }
 0x240   : > { %5510 = vmatmul.mubr.bf16.vlgmr.msra.gmra.mrb[0].mxu0 %v449_v4  ;;  %6043 = vmatmul.mubr.bf16.vlgmr.msra.gmra.mrb[0].mxu1 %v449_v4  ;;  %v8494_v4 = vld [vmem:[%s9034_s15 + $0x11c8] ss:$16 sps:$4 sm:$0xff]  }
 0x241   : > { %5519 = vmatpush1.bf16.msra.mxu0 %v8407_v5  ;;  %6052 = vmatpush1.bf16.msra.mxu1 %v8410_v6  ;;  %v8499_v5 = vld [vmem:[%s9034_s15 + $0x11e4] ss:$16 sps:$4 sm:$0xff]   ;;  %v8502_v6 = vld [vmem:[%s9034_s15 + $0x11ec] ss:$16 sps:$4 sm:$0xff]  }
 0x242   : > { %5520 = vmatprep.subr.bf16.mxu0 %v8415_v7  ;;  %6053 = vmatprep.subr.bf16.mxu1 %v8418_v8  ;;  %v9727_v7 = vrot.slane %v369_v48, %v9104_v50  ;;  %v8500_v8 = vld [vmem:[%s9034_s15 + $0x11e8] ss:$16 sps:$4 sm:$0xff]  }
 0x243   : > { %5550 = vmatprep.mubr.bf16.mxu0 %v452_v9  ;;  %6083 = vmatprep.mubr.bf16.mxu1 %v452_v9  ;;  %v8505_v9 = vld [vmem:[%s9034_s15 + $0x1204] ss:$16 sps:$4 sm:$0xff]   ;;  %v8578_v48 = vld [vmem:[%s9034_s15 + $0x1388] ss:$16 sps:$4 sm:$0xff]  }
 0x245   : > { %5521 = vmatpush1.bf16.msra.mxu0 %v8413_v57  ;;  %6054 = vmatpush1.bf16.msra.mxu1 %v8416_v11  ;;  %v8508_v57 = vld [vmem:[%s9034_s15 + $0x120c] ss:$16 sps:$4 sm:$0xff]   ;;  %v385_v11 = vcombine.high %v9727_v7, %v9727_v7 }
 0x246   : > { %5522 = vmatprep.subr.bf16.mxu0 %v8421_v12  ;;  %6055 = vmatprep.subr.bf16.mxu1 %v8424_v13  ;;  %v451_v12 = vpack.c.bf16 %v9654_v63, %v9654_v63  ;;  %v8503_v13 = vld [vmem:[%s9034_s15 + $0x1200] ss:$16 sps:$4 sm:$0xff]  }
 0x247   : > { %v8509_v63 = vld [vmem:[%s9034_s15 + $0x1220] ss:$16 sps:$4 sm:$0xff]  }
 0x249   : > { %5523 = vmatpush1.bf16.msra.mxu0 %v8419_v14  ;;  %6056 = vmatpush1.bf16.msra.mxu1 %v8422_v15  ;;  %v8506_v14 = vld [vmem:[%s9034_s15 + $0x1208] ss:$16 sps:$4 sm:$0xff]   ;;  %v8511_v15 = vld [vmem:[%s9034_s15 + $0x1224] ss:$16 sps:$4 sm:$0xff]  }
 0x24a   : > { %5524 = vmatprep.subr.bf16.mxu0 %v8427_v16  ;;  %6057 = vmatprep.subr.bf16.mxu1 %v8430_v17  ;;  %v8514_v16 = vld [vmem:[%s9034_s15 + $0x122c] ss:$16 sps:$4 sm:$0xff]   ;;  %v454_v17 = vpack.c.bf16 %v385_v11, %v385_v11  ;;  %v8590_v11 = vld [vmem:[%s9034_s15 + $0x13c8] ss:$16 sps:$4 sm:$0xff]  }
 0x24d   : > { %5525 = vmatpush1.bf16.msra.mxu0 %v8425_v18  ;;  %6058 = vmatpush1.bf16.msra.mxu1 %v8428_v19  ;;  %v8512_v18 = vld [vmem:[%s9034_s15 + $0x1228] ss:$16 sps:$4 sm:$0xff]   ;;  %v8517_v19 = vld [vmem:[%s9034_s15 + $0x1244] ss:$16 sps:$4 sm:$0xff]  }
 0x24e   : > { %5526 = vmatprep.subr.bf16.mxu0 %v8433_v20  ;;  %6059 = vmatprep.subr.bf16.mxu1 %v8436_v21  ;;  %v8520_v20 = vld [vmem:[%s9034_s15 + $0x124c] ss:$16 sps:$4 sm:$0xff]   ;;  %v8515_v21 = vld [vmem:[%s9034_s15 + $0x1240] ss:$16 sps:$4 sm:$0xff]  }
 0x251   : > { %5527 = vmatpush1.bf16.msra.mxu0 %v8431_v22  ;;  %6060 = vmatpush1.bf16.msra.mxu1 %v8434_v23  ;;  %v8518_v22 = vld [vmem:[%s9034_s15 + $0x1248] ss:$16 sps:$4 sm:$0xff]   ;;  %v8523_v23 = vld [vmem:[%s9034_s15 + $0x1264] ss:$16 sps:$4 sm:$0xff]  }
 0x252   : > { %5528 = vmatprep.subr.bf16.mxu0 %v8439_v25  ;;  %6061 = vmatprep.subr.bf16.mxu1 %v8442_v24  ;;  %v8526_v25 = vld [vmem:[%s9034_s15 + $0x126c] ss:$16 sps:$4 sm:$0xff]   ;;  %v8521_v24 = vld [vmem:[%s9034_s15 + $0x1260] ss:$16 sps:$4 sm:$0xff]  }
 0x255   : > { %5529 = vmatpush1.bf16.msra.mxu0 %v8437_v10  ;;  %6062 = vmatpush1.bf16.msra.mxu1 %v8440_v28  ;;  %v8524_v10 = vld [vmem:[%s9034_s15 + $0x1268] ss:$16 sps:$4 sm:$0xff]   ;;  %v8529_v28 = vld [vmem:[%s9034_s15 + $0x1284] ss:$16 sps:$4 sm:$0xff]  }
 0x256   : > { %5530 = vmatprep.subr.bf16.mxu0 %v8445_v30  ;;  %6063 = vmatprep.subr.bf16.mxu1 %v8448_v31  ;;  %v8532_v30 = vld [vmem:[%s9034_s15 + $0x128c] ss:$16 sps:$4 sm:$0xff]   ;;  %v8527_v31 = vld [vmem:[%s9034_s15 + $0x1280] ss:$16 sps:$4 sm:$0xff]  }
 0x259   : > { %5531 = vmatpush1.bf16.msra.mxu0 %v8443_v32  ;;  %6064 = vmatpush1.bf16.msra.mxu1 %v8446_v34  ;;  %v8530_v32 = vld [vmem:[%s9034_s15 + $0x1288] ss:$16 sps:$4 sm:$0xff]   ;;  %v8535_v34 = vld [vmem:[%s9034_s15 + $0x12a4] ss:$16 sps:$4 sm:$0xff]  }
 0x25a   : > { %5532 = vmatprep.subr.bf16.mxu0 %v8451_v35  ;;  %6065 = vmatprep.subr.bf16.mxu1 %v8454_v36  ;;  %v8538_v35 = vld [vmem:[%s9034_s15 + $0x12ac] ss:$16 sps:$4 sm:$0xff]   ;;  %v8533_v36 = vld [vmem:[%s9034_s15 + $0x12a0] ss:$16 sps:$4 sm:$0xff]  }
 0x25d   : > { %5533 = vmatpush1.bf16.msra.mxu0 %v8449_v27  ;;  %6066 = vmatpush1.bf16.msra.mxu1 %v8452_v37  ;;  %v8536_v27 = vld [vmem:[%s9034_s15 + $0x12a8] ss:$16 sps:$4 sm:$0xff]   ;;  %v8541_v37 = vld [vmem:[%s9034_s15 + $0x12c4] ss:$16 sps:$4 sm:$0xff]  }
 0x25e   : > { %5534 = vmatprep.subr.bf16.mxu0 %v8457_v38  ;;  %6067 = vmatprep.subr.bf16.mxu1 %v8460_v39  ;;  %v8544_v38 = vld [vmem:[%s9034_s15 + $0x12cc] ss:$16 sps:$4 sm:$0xff]   ;;  %v8539_v39 = vld [vmem:[%s9034_s15 + $0x12c0] ss:$16 sps:$4 sm:$0xff]  }
 0x261   : > { %5535 = vmatpush1.bf16.msra.mxu0 %v8455_v40  ;;  %6068 = vmatpush1.bf16.msra.mxu1 %v8458_v29  ;;  %v8542_v40 = vld [vmem:[%s9034_s15 + $0x12c8] ss:$16 sps:$4 sm:$0xff]   ;;  %v8547_v29 = vld [vmem:[%s9034_s15 + $0x12e4] ss:$16 sps:$4 sm:$0xff]  }
 0x262   : > { %5536 = vmatprep.subr.bf16.mxu0 %v8463_v42  ;;  %6069 = vmatprep.subr.bf16.mxu1 %v8466_v45  ;;  %v8550_v42 = vld [vmem:[%s9034_s15 + $0x12ec] ss:$16 sps:$4 sm:$0xff]   ;;  %v8545_v45 = vld [vmem:[%s9034_s15 + $0x12e0] ss:$16 sps:$4 sm:$0xff]  }
 0x265   : > { %5537 = vmatpush1.bf16.msra.mxu0 %v8461_v46  ;;  %6070 = vmatpush1.bf16.msra.mxu1 %v8464_v26  ;;  %v8548_v46 = vld [vmem:[%s9034_s15 + $0x12e8] ss:$16 sps:$4 sm:$0xff]   ;;  %v8553_v26 = vld [vmem:[%s9034_s15 + $0x1304] ss:$16 sps:$4 sm:$0xff]  }
 0x266   : > { %5538 = vmatprep.subr.bf16.mxu0 %v8469_v47  ;;  %6071 = vmatprep.subr.bf16.mxu1 %v8472_v49  ;;  %v8556_v47 = vld [vmem:[%s9034_s15 + $0x130c] ss:$16 sps:$4 sm:$0xff]   ;;  %v8551_v49 = vld [vmem:[%s9034_s15 + $0x1300] ss:$16 sps:$4 sm:$0xff]  }
 0x269   : > { %5539 = vmatpush1.bf16.msra.mxu0 %v8467_v51  ;;  %6072 = vmatpush1.bf16.msra.mxu1 %v8470_v52  ;;  %v8554_v51 = vld [vmem:[%s9034_s15 + $0x1308] ss:$16 sps:$4 sm:$0xff]   ;;  %v8559_v52 = vld [vmem:[%s9034_s15 + $0x1324] ss:$16 sps:$4 sm:$0xff]  }
 0x26a   : > { %5540 = vmatprep.subr.bf16.mxu0 %v8475_v33  ;;  %6073 = vmatprep.subr.bf16.mxu1 %v8478_v53  ;;  %v8562_v33 = vld [vmem:[%s9034_s15 + $0x132c] ss:$16 sps:$4 sm:$0xff]   ;;  %v8557_v53 = vld [vmem:[%s9034_s15 + $0x1320] ss:$16 sps:$4 sm:$0xff]  }
 0x26d   : > { %5541 = vmatpush1.bf16.msra.mxu0 %v8473_v54  ;;  %6074 = vmatpush1.bf16.msra.mxu1 %v8476_v55  ;;  %v8560_v54 = vld [vmem:[%s9034_s15 + $0x1328] ss:$16 sps:$4 sm:$0xff]   ;;  %v8565_v55 = vld [vmem:[%s9034_s15 + $0x1344] ss:$16 sps:$4 sm:$0xff]  }
 0x26e   : > { %5542 = vmatprep.subr.bf16.mxu0 %v8481_v56  ;;  %6075 = vmatprep.subr.bf16.mxu1 %v8484_v43  ;;  %v8568_v56 = vld [vmem:[%s9034_s15 + $0x134c] ss:$16 sps:$4 sm:$0xff]   ;;  %v8563_v43 = vld [vmem:[%s9034_s15 + $0x1340] ss:$16 sps:$4 sm:$0xff]  }
 0x271   : > { %5543 = vmatpush1.bf16.msra.mxu0 %v8479_v58  ;;  %6076 = vmatpush1.bf16.msra.mxu1 %v8482_v41  ;;  %v8566_v58 = vld [vmem:[%s9034_s15 + $0x1348] ss:$16 sps:$4 sm:$0xff]   ;;  %v8571_v41 = vld [vmem:[%s9034_s15 + $0x1364] ss:$16 sps:$4 sm:$0xff]  }
 0x272   : > { %5544 = vmatprep.subr.bf16.mxu0 %v8487_v60  ;;  %6077 = vmatprep.subr.bf16.mxu1 %v8490_v61  ;;  %v8574_v60 = vld [vmem:[%s9034_s15 + $0x136c] ss:$16 sps:$4 sm:$0xff]   ;;  %v8569_v61 = vld [vmem:[%s9034_s15 + $0x1360] ss:$16 sps:$4 sm:$0xff]  }
 0x275   : > { %5545 = vmatpush1.bf16.msra.mxu0 %v8485_v62  ;;  %6078 = vmatpush1.bf16.msra.mxu1 %v8488_v0  ;;  %v8572_v62 = vld [vmem:[%s9034_s15 + $0x1368] ss:$16 sps:$4 sm:$0xff]   ;;  %v8577_v0 = vld [vmem:[%s9034_s15 + $0x1384] ss:$16 sps:$4 sm:$0xff]  }
 0x276   : > { %5546 = vmatprep.subr.bf16.mxu0 %v8493_v1  ;;  %6079 = vmatprep.subr.bf16.mxu1 %v8496_v2  ;;  %v8580_v1 = vld [vmem:[%s9034_s15 + $0x138c] ss:$16 sps:$4 sm:$0xff]   ;;  %v8575_v2 = vld [vmem:[%s9034_s15 + $0x1380] ss:$16 sps:$4 sm:$0xff]  }
 0x279   : > { %5547 = vmatpush1.bf16.msra.mxu0 %v8491_v3  ;;  %6080 = vmatpush1.bf16.msra.mxu1 %v8494_v4  ;;  %v8583_v3 = vld [vmem:[%s9034_s15 + $0x13a4] ss:$16 sps:$4 sm:$0xff]   ;;  %v8586_v4 = vld [vmem:[%s9034_s15 + $0x13ac] ss:$16 sps:$4 sm:$0xff]  }
 0x27a   : > { %5548 = vmatprep.subr.bf16.mxu0 %v8499_v5  ;;  %6081 = vmatprep.subr.bf16.mxu1 %v8502_v6  ;;  %v8581_v5 = vld [vmem:[%s9034_s15 + $0x13a0] ss:$16 sps:$4 sm:$0xff]   ;;  %v8584_v6 = vld [vmem:[%s9034_s15 + $0x13a8] ss:$16 sps:$4 sm:$0xff]  }
 0x27d   : > { %5549 = vmatpush1.bf16.msra.mxu0 %v8497_v59  ;;  %6082 = vmatpush1.bf16.msra.mxu1 %v8500_v8  ;;  %v8589_v59 = vld [vmem:[%s9034_s15 + $0x13c4] ss:$16 sps:$4 sm:$0xff]   ;;  %v8592_v8 = vld [vmem:[%s9034_s15 + $0x13cc] ss:$16 sps:$4 sm:$0xff]  }
 0x27e   : > { %5559 = vmatprep.subr.bf16.mxu0 %v8505_v9  ;;  %6092 = vmatprep.subr.bf16.mxu1 %v8508_v57  ;;  %v9796_v9 = vld [vmem:[%s10081_s0 + $0x28] sm:$0xff]  ;;  %v8587_v57 = vld [vmem:[%s9034_s15 + $0x13c0] ss:$16 sps:$4 sm:$0xff]  }
 0x280   : > { %5551 = vmatmul.mubr.bf16.vlgmr.msra.gmra.mrb[0].mxu0 %v451_v12  ;;  %6084 = vmatmul.mubr.bf16.vlgmr.msra.gmra.mrb[0].mxu1 %v451_v12  ;;  %v8595_v12 = vld [vmem:[%s9034_s15 + $0x13e4] ss:$16 sps:$4 sm:$0xff]  }
 0x281   : > { %5560 = vmatpush1.bf16.msra.mxu0 %v8503_v13  ;;  %6093 = vmatpush1.bf16.msra.mxu1 %v8506_v14  ;;  %v8598_v13 = vld [vmem:[%s9034_s15 + $0x13ec] ss:$16 sps:$4 sm:$0xff]   ;;  %v9804_v14 = vrot.slane %v9796_v9, %v9104_v50 }
 0x282   : > { %5561 = vmatprep.subr.bf16.mxu0 %v8511_v15  ;;  %6094 = vmatprep.subr.bf16.mxu1 %v8514_v16  ;;  %v8593_v15 = vld [vmem:[%s9034_s15 + $0x13e0] ss:$16 sps:$4 sm:$0xff]   ;;  %v8596_v16 = vld [vmem:[%s9034_s15 + $0x13e8] ss:$16 sps:$4 sm:$0xff]  }
 0x283   : > { %5591 = vmatprep.mubr.bf16.mxu0 %v454_v17  ;;  %6124 = vmatprep.mubr.bf16.mxu1 %v454_v17  ;;  %v8602_v17 = vld [vmem:[%s9034_s15 + $0x1404] ss:$16 sps:$4 sm:$0xff]  }
 0x285   : > { %5562 = vmatpush1.bf16.msra.mxu0 %v8509_v63  ;;  %6095 = vmatpush1.bf16.msra.mxu1 %v8512_v18  ;;  %v8605_v63 = vld [vmem:[%s9034_s15 + $0x140c] ss:$16 sps:$4 sm:$0xff]   ;;  %v401_v18 = vcombine.high %v9804_v14, %v9804_v14 }
 0x286   : > { %5563 = vmatprep.subr.bf16.mxu0 %v8517_v19  ;;  %6096 = vmatprep.subr.bf16.mxu1 %v8520_v20  ;;  %v453_v19 = vpack.c.bf16 %v9727_v7, %v9727_v7  ;;  %v8600_v20 = vld [vmem:[%s9034_s15 + $0x1400] ss:$16 sps:$4 sm:$0xff]  }
 0x287   : > { %v8606_v7 = vld [vmem:[%s9034_s15 + $0x1420] ss:$16 sps:$4 sm:$0xff]  }
 0x289   : > { %5564 = vmatpush1.bf16.msra.mxu0 %v8515_v21  ;;  %6097 = vmatpush1.bf16.msra.mxu1 %v8518_v22  ;;  %v8603_v21 = vld [vmem:[%s9034_s15 + $0x1408] ss:$16 sps:$4 sm:$0xff]   ;;  %v8608_v22 = vld [vmem:[%s9034_s15 + $0x1424] ss:$16 sps:$4 sm:$0xff]  }
 0x28a   : > { %5565 = vmatprep.subr.bf16.mxu0 %v8523_v23  ;;  %6098 = vmatprep.subr.bf16.mxu1 %v8526_v25  ;;  %v8611_v23 = vld [vmem:[%s9034_s15 + $0x142c] ss:$16 sps:$4 sm:$0xff]   ;;  %v456_v25 = vpack.c.bf16 %v401_v18, %v401_v18  ;;  %v8684_v18 = vld [vmem:[%s9034_s15 + $0x15c0] ss:$16 sps:$4 sm:$0xff]  }
 0x28d   : > { %5566 = vmatpush1.bf16.msra.mxu0 %v8521_v24  ;;  %6099 = vmatpush1.bf16.msra.mxu1 %v8524_v10  ;;  %v8609_v24 = vld [vmem:[%s9034_s15 + $0x1428] ss:$16 sps:$4 sm:$0xff]   ;;  %v8614_v10 = vld [vmem:[%s9034_s15 + $0x1444] ss:$16 sps:$4 sm:$0xff]  }
 0x28e   : > { %5567 = vmatprep.subr.bf16.mxu0 %v8529_v28  ;;  %6100 = vmatprep.subr.bf16.mxu1 %v8532_v30  ;;  %v8617_v28 = vld [vmem:[%s9034_s15 + $0x144c] ss:$16 sps:$4 sm:$0xff]   ;;  %v8612_v30 = vld [vmem:[%s9034_s15 + $0x1440] ss:$16 sps:$4 sm:$0xff]  }
 0x291   : > { %5568 = vmatpush1.bf16.msra.mxu0 %v8527_v31  ;;  %6101 = vmatpush1.bf16.msra.mxu1 %v8530_v32  ;;  %v8615_v31 = vld [vmem:[%s9034_s15 + $0x1448] ss:$16 sps:$4 sm:$0xff]   ;;  %v8620_v32 = vld [vmem:[%s9034_s15 + $0x1464] ss:$16 sps:$4 sm:$0xff]  }
 0x292   : > { %5569 = vmatprep.subr.bf16.mxu0 %v8535_v34  ;;  %6102 = vmatprep.subr.bf16.mxu1 %v8538_v35  ;;  %v8623_v34 = vld [vmem:[%s9034_s15 + $0x146c] ss:$16 sps:$4 sm:$0xff]   ;;  %v8618_v35 = vld [vmem:[%s9034_s15 + $0x1460] ss:$16 sps:$4 sm:$0xff]  }
 0x295   : > { %5570 = vmatpush1.bf16.msra.mxu0 %v8533_v36  ;;  %6103 = vmatpush1.bf16.msra.mxu1 %v8536_v27  ;;  %v8621_v36 = vld [vmem:[%s9034_s15 + $0x1468] ss:$16 sps:$4 sm:$0xff]   ;;  %v8626_v27 = vld [vmem:[%s9034_s15 + $0x1484] ss:$16 sps:$4 sm:$0xff]  }
 0x296   : > { %5571 = vmatprep.subr.bf16.mxu0 %v8541_v37  ;;  %6104 = vmatprep.subr.bf16.mxu1 %v8544_v38  ;;  %v8629_v37 = vld [vmem:[%s9034_s15 + $0x148c] ss:$16 sps:$4 sm:$0xff]   ;;  %v8624_v38 = vld [vmem:[%s9034_s15 + $0x1480] ss:$16 sps:$4 sm:$0xff]  }
 0x299   : > { %5572 = vmatpush1.bf16.msra.mxu0 %v8539_v39  ;;  %6105 = vmatpush1.bf16.msra.mxu1 %v8542_v40  ;;  %v8627_v39 = vld [vmem:[%s9034_s15 + $0x1488] ss:$16 sps:$4 sm:$0xff]   ;;  %v8632_v40 = vld [vmem:[%s9034_s15 + $0x14a4] ss:$16 sps:$4 sm:$0xff]  }
 0x29a   : > { %5573 = vmatprep.subr.bf16.mxu0 %v8547_v29  ;;  %6106 = vmatprep.subr.bf16.mxu1 %v8550_v42  ;;  %v8635_v29 = vld [vmem:[%s9034_s15 + $0x14ac] ss:$16 sps:$4 sm:$0xff]   ;;  %v8630_v42 = vld [vmem:[%s9034_s15 + $0x14a0] ss:$16 sps:$4 sm:$0xff]  }
 0x29d   : > { %5574 = vmatpush1.bf16.msra.mxu0 %v8545_v45  ;;  %6107 = vmatpush1.bf16.msra.mxu1 %v8548_v46  ;;  %v8633_v45 = vld [vmem:[%s9034_s15 + $0x14a8] ss:$16 sps:$4 sm:$0xff]   ;;  %v8638_v46 = vld [vmem:[%s9034_s15 + $0x14c4] ss:$16 sps:$4 sm:$0xff]  }
 0x29e   : > { %5575 = vmatprep.subr.bf16.mxu0 %v8553_v26  ;;  %6108 = vmatprep.subr.bf16.mxu1 %v8556_v47  ;;  %v8641_v26 = vld [vmem:[%s9034_s15 + $0x14cc] ss:$16 sps:$4 sm:$0xff]   ;;  %v8636_v47 = vld [vmem:[%s9034_s15 + $0x14c0] ss:$16 sps:$4 sm:$0xff]  }
 0x2a1   : > { %5576 = vmatpush1.bf16.msra.mxu0 %v8551_v49  ;;  %6109 = vmatpush1.bf16.msra.mxu1 %v8554_v51  ;;  %v8639_v49 = vld [vmem:[%s9034_s15 + $0x14c8] ss:$16 sps:$4 sm:$0xff]   ;;  %v8644_v51 = vld [vmem:[%s9034_s15 + $0x14e4] ss:$16 sps:$4 sm:$0xff]  }
 0x2a2   : > { %5577 = vmatprep.subr.bf16.mxu0 %v8559_v52  ;;  %6110 = vmatprep.subr.bf16.mxu1 %v8562_v33  ;;  %v8647_v52 = vld [vmem:[%s9034_s15 + $0x14ec] ss:$16 sps:$4 sm:$0xff]   ;;  %v8642_v33 = vld [vmem:[%s9034_s15 + $0x14e0] ss:$16 sps:$4 sm:$0xff]  }
 0x2a5   : > { %5578 = vmatpush1.bf16.msra.mxu0 %v8557_v53  ;;  %6111 = vmatpush1.bf16.msra.mxu1 %v8560_v54  ;;  %v8645_v53 = vld [vmem:[%s9034_s15 + $0x14e8] ss:$16 sps:$4 sm:$0xff]   ;;  %v8650_v54 = vld [vmem:[%s9034_s15 + $0x1504] ss:$16 sps:$4 sm:$0xff]  }
 0x2a6   : > { %5579 = vmatprep.subr.bf16.mxu0 %v8565_v55  ;;  %6112 = vmatprep.subr.bf16.mxu1 %v8568_v56  ;;  %v8653_v55 = vld [vmem:[%s9034_s15 + $0x150c] ss:$16 sps:$4 sm:$0xff]   ;;  %v8648_v56 = vld [vmem:[%s9034_s15 + $0x1500] ss:$16 sps:$4 sm:$0xff]  }
 0x2a9   : > { %5580 = vmatpush1.bf16.msra.mxu0 %v8563_v43  ;;  %6113 = vmatpush1.bf16.msra.mxu1 %v8566_v58  ;;  %v8651_v43 = vld [vmem:[%s9034_s15 + $0x1508] ss:$16 sps:$4 sm:$0xff]   ;;  %v8656_v58 = vld [vmem:[%s9034_s15 + $0x1524] ss:$16 sps:$4 sm:$0xff]  }
 0x2aa   : > { %5581 = vmatprep.subr.bf16.mxu0 %v8571_v41  ;;  %6114 = vmatprep.subr.bf16.mxu1 %v8574_v60  ;;  %v8659_v41 = vld [vmem:[%s9034_s15 + $0x152c] ss:$16 sps:$4 sm:$0xff]   ;;  %v8654_v60 = vld [vmem:[%s9034_s15 + $0x1520] ss:$16 sps:$4 sm:$0xff]  }
 0x2ad   : > { %5582 = vmatpush1.bf16.msra.mxu0 %v8569_v61  ;;  %6115 = vmatpush1.bf16.msra.mxu1 %v8572_v62  ;;  %v8657_v61 = vld [vmem:[%s9034_s15 + $0x1528] ss:$16 sps:$4 sm:$0xff]   ;;  %v8662_v62 = vld [vmem:[%s9034_s15 + $0x1544] ss:$16 sps:$4 sm:$0xff]  }
 0x2ae   : > { %5583 = vmatprep.subr.bf16.mxu0 %v8577_v0  ;;  %6116 = vmatprep.subr.bf16.mxu1 %v8580_v1  ;;  %v8665_v0 = vld [vmem:[%s9034_s15 + $0x154c] ss:$16 sps:$4 sm:$0xff]   ;;  %v8660_v1 = vld [vmem:[%s9034_s15 + $0x1540] ss:$16 sps:$4 sm:$0xff]  }
 0x2b1   : > { %5584 = vmatpush1.bf16.msra.mxu0 %v8575_v2  ;;  %6117 = vmatpush1.bf16.msra.mxu1 %v8578_v48  ;;  %v8663_v2 = vld [vmem:[%s9034_s15 + $0x1548] ss:$16 sps:$4 sm:$0xff]   ;;  %v8668_v48 = vld [vmem:[%s9034_s15 + $0x1564] ss:$16 sps:$4 sm:$0xff]  }
 0x2b2   : > { %5585 = vmatprep.subr.bf16.mxu0 %v8583_v3  ;;  %6118 = vmatprep.subr.bf16.mxu1 %v8586_v4  ;;  %v8671_v3 = vld [vmem:[%s9034_s15 + $0x156c] ss:$16 sps:$4 sm:$0xff]   ;;  %v8666_v4 = vld [vmem:[%s9034_s15 + $0x1560] ss:$16 sps:$4 sm:$0xff]  }
 0x2b5   : > { %5586 = vmatpush1.bf16.msra.mxu0 %v8581_v5  ;;  %6119 = vmatpush1.bf16.msra.mxu1 %v8584_v6  ;;  %v8669_v5 = vld [vmem:[%s9034_s15 + $0x1568] ss:$16 sps:$4 sm:$0xff]   ;;  %v8674_v6 = vld [vmem:[%s9034_s15 + $0x1584] ss:$16 sps:$4 sm:$0xff]  }
 0x2b6   : > { %5587 = vmatprep.subr.bf16.mxu0 %v8589_v59  ;;  %6120 = vmatprep.subr.bf16.mxu1 %v8592_v8  ;;  %v8677_v59 = vld [vmem:[%s9034_s15 + $0x158c] ss:$16 sps:$4 sm:$0xff]   ;;  %v8672_v8 = vld [vmem:[%s9034_s15 + $0x1580] ss:$16 sps:$4 sm:$0xff]  }
 0x2b9   : > { %5588 = vmatpush1.bf16.msra.mxu0 %v8587_v57  ;;  %6121 = vmatpush1.bf16.msra.mxu1 %v8590_v11  ;;  %v8675_v57 = vld [vmem:[%s9034_s15 + $0x1588] ss:$16 sps:$4 sm:$0xff]   ;;  %v8680_v11 = vld [vmem:[%s9034_s15 + $0x15a4] ss:$16 sps:$4 sm:$0xff]  }
 0x2ba   : > { %5589 = vmatprep.subr.bf16.mxu0 %v8595_v12  ;;  %6122 = vmatprep.subr.bf16.mxu1 %v8598_v13  ;;  %v8683_v12 = vld [vmem:[%s9034_s15 + $0x15ac] ss:$16 sps:$4 sm:$0xff]   ;;  %v8678_v13 = vld [vmem:[%s9034_s15 + $0x15a0] ss:$16 sps:$4 sm:$0xff]  }
 0x2bd   : > { %5590 = vmatpush1.bf16.msra.mxu0 %v8593_v15  ;;  %6123 = vmatpush1.bf16.msra.mxu1 %v8596_v16  ;;  %v8681_v15 = vld [vmem:[%s9034_s15 + $0x15a8] ss:$16 sps:$4 sm:$0xff]   ;;  %v8686_v16 = vld [vmem:[%s9034_s15 + $0x15c4] ss:$16 sps:$4 sm:$0xff]  }
 0x2be   : > { %5600 = vmatprep.subr.bf16.mxu0 %v8602_v17  ;;  %6133 = vmatprep.subr.bf16.mxu1 %v8605_v63  ;;  %v8689_v17 = vld [vmem:[%s9034_s15 + $0x15cc] ss:$16 sps:$4 sm:$0xff]   ;;  %v386_v63 = vcombine.high %v9796_v9, %v9796_v9  ;;  %v8690_v9 = vld [vmem:[%s9034_s15 + $0x15e0] ss:$16 sps:$4 sm:$0xff]  }
 0x2c0   : > { %5592 = vmatmul.mubr.bf16.vlgmr.msra.gmra.mrb[0].mxu0 %v453_v19  ;;  %6125 = vmatmul.mubr.bf16.vlgmr.msra.gmra.mrb[0].mxu1 %v453_v19  ;;  %v8687_v19 = vld [vmem:[%s9034_s15 + $0x15c8] ss:$16 sps:$4 sm:$0xff]  }
 0x2c1   : > { %5601 = vmatpush1.bf16.msra.mxu0 %v8600_v20  ;;  %6134 = vmatpush1.bf16.msra.mxu1 %v8603_v21  ;;  %v8692_v20 = vld [vmem:[%s9034_s15 + $0x15e4] ss:$16 sps:$4 sm:$0xff]   ;;  %v8695_v21 = vld [vmem:[%s9034_s15 + $0x15ec] ss:$16 sps:$4 sm:$0xff]  }
 0x2c2   : > { %5602 = vmatprep.subr.bf16.mxu0 %v8608_v22  ;;  %6135 = vmatprep.subr.bf16.mxu1 %v8611_v23  ;;  %v9877_v22 = vrot.slane %v386_v63, %v9104_v50  ;;  %v8693_v23 = vld [vmem:[%s9034_s15 + $0x15e8] ss:$16 sps:$4 sm:$0xff]   ;;  %v8696_v50 = vld [vmem:[%s9034_s15 + $0x1600] ss:$16 sps:$4 sm:$0xff]   ;;  %v8776_v63 = vld [vmem:[%s9034_s15 + $0x17a4] ss:$16 sps:$4 sm:$0xff]  }
 0x2c3   : > { %5632 = vmatprep.mubr.bf16.mxu0 %v456_v25  ;;  %6165 = vmatprep.mubr.bf16.mxu1 %v456_v25  ;;  %v8698_v25 = vld [vmem:[%s9034_s15 + $0x1604] ss:$16 sps:$4 sm:$0xff]  }
 0x2c5   : > { %5603 = vmatpush1.bf16.msra.mxu0 %v8606_v7  ;;  %6136 = vmatpush1.bf16.msra.mxu1 %v8609_v24  ;;  %v8701_v7 = vld [vmem:[%s9034_s15 + $0x160c] ss:$16 sps:$4 sm:$0xff]   ;;  %v402_v24 = vcombine.high %v9877_v22, %v9877_v22 }
 0x2c6   : > { %5604 = vmatprep.subr.bf16.mxu0 %v8614_v10  ;;  %6137 = vmatprep.subr.bf16.mxu1 %v8617_v28  ;;  %v455_v10 = vpack.c.bf16 %v9804_v14, %v9804_v14  ;;  %v8699_v28 = vld [vmem:[%s9034_s15 + $0x1608] ss:$16 sps:$4 sm:$0xff]   ;;  %v8702_v14 = vld [vmem:[%s9034_s15 + $0x1620] ss:$16 sps:$4 sm:$0xff]  }
 0x2c9   : > { %5605 = vmatpush1.bf16.msra.mxu0 %v8612_v30  ;;  %6138 = vmatpush1.bf16.msra.mxu1 %v8615_v31  ;;  %v8704_v30 = vld [vmem:[%s9034_s15 + $0x1624] ss:$16 sps:$4 sm:$0xff]   ;;  %v8707_v31 = vld [vmem:[%s9034_s15 + $0x162c] ss:$16 sps:$4 sm:$0xff]  }
 0x2ca   : > { %5606 = vmatprep.subr.bf16.mxu0 %v8620_v32  ;;  %6139 = vmatprep.subr.bf16.mxu1 %v8623_v34  ;;  %v458_v32 = vpack.c.bf16 %v402_v24, %v402_v24  ;;  %v8705_v34 = vld [vmem:[%s9034_s15 + $0x1628] ss:$16 sps:$4 sm:$0xff]   ;;  %v8791_v24 = vld [vmem:[%s9034_s15 + $0x17ec] ss:$16 sps:$4 sm:$0xff]  }
 0x2cd   : > { %5607 = vmatpush1.bf16.msra.mxu0 %v8618_v35  ;;  %6140 = vmatpush1.bf16.msra.mxu1 %v8621_v36  ;;  %v8710_v35 = vld [vmem:[%s9034_s15 + $0x1644] ss:$16 sps:$4 sm:$0xff]   ;;  %v8713_v36 = vld [vmem:[%s9034_s15 + $0x164c] ss:$16 sps:$4 sm:$0xff]  }
 0x2ce   : > { %5608 = vmatprep.subr.bf16.mxu0 %v8626_v27  ;;  %6141 = vmatprep.subr.bf16.mxu1 %v8629_v37  ;;  %v8708_v27 = vld [vmem:[%s9034_s15 + $0x1640] ss:$16 sps:$4 sm:$0xff]   ;;  %v8711_v37 = vld [vmem:[%s9034_s15 + $0x1648] ss:$16 sps:$4 sm:$0xff]  }
 0x2d1   : > { %5609 = vmatpush1.bf16.msra.mxu0 %v8624_v38  ;;  %6142 = vmatpush1.bf16.msra.mxu1 %v8627_v39  ;;  %v8716_v38 = vld [vmem:[%s9034_s15 + $0x1664] ss:$16 sps:$4 sm:$0xff]   ;;  %v8719_v39 = vld [vmem:[%s9034_s15 + $0x166c] ss:$16 sps:$4 sm:$0xff]  }
 0x2d2   : > { %5610 = vmatprep.subr.bf16.mxu0 %v8632_v40  ;;  %6143 = vmatprep.subr.bf16.mxu1 %v8635_v29  ;;  %v8714_v40 = vld [vmem:[%s9034_s15 + $0x1660] ss:$16 sps:$4 sm:$0xff]   ;;  %v8717_v29 = vld [vmem:[%s9034_s15 + $0x1668] ss:$16 sps:$4 sm:$0xff]  }
 0x2d5   : > { %5611 = vmatpush1.bf16.msra.mxu0 %v8630_v42  ;;  %6144 = vmatpush1.bf16.msra.mxu1 %v8633_v45  ;;  %v8722_v42 = vld [vmem:[%s9034_s15 + $0x1684] ss:$16 sps:$4 sm:$0xff]   ;;  %v8725_v45 = vld [vmem:[%s9034_s15 + $0x168c] ss:$16 sps:$4 sm:$0xff]  }
 0x2d6   : > { %5612 = vmatprep.subr.bf16.mxu0 %v8638_v46  ;;  %6145 = vmatprep.subr.bf16.mxu1 %v8641_v26  ;;  %v8720_v46 = vld [vmem:[%s9034_s15 + $0x1680] ss:$16 sps:$4 sm:$0xff]   ;;  %v8723_v26 = vld [vmem:[%s9034_s15 + $0x1688] ss:$16 sps:$4 sm:$0xff]  }
 0x2d9   : > { %5613 = vmatpush1.bf16.msra.mxu0 %v8636_v47  ;;  %6146 = vmatpush1.bf16.msra.mxu1 %v8639_v49  ;;  %v8728_v47 = vld [vmem:[%s9034_s15 + $0x16a4] ss:$16 sps:$4 sm:$0xff]   ;;  %v8731_v49 = vld [vmem:[%s9034_s15 + $0x16ac] ss:$16 sps:$4 sm:$0xff]  }
 0x2da   : > { %5614 = vmatprep.subr.bf16.mxu0 %v8644_v51  ;;  %6147 = vmatprep.subr.bf16.mxu1 %v8647_v52  ;;  %v8726_v51 = vld [vmem:[%s9034_s15 + $0x16a0] ss:$16 sps:$4 sm:$0xff]   ;;  %v8729_v52 = vld [vmem:[%s9034_s15 + $0x16a8] ss:$16 sps:$4 sm:$0xff]  }
 0x2dd   : > { %5615 = vmatpush1.bf16.msra.mxu0 %v8642_v33  ;;  %6148 = vmatpush1.bf16.msra.mxu1 %v8645_v53  ;;  %v8734_v33 = vld [vmem:[%s9034_s15 + $0x16c4] ss:$16 sps:$4 sm:$0xff]   ;;  %v8737_v53 = vld [vmem:[%s9034_s15 + $0x16cc] ss:$16 sps:$4 sm:$0xff]  }
 0x2de   : > { %5616 = vmatprep.subr.bf16.mxu0 %v8650_v54  ;;  %6149 = vmatprep.subr.bf16.mxu1 %v8653_v55  ;;  %v8732_v54 = vld [vmem:[%s9034_s15 + $0x16c0] ss:$16 sps:$4 sm:$0xff]   ;;  %v8735_v55 = vld [vmem:[%s9034_s15 + $0x16c8] ss:$16 sps:$4 sm:$0xff]  }
 0x2e1   : > { %5617 = vmatpush1.bf16.msra.mxu0 %v8648_v56  ;;  %6150 = vmatpush1.bf16.msra.mxu1 %v8651_v43  ;;  %v8740_v56 = vld [vmem:[%s9034_s15 + $0x16e4] ss:$16 sps:$4 sm:$0xff]   ;;  %v8743_v43 = vld [vmem:[%s9034_s15 + $0x16ec] ss:$16 sps:$4 sm:$0xff]  }
 0x2e2   : > { %5618 = vmatprep.subr.bf16.mxu0 %v8656_v58  ;;  %6151 = vmatprep.subr.bf16.mxu1 %v8659_v41  ;;  %v8738_v58 = vld [vmem:[%s9034_s15 + $0x16e0] ss:$16 sps:$4 sm:$0xff]   ;;  %v8741_v41 = vld [vmem:[%s9034_s15 + $0x16e8] ss:$16 sps:$4 sm:$0xff]  }
 0x2e5   : > { %5619 = vmatpush1.bf16.msra.mxu0 %v8654_v60  ;;  %6152 = vmatpush1.bf16.msra.mxu1 %v8657_v61  ;;  %v8746_v60 = vld [vmem:[%s9034_s15 + $0x1704] ss:$16 sps:$4 sm:$0xff]   ;;  %v8749_v61 = vld [vmem:[%s9034_s15 + $0x170c] ss:$16 sps:$4 sm:$0xff]  }
 0x2e6   : > { %5620 = vmatprep.subr.bf16.mxu0 %v8662_v62  ;;  %6153 = vmatprep.subr.bf16.mxu1 %v8665_v0  ;;  %v8744_v62 = vld [vmem:[%s9034_s15 + $0x1700] ss:$16 sps:$4 sm:$0xff]   ;;  %v8747_v0 = vld [vmem:[%s9034_s15 + $0x1708] ss:$16 sps:$4 sm:$0xff]  }
 0x2e9   : > { %5621 = vmatpush1.bf16.msra.mxu0 %v8660_v1  ;;  %6154 = vmatpush1.bf16.msra.mxu1 %v8663_v2  ;;  %v8752_v1 = vld [vmem:[%s9034_s15 + $0x1724] ss:$16 sps:$4 sm:$0xff]   ;;  %v8755_v2 = vld [vmem:[%s9034_s15 + $0x172c] ss:$16 sps:$4 sm:$0xff]  }
 0x2ea   : > { %5622 = vmatprep.subr.bf16.mxu0 %v8668_v48  ;;  %6155 = vmatprep.subr.bf16.mxu1 %v8671_v3  ;;  %v8750_v48 = vld [vmem:[%s9034_s15 + $0x1720] ss:$16 sps:$4 sm:$0xff]   ;;  %v8753_v3 = vld [vmem:[%s9034_s15 + $0x1728] ss:$16 sps:$4 sm:$0xff]  }
 0x2ed   : > { %5623 = vmatpush1.bf16.msra.mxu0 %v8666_v4  ;;  %6156 = vmatpush1.bf16.msra.mxu1 %v8669_v5  ;;  %v8758_v4 = vld [vmem:[%s9034_s15 + $0x1744] ss:$16 sps:$4 sm:$0xff]   ;;  %v8761_v5 = vld [vmem:[%s9034_s15 + $0x174c] ss:$16 sps:$4 sm:$0xff]  }
 0x2ee   : > { %5624 = vmatprep.subr.bf16.mxu0 %v8674_v6  ;;  %6157 = vmatprep.subr.bf16.mxu1 %v8677_v59  ;;  %v8756_v6 = vld [vmem:[%s9034_s15 + $0x1740] ss:$16 sps:$4 sm:$0xff]   ;;  %v8759_v59 = vld [vmem:[%s9034_s15 + $0x1748] ss:$16 sps:$4 sm:$0xff]  }
 0x2f1   : > { %5625 = vmatpush1.bf16.msra.mxu0 %v8672_v8  ;;  %6158 = vmatpush1.bf16.msra.mxu1 %v8675_v57  ;;  %v8764_v8 = vld [vmem:[%s9034_s15 + $0x1764] ss:$16 sps:$4 sm:$0xff]   ;;  %v8767_v57 = vld [vmem:[%s9034_s15 + $0x176c] ss:$16 sps:$4 sm:$0xff]  }
 0x2f2   : > { %5626 = vmatprep.subr.bf16.mxu0 %v8680_v11  ;;  %6159 = vmatprep.subr.bf16.mxu1 %v8683_v12  ;;  %v8762_v11 = vld [vmem:[%s9034_s15 + $0x1760] ss:$16 sps:$4 sm:$0xff]   ;;  %v8765_v12 = vld [vmem:[%s9034_s15 + $0x1768] ss:$16 sps:$4 sm:$0xff]  }
 0x2f5   : > { %5627 = vmatpush1.bf16.msra.mxu0 %v8678_v13  ;;  %6160 = vmatpush1.bf16.msra.mxu1 %v8681_v15  ;;  %v8770_v13 = vld [vmem:[%s9034_s15 + $0x1784] ss:$16 sps:$4 sm:$0xff]   ;;  %v8773_v15 = vld [vmem:[%s9034_s15 + $0x178c] ss:$16 sps:$4 sm:$0xff]  }
 0x2f6   : > { %5628 = vmatprep.subr.bf16.mxu0 %v8686_v16  ;;  %6161 = vmatprep.subr.bf16.mxu1 %v8689_v17  ;;  %v8768_v16 = vld [vmem:[%s9034_s15 + $0x1780] ss:$16 sps:$4 sm:$0xff]   ;;  %v8771_v17 = vld [vmem:[%s9034_s15 + $0x1788] ss:$16 sps:$4 sm:$0xff]  }
 0x2f9   : > { %5629 = vmatpush1.bf16.msra.mxu0 %v8684_v18  ;;  %6162 = vmatpush1.bf16.msra.mxu1 %v8687_v19  ;;  %v8779_v18 = vld [vmem:[%s9034_s15 + $0x17ac] ss:$16 sps:$4 sm:$0xff]   ;;  %v8774_v19 = vld [vmem:[%s9034_s15 + $0x17a0] ss:$16 sps:$4 sm:$0xff]  }
 0x2fa   : > { %5630 = vmatprep.subr.bf16.mxu0 %v8692_v20  ;;  %6163 = vmatprep.subr.bf16.mxu1 %v8695_v21  ;;  %v8777_v20 = vld [vmem:[%s9034_s15 + $0x17a8] ss:$16 sps:$4 sm:$0xff]   ;;  %v8782_v21 = vld [vmem:[%s9034_s15 + $0x17c4] ss:$16 sps:$4 sm:$0xff]  }
 0x2fd   : > { %5631 = vmatpush1.bf16.msra.mxu0 %v8690_v9  ;;  %6164 = vmatpush1.bf16.msra.mxu1 %v8693_v23  ;;  %v8785_v9 = vld [vmem:[%s9034_s15 + $0x17cc] ss:$16 sps:$4 sm:$0xff]   ;;  %v8780_v23 = vld [vmem:[%s9034_s15 + $0x17c0] ss:$16 sps:$4 sm:$0xff]  }
 0x2fe   : > { %5641 = vmatprep.subr.bf16.mxu0 %v8698_v25  ;;  %6174 = vmatprep.subr.bf16.mxu1 %v8701_v7  ;;  %v8783_v25 = vld [vmem:[%s9034_s15 + $0x17c8] ss:$16 sps:$4 sm:$0xff]   ;;  %v8788_v7 = vld [vmem:[%s9034_s15 + $0x17e4] ss:$16 sps:$4 sm:$0xff]  }
 0x300   : > { %5633 = vmatmul.mubr.bf16.vlgmr.msra.gmra.mrb[0].mxu0 %v455_v10  ;;  %6166 = vmatmul.mubr.bf16.vlgmr.msra.gmra.mrb[0].mxu1 %v455_v10  ;;  %v8786_v10 = vld [vmem:[%s9034_s15 + $0x17e0] ss:$16 sps:$4 sm:$0xff]  }
 0x301   : > { %5642 = vmatpush1.bf16.msra.mxu0 %v8696_v50  ;;  %6175 = vmatpush1.bf16.msra.mxu1 %v8699_v28  ;;  %v8789_v50 = vld [vmem:[%s9034_s15 + $0x17e8] ss:$16 sps:$4 sm:$0xff]   ;;  %v8795_v28 = vld [vmem:[%s9034_s15 + $0x1804] ss:$16 sps:$4 sm:$0xff]  }
 0x302   : > { %5643 = vmatprep.subr.bf16.mxu0 %v8704_v30  ;;  %6176 = vmatprep.subr.bf16.mxu1 %v8707_v31  ;;  %v8798_v30 = vld [vmem:[%s9034_s15 + $0x180c] ss:$16 sps:$4 sm:$0xff]   ;;  %v457_v31 = vpack.c.bf16 %v9877_v22, %v9877_v22  ;;  %v8802_v22 = vld [vmem:[%s9034_s15 + $0x1828] ss:$16 sps:$4 sm:$0xff]  }
 0x303   : > { %5673 = vmatprep.mubr.bf16.mxu0 %v458_v32  ;;  %6206 = vmatprep.mubr.bf16.mxu1 %v458_v32  ;;  %v8793_v32 = vld [vmem:[%s9034_s15 + $0x1800] ss:$16 sps:$4 sm:$0xff]  }
 0x305   : > { %5644 = vmatpush1.bf16.msra.mxu0 %v8702_v14  ;;  %6177 = vmatpush1.bf16.msra.mxu1 %v8705_v34  ;;  %v8796_v14 = vld [vmem:[%s9034_s15 + $0x1808] ss:$16 sps:$4 sm:$0xff]   ;;  %v8801_v34 = vld [vmem:[%s9034_s15 + $0x1824] ss:$16 sps:$4 sm:$0xff]  }
 0x306   : > { %5645 = vmatprep.subr.bf16.mxu0 %v8710_v35  ;;  %6178 = vmatprep.subr.bf16.mxu1 %v8713_v36  ;;  %v8804_v35 = vld [vmem:[%s9034_s15 + $0x182c] ss:$16 sps:$4 sm:$0xff]   ;;  %v8799_v36 = vld [vmem:[%s9034_s15 + $0x1820] ss:$16 sps:$4 sm:$0xff]  }
 0x309   : > { %5646 = vmatpush1.bf16.msra.mxu0 %v8708_v27  ;;  %6179 = vmatpush1.bf16.msra.mxu1 %v8711_v37  ;;  %v8807_v27 = vld [vmem:[%s9034_s15 + $0x1844] ss:$16 sps:$4 sm:$0xff]   ;;  %v8810_v37 = vld [vmem:[%s9034_s15 + $0x184c] ss:$16 sps:$4 sm:$0xff]  }
 0x30a   : > { %5647 = vmatprep.subr.bf16.mxu0 %v8716_v38  ;;  %6180 = vmatprep.subr.bf16.mxu1 %v8719_v39  ;;  %v8918_v38 = vmov 0   ;;  %v8805_v39 = vld [vmem:[%s9034_s15 + $0x1840] ss:$16 sps:$4 sm:$0xff]  }
 0x30d   : > { %5648 = vmatpush1.bf16.msra.mxu0 %v8714_v40  ;;  %6181 = vmatpush1.bf16.msra.mxu1 %v8717_v29  ;;  %v8808_v40 = vld [vmem:[%s9034_s15 + $0x1848] ss:$16 sps:$4 sm:$0xff]   ;;  %v8813_v29 = vld [vmem:[%s9034_s15 + $0x1864] ss:$16 sps:$4 sm:$0xff]  }
 0x30e   : > { %5649 = vmatprep.subr.bf16.mxu0 %v8722_v42  ;;  %6182 = vmatprep.subr.bf16.mxu1 %v8725_v45  ;;  %v8816_v42 = vld [vmem:[%s9034_s15 + $0x186c] ss:$16 sps:$4 sm:$0xff]   ;;  %v6277_v45 = vld [vmem:[%s9051_s27 + $0x80] sm:$0xff] }
 0x311   : > { %5650 = vmatpush1.bf16.msra.mxu0 %v8720_v46  ;;  %6183 = vmatpush1.bf16.msra.mxu1 %v8723_v26  ;;  %v6278_v46 = vld [vmem:[%s9051_s27 + $0x88] sm:$0xff]  ;;  %v6309_v26 = vld [vmem:[%s9051_s27 + $0x180] sm:$0xff] }
 0x312   : > { %5651 = vmatprep.subr.bf16.mxu0 %v8728_v47  ;;  %6184 = vmatprep.subr.bf16.mxu1 %v8731_v49  ;;  %v6310_v47 = vld [vmem:[%s9051_s27 + $0x188] sm:$0xff]  ;;  %v8811_v49 = vld [vmem:[%s9034_s15 + $0x1860] ss:$16 sps:$4 sm:$0xff]  }
 0x315   : > { %5652 = vmatpush1.bf16.msra.mxu0 %v8726_v51  ;;  %6185 = vmatpush1.bf16.msra.mxu1 %v8729_v52  ;;  %v8814_v51 = vld [vmem:[%s9034_s15 + $0x1868] ss:$16 sps:$4 sm:$0xff]   ;;  %v6556_v52 = vld.sshfl [vmem:[%s10081_s0 + $0x30] sm:$0x3 pattern:$0x76325410] }
 0x316   : > { %5653 = vmatprep.subr.bf16.mxu0 %v8734_v33  ;;  %6186 = vmatprep.subr.bf16.mxu1 %v8737_v53  ;;  %v6261_v33 = vld [vmem:[%s9051_s27] sm:$0xff]  ;;  %v6262_v53 = vld [vmem:[%s9051_s27 + $0x8] sm:$0xff] }
 0x319   : > { %5654 = vmatpush1.bf16.msra.mxu0 %v8732_v54  ;;  %6187 = vmatpush1.bf16.msra.mxu1 %v8735_v55  ;;  %v7418_v54 = vpack.c.bf16 %v6278_v46, %v6277_v45  ;;  %v7450_v55 = vpack.c.bf16 %v6310_v47, %v6309_v26  ;;  %v6288_v45 = vld [vmem:[%s9051_s27 + $0xd8] sm:$0xff]  ;;  %v6319_v46 = vld [vmem:[%s9051_s27 + $0x1d0] sm:$0xff] }
 0x31a   : > { %5655 = vmatprep.subr.bf16.mxu0 %v8740_v56  ;;  %6188 = vmatprep.subr.bf16.mxu1 %v8743_v43  ;;  %v6293_v56 = vld [vmem:[%s9051_s27 + $0x100] sm:$0xff]  ;;  %v6294_v43 = vld [vmem:[%s9051_s27 + $0x108] sm:$0xff]  ;;  %v6320_v26 = vld [vmem:[%s9051_s27 + $0x1d8] sm:$0xff] }
 0x31d   : > { %5656 = vmatpush1.bf16.msra.mxu0 %v8738_v58  ;;  %6189 = vmatpush1.bf16.msra.mxu1 %v8741_v41  ;;  %v6279_v58 = vld [vmem:[%s9051_s27 + $0x90] sm:$0xff]  ;;  %v6280_v41 = vld [vmem:[%s9051_s27 + $0x98] sm:$0xff] }
 0x31e   : > { %5657 = vmatprep.subr.bf16.mxu0 %v8746_v60  ;;  %6190 = vmatprep.subr.bf16.mxu1 %v8749_v61  ;;  %v6311_v60 = vld [vmem:[%s9051_s27 + $0x190] sm:$0xff]  ;;  %v6312_v61 = vld [vmem:[%s9051_s27 + $0x198] sm:$0xff] }
 0x321   : > { %5658 = vmatpush1.bf16.msra.mxu0 %v8744_v62  ;;  %6191 = vmatpush1.bf16.msra.mxu1 %v8747_v0  ;;  %v459_v62 = vpack.c.bf16 %v6556_v52, %v6556_v52  ;;  %v7420_v0 = vpack.c.bf16 %v6262_v53, %v6261_v33  ;;  %v6272_v52 = vld [vmem:[%s9051_s27 + $0x58] sm:$0xff]  ;;  %v7470_v53 = vpack.c.bf16 %v6320_v26, %v6319_v46 }
 0x322   : > { %5659 = vmatprep.subr.bf16.mxu0 %v8752_v1  ;;  %6192 = vmatprep.subr.bf16.mxu1 %v8755_v2  ;;  %v7452_v1 = vpack.c.bf16 %v6294_v43, %v6293_v56  ;;  %v6263_v2 = vld [vmem:[%s9051_s27 + $0x10] sm:$0xff]  ;;  %v6289_v56 = vld [vmem:[%s9051_s27 + $0xe0] sm:$0xff]  ;;  %v6290_v43 = vld [vmem:[%s9051_s27 + $0xe8] sm:$0xff] }
 0x325   : > { %5660 = vmatpush1.bf16.msra.mxu0 %v8750_v48  ;;  %6193 = vmatpush1.bf16.msra.mxu1 %v8753_v3  ;;  %v6264_v48 = vld [vmem:[%s9051_s27 + $0x18] sm:$0xff]  ;;  %v7422_v3 = vpack.c.bf16 %v6280_v41, %v6279_v58  ;;  %v6321_v58 = vld [vmem:[%s9051_s27 + $0x1e0] sm:$0xff]  ;;  %v6322_v41 = vld [vmem:[%s9051_s27 + $0x1e8] sm:$0xff] }
 0x326   : > { %5661 = vmatprep.subr.bf16.mxu0 %v8758_v4  ;;  %6194 = vmatprep.subr.bf16.mxu1 %v8761_v5  ;;  %v7454_v4 = vpack.c.bf16 %v6312_v61, %v6311_v60  ;;  %v6295_v5 = vld [vmem:[%s9051_s27 + $0x110] sm:$0xff] }
 0x329   : > { %5662 = vmatpush1.bf16.msra.mxu0 %v8756_v6  ;;  %6195 = vmatpush1.bf16.msra.mxu1 %v8759_v59  ;;  %v6296_v6 = vld [vmem:[%s9051_s27 + $0x118] sm:$0xff]  ;;  %v6281_v59 = vld [vmem:[%s9051_s27 + $0xa0] sm:$0xff] }
 0x32a   : > { %5663 = vmatprep.subr.bf16.mxu0 %v8764_v8  ;;  %6196 = vmatprep.subr.bf16.mxu1 %v8767_v57  ;;  %v6282_v8 = vld [vmem:[%s9051_s27 + $0xa8] sm:$0xff]  ;;  %v6313_v57 = vld [vmem:[%s9051_s27 + $0x1a0] sm:$0xff] }
 0x32d   : > { %5664 = vmatpush1.bf16.msra.mxu0 %v8762_v11  ;;  %6197 = vmatpush1.bf16.msra.mxu1 %v8765_v12  ;;  %v6314_v11 = vld [vmem:[%s9051_s27 + $0x1a8] sm:$0xff]  ;;  %v7424_v12 = vpack.c.bf16 %v6264_v48, %v6263_v2  ;;  %v6305_v48 = vld [vmem:[%s9051_s27 + $0x160] sm:$0xff] }
 0x32e   : > { %5665 = vmatprep.subr.bf16.mxu0 %v8770_v13  ;;  %6198 = vmatprep.subr.bf16.mxu1 %v8773_v15  ;;  %v7456_v13 = vpack.c.bf16 %v6296_v6, %v6295_v5  ;;  %v6265_v15 = vld [vmem:[%s9051_s27 + $0x20] sm:$0xff]  ;;  %v6274_v2 = vld [vmem:[%s9051_s27 + $0x68] sm:$0xff]  ;;  %v6291_v6 = vld [vmem:[%s9051_s27 + $0xf0] sm:$0xff] }
 0x331   : > { %5666 = vmatpush1.bf16.msra.mxu0 %v8768_v16  ;;  %6199 = vmatpush1.bf16.msra.mxu1 %v8771_v17  ;;  %v6266_v16 = vld [vmem:[%s9051_s27 + $0x28] sm:$0xff]  ;;  %v7426_v17 = vpack.c.bf16 %v6282_v8, %v6281_v59  ;;  %v6292_v59 = vld [vmem:[%s9051_s27 + $0xf8] sm:$0xff]  ;;  %v6323_v8 = vld [vmem:[%s9051_s27 + $0x1f0] sm:$0xff] }
 0x332   : > { %5667 = vmatprep.subr.bf16.mxu0 %v8776_v63  ;;  %6200 = vmatprep.subr.bf16.mxu1 %v8779_v18  ;;  %v7458_v63 = vpack.c.bf16 %v6314_v11, %v6313_v57  ;;  %v6297_v18 = vld [vmem:[%s9051_s27 + $0x120] sm:$0xff]  ;;  %v7446_v57 = vpack.c.bf16 %v6292_v59, %v6291_v6  ;;  %v6324_v11 = vld [vmem:[%s9051_s27 + $0x1f8] sm:$0xff] }
 0x335   : > { %5668 = vmatpush1.bf16.msra.mxu0 %v8774_v19  ;;  %6201 = vmatpush1.bf16.msra.mxu1 %v8777_v20  ;;  %v6298_v19 = vld [vmem:[%s9051_s27 + $0x128] sm:$0xff]  ;;  %v6283_v20 = vld [vmem:[%s9051_s27 + $0xb0] sm:$0xff] }
 0x336   : > { %5669 = vmatprep.subr.bf16.mxu0 %v8782_v21  ;;  %6202 = vmatprep.subr.bf16.mxu1 %v8785_v9  ;;  %v6284_v21 = vld [vmem:[%s9051_s27 + $0xb8] sm:$0xff]  ;;  %v6315_v9 = vld [vmem:[%s9051_s27 + $0x1b0] sm:$0xff] }
 0x339   : > { %5670 = vmatpush1.bf16.msra.mxu0 %v8780_v23  ;;  %6203 = vmatpush1.bf16.msra.mxu1 %v8783_v25  ;;  %v6316_v23 = vld [vmem:[%s9051_s27 + $0x1b8] sm:$0xff]  ;;  %v7428_v25 = vpack.c.bf16 %v6266_v16, %v6265_v15  ;;  %v7478_v15 = vpack.c.bf16 %v6324_v11, %v6323_v8 }
 0x33a   : > { %5671 = vmatprep.subr.bf16.mxu0 %v8788_v7  ;;  %6204 = vmatprep.subr.bf16.mxu1 %v8791_v24  ;;  %v7460_v7 = vpack.c.bf16 %v6298_v19, %v6297_v18  ;;  %v6267_v24 = vld [vmem:[%s9051_s27 + $0x30] sm:$0xff]  ;;  %v1248_v19 = vsub.s32 0, %v9096_v44 }
 0x33d   : > { %5672 = vmatpush1.bf16.msra.mxu0 %v8786_v10  ;;  %6205 = vmatpush1.bf16.msra.mxu1 %v8789_v50  ;;  %v6268_v10 = vld [vmem:[%s9051_s27 + $0x38] sm:$0xff]  ;;  %v7430_v50 = vpack.c.bf16 %v6284_v21, %v6283_v20  ;;  %v1256_v20 = vsub.s32 2, %v9096_v44  ;;  %v1244_v21 = vld [vmem:[%s265_s12] sm:$0xf]  ;;  %s6474_s12 = sshll.u32 %s8919_s6, 4  ;;  %s6475_s12 = int_to_ptr.vmem [resolvable:$true] %s6474_s12 }
 0x33e   : > { %5682 = vmatprep.subr.bf16.mxu0 %v8795_v28  ;;  %6215 = vmatprep.subr.bf16.mxu1 %v8798_v30  ;;  %v7462_v28 = vpack.c.bf16 %v6316_v23, %v6315_v9  ;;  %v6299_v30 = vld [vmem:[%s9051_s27 + $0x130] sm:$0xff]  ;;  %v1252_v9 = vsub.s32 1, %v9096_v44  ;;  %v1260_v23 = vsub.s32 3, %v9096_v44  ;;  %p8854_p11 = scmp.lt.s32.totalorder %s6475_s12, %s6475_s12 }
 0x340   : > { %5674 = vmatmul.mubr.bf16.vlgmr.msra.gmra.mrb[0].mxu0 %v457_v31  ;;  %6207 = vmatmul.mubr.bf16.vlgmr.msra.gmra.mrb[0].mxu1 %v457_v31  ;;  %v6300_v31 = vld [vmem:[%s9051_s27 + $0x138] sm:$0xff] }
 0x341   : > { %5683 = vmatpush1.bf16.msra.mxu0 %v8793_v32  ;;  %6216 = vmatpush1.bf16.msra.mxu1 %v8796_v14  ;;  %v6285_v32 = vld [vmem:[%s9051_s27 + $0xc0] sm:$0xff]  ;;  %v6286_v14 = vld [vmem:[%s9051_s27 + $0xc8] sm:$0xff] }
 0x342   : > { %5684 = vmatprep.subr.bf16.mxu0 %v8801_v34  ;;  %6217 = vmatprep.subr.bf16.mxu1 %v8804_v35  ;;  %v6317_v34 = vld [vmem:[%s9051_s27 + $0x1c0] sm:$0xff]  ;;  %v6318_v35 = vld [vmem:[%s9051_s27 + $0x1c8] sm:$0xff] }
 0x343   : > { %5714 = vmatprep.mubr.bf16.mxu0 %v8918_v38  ;;  %6247 = vmatprep.mubr.bf16.mxu1 %v8918_v38  ;;  %v7434_v38 = vpack.c.bf16 %v6286_v14, %v6285_v32 }
 0x345   : > { %5685 = vmatpush1.bf16.msra.mxu0 %v8799_v36  ;;  %6218 = vmatpush1.bf16.msra.mxu1 %v8802_v22  ;;  %v7432_v36 = vpack.c.bf16 %v6268_v10, %v6267_v24  ;;  %v7464_v22 = vpack.c.bf16 %v6300_v31, %v6299_v30  ;;  %v1253_v24 = vrot.slane %v1244_v21, %v1252_v9 }
 0x346   : > { %5686 = vmatprep.subr.bf16.mxu0 %v8807_v27  ;;  %6219 = vmatprep.subr.bf16.mxu1 %v8810_v37  ;;  %v6269_v27 = vld [vmem:[%s9051_s27 + $0x40] sm:$0xff]  ;;  %v6270_v37 = vld [vmem:[%s9051_s27 + $0x48] sm:$0xff]  ;;  %v1261_v10 = vrot.slane %v1244_v21, %v1260_v23 }
 0x347   : > { %v7436_v47 = vpack.c.bf16 %v6270_v37, %v6269_v27 }
 0x349   : > { %5687 = vmatpush1.bf16.msra.mxu0 %v8805_v39  ;;  %6220 = vmatpush1.bf16.msra.mxu1 %v8808_v40  ;;  %v7466_v39 = vpack.c.bf16 %v6318_v35, %v6317_v34  ;;  %v6301_v40 = vld [vmem:[%s9051_s27 + $0x140] sm:$0xff] }
 0x34a   : > { %5688 = vmatprep.subr.bf16.mxu0 %v8813_v29  ;;  %6221 = vmatprep.subr.bf16.mxu1 %v8816_v42  ;;  %v6302_v29 = vld [vmem:[%s9051_s27 + $0x148] sm:$0xff]  ;;  %v6287_v42 = vld [vmem:[%s9051_s27 + $0xd0] sm:$0xff] }
 0x34b   : > { %v7438_v33 = vpack.c.bf16 %v6288_v45, %v6287_v42 }
 0x34d   : > { %5689 = vmatpush1.bf16.msra.mxu0 %v8811_v49  ;;  %6222 = vmatpush1.bf16.msra.mxu1 %v8814_v51  ;;  %v7468_v49 = vpack.c.bf16 %v6302_v29, %v6301_v40  ;;  %v6271_v51 = vld [vmem:[%s9051_s27 + $0x50] sm:$0xff] }
 0x34e   : > { %7419 = vmatprep.subr.bf16.mxu0 %v7418_v54  ;;  %7451 = vmatprep.subr.bf16.mxu1 %v7450_v55  ;;  %v6303_v54 = vld [vmem:[%s9051_s27 + $0x150] sm:$0xff]  ;;  %v6304_v55 = vld [vmem:[%s9051_s27 + $0x158] sm:$0xff]  ;;  %v7440_v60 = vpack.c.bf16 %v6272_v52, %v6271_v51 }
 0x34f   : > { %v7472_v61 = vpack.c.bf16 %v6304_v55, %v6303_v54 }
 0x350   : > { %7341 = vmatmul.mubr.msk.bf16.vlgmr.msra.gmra.mrb[0].mxu0 %vm5186_vm0, %v459_v62  ;;  %7342 = vmatmul.mubr.msk.bf16.vlgmr.msra.gmra.mrb[0].mxu1 %vm5186_vm0, %v459_v62  ;;  %v7442_v62 = vpack.c.bf16 %v6290_v43, %v6289_v56 }
 0x351   : > { %7421 = vmatpush3.bf16.msra.mxu0 %v7420_v0  ;;  %7453 = vmatpush3.bf16.msra.mxu1 %v7452_v1  ;;  %v7474_v0 = vpack.c.bf16 %v6322_v41, %v6321_v58  ;;  %v6273_v1 = vld [vmem:[%s9051_s27 + $0x60] sm:$0xff] }
 0x352   : > { %7423 = vmatprep.subr.bf16.mxu0 %v7422_v3  ;;  %7455 = vmatprep.subr.bf16.mxu1 %v7454_v4  ;;  %v7444_v3 = vpack.c.bf16 %v6274_v2, %v6273_v1  ;;  %v6306_v4 = vld [vmem:[%s9051_s27 + $0x168] sm:$0xff] }
 0x353   : > { %v7476_v5 = vpack.c.bf16 %v6306_v4, %v6305_v48 }
 0x355   : > { %7425 = vmatpush3.bf16.msra.mxu0 %v7424_v12  ;;  %7457 = vmatpush3.bf16.msra.mxu1 %v7456_v13  ;;  %v6275_v12 = vld [vmem:[%s9051_s27 + $0x70] sm:$0xff]  ;;  %v6276_v13 = vld [vmem:[%s9051_s27 + $0x78] sm:$0xff] }
 0x356   : > { %7427 = vmatprep.subr.bf16.mxu0 %v7426_v17  ;;  %7459 = vmatprep.subr.bf16.mxu1 %v7458_v63  ;;  %v7448_v16 = vpack.c.bf16 %v6276_v13, %v6275_v12  ;;  %v6307_v17 = vld [vmem:[%s9051_s27 + $0x170] sm:$0xff]  ;;  %v6308_v63 = vld [vmem:[%s9051_s27 + $0x178] sm:$0xff]  ;;  %s8847_s27 = scalar_lea.vmem %s6475_s12, 32 }
 0x357   : > { %v7480_v18 = vpack.c.bf16 %v6308_v63, %v6307_v17  ;;  %p8848_p5 = scmp.ne.s32.totalorder %s6475_s12, %s8847_s27  ;;  %p8855_p13 = scmp.lt.s32.totalorder %s8847_s27, %s8847_s27 }
 0x359   : > { %7429 = vmatpush3.bf16.msra.mxu0 %v7428_v25  ;;  %7461 = vmatpush3.bf16.msra.mxu1 %v7460_v7  ;;  %v1249_v25 = vrot.slane %v1244_v21, %v1248_v19  ;;  %v1257_v7 = vrot.slane %v1244_v21, %v1256_v20  ;;  %p8849_p6 = pnand %p8848_p5, %p7595_p4  ;;  %p8856_p0 = por %p8855_p13, %p8854_p11 }
 0x35a   : > { %7431 = vmatprep.subr.bf16.mxu0 %v7430_v50  ;;  %7463 = vmatprep.subr.bf16.mxu1 %v7462_v28 }
 0x35b   : > { %p8850_p9 = pneg %p8849_p6 }
 0x35d   : > { %7433 = vmatpush3.bf16.msra.mxu0 %v7432_v36  ;;  %7465 = vmatpush3.bf16.msra.mxu1 %v7464_v22  ;;  %p8857_p1 = pnand %p8856_p0, %p8850_p9 }
 0x35e   : > { %7435 = vmatprep.subr.bf16.mxu0 %v7434_v38  ;;  %7467 = vmatprep.subr.bf16.mxu1 %v7466_v39 }
 0x361   : > { %7437 = vmatpush3.bf16.msra.mxu0 %v7436_v47  ;;  %7469 = vmatpush3.bf16.msra.mxu1 %v7468_v49  ;;  %v6260_v49 = vld [vmem:[#allocation5] sm:$0x3] }
 0x362   : > { %7439 = vmatprep.subr.bf16.mxu0 %v7438_v33  ;;  %7471 = vmatprep.subr.bf16.mxu1 %v7470_v53 }
 0x365   : > { %7441 = vmatpush3.bf16.msra.mxu0 %v7440_v60  ;;  %7473 = vmatpush3.bf16.msra.mxu1 %v7472_v61 }
 0x366   : > { %7443 = vmatprep.subr.bf16.mxu0 %v7442_v62  ;;  %7475 = vmatprep.subr.bf16.mxu1 %v7474_v0 }
 0x369   : > { %7445 = vmatpush3.bf16.msra.mxu0 %v7444_v3  ;;  %7477 = vmatpush3.bf16.msra.mxu1 %v7476_v5 }
 0x36a   : > { %7447 = vmatprep.subr.bf16.mxu0 %v7446_v57  ;;  %7479 = vmatprep.subr.bf16.mxu1 %v7478_v15 }
 0x36d   : > { %7449 = vmatpush3.bf16.msra.mxu0 %v7448_v16  ;;  %7481 = vmatpush3.bf16.msra.mxu1 %v7480_v18 }
 0x423   : > { %v5716_v50 = vpop.f32.mrb[0].mxu0  ;;  %v6249_v28 = vpop.f32.mrb[0].mxu1 }
 0x424   : > { %v7482_v30 = vadd.f32 %v5716_v50, %v1249_v25  ;;  %v7484_v31 = vadd.f32 %v6249_v28, %v1257_v7  ;;  %v5718_v32 = vpop.f32.mrb[1].mxu0  ;;  %v6251_v14 = vpop.f32.mrb[1].mxu1 }
 0x425   : > { %v7483_v34 = vadd.f32 %v5718_v32, %v1253_v24  ;;  %v7485_v35 = vadd.f32 %v6251_v14, %v1261_v10  ;;  %v5720_v36 = vpop.f32.mrb[2].mxu0  ;;  %v6253_v22 = vpop.f32.mrb[2].mxu1 }
 0x426   : > { %v5721_v27 = vpop.f32.mrb[3].mxu0  ;;  %v6254_v37 = vpop.f32.mrb[3].mxu1  ;;  %v6256_v40 = vmax.f32 %v7482_v30, 0.0  ;;  %v6258_v44 = vmax.f32 %v7484_v31, 0.0 }
 0x427   : > { %v6257_v38 = vmax.f32 %v7483_v34, 0.0  ;;  %v6259_v39 = vmax.f32 %v7485_v35, 0.0 }
 0x429   : > { %6389 = vmatprep.mubr.f32.mxu0 %v6257_v38  ;;  %6459 = vmatprep.mubr.f32.mxu1 %v6259_v39 }
 0x42a   : > { %6390 = vmatmul.mubr.f32.vlgmr.msra.gmra.mrb[4].mxu0 %v6256_v40  ;;  %6460 = vmatmul.mubr.f32.vlgmr.msra.gmra.mrb[4].mxu1 %v6258_v44 }
 0x4fd   : > { %v7380_v29 = vpop.f32.mrb[4].mxu0  ;;  %v7415_v42 = vpop.f32.mrb[4].mxu1 }
 0x4fe   : > { %v7381_v45 = vpop.f32.mrb[5].mxu0  ;;  %v7416_v46 = vpop.f32.mrb[5].mxu1 }
 0x4ff   : > { %v7382_v26 = vadd.f32 %v7381_v45, %v7380_v29  ;;  %v7417_v47 = vadd.f32 %v7416_v46, %v7415_v42 }
 0x501   : > { %v6462_v51 = vadd.f32 %v7417_v47, %v7382_v26 }
 0x503   : > { %v6465_v52 = vadd.f32 %v6462_v51, %v6260_v49 }
 0x505   : > { %6466 = vst [vmem:[#allocation5] sm:$0x3] %v6465_v52 }
 0x506   : > { %8860 = shalt.err (!%p8857_p1)
}
 0x507   : > { %s8861_s29 = scalar_lea.hbm %s10086_s5, 32 }
 0x508   : > { %p8862_p10 = scmp.ne.s32.totalorder %s10086_s5, %s8861_s29  ;;  %p8867_p8 = scmp.lt.u32.totalorder %s8861_s29, %s10086_s5 }
 0x50a   : > { %p8863_p12 = pnand %p8862_p10, %p7595_p4 }
 0x50c   : > { %p8864_p2 = pneg %p8863_p12 }
 0x50e   : > { %p8869_p3 = pnand %p8867_p8, %p8864_p2 }
 0x510   : > { %8872 = shalt.err (!%p8869_p3)
}
 0x511   : > { %7587 = dma.vmem_to_hbm [thread:$0]  (%p7595_p4), %s6475_s12, 32, %s10086_s5, [#allocation4]  }
 0x512   : > { %8894 = dma.done.wait (%p7595_p4), [#allocation4], 32  }
 0x513   : > { %8896 = vsyncadd (%p7595_p4), [#allocation4], 4294967264 }
 0x514 PF: > { %p16_p7 = scmp.ge.s32.totalorder %s8972_s23, 6   ;;  %s10089_s18 = smov %s8903_s19 }
 0x515   : > { %s10090_s19 = smov %s8907_s20  ;;  %s10091_s20 = smov %s8982_s26 }
 0x516   : > { %s10092_s21 = smov %s8972_s23  ;;  %18 = sbr.rel (!%p16_p7) target bundleno = 4 (0x4), region = 87 }
 0x51d   :  { %6487 = vsyncpa [#allocation3], 1 }
 0x51e   :  { %6489 = vsyncpa [#allocation3 + $0x1], 1 }
 0x51f   :  { %6490 = vsyncpa [#allocation4], 1 }
 0x520   :  { %6492 = vsyncpa [#allocation4 + $0x1], 1 }

</bundles_post_ra>
